<compile_context>
chip_gen: v7x
topology: tpu7x:2x2x1
jax: 0.10.0
libtpu: 0.0.40
codegen_flags: <defaults>
</compile_context>

<pallas_src>
import functools

import jax
import jax.numpy as jnp
import numpy as np
from jax.experimental import pallas as pl
from jax.experimental.pallas import tpu as pltpu


# ---------------------------------------------------------------------------
# Kernel
# ---------------------------------------------------------------------------
def _disc_kernel(adj_ref, node_ref, mask_ref, pwide_ref,
                 gc1_ref, gc2_ref, agg_ref, d1_ref, d2_ref, outl_ref,
                 pack_ref, *, n_node, n_edge):
    f32 = jnp.float32
    adj = adj_ref[...]                       # (bt*N, N*(E+1))  k-major, all channels
    x0 = node_ref[...]                       # (bt*N, M)
    rows = adj.shape[0]
    bt = rows // n_node

    # Block-diagonal adjacency for the whole block of graphs, built ONCE per step:
    #   a_bd[b*N+n, b*E*N + e*N + j] = adj_orig[b, n, j, e+1], 0 off the diagonal.
    # pwide: constant 0/1 selector (k-major -> e-major, channel 0 dropped, tiled
    # over the bt graph column blocks); mask: constant block-diagonal indicator.
    a_bd = jnp.dot(adj, pwide_ref[...], preferred_element_type=f32) * mask_ref[...]

    def gcn(x_flat, slab):
        # slab: (8 + din, (E+1)*dout); row 0 = fused bias, rows 8: = [W_e ... | W_self]
        dout = slab.shape[-1] // (n_edge + 1)
        h_all = jnp.dot(x_flat, slab[8:], preferred_element_type=f32) + slab[0:1]
        # stack the per-edge results e-major along rows to match a_bd's columns
        pieces = [h_all[:, e * dout:(e + 1) * dout].reshape(bt, n_node, dout)
                  for e in range(n_edge)]
        h_cat = jnp.concatenate(pieces, axis=1)              # (bt, E*N, dout)
        h_cat = h_cat.reshape(bt * n_edge * n_node, dout)    # (bt*E*N, dout)
        h_self = h_all[:, n_edge * dout:]                    # (bt*N, dout)
        # edge aggregation for the whole block: one well-shaped MXU matmul
        acc = jnp.dot(a_bd, h_cat, preferred_element_type=f32)
        return jnp.tanh(acc + h_self)                        # (bt*N, dout)

    h1 = gcn(x0, gc1_ref[...])
    h2 = gcn(h1, gc2_ref[...])

    # GraphAggregation on cat(h2, node): split the fused (i|j) matmul over the two
    # operands (identical math, avoids a lane concat).
    agg = agg_ref[...]
    d2 = h2.shape[-1]
    ij = (jnp.dot(h2, agg[8:8 + d2], preferred_element_type=f32)
          + jnp.dot(x0, agg[8 + d2:], preferred_element_type=f32)
          + agg[0:1])                                        # (bt*N, 2*aux)
    aux = ij.shape[-1] // 2
    gate = jax.nn.sigmoid(ij[:, :aux]) * jnp.tanh(ij[:, aux:])     # (bt*N, aux)

    # Per-graph node pooling: cheap cross-sublane reduce over N (XLU slot).
    h_agg = jnp.tanh(jnp.sum(gate.reshape(bt, n_node, aux), axis=1))   # (bt, aux)

    def affine(x, slab):
        return jnp.dot(x, slab[8:], preferred_element_type=f32) + slab[0:1]

    # MultiDenseLayer: Linear -> (Dropout=id) -> Tanh, per layer; then output head.
    hd = jnp.tanh(affine(h_agg, d1_ref[...]))
    hd = jnp.tanh(affine(hd, d2_ref[...]))
    out = affine(hd, outl_ref[...])

    # Single lane-packed writeback: [h | out] -> (bt, L2 + 1)
    pack_ref[...] = jnp.concatenate([hd, out], axis=-1).astype(pack_ref.dtype)


# ---------------------------------------------------------------------------
# Weight packing helpers (bias folded into row 0 of an 8-row-aligned slab)
# ---------------------------------------------------------------------------
def _pack_affine(w, b):
    w = jnp.asarray(w, jnp.float32)
    b = jnp.reshape(jnp.asarray(b, jnp.float32), (1, w.shape[1]))
    pad = jnp.zeros((7, w.shape[1]), jnp.float32)
    return jnp.concatenate([b, pad, w], axis=0)              # (8 + K, D)


def _pack_gcn(we, be, ws, bs):
    """Fuse per-edge weights (E, din, dout) + self weight (din, dout) into one slab."""
    e, din, dout = we.shape
    w_all = jnp.concatenate(
        [jnp.transpose(we, (1, 0, 2)).reshape(din, e * dout), ws], axis=1)
    b_all = jnp.concatenate(
        [jnp.reshape(be, (1, e * dout)), jnp.reshape(bs, (1, dout))], axis=1)
    return _pack_affine(w_all, b_all)                        # (8 + din, (E+1)*dout)


def _block_diag_consts(block_b, n_node, n_edge, n_ch):
    """Constant selector + block-diagonal mask used to build a_bd in-kernel.

    pwide[k, b*E*N + e*N + j] = 1  iff  k == j*n_ch + (e+1)   (drops channel 0)
    mask[r, C]                = 1  iff  r // N == C // (E*N)
    """
    bn = block_b * n_node
    en = n_edge * n_node
    cols = np.arange(block_b * en)
    kp = cols % en
    e = kp // n_node
    j = kp % n_node
    src = j * n_ch + (e + 1)
    pwide = (np.arange(n_node * n_ch)[:, None] == src[None, :]).astype(np.float32)
    mask = (np.arange(bn)[:, None] // n_node
            == cols[None, :] // en).astype(np.float32)
    return jnp.asarray(mask), jnp.asarray(pwide)


# ---------------------------------------------------------------------------
# Wrapper
# ---------------------------------------------------------------------------
@functools.partial(jax.jit, static_argnames=("block_b",))
def discriminator_forward(adj, node, params, hidden=None, *, block_b=32):
    """adj: (B, N, N, E+1) float32; node: (B, N, M) float32; hidden must be None."""
    if hidden is not None:
        # TODO(synk): non-None `hidden` (with_features) path not implemented.
        raise NotImplementedError("hidden (with_features) path not implemented")
    assert block_b % 8 == 0

    adj = adj.astype(jnp.float32)
    node = node.astype(jnp.float32)

    E, M, D1 = params['gc1_we'].shape
    D2 = params['gc2_we'].shape[2]
    aux = params['agg_bi'].shape[-1]
    L1 = params['d1_b'].shape[-1]
    L2 = params['d2_b'].shape[-1]
    B, N = node.shape[0], node.shape[1]
    n_ch = adj.shape[-1]
    assert n_ch == E + 1

    # Free layout changes only (pure reshapes): no transpose / channel-slice pass.
    adj2 = adj.reshape(B * N, N * n_ch)      # k-major, all bond channels
    node2 = node.reshape(B * N, M)

    slabs = (
        _pack_gcn(params['gc1_we'], params['gc1_be'],
                  params['gc1_ws'], params['gc1_bs']),
        _pack_gcn(params['gc2_we'], params['gc2_be'],
                  params['gc2_ws'], params['gc2_bs']),
        _pack_affine(jnp.concatenate([params['agg_wi'], params['agg_wj']], axis=1),
                     jnp.concatenate([jnp.reshape(params['agg_bi'], (1, aux)),
                                      jnp.reshape(params['agg_bj'], (1, aux))],
                                     axis=1)),
        _pack_affine(params['d1_w'], params['d1_b']),
        _pack_affine(params['d2_w'], params['d2_b']),
        _pack_affine(params['out_w'], params['out_b']),
    )

    # Pad the batch to a multiple of block_b (padded graphs are all-zero -> finite).
    Bp = ((B + block_b - 1) // block_b) * block_b
    if Bp != B:
        adj2 = jnp.pad(adj2, ((0, (Bp - B) * N), (0, 0)))
        node2 = jnp.pad(node2, ((0, (Bp - B) * N), (0, 0)))

    mask, pwide = _block_diag_consts(block_b, N, E, n_ch)

    bn = block_b * N
    grid = (Bp // block_b,)
    in_specs = ([pl.BlockSpec((bn, N * n_ch), lambda b: (b, 0)),
                 pl.BlockSpec((bn, M), lambda b: (b, 0)),
                 pl.BlockSpec(mask.shape, lambda b: (0, 0)),
                 pl.BlockSpec(pwide.shape, lambda b: (0, 0))]
                + [pl.BlockSpec(s.shape, lambda b: (0, 0)) for s in slabs])
    out_specs = pl.BlockSpec((block_b, L2 + 1), lambda b: (b, 0))
    out_shape = jax.ShapeDtypeStruct((Bp, L2 + 1), jnp.float32)

    kw = block_b * E * N
    flops_block = (
        2 * bn * (N * n_ch) * kw + bn * kw                 # build block-diag adjacency
        + 2 * bn * M * (E + 1) * D1 + 2 * bn * kw * D1     # gcn layer 1
        + 2 * bn * D1 * (E + 1) * D2 + 2 * bn * kw * D2    # gcn layer 2
        + 2 * bn * (D2 + M) * 2 * aux + bn * aux           # aggregation gates + pool
        + 2 * block_b * (aux * L1 + L1 * L2 + L2))         # dense head
    trans_block = bn * (D1 + D2 + 2 * aux) + block_b * (aux + L1 + L2)
    steps = Bp // block_b
    cost = pl.CostEstimate(
        flops=int(steps * flops_block),
        transcendentals=int(steps * trans_block),
        bytes_accessed=int(4 * (adj2.size + node2.size + mask.size + pwide.size
                                + sum(int(s.size) for s in slabs)
                                + Bp * (L2 + 1))))

    kernel = functools.partial(_disc_kernel, n_node=N, n_edge=E)
    packed = pl.pallas_call(
        kernel,
        out_shape=out_shape,
        grid_spec=pltpu.PrefetchScalarGridSpec(
            num_scalar_prefetch=0,
            grid=grid,
            in_specs=in_specs,
            out_specs=out_specs),
        compiler_params=pltpu.CompilerParams(
            dimension_semantics=("parallel",)),
        cost_estimate=cost,
    )(adj2, node2, mask, pwide, *slabs)

    return packed[:B, L2:], packed[:B, :L2]                 # (out, h)


# ---------------------------------------------------------------------------
# Synthetic params + pure-JAX reference
# ---------------------------------------------------------------------------
def make_params(key, m_dim, b_dim, graph_conv_dim, aux_dim, linear_dim):
    """Deterministic synthetic parameters (shapes follow the PyTorch __init__)."""
    e = b_dim - 1   # edge types actually used after adj[:, :, :, 1:]
    d1, d2 = graph_conv_dim
    l1, l2 = linear_dim
    shapes = {
        'gc1_we': (e, m_dim, d1), 'gc1_be': (e, d1),
        'gc1_ws': (m_dim, d1),    'gc1_bs': (1, d1),
        'gc2_we': (e, d1, d2),    'gc2_be': (e, d2),
        'gc2_ws': (d1, d2),       'gc2_bs': (1, d2),
        'agg_wi': (d2 + m_dim, aux_dim), 'agg_bi': (1, aux_dim),
        'agg_wj': (d2 + m_dim, aux_dim), 'agg_bj': (1, aux_dim),
        'd1_w': (aux_dim, l1), 'd1_b': (1, l1),
        'd2_w': (l1, l2),      'd2_b': (1, l2),
        'out_w': (l2, 1), 'out_b': (1, 1),
    }
    params = {}
    keys = jax.random.split(key, len(shapes))
    for k, (name, shp) in zip(keys, sorted(shapes.items())):
        fan_in = shp[-2] if len(shp) >= 2 else shp[-1]
        params[name] = (jax.random.normal(k, shp, jnp.float32)
                        * (1.0 / np.sqrt(fan_in)))
    return params


def reference_forward(adj, node, params):
    """Pure-JAX reference mirroring the PyTorch module (hidden=None, dropout=0)."""
    adj_p = jnp.transpose(adj[:, :, :, 1:], (0, 3, 1, 2))   # (B, E, N, N)

    def gcn(x, we, be, ws, bs):
        hid = jnp.einsum('bnm,emd->bend', x, we) + be[None, :, None, :]
        agg = jnp.einsum('benk,bekd->bnd', adj_p, hid)
        return jnp.tanh(agg + jnp.einsum('bnm,md->bnd', x, ws) + bs)

    h1 = gcn(node, params['gc1_we'], params['gc1_be'],
             params['gc1_ws'], params['gc1_bs'])
    h2 = gcn(h1, params['gc2_we'], params['gc2_be'],
             params['gc2_ws'], params['gc2_bs'])

    ann = jnp.concatenate([h2, node], axis=-1)
    i_gate = jax.nn.sigmoid(jnp.einsum('bnk,ka->bna', ann, params['agg_wi'])
                            + params['agg_bi'])
    j_gate = jnp.tanh(jnp.einsum('bnk,ka->bna', ann, params['agg_wj'])
                      + params['agg_bj'])
    h = jnp.tanh(jnp.sum(i_gate * j_gate, axis=1))

    h = jnp.tanh(h @ params['d1_w'] + params['d1_b'])
    h = jnp.tanh(h @ params['d2_w'] + params['d2_b'])
    out = h @ params['out_w'] + params['out_b']
    return out, h


if __name__ == "__main__":
    # small shapes consistent with the module:
    B, N = 40, 8           # batch (exercises padding + 2 grid blocks), graph nodes
    m_dim = 4              # node (atom-type) feature dim
    b_dim = 5              # bond types in adj last axis (type 0 dropped by the model)
    graph_conv_dim = [32, 32]
    aux_dim = 32
    linear_dim = [32, 16]
    # conv_dim = [graph_conv_dim, aux_dim, linear_dim], dropout = 0.0

    key = jax.random.PRNGKey(0)
    k_adj, k_node, k_params = jax.random.split(key, 3)

    adj = jax.random.uniform(k_adj, (B, N, N, b_dim), jnp.float32)
    adj = 0.5 * (adj + jnp.transpose(adj, (0, 2, 1, 3)))        # symmetric adjacency
    node = jax.random.uniform(k_node, (B, N, m_dim), jnp.float32)

    params = make_params(k_params, m_dim, b_dim, graph_conv_dim, aux_dim, linear_dim)

    out, h = discriminator_forward(adj, node, params, block_b=32)
    out, h = jax.block_until_ready((out, h))

    out_ref, h_ref = reference_forward(adj, node, params)
    np.testing.assert_allclose(np.asarray(out), np.asarray(out_ref),
                               rtol=1e-5, atol=1e-5)
    np.testing.assert_allclose(np.asarray(h), np.asarray(h_ref),
                               rtol=1e-5, atol=1e-5)

    assert out.shape == (B, 1) and h.shape == (B, linear_dim[-1])
    print("KERNEL_OK")
</pallas_src>

<mosaic_0001>
module attributes {stable_mosaic.version = 11 : i64} {
  func.func @_disc_kernel(%arg0: i32, %arg1: memref<256x40xf32, #tpu.memory_space<vmem>>, %arg2: memref<256x4xf32, #tpu.memory_space<vmem>>, %arg3: memref<256x1024xf32, #tpu.memory_space<vmem>>, %arg4: memref<40x1024xf32, #tpu.memory_space<vmem>>, %arg5: memref<12x160xf32, #tpu.memory_space<vmem>>, %arg6: memref<40x160xf32, #tpu.memory_space<vmem>>, %arg7: memref<44x64xf32, #tpu.memory_space<vmem>>, %arg8: memref<40x32xf32, #tpu.memory_space<vmem>>, %arg9: memref<40x16xf32, #tpu.memory_space<vmem>>, %arg10: memref<24x1xf32, #tpu.memory_space<vmem>>, %arg11: memref<32x17xf32, #tpu.memory_space<vmem>>) attributes {dimension_semantics = [#tpu.dimension_semantics<parallel>], iteration_bounds = array<i64: 2>, scalar_prefetch = 0 : i64, scratch_operands = 0 : i64, tpu.core_type = #tpu.core_type<tc>, window_params = [{transform_indices = @transform_0, window_bounds = array<i64: 256, 40>}, {transform_indices = @transform_1, window_bounds = array<i64: 256, 4>}, {pipeline_mode = #tpu.pipeline_mode<synchronous>, transform_indices = @transform_2, window_bounds = array<i64: 256, 1024>}, {pipeline_mode = #tpu.pipeline_mode<synchronous>, transform_indices = @transform_3, window_bounds = array<i64: 40, 1024>}, {pipeline_mode = #tpu.pipeline_mode<synchronous>, transform_indices = @transform_4, window_bounds = array<i64: 12, 160>}, {pipeline_mode = #tpu.pipeline_mode<synchronous>, transform_indices = @transform_5, window_bounds = array<i64: 40, 160>}, {pipeline_mode = #tpu.pipeline_mode<synchronous>, transform_indices = @transform_6, window_bounds = array<i64: 44, 64>}, {pipeline_mode = #tpu.pipeline_mode<synchronous>, transform_indices = @transform_7, window_bounds = array<i64: 40, 32>}, {pipeline_mode = #tpu.pipeline_mode<synchronous>, transform_indices = @transform_8, window_bounds = array<i64: 40, 16>}, {pipeline_mode = #tpu.pipeline_mode<synchronous>, transform_indices = @transform_9, window_bounds = array<i64: 24, 1>}, {transform_indices = @transform_10, window_bounds = array<i64: 32, 17>}]} {
    %c0 = arith.constant 0 : index
    %c0_0 = arith.constant 0 : index
    %0 = vector.load %arg1[%c0, %c0_0] : memref<256x40xf32, #tpu.memory_space<vmem>>, vector<256x40xf32>
    %c0_1 = arith.constant 0 : index
    %c0_2 = arith.constant 0 : index
    %1 = vector.load %arg2[%c0_1, %c0_2] : memref<256x4xf32, #tpu.memory_space<vmem>>, vector<256x4xf32>
    %c0_3 = arith.constant 0 : index
    %c0_4 = arith.constant 0 : index
    %2 = vector.load %arg4[%c0_3, %c0_4] : memref<40x1024xf32, #tpu.memory_space<vmem>>, vector<40x1024xf32>
    %cst = arith.constant dense<0.000000e+00> : vector<256x1024xf32>
    %3 = tpu.matmul %0, %2, %cst {dimension_numbers = #tpu.dot_dimension_numbers<[1], [0], [0], [1], [0, 0, 1, 1], [], []>} : vector<256x40xf32>, vector<40x1024xf32>, vector<256x1024xf32> -> vector<256x1024xf32>
    %c0_5 = arith.constant 0 : index
    %c0_6 = arith.constant 0 : index
    %4 = vector.load %arg3[%c0_5, %c0_6] : memref<256x1024xf32, #tpu.memory_space<vmem>>, vector<256x1024xf32>
    %5 = arith.mulf %3, %4 : vector<256x1024xf32>
    %c0_7 = arith.constant 0 : index
    %c0_8 = arith.constant 0 : index
    %6 = vector.load %arg5[%c0_7, %c0_8] : memref<12x160xf32, #tpu.memory_space<vmem>>, vector<12x160xf32>
    %7 = vector.extract_strided_slice %6 {offsets = [8, 0], sizes = [4, 160], strides = [1, 1]} : vector<12x160xf32> to vector<4x160xf32>
    %cst_9 = arith.constant dense<0.000000e+00> : vector<256x160xf32>
    %8 = tpu.matmul %1, %7, %cst_9 {dimension_numbers = #tpu.dot_dimension_numbers<[1], [0], [0], [1], [0, 0, 1, 1], [], []>} : vector<256x4xf32>, vector<4x160xf32>, vector<256x160xf32> -> vector<256x160xf32>
    %9 = vector.extract_strided_slice %6 {offsets = [0, 0], sizes = [1, 160], strides = [1, 1]} : vector<12x160xf32> to vector<1x160xf32>
    %10 = vector.broadcast %9 : vector<1x160xf32> to vector<256x160xf32>
    %11 = arith.addf %8, %10 : vector<256x160xf32>
    %12 = vector.extract_strided_slice %11 {offsets = [0, 0], sizes = [256, 32], strides = [1, 1]} : vector<256x160xf32> to vector<256x32xf32>
    %13 = vector.shape_cast %12 : vector<256x32xf32> to vector<32x8x32xf32>
    %14 = vector.extract_strided_slice %11 {offsets = [0, 32], sizes = [256, 32], strides = [1, 1]} : vector<256x160xf32> to vector<256x32xf32>
    %15 = vector.shape_cast %14 : vector<256x32xf32> to vector<32x8x32xf32>
    %16 = vector.extract_strided_slice %11 {offsets = [0, 64], sizes = [256, 32], strides = [1, 1]} : vector<256x160xf32> to vector<256x32xf32>
    %17 = vector.shape_cast %16 : vector<256x32xf32> to vector<32x8x32xf32>
    %18 = vector.extract_strided_slice %11 {offsets = [0, 96], sizes = [256, 32], strides = [1, 1]} : vector<256x160xf32> to vector<256x32xf32>
    %19 = vector.shape_cast %18 : vector<256x32xf32> to vector<32x8x32xf32>
    %20 = tpu.concatenate %13, %15, %17, %19 in 1 : vector<32x8x32xf32>, vector<32x8x32xf32>, vector<32x8x32xf32>, vector<32x8x32xf32> -> vector<32x32x32xf32>
    %21 = vector.shape_cast %20 : vector<32x32x32xf32> to vector<1024x32xf32>
    %22 = vector.extract_strided_slice %11 {offsets = [0, 128], sizes = [256, 32], strides = [1, 1]} : vector<256x160xf32> to vector<256x32xf32>
    %cst_10 = arith.constant dense<0.000000e+00> : vector<256x32xf32>
    %23 = tpu.matmul %5, %21, %cst_10 {dimension_numbers = #tpu.dot_dimension_numbers<[1], [0], [0], [1], [0, 0, 1, 1], [], []>} : vector<256x1024xf32>, vector<1024x32xf32>, vector<256x32xf32> -> vector<256x32xf32>
    %24 = arith.addf %23, %22 : vector<256x32xf32>
    %25 = math.tanh %24 : vector<256x32xf32>
    %c0_11 = arith.constant 0 : index
    %c0_12 = arith.constant 0 : index
    %26 = vector.load %arg6[%c0_11, %c0_12] : memref<40x160xf32, #tpu.memory_space<vmem>>, vector<40x160xf32>
    %27 = vector.extract_strided_slice %26 {offsets = [8, 0], sizes = [32, 160], strides = [1, 1]} : vector<40x160xf32> to vector<32x160xf32>
    %cst_13 = arith.constant dense<0.000000e+00> : vector<256x160xf32>
    %28 = tpu.matmul %25, %27, %cst_13 {dimension_numbers = #tpu.dot_dimension_numbers<[1], [0], [0], [1], [0, 0, 1, 1], [], []>} : vector<256x32xf32>, vector<32x160xf32>, vector<256x160xf32> -> vector<256x160xf32>
    %29 = vector.extract_strided_slice %26 {offsets = [0, 0], sizes = [1, 160], strides = [1, 1]} : vector<40x160xf32> to vector<1x160xf32>
    %30 = vector.broadcast %29 : vector<1x160xf32> to vector<256x160xf32>
    %31 = arith.addf %28, %30 : vector<256x160xf32>
    %32 = vector.extract_strided_slice %31 {offsets = [0, 0], sizes = [256, 32], strides = [1, 1]} : vector<256x160xf32> to vector<256x32xf32>
    %33 = vector.shape_cast %32 : vector<256x32xf32> to vector<32x8x32xf32>
    %34 = vector.extract_strided_slice %31 {offsets = [0, 32], sizes = [256, 32], strides = [1, 1]} : vector<256x160xf32> to vector<256x32xf32>
    %35 = vector.shape_cast %34 : vector<256x32xf32> to vector<32x8x32xf32>
    %36 = vector.extract_strided_slice %31 {offsets = [0, 64], sizes = [256, 32], strides = [1, 1]} : vector<256x160xf32> to vector<256x32xf32>
    %37 = vector.shape_cast %36 : vector<256x32xf32> to vector<32x8x32xf32>
    %38 = vector.extract_strided_slice %31 {offsets = [0, 96], sizes = [256, 32], strides = [1, 1]} : vector<256x160xf32> to vector<256x32xf32>
    %39 = vector.shape_cast %38 : vector<256x32xf32> to vector<32x8x32xf32>
    %40 = tpu.concatenate %33, %35, %37, %39 in 1 : vector<32x8x32xf32>, vector<32x8x32xf32>, vector<32x8x32xf32>, vector<32x8x32xf32> -> vector<32x32x32xf32>
    %41 = vector.shape_cast %40 : vector<32x32x32xf32> to vector<1024x32xf32>
    %42 = vector.extract_strided_slice %31 {offsets = [0, 128], sizes = [256, 32], strides = [1, 1]} : vector<256x160xf32> to vector<256x32xf32>
    %cst_14 = arith.constant dense<0.000000e+00> : vector<256x32xf32>
    %43 = tpu.matmul %5, %41, %cst_14 {dimension_numbers = #tpu.dot_dimension_numbers<[1], [0], [0], [1], [0, 0, 1, 1], [], []>} : vector<256x1024xf32>, vector<1024x32xf32>, vector<256x32xf32> -> vector<256x32xf32>
    %44 = arith.addf %43, %42 : vector<256x32xf32>
    %45 = math.tanh %44 : vector<256x32xf32>
    %c0_15 = arith.constant 0 : index
    %c0_16 = arith.constant 0 : index
    %46 = vector.load %arg7[%c0_15, %c0_16] : memref<44x64xf32, #tpu.memory_space<vmem>>, vector<44x64xf32>
    %47 = vector.extract_strided_slice %46 {offsets = [8, 0], sizes = [32, 64], strides = [1, 1]} : vector<44x64xf32> to vector<32x64xf32>
    %cst_17 = arith.constant dense<0.000000e+00> : vector<256x64xf32>
    %48 = tpu.matmul %45, %47, %cst_17 {dimension_numbers = #tpu.dot_dimension_numbers<[1], [0], [0], [1], [0, 0, 1, 1], [], []>} : vector<256x32xf32>, vector<32x64xf32>, vector<256x64xf32> -> vector<256x64xf32>
    %49 = vector.extract_strided_slice %46 {offsets = [40, 0], sizes = [4, 64], strides = [1, 1]} : vector<44x64xf32> to vector<4x64xf32>
    %cst_18 = arith.constant dense<0.000000e+00> : vector<256x64xf32>
    %50 = tpu.matmul %1, %49, %cst_18 {dimension_numbers = #tpu.dot_dimension_numbers<[1], [0], [0], [1], [0, 0, 1, 1], [], []>} : vector<256x4xf32>, vector<4x64xf32>, vector<256x64xf32> -> vector<256x64xf32>
    %51 = arith.addf %48, %50 : vector<256x64xf32>
    %52 = vector.extract_strided_slice %46 {offsets = [0, 0], sizes = [1, 64], strides = [1, 1]} : vector<44x64xf32> to vector<1x64xf32>
    %53 = vector.broadcast %52 : vector<1x64xf32> to vector<256x64xf32>
    %54 = arith.addf %51, %53 : vector<256x64xf32>
    %55 = vector.extract_strided_slice %54 {offsets = [0, 0], sizes = [256, 32], strides = [1, 1]} : vector<256x64xf32> to vector<256x32xf32>
    %56 = arith.negf %55 : vector<256x32xf32>
    %57 = math.exp %56 : vector<256x32xf32>
    %cst_19 = arith.constant 1.000000e+00 : f32
    %58 = vector.broadcast %cst_19 : f32 to vector<256x32xf32>
    %59 = arith.addf %58, %57 : vector<256x32xf32>
    %60 = arith.divf %58, %59 : vector<256x32xf32>
    %61 = vector.extract_strided_slice %54 {offsets = [0, 32], sizes = [256, 32], strides = [1, 1]} : vector<256x64xf32> to vector<256x32xf32>
    %62 = math.tanh %61 : vector<256x32xf32>
    %63 = arith.mulf %60, %62 : vector<256x32xf32>
    %64 = vector.shape_cast %63 : vector<256x32xf32> to vector<32x8x32xf32>
    %cst_20 = arith.constant dense<0.000000e+00> : vector<32x32xf32>
    %65 = vector.multi_reduction <add>, %64, %cst_20 [1] : vector<32x8x32xf32> to vector<32x32xf32>
    %66 = math.tanh %65 : vector<32x32xf32>
    %c0_21 = arith.constant 0 : index
    %c0_22 = arith.constant 0 : index
    %67 = vector.load %arg8[%c0_21, %c0_22] : memref<40x32xf32, #tpu.memory_space<vmem>>, vector<40x32xf32>
    %68 = vector.extract_strided_slice %67 {offsets = [8, 0], sizes = [32, 32], strides = [1, 1]} : vector<40x32xf32> to vector<32x32xf32>
    %cst_23 = arith.constant dense<0.000000e+00> : vector<32x32xf32>
    %69 = tpu.matmul %66, %68, %cst_23 {dimension_numbers = #tpu.dot_dimension_numbers<[1], [0], [0], [1], [0, 0, 1, 1], [], []>} : vector<32x32xf32>, vector<32x32xf32>, vector<32x32xf32> -> vector<32x32xf32>
    %70 = vector.extract_strided_slice %67 {offsets = [0, 0], sizes = [1, 32], strides = [1, 1]} : vector<40x32xf32> to vector<1x32xf32>
    %71 = vector.broadcast %70 : vector<1x32xf32> to vector<32x32xf32>
    %72 = arith.addf %69, %71 : vector<32x32xf32>
    %73 = math.tanh %72 : vector<32x32xf32>
    %c0_24 = arith.constant 0 : index
    %c0_25 = arith.constant 0 : index
    %74 = vector.load %arg9[%c0_24, %c0_25] : memref<40x16xf32, #tpu.memory_space<vmem>>, vector<40x16xf32>
    %75 = vector.extract_strided_slice %74 {offsets = [8, 0], sizes = [32, 16], strides = [1, 1]} : vector<40x16xf32> to vector<32x16xf32>
    %cst_26 = arith.constant dense<0.000000e+00> : vector<32x16xf32>
    %76 = tpu.matmul %73, %75, %cst_26 {dimension_numbers = #tpu.dot_dimension_numbers<[1], [0], [0], [1], [0, 0, 1, 1], [], []>} : vector<32x32xf32>, vector<32x16xf32>, vector<32x16xf32> -> vector<32x16xf32>
    %77 = vector.extract_strided_slice %74 {offsets = [0, 0], sizes = [1, 16], strides = [1, 1]} : vector<40x16xf32> to vector<1x16xf32>
    %78 = vector.broadcast %77 : vector<1x16xf32> to vector<32x16xf32>
    %79 = arith.addf %76, %78 : vector<32x16xf32>
    %80 = math.tanh %79 : vector<32x16xf32>
    %c0_27 = arith.constant 0 : index
    %c0_28 = arith.constant 0 : index
    %81 = vector.load %arg10[%c0_27, %c0_28] : memref<24x1xf32, #tpu.memory_space<vmem>>, vector<24x1xf32>
    %82 = vector.extract_strided_slice %81 {offsets = [8, 0], sizes = [16, 1], strides = [1, 1]} : vector<24x1xf32> to vector<16x1xf32>
    %cst_29 = arith.constant dense<0.000000e+00> : vector<32x1xf32>
    %83 = tpu.matmul %80, %82, %cst_29 {dimension_numbers = #tpu.dot_dimension_numbers<[1], [0], [0], [1], [0, 0, 1, 1], [], []>} : vector<32x16xf32>, vector<16x1xf32>, vector<32x1xf32> -> vector<32x1xf32>
    %84 = vector.extract_strided_slice %81 {offsets = [0, 0], sizes = [1, 1], strides = [1, 1]} : vector<24x1xf32> to vector<1x1xf32>
    %85 = vector.broadcast %84 : vector<1x1xf32> to vector<32x1xf32>
    %86 = arith.addf %83, %85 : vector<32x1xf32>
    %87 = tpu.concatenate %80, %86 in 1 : vector<32x16xf32>, vector<32x1xf32> -> vector<32x17xf32>
    %c0_30 = arith.constant 0 : index
    %c0_31 = arith.constant 0 : index
    %88 = vector.load %arg11[%c0_30, %c0_31] : memref<32x17xf32, #tpu.memory_space<vmem>>, vector<32x17xf32>
    tpu.vector_store %arg11[%c0_30, %c0_31], %87 {strides = array<i32>} : memref<32x17xf32, #tpu.memory_space<vmem>>, vector<32x17xf32>,
    return
  }
  func.func @transform_0(%arg0: i32) -> (i32, i32) {
    %c0_i32 = arith.constant 0 : i32
    %c0_i32_0 = arith.constant 0 : i32
    return %arg0, %c0_i32 : i32, i32
  }
  func.func @transform_1(%arg0: i32) -> (i32, i32) {
    %c0_i32 = arith.constant 0 : i32
    %c0_i32_0 = arith.constant 0 : i32
    return %arg0, %c0_i32 : i32, i32
  }
  func.func @transform_2(%arg0: i32) -> (i32, i32) {
    %c0_i32 = arith.constant 0 : i32
    %c0_i32_0 = arith.constant 0 : i32
    %c0_i32_1 = arith.constant 0 : i32
    return %c0_i32, %c0_i32_0 : i32, i32
  }
  func.func @transform_3(%arg0: i32) -> (i32, i32) {
    %c0_i32 = arith.constant 0 : i32
    %c0_i32_0 = arith.constant 0 : i32
    %c0_i32_1 = arith.constant 0 : i32
    return %c0_i32, %c0_i32_0 : i32, i32
  }
  func.func @transform_4(%arg0: i32) -> (i32, i32) {
    %c0_i32 = arith.constant 0 : i32
    %c0_i32_0 = arith.constant 0 : i32
    %c0_i32_1 = arith.constant 0 : i32
    return %c0_i32, %c0_i32_0 : i32, i32
  }
  func.func @transform_5(%arg0: i32) -> (i32, i32) {
    %c0_i32 = arith.constant 0 : i32
    %c0_i32_0 = arith.constant 0 : i32
    %c0_i32_1 = arith.constant 0 : i32
    return %c0_i32, %c0_i32_0 : i32, i32
  }
  func.func @transform_6(%arg0: i32) -> (i32, i32) {
    %c0_i32 = arith.constant 0 : i32
    %c0_i32_0 = arith.constant 0 : i32
    %c0_i32_1 = arith.constant 0 : i32
    return %c0_i32, %c0_i32_0 : i32, i32
  }
  func.func @transform_7(%arg0: i32) -> (i32, i32) {
    %c0_i32 = arith.constant 0 : i32
    %c0_i32_0 = arith.constant 0 : i32
    %c0_i32_1 = arith.constant 0 : i32
    return %c0_i32, %c0_i32_0 : i32, i32
  }
  func.func @transform_8(%arg0: i32) -> (i32, i32) {
    %c0_i32 = arith.constant 0 : i32
    %c0_i32_0 = arith.constant 0 : i32
    %c0_i32_1 = arith.constant 0 : i32
    return %c0_i32, %c0_i32_0 : i32, i32
  }
  func.func @transform_9(%arg0: i32) -> (i32, i32) {
    %c0_i32 = arith.constant 0 : i32
    %c0_i32_0 = arith.constant 0 : i32
    %c0_i32_1 = arith.constant 0 : i32
    return %c0_i32, %c0_i32_0 : i32, i32
  }
  func.func @transform_10(%arg0: i32) -> (i32, i32) {
    %c0_i32 = arith.constant 0 : i32
    %c0_i32_0 = arith.constant 0 : i32
    return %arg0, %c0_i32 : i32, i32
  }
}

</mosaic_0001>

<bundles_post_ra>
// kernel: discriminator_forward.1
= control target key start
LH: loop header
LB: loop body
LE: loop exit
PB: predicated region body
PF: predicated region fallthrough
CT: control target
= control target key end

     0   :  { %s9078_s13 = smov 0   ;;  %s14283_s0 = inlined_call_operand.vmem [shape: f32[512,40], index: 0, kind: input, shape index: {}]   ;;  %s14284_s1 = inlined_call_operand.vmem [shape: f32[512,4], index: 1, kind: input, shape index: {}]   ;;  %s14285_s2 = inlined_call_operand.vmem [shape: f32[256,1024], index: 2, kind: input, shape index: {}]   ;;  %s14286_s3 = inlined_call_operand.vmem [shape: f32[40,1024], index: 3, kind: input, shape index: {}]   ;;  %s14287_s4 = inlined_call_operand.vmem [shape: f32[12,160], index: 4, kind: input, shape index: {}]   ;;  %s14288_s5 = inlined_call_operand.vmem [shape: f32[40,160], index: 5, kind: input, shape index: {}]   ;;  %s14289_s6 = inlined_call_operand.vmem [shape: f32[44,64], index: 6, kind: input, shape index: {}]   ;;  %s14290_s7 = inlined_call_operand.vmem [shape: f32[40,32], index: 7, kind: input, shape index: {}]   ;;  %s14291_s8 = inlined_call_operand.vmem [shape: f32[40,16], index: 8, kind: input, shape index: {}]   ;;  %s14292_s9 = inlined_call_operand.vmem [shape: f32[24,1], index: 9, kind: input, shape index: {}]   ;;  %s14293_s10 = inlined_call_operand.vmem [shape: f32[64,17], index: 10, kind: output, shape index: {}]  }
   0x1 LB: > { %s7087_s14 = sadd.s32 4294967295, %s9015_s13   ;;  %p7091_p0 = scmp.ge.s32.totalorder %s9015_s13, 1  ;;  %s9015_s13 = sphi %s9078_s13, %s20_s13  }
   0x2   : > { %p324_p1 = scmp.lt.s32.totalorder %s9015_s13, 3 }
   0x4   : > { %p325_p2 = pnand %p7091_p0, %p324_p1 }
   0x6   : > { %328 = sbr.rel (%p325_p2) target bundleno = 3527 (0xdc7), region = 60 }
   0xd   : > { %v450_v0 = vld [vmem:[%s14286_s3 + $0x8] sm:$0xff]  ;;  %v449_v2 = vld [vmem:[%s14286_s3] sm:$0xff]  ;;  %s7092_s21 = sshll.u32 %s7087_s14, 5  ;;  %v14295_v7 = vmov 0.0   ;;  %v452_v12 = vld [vmem:[%s14286_s3 + $0x18] sm:$0xff]  ;;  %vm489_vm0 = vcmask 326656  }
   0xe   : > { %v458_v1 = vld [vmem:[%s14286_s3 + $0x48] sm:$0xff]  ;;  %v457_v4 = vld [vmem:[%s14286_s3 + $0x40] sm:$0xff]  ;;  %650 = vmatprep.mubr.f32.mxu0 %v14295_v7  ;;  %p368_p3 = scmp.lt.s32.totalorder %s7092_s21, 63  ;;  %985 = vmatprep.mubr.f32.mxu1 %v14295_v7  ;;  %v460_v13 = vld [vmem:[%s14286_s3 + $0x58] sm:$0xff]  ;;  %vm2235_vm1 = vcmask 1043456   ;;  %vm2138_vm2 = vcmask 31744  }
   0xf   : > { %v7638_v3 = vpack.c.bf16 %v458_v1, %v450_v0  ;;  %v466_v5 = vld [vmem:[%s14286_s3 + $0x88] sm:$0xff]  ;;  %v7640_v8 = vpack.c.bf16 %v457_v4, %v449_v2  ;;  %v465_v10 = vld [vmem:[%s14286_s3 + $0x80] sm:$0xff]  ;;  %v7646_v15 = vpack.c.bf16 %v460_v13, %v452_v12  ;;  %v451_v16 = vld [vmem:[%s14286_s3 + $0x10] sm:$0xff]  ;;  %s9019_s11 = smov 32   ;;  %s9020_s12 = smov 96   ;;  %vm3769_vm3 = vcmask 261120  }
  0x10   : > { %v474_v6 = vld [vmem:[%s14286_s3 + $0xc8] sm:$0xff]  ;;  %v473_v11 = vld [vmem:[%s14286_s3 + $0xc0] sm:$0xff]  ;;  %s15539_s21 = smov (!%p368_p3, %s7092_s21), 63  ;;  %v459_v17 = vld [vmem:[%s14286_s3 + $0x50] sm:$0xff]  ;;  %s9021_s15 = smov 64   ;;  %vm6647_vm4 = vcmask 1041409  }
  0x11   : > { %v7642_v9 = vpack.c.bf16 %v474_v6, %v466_v5  ;;  %7639 = vmatprep.subr.bf16.mxu0 %v7638_v3  ;;  %v7644_v14 = vpack.c.bf16 %v473_v11, %v465_v10  ;;  %v468_v18 = vld [vmem:[%s14286_s3 + $0x98] sm:$0xff]  ;;  %s7093_s25 = sshll.u32 %s15539_s21, 3  ;;  %v7648_v19 = vpack.c.bf16 %v459_v17, %v451_v16  ;;  %v467_v21 = vld [vmem:[%s14286_s3 + $0x90] sm:$0xff]  ;;  %v482_v23 = vld [vmem:[%s14286_s3 + $0x108] sm:$0xff]  ;;  %8090 = vmatprep.subr.bf16.mxu1 %v7646_v15  ;;  %vm6649_vm5 = vcmask 1042434   ;;  %s7096_s29 = sshll.u32 %s7087_s14, 2 }
  0x12   : > { %7641 = vmatpush1.bf16.msra.mxu0 %v7640_v8  ;;  %v476_v20 = vld [vmem:[%s14286_s3 + $0xd8] sm:$0xff]  ;;  %v475_v22 = vld [vmem:[%s14286_s3 + $0xd0] sm:$0xff]  ;;  %s9149_s18 = scalar_lea.vmem %s14283_s0, %s7093_s25  ;;  %v481_v26 = vld [vmem:[%s14286_s3 + $0x100] sm:$0xff]  ;;  %s9805_s28 = scalar_lea.vmem %s14284_s1, %s7093_s25  ;;  %vm6651_vm6 = vcmask 1043459   ;;  %vm6653_vm7 = vcmask 1044484   ;;  %vm6655_vm8 = vcmask 1045509  }
  0x13   : > { %7643 = vmatprep.subr.bf16.mxu0 %v7642_v9  ;;  %v7650_v24 = vpack.c.bf16 %v476_v20, %v468_v18  ;;  %8093 = vmatpush1.bf16.msra.mxu1 %v7648_v19  ;;  %v7652_v25 = vpack.c.bf16 %v475_v22, %v467_v21  ;;  %v484_v27 = vld [vmem:[%s14286_s3 + $0x118] sm:$0xff]  ;;  %v9158_v28 = vld [vmem:[%s9149_s18] sm:$0xff]  ;;  %v483_v29 = vld [vmem:[%s14286_s3 + $0x110] sm:$0xff]  ;;  %vm6657_vm9 = vcmask 1046534   ;;  %vm6659_vm10 = vcmask 1047559   ;;  %p380_p4 = scmp.lt.s32.totalorder %s7096_s29, 7 }
  0x14   : > { %v9166_v30 = vld [vmem:[%s9149_s18 + $0x68] sm:$0xff]  ;;  %v456_v32 = vld [vmem:[%s14286_s3 + $0x38] sm:$0xff]  ;;  %v9178_v33 = vld [vmem:[%s9149_s18 + $0x70] sm:$0xff]  ;;  %vm6896_vm11 = vcmask 130048   ;;  %vm7014_vm12 = vcmask 138240  }
  0x15   : > { %8091 = vmatprep.subr.bf16.mxu1 %v7650_v24  ;;  %v9170_v31 = vld [vmem:[%s9149_s18 + $0x8] sm:$0xff]  ;;  %v464_v34 = vld [vmem:[%s14286_s3 + $0x78] sm:$0xff]  ;;  %v455_v35 = vld [vmem:[%s14286_s3 + $0x30] sm:$0xff]  ;;  %s15541_s29 = smov (!%p380_p4, %s7096_s29), 7 }
  0x16   : > { %7645 = vmatpush1.bf16.msra.mxu0 %v7644_v14  ;;  %v463_v36 = vld [vmem:[%s14286_s3 + $0x70] sm:$0xff]  ;;  %v7662_v38 = vpack.c.bf16 %v464_v34, %v456_v32  ;;  %v472_v40 = vld [vmem:[%s14286_s3 + $0xb8] sm:$0xff]  ;;  %v9229_v49 = vld [vmem:[%s9149_s18 + $0x80] sm:$0xff]  ;;  %s7097_s30 = sshll.u32 %s15541_s29, 3 }
  0x17   : > { %594 = vmatprep.subr.mxu0 %v482_v23  ;;  %8094 = vmatpush1.bf16.msra.mxu1 %v7652_v25  ;;  %v9194_v37 = vld [vmem:[%s9149_s18 + $0x10] sm:$0xff]  ;;  %v7664_v39 = vpack.c.bf16 %v463_v36, %v455_v35  ;;  %v480_v41 = vld [vmem:[%s14286_s3 + $0xf8] sm:$0xff]  ;;  %v9233_v50 = vld [vmem:[%s9149_s18 + $0x20] sm:$0xff] }
  0x18   : > { %8092 = vmatprep.subr.mxu1 %v484_v27  ;;  %v7666_v42 = vpack.c.bf16 %v480_v41, %v472_v40  ;;  %v471_v43 = vld [vmem:[%s14286_s3 + $0xb0] sm:$0xff]  ;;  %v9214_v45 = vld [vmem:[%s9149_s18 + $0x78] sm:$0xff]  ;;  %v9244_v52 = vld [vmem:[%s9149_s18 + $0x88] sm:$0xff] }
  0x19   : > { %v479_v44 = vld [vmem:[%s14286_s3 + $0xf0] sm:$0xff]  ;;  %v9218_v46 = vld [vmem:[%s9149_s18 + $0x18] sm:$0xff]  ;;  %v9248_v53 = vld [vmem:[%s9149_s18 + $0x28] sm:$0xff] }
  0x1a   : > { %595 = vmatpush1.msra.mxu0 %v481_v26  ;;  %v7668_v47 = vpack.c.bf16 %v479_v44, %v471_v43  ;;  %v488_v48 = vld [vmem:[%s14286_s3 + $0x138] sm:$0xff]  ;;  %v487_v51 = vld [vmem:[%s14286_s3 + $0x130] sm:$0xff]  ;;  %v9280_v58 = vld [vmem:[%s9149_s18 + $0xa0] sm:$0xff] }
  0x1b   : > { %7098 = vmatmul.mubr.msk.f32.vlgmr.msra.gmra.mrb[0].mxu0 %vm489_vm0, %v9158_v28  ;;  %7647 = vmatprep.subr.bf16.mxu0 %v7646_v15  ;;  %v9256_v54 = vld [vmem:[%s9149_s18 + $0x90] sm:$0xff]  ;;  %v9268_v56 = vld [vmem:[%s9149_s18 + $0x98] sm:$0xff]  ;;  %v9284_v59 = vld [vmem:[%s9149_s18 + $0x40] sm:$0xff] }
  0x1c   : > { %656 = vmatprep.mubr.f32.mxu0 %v14295_v7  ;;  %7649 = vmatpush1.bf16.msra.mxu0 %v7648_v19  ;;  %v9260_v55 = vld [vmem:[%s9149_s18 + $0x30] sm:$0xff]  ;;  %v9272_v57 = vld [vmem:[%s9149_s18 + $0x38] sm:$0xff]  ;;  %v9292_v60 = vld [vmem:[%s9149_s18 + $0xa8] sm:$0xff] }
  0x1d   : > { %8095 = vmatpush1.msra.mxu1 %v483_v29  ;;  %7651 = vmatprep.subr.bf16.mxu0 %v7650_v24  ;;  %v9296_v61 = vld [vmem:[%s9149_s18 + $0x48] sm:$0xff]  ;;  %v9304_v62 = vld [vmem:[%s9149_s18 + $0xb0] sm:$0xff]  ;;  %v9322_v2 = vld [vmem:[%s9149_s18 + $0xb8] sm:$0xff] }
  0x1e   : > { %7143 = vmatmul.mubr.msk.f32.vlgmr.msra.gmra.mrb[0].mxu1 %vm489_vm0, %v9166_v30  ;;  %7663 = vmatprep.subr.bf16.mxu1 %v7662_v38  ;;  %v9308_v63 = vld [vmem:[%s9149_s18 + $0x50] sm:$0xff]  ;;  %v454_v0 = vld [vmem:[%s14286_s3 + $0x28] sm:$0xff]  ;;  %v9326_v4 = vld [vmem:[%s9149_s18 + $0x58] sm:$0xff] }
  0x1f   : > { %7099 = vmatmul.mubr.msk.f32.gmra.mrb[2].mxu0 %vm489_vm0, %v9170_v31  ;;  %991 = vmatprep.mubr.f32.mxu1 %v14295_v7  ;;  %v462_v1 = vld [vmem:[%s14286_s3 + $0x68] sm:$0xff]  ;;  %v9334_v5 = vld [vmem:[%s9149_s18 + $0xc0] sm:$0xff]  ;;  %v9355_v9 = vld [vmem:[%s9149_s18 + $0xd0] sm:$0xff] }
  0x20   : > { %662 = vmatprep.mubr.f32.mxu0 %v14295_v7  ;;  %7653 = vmatpush1.bf16.msra.mxu0 %v7652_v25  ;;  %v7654_v3 = vpack.c.bf16 %v462_v1, %v454_v0  ;;  %v9338_v6 = vld [vmem:[%s9149_s18 + $0x60] sm:$0xff]  ;;  %v9346_v8 = vld [vmem:[%s9149_s18 + $0xc8] sm:$0xff]  ;;  %v9364_v10 = vld [vmem:[%s9149_s18 + $0xd8] sm:$0xff] }
  0x21   : > { %851 = vmatprep.subr.mxu0 %v484_v27  ;;  %7665 = vmatpush1.bf16.msra.mxu1 %v7664_v39  ;;  %v9373_v11 = vld [vmem:[%s9149_s18 + $0xe0] sm:$0xff]  ;;  %v9382_v12 = vld [vmem:[%s9149_s18 + $0xe8] sm:$0xff]  ;;  %v9391_v13 = vld [vmem:[%s9149_s18 + $0xf0] sm:$0xff] }
  0x22   : > { %7144 = vmatmul.mubr.msk.f32.gmra.mrb[2].mxu1 %vm489_vm0, %v9178_v33  ;;  %7667 = vmatprep.subr.bf16.mxu1 %v7666_v42  ;;  %v9400_v14 = vld [vmem:[%s9149_s18 + $0xf8] sm:$0xff]  ;;  %v453_v15 = vld [vmem:[%s14286_s3 + $0x20] sm:$0xff]  ;;  %v470_v17 = vld [vmem:[%s14286_s3 + $0xa8] sm:$0xff]  ;;  %s383_s18 = scalar_lea.vmem %s14293_s10, %s7097_s30 }
  0x23   : > { %7100 = vmatmul.mubr.msk.f32.gmra.mrb[4].mxu0 %vm489_vm0, %v9194_v37  ;;  %997 = vmatprep.mubr.f32.mxu1 %v14295_v7  ;;  %v461_v16 = vld [vmem:[%s14286_s3 + $0x60] sm:$0xff]  ;;  %v478_v18 = vld [vmem:[%s14286_s3 + $0xe8] sm:$0xff]  ;;  %v2129_v26 = vld [vmem:[%s14287_s4 + $0x18] sm:$0xf] }
  0x24   : > { %668 = vmatprep.mubr.f32.mxu0 %v14295_v7  ;;  %852 = vmatpush1.msra.mxu0 %v483_v29  ;;  %v7656_v19 = vpack.c.bf16 %v461_v16, %v453_v15  ;;  %v7658_v20 = vpack.c.bf16 %v478_v18, %v470_v17  ;;  %v469_v21 = vld [vmem:[%s14286_s3 + $0xa0] sm:$0xff]  ;;  %v486_v24 = vld [vmem:[%s14286_s3 + $0x128] sm:$0xff]  ;;  %v2128_v27 = vld [vmem:[%s14287_s4 + $0x10] sm:$0xf] }
  0x25   : > { %7669 = vmatpush1.bf16.msra.mxu1 %v7668_v47  ;;  %7655 = vmatprep.subr.bf16.mxu0 %v7654_v3  ;;  %v477_v22 = vld [vmem:[%s14286_s3 + $0xe0] sm:$0xff] }
  0x26   : > { %7145 = vmatmul.mubr.msk.f32.gmra.mrb[4].mxu1 %vm489_vm0, %v9214_v45  ;;  %1365 = vmatprep.subr.mxu1 %v488_v48  ;;  %v7660_v23 = vpack.c.bf16 %v477_v22, %v469_v21  ;;  %v485_v25 = vld [vmem:[%s14286_s3 + $0x120] sm:$0xff] }
  0x27   : > { %7101 = vmatmul.mubr.msk.f32.gmra.mrb[6].mxu0 %vm489_vm0, %v9218_v46  ;;  %1003 = vmatprep.mubr.f32.mxu1 %v14295_v7 }
  0x28   : > { %674 = vmatprep.mubr.f32.mxu0 %v14295_v7 }
  0x29   : > { %1366 = vmatpush1.msra.mxu1 %v487_v51 }
  0x2a   : > { %7146 = vmatmul.mubr.msk.f32.gmra.mrb[6].mxu1 %vm489_vm0, %v9229_v49 }
  0x2b   : > { %7102 = vmatmul.mubr.msk.f32.gmra.mrb[8].mxu0 %vm489_vm0, %v9233_v50  ;;  %1009 = vmatprep.mubr.f32.mxu1 %v14295_v7 }
  0x2c   : > { %680 = vmatprep.mubr.f32.mxu0 %v14295_v7 }
  0x2e   : > { %7147 = vmatmul.mubr.msk.f32.gmra.mrb[8].mxu1 %vm489_vm0, %v9244_v52 }
  0x2f   : > { %7103 = vmatmul.mubr.msk.f32.gmra.mrb[10].mxu0 %vm489_vm0, %v9248_v53  ;;  %1015 = vmatprep.mubr.f32.mxu1 %v14295_v7 }
  0x30   : > { %686 = vmatprep.mubr.f32.mxu0 %v14295_v7 }
  0x32   : > { %7148 = vmatmul.mubr.msk.f32.gmra.mrb[10].mxu1 %vm489_vm0, %v9256_v54 }
  0x33   : > { %7104 = vmatmul.mubr.msk.f32.gmra.mrb[12].mxu0 %vm489_vm0, %v9260_v55  ;;  %1021 = vmatprep.mubr.f32.mxu1 %v14295_v7 }
  0x34   : > { %692 = vmatprep.mubr.f32.mxu0 %v14295_v7 }
  0x36   : > { %7149 = vmatmul.mubr.msk.f32.gmra.mrb[12].mxu1 %vm489_vm0, %v9268_v56 }
  0x37   : > { %7105 = vmatmul.mubr.msk.f32.gmra.mrb[14].mxu0 %vm489_vm0, %v9272_v57  ;;  %1027 = vmatprep.mubr.f32.mxu1 %v14295_v7 }
  0x38   : > { %698 = vmatprep.mubr.f32.mxu0 %v14295_v7 }
  0x3a   : > { %7150 = vmatmul.mubr.msk.f32.gmra.mrb[14].mxu1 %vm489_vm0, %v9280_v58 }
  0x3b   : > { %7106 = vmatmul.mubr.msk.f32.gmra.mrb[16].mxu0 %vm489_vm0, %v9284_v59  ;;  %1033 = vmatprep.mubr.f32.mxu1 %v14295_v7 }
  0x3c   : > { %704 = vmatprep.mubr.f32.mxu0 %v14295_v7 }
  0x3e   : > { %7151 = vmatmul.mubr.msk.f32.gmra.mrb[16].mxu1 %vm489_vm0, %v9292_v60 }
  0x3f   : > { %7107 = vmatmul.mubr.msk.f32.gmra.mrb[18].mxu0 %vm489_vm0, %v9296_v61  ;;  %1039 = vmatprep.mubr.f32.mxu1 %v14295_v7 }
  0x40   : > { %710 = vmatprep.mubr.f32.mxu0 %v14295_v7 }
  0x42   : > { %7152 = vmatmul.mubr.msk.f32.gmra.mrb[18].mxu1 %vm489_vm0, %v9304_v62 }
  0x43   : > { %7108 = vmatmul.mubr.msk.f32.gmra.mrb[20].mxu0 %vm489_vm0, %v9308_v63  ;;  %1045 = vmatprep.mubr.f32.mxu1 %v14295_v7 }
  0x44   : > { %716 = vmatprep.mubr.f32.mxu0 %v14295_v7 }
  0x46   : > { %7153 = vmatmul.mubr.msk.f32.gmra.mrb[20].mxu1 %vm489_vm0, %v9322_v2 }
  0x47   : > { %7109 = vmatmul.mubr.msk.f32.gmra.mrb[22].mxu0 %vm489_vm0, %v9326_v4  ;;  %1051 = vmatprep.mubr.f32.mxu1 %v14295_v7 }
  0x48   : > { %722 = vmatprep.mubr.f32.mxu0 %v14295_v7 }
  0x4a   : > { %7154 = vmatmul.mubr.msk.f32.gmra.mrb[22].mxu1 %vm489_vm0, %v9334_v5 }
  0x4b   : > { %7110 = vmatmul.mubr.msk.f32.gmra.mrb[24].mxu0 %vm489_vm0, %v9338_v6  ;;  %1057 = vmatprep.mubr.f32.mxu1 %v14295_v7 }
  0x4c   : > { %728 = vmatprep.mubr.f32.mxu0 %v14295_v7 }
  0x4e   : > { %7155 = vmatmul.mubr.msk.f32.gmra.mrb[24].mxu1 %vm489_vm0, %v9346_v8 }
  0x4f   : > { %7111 = vmatmul.mubr.msk.f32.gmra.mrb[26].mxu0 %vm489_vm0, %v9166_v30  ;;  %1063 = vmatprep.mubr.f32.mxu1 %v14295_v7 }
  0x50   : > { %734 = vmatprep.mubr.f32.mxu0 %v14295_v7 }
  0x52   : > { %7156 = vmatmul.mubr.msk.f32.gmra.mrb[26].mxu1 %vm489_vm0, %v9355_v9 }
  0x53   : > { %7112 = vmatmul.mubr.msk.f32.gmra.mrb[28].mxu0 %vm489_vm0, %v9178_v33  ;;  %1069 = vmatprep.mubr.f32.mxu1 %v14295_v7 }
  0x54   : > { %740 = vmatprep.mubr.f32.mxu0 %v14295_v7 }
  0x56   : > { %7157 = vmatmul.mubr.msk.f32.gmra.mrb[28].mxu1 %vm489_vm0, %v9364_v10 }
  0x57   : > { %7113 = vmatmul.mubr.msk.f32.gmra.mrb[30].mxu0 %vm489_vm0, %v9214_v45  ;;  %1075 = vmatprep.mubr.f32.mxu1 %v14295_v7 }
  0x58   : > { %746 = vmatprep.mubr.f32.mxu0 %v14295_v7 }
  0x5a   : > { %7158 = vmatmul.mubr.msk.f32.gmra.mrb[30].mxu1 %vm489_vm0, %v9373_v11 }
  0x5b   : > { %7114 = vmatmul.mubr.msk.f32.gmra.mrb[32].mxu0 %vm489_vm0, %v9229_v49  ;;  %1081 = vmatprep.mubr.f32.mxu1 %v14295_v7 }
  0x5c   : > { %752 = vmatprep.mubr.f32.mxu0 %v14295_v7 }
  0x5e   : > { %7159 = vmatmul.mubr.msk.f32.gmra.mrb[32].mxu1 %vm489_vm0, %v9382_v12 }
  0x5f   : > { %7115 = vmatmul.mubr.msk.f32.gmra.mrb[34].mxu0 %vm489_vm0, %v9244_v52  ;;  %1087 = vmatprep.mubr.f32.mxu1 %v14295_v7 }
  0x60   : > { %758 = vmatprep.mubr.f32.mxu0 %v14295_v7 }
  0x62   : > { %7160 = vmatmul.mubr.msk.f32.gmra.mrb[34].mxu1 %vm489_vm0, %v9391_v13 }
  0x63   : > { %7116 = vmatmul.mubr.msk.f32.gmra.mrb[36].mxu0 %vm489_vm0, %v9256_v54  ;;  %1093 = vmatprep.mubr.f32.mxu1 %v14295_v7 }
  0x64   : > { %764 = vmatprep.mubr.f32.mxu0 %v14295_v7 }
  0x66   : > { %7161 = vmatmul.mubr.msk.f32.gmra.mrb[36].mxu1 %vm489_vm0, %v9400_v14 }
  0x67   : > { %7117 = vmatmul.mubr.msk.f32.gmra.mrb[38].mxu0 %vm489_vm0, %v9268_v56  ;;  %1421 = vmatprep.mubr.f32.mxu1 %v14295_v7 }
  0x68   : > { %770 = vmatprep.mubr.f32.mxu0 %v14295_v7 }
  0x6a   : > { %7194 = vmatmul.mubr.msk.f32.vlgmr.msra.gmra.mrb[38].mxu1 %vm489_vm0, %v9158_v28 }
  0x6b   : > { %7118 = vmatmul.mubr.msk.f32.gmra.mrb[40].mxu0 %vm489_vm0, %v9280_v58  ;;  %1427 = vmatprep.mubr.f32.mxu1 %v14295_v7 }
  0x6c   : > { %776 = vmatprep.mubr.f32.mxu0 %v14295_v7 }
  0x6e   : > { %7195 = vmatmul.mubr.msk.f32.gmra.mrb[40].mxu1 %vm489_vm0, %v9170_v31 }
  0x6f   : > { %7119 = vmatmul.mubr.msk.f32.gmra.mrb[42].mxu0 %vm489_vm0, %v9292_v60  ;;  %1433 = vmatprep.mubr.f32.mxu1 %v14295_v7 }
  0x70   : > { %782 = vmatprep.mubr.f32.mxu0 %v14295_v7 }
  0x72   : > { %7196 = vmatmul.mubr.msk.f32.gmra.mrb[42].mxu1 %vm489_vm0, %v9194_v37 }
  0x73   : > { %7120 = vmatmul.mubr.msk.f32.gmra.mrb[44].mxu0 %vm489_vm0, %v9304_v62  ;;  %1439 = vmatprep.mubr.f32.mxu1 %v14295_v7 }
  0x74   : > { %788 = vmatprep.mubr.f32.mxu0 %v14295_v7 }
  0x76   : > { %7197 = vmatmul.mubr.msk.f32.gmra.mrb[44].mxu1 %vm489_vm0, %v9218_v46 }
  0x77   : > { %7121 = vmatmul.mubr.msk.f32.gmra.mrb[46].mxu0 %vm489_vm0, %v9322_v2  ;;  %1445 = vmatprep.mubr.f32.mxu1 %v14295_v7 }
  0x78   : > { %794 = vmatprep.mubr.f32.mxu0 %v14295_v7 }
  0x7a   : > { %7198 = vmatmul.mubr.msk.f32.gmra.mrb[46].mxu1 %vm489_vm0, %v9233_v50 }
  0x7b   : > { %7122 = vmatmul.mubr.msk.f32.gmra.mrb[48].mxu0 %vm489_vm0, %v9334_v5  ;;  %1451 = vmatprep.mubr.f32.mxu1 %v14295_v7 }
  0x7c   : > { %800 = vmatprep.mubr.f32.mxu0 %v14295_v7 }
  0x7e   : > { %7199 = vmatmul.mubr.msk.f32.gmra.mrb[48].mxu1 %vm489_vm0, %v9248_v53 }
  0x7f   : > { %7123 = vmatmul.mubr.msk.f32.gmra.mrb[50].mxu0 %vm489_vm0, %v9346_v8  ;;  %1457 = vmatprep.mubr.f32.mxu1 %v14295_v7 }
  0x80   : > { %806 = vmatprep.mubr.f32.mxu0 %v14295_v7 }
  0x82   : > { %7200 = vmatmul.mubr.msk.f32.gmra.mrb[50].mxu1 %vm489_vm0, %v9260_v55 }
  0x83   : > { %7124 = vmatmul.mubr.msk.f32.gmra.mrb[52].mxu0 %vm489_vm0, %v9355_v9  ;;  %1463 = vmatprep.mubr.f32.mxu1 %v14295_v7 }
  0x84   : > { %812 = vmatprep.mubr.f32.mxu0 %v14295_v7 }
  0x86   : > { %7201 = vmatmul.mubr.msk.f32.gmra.mrb[52].mxu1 %vm489_vm0, %v9272_v57 }
  0x87   : > { %7125 = vmatmul.mubr.msk.f32.gmra.mrb[54].mxu0 %vm489_vm0, %v9364_v10  ;;  %1469 = vmatprep.mubr.f32.mxu1 %v14295_v7 }
  0x88   : > { %818 = vmatprep.mubr.f32.mxu0 %v14295_v7 }
  0x8a   : > { %7202 = vmatmul.mubr.msk.f32.gmra.mrb[54].mxu1 %vm489_vm0, %v9284_v59 }
  0x8b   : > { %7126 = vmatmul.mubr.msk.f32.gmra.mrb[56].mxu0 %vm489_vm0, %v9373_v11  ;;  %1475 = vmatprep.mubr.f32.mxu1 %v14295_v7 }
  0x8c   : > { %824 = vmatprep.mubr.f32.mxu0 %v14295_v7 }
  0x8e   : > { %7203 = vmatmul.mubr.msk.f32.gmra.mrb[56].mxu1 %vm489_vm0, %v9296_v61 }
  0x8f   : > { %7127 = vmatmul.mubr.msk.f32.gmra.mrb[58].mxu0 %vm489_vm0, %v9382_v12  ;;  %1481 = vmatprep.mubr.f32.mxu1 %v14295_v7 }
  0x90   : > { %830 = vmatprep.mubr.f32.mxu0 %v14295_v7 }
  0x92   : > { %7204 = vmatmul.mubr.msk.f32.gmra.mrb[58].mxu1 %vm489_vm0, %v9308_v63 }
  0x93   : > { %7128 = vmatmul.mubr.msk.f32.gmra.mrb[60].mxu0 %vm489_vm0, %v9391_v13  ;;  %1487 = vmatprep.mubr.f32.mxu1 %v14295_v7 }
  0x94   : > { %836 = vmatprep.mubr.f32.mxu0 %v14295_v7 }
  0x96   : > { %7205 = vmatmul.mubr.msk.f32.gmra.mrb[60].mxu1 %vm489_vm0, %v9326_v4 }
  0x97   : > { %7129 = vmatmul.mubr.msk.f32.gmra.mrb[62].mxu0 %vm489_vm0, %v9400_v14  ;;  %1493 = vmatprep.mubr.f32.mxu1 %v14295_v7 }
  0x98   : > { %907 = vmatprep.mubr.f32.mxu0 %v14295_v7 }
  0x9a   : > { %7206 = vmatmul.mubr.msk.f32.gmra.mrb[62].mxu1 %vm489_vm0, %v9338_v6 }
  0x9b   : > { %7130 = vmatmul.mubr.msk.f32.vlgmr.msra.gmra.mrb[64].mxu0 %vm489_vm0, %v9158_v28  ;;  %1499 = vmatprep.mubr.f32.mxu1 %v14295_v7 }
  0x9c   : > { %913 = vmatprep.mubr.f32.mxu0 %v14295_v7  ;;  %7657 = vmatpush1.bf16.msra.mxu0 %v7656_v19  ;;  %v418_v19 = vld [vmem:[%s9805_s28 + $0x8] sm:$0xff] }
  0x9d   : > { %7659 = vmatprep.subr.bf16.mxu0 %v7658_v20 }
  0x9e   : > { %7207 = vmatmul.mubr.msk.f32.gmra.mrb[64].mxu1 %vm489_vm0, %v9166_v30 }
  0x9f   : > { %7131 = vmatmul.mubr.msk.f32.gmra.mrb[66].mxu0 %vm489_vm0, %v9170_v31  ;;  %1505 = vmatprep.mubr.f32.mxu1 %v14295_v7 }
  0xa0   : > { %919 = vmatprep.mubr.f32.mxu0 %v14295_v7  ;;  %7661 = vmatpush1.bf16.msra.mxu0 %v7660_v23 }
  0xa1   : > { %1108 = vmatprep.subr.mxu0 %v486_v24  ;;  %v420_v24 = vld [vmem:[%s9805_s28 + $0x18] sm:$0xff] }
  0xa2   : > { %7208 = vmatmul.mubr.msk.f32.gmra.mrb[66].mxu1 %vm489_vm0, %v9178_v33 }
  0xa3   : > { %7132 = vmatmul.mubr.msk.f32.gmra.mrb[68].mxu0 %vm489_vm0, %v9194_v37  ;;  %1511 = vmatprep.mubr.f32.mxu1 %v14295_v7 }
  0xa4   : > { %925 = vmatprep.mubr.f32.mxu0 %v14295_v7  ;;  %1109 = vmatpush1.msra.mxu0 %v485_v25 }
  0xa5   : > { %7226 = vmatprep.subr.msk.mxu0 %vm2235_vm1, %v2129_v26 }
  0xa6   : > { %7209 = vmatmul.mubr.msk.f32.gmra.mrb[68].mxu1 %vm489_vm0, %v9214_v45 }
  0xa7   : > { %7133 = vmatmul.mubr.msk.f32.gmra.mrb[70].mxu0 %vm489_vm0, %v9218_v46  ;;  %1517 = vmatprep.mubr.f32.mxu1 %v14295_v7 }
  0xa8   : > { %931 = vmatprep.mubr.f32.mxu0 %v14295_v7 }
  0xaa   : > { %7210 = vmatmul.mubr.msk.f32.gmra.mrb[70].mxu1 %vm489_vm0, %v9229_v49 }
  0xab   : > { %7134 = vmatmul.mubr.msk.f32.gmra.mrb[72].mxu0 %vm489_vm0, %v9233_v50  ;;  %1523 = vmatprep.mubr.f32.mxu1 %v14295_v7 }
  0xac   : > { %937 = vmatprep.mubr.f32.mxu0 %v14295_v7 }
  0xae   : > { %7211 = vmatmul.mubr.msk.f32.gmra.mrb[72].mxu1 %vm489_vm0, %v9244_v52 }
  0xaf   : > { %7135 = vmatmul.mubr.msk.f32.gmra.mrb[74].mxu0 %vm489_vm0, %v9248_v53  ;;  %1529 = vmatprep.mubr.f32.mxu1 %v14295_v7 }
  0xb0   : > { %943 = vmatprep.mubr.f32.mxu0 %v14295_v7 }
  0xb2   : > { %7212 = vmatmul.mubr.msk.f32.gmra.mrb[74].mxu1 %vm489_vm0, %v9256_v54 }
  0xb3   : > { %7136 = vmatmul.mubr.msk.f32.gmra.mrb[76].mxu0 %vm489_vm0, %v9260_v55  ;;  %1535 = vmatprep.mubr.f32.mxu1 %v14295_v7 }
  0xb4   : > { %949 = vmatprep.mubr.f32.mxu0 %v14295_v7 }
  0xb6   : > { %7213 = vmatmul.mubr.msk.f32.gmra.mrb[76].mxu1 %vm489_vm0, %v9268_v56 }
  0xb7   : > { %7137 = vmatmul.mubr.msk.f32.gmra.mrb[78].mxu0 %vm489_vm0, %v9272_v57  ;;  %1541 = vmatprep.mubr.f32.mxu1 %v14295_v7 }
  0xb8   : > { %955 = vmatprep.mubr.f32.mxu0 %v14295_v7 }
  0xba   : > { %7214 = vmatmul.mubr.msk.f32.gmra.mrb[78].mxu1 %vm489_vm0, %v9280_v58 }
  0xbb   : > { %7138 = vmatmul.mubr.msk.f32.gmra.mrb[80].mxu0 %vm489_vm0, %v9284_v59  ;;  %1547 = vmatprep.mubr.f32.mxu1 %v14295_v7 }
  0xbc   : > { %961 = vmatprep.mubr.f32.mxu0 %v14295_v7 }
  0xbe   : > { %7215 = vmatmul.mubr.msk.f32.gmra.mrb[80].mxu1 %vm489_vm0, %v9292_v60 }
  0xbf   : > { %7139 = vmatmul.mubr.msk.f32.gmra.mrb[82].mxu0 %vm489_vm0, %v9296_v61  ;;  %1553 = vmatprep.mubr.f32.mxu1 %v14295_v7 }
  0xc0   : > { %967 = vmatprep.mubr.f32.mxu0 %v14295_v7 }
  0xc2   : > { %7216 = vmatmul.mubr.msk.f32.gmra.mrb[82].mxu1 %vm489_vm0, %v9304_v62 }
  0xc3   : > { %7140 = vmatmul.mubr.msk.f32.gmra.mrb[84].mxu0 %vm489_vm0, %v9308_v63  ;;  %1559 = vmatprep.mubr.f32.mxu1 %v14295_v7 }
  0xc4   : > { %973 = vmatprep.mubr.f32.mxu0 %v14295_v7 }
  0xc6   : > { %7217 = vmatmul.mubr.msk.f32.gmra.mrb[84].mxu1 %vm489_vm0, %v9322_v2 }
  0xc7   : > { %7141 = vmatmul.mubr.msk.f32.gmra.mrb[86].mxu0 %vm489_vm0, %v9326_v4  ;;  %1565 = vmatprep.mubr.f32.mxu1 %v14295_v7 }
  0xc8   : > { %979 = vmatprep.mubr.f32.mxu0 %v14295_v7 }
  0xca   : > { %7218 = vmatmul.mubr.msk.f32.gmra.mrb[86].mxu1 %vm489_vm0, %v9334_v5 }
  0xcb   : > { %7142 = vmatmul.mubr.msk.f32.gmra.mrb[88].mxu0 %vm489_vm0, %v9338_v6  ;;  %1571 = vmatprep.mubr.f32.mxu1 %v14295_v7 }
  0xcc   : > { %1164 = vmatprep.mubr.f32.mxu0 %v14295_v7 }
  0xce   : > { %7219 = vmatmul.mubr.msk.f32.gmra.mrb[88].mxu1 %vm489_vm0, %v9346_v8 }
  0xcf   : > { %7162 = vmatmul.mubr.msk.f32.vlgmr.msra.gmra.mrb[90].mxu0 %vm489_vm0, %v9158_v28  ;;  %1577 = vmatprep.mubr.f32.mxu1 %v14295_v7  ;;  %v1615_v28 = vld [vmem:[%s14285_s2 + $0x8] sm:$0xff] }
  0xd0   : > { %1170 = vmatprep.mubr.f32.mxu0 %v14295_v7  ;;  %7227 = vmatpush1.msk.msra.mxu0 %vm2235_vm1, %v2128_v27  ;;  %v421_v27 = vld [vmem:[%s9805_s28 + $0x20] sm:$0xff] }
  0xd2   : > { %7220 = vmatmul.mubr.msk.f32.gmra.mrb[90].mxu1 %vm489_vm0, %v9355_v9 }
  0xd3   : > { %7163 = vmatmul.mubr.msk.f32.gmra.mrb[92].mxu0 %vm489_vm0, %v9170_v31  ;;  %1583 = vmatprep.mubr.f32.mxu1 %v14295_v7 }
  0xd4   : > { %1176 = vmatprep.mubr.f32.mxu0 %v14295_v7 }
  0xd6   : > { %7221 = vmatmul.mubr.msk.f32.gmra.mrb[92].mxu1 %vm489_vm0, %v9364_v10 }
  0xd7   : > { %7164 = vmatmul.mubr.msk.f32.gmra.mrb[94].mxu0 %vm489_vm0, %v9194_v37  ;;  %1589 = vmatprep.mubr.f32.mxu1 %v14295_v7 }
  0xd8   : > { %1182 = vmatprep.mubr.f32.mxu0 %v14295_v7 }
  0xda   : > { %7222 = vmatmul.mubr.msk.f32.gmra.mrb[94].mxu1 %vm489_vm0, %v9373_v11 }
  0xdb   : > { %7165 = vmatmul.mubr.msk.f32.gmra.mrb[96].mxu0 %vm489_vm0, %v9218_v46  ;;  %1595 = vmatprep.mubr.f32.mxu1 %v14295_v7 }
  0xdc   : > { %1188 = vmatprep.mubr.f32.mxu0 %v14295_v7 }
  0xde   : > { %7223 = vmatmul.mubr.msk.f32.gmra.mrb[96].mxu1 %vm489_vm0, %v9382_v12 }
  0xdf   : > { %7166 = vmatmul.mubr.msk.f32.gmra.mrb[98].mxu0 %vm489_vm0, %v9233_v50  ;;  %1601 = vmatprep.mubr.f32.mxu1 %v14295_v7 }
  0xe0   : > { %1194 = vmatprep.mubr.f32.mxu0 %v14295_v7 }
  0xe2   : > { %7224 = vmatmul.mubr.msk.f32.gmra.mrb[98].mxu1 %vm489_vm0, %v9391_v13 }
  0xe3   : > { %7167 = vmatmul.mubr.msk.f32.gmra.mrb[100].mxu0 %vm489_vm0, %v9248_v53  ;;  %1607 = vmatprep.mubr.f32.mxu1 %v14295_v7 }
  0xe4   : > { %1200 = vmatprep.mubr.f32.mxu0 %v14295_v7 }
  0xe6   : > { %7225 = vmatmul.mubr.msk.f32.gmra.mrb[100].mxu1 %vm489_vm0, %v9400_v14 }
  0xe7   : > { %7168 = vmatmul.mubr.msk.f32.gmra.mrb[102].mxu0 %vm489_vm0, %v9260_v55 }
  0xe8   : > { %1206 = vmatprep.mubr.f32.mxu0 %v14295_v7 }
  0xeb   : > { %7169 = vmatmul.mubr.msk.f32.gmra.mrb[104].mxu0 %vm489_vm0, %v9272_v57 }
  0xec   : > { %1212 = vmatprep.mubr.f32.mxu0 %v14295_v7 }
  0xee   : > { %v9638_v29 = vpop.f32.mrb[0].mxu0 }
  0xef   : > { %14562 = vst [vmem:[#allocation2_spill] sm:$0xff] %v9638_v29  ;;  %v654_v31 = vpop.f32.mrb[1].mxu0  ;;  %7170 = vmatmul.mubr.msk.f32.gmra.mrb[106].mxu0 %vm489_vm0, %v9284_v59 }
  0xf0   : > { %1218 = vmatprep.mubr.f32.mxu0 %v14295_v7  ;;  %v9643_v32 = vmul.f32 %v1615_v28, %v654_v31 }
  0xf2   : > { %14563 = vst [vmem:[#allocation3_spill] sm:$0xff] %v9643_v32  ;;  %v9645_v34 = vpop.f32.mrb[2].mxu0  ;;  %2883 = vmatprep.mubr.f32.mxu1 %v9643_v32 }
  0xf3   : > { %14564 = vst [vmem:[#allocation4_spill] sm:$0xff] %v9645_v34  ;;  %v9648_v35 = vpop.f32.mrb[3].mxu0  ;;  %7171 = vmatmul.mubr.msk.f32.gmra.mrb[108].mxu0 %vm489_vm0, %v9296_v61 }
  0xf4   : > { %14565 = vst [vmem:[#allocation5_spill] sm:$0xff] %v9648_v35  ;;  %1224 = vmatprep.mubr.f32.mxu0 %v14295_v7  ;;  %v10384_v35 = vpop.f32.mrb[0].mxu1 }
  0xf5   : > { %14726 = vst [vmem:[#allocation166_spill] sm:$0xff] %v10384_v35 }
  0xf6   : > { %v9653_v36 = vpop.f32.mrb[4].mxu0 }
  0xf7   : > { %14566 = vst [vmem:[#allocation6_spill] sm:$0xff] %v9653_v36  ;;  %v9655_v37 = vpop.f32.mrb[5].mxu0  ;;  %7172 = vmatmul.mubr.msk.f32.gmra.mrb[110].mxu0 %vm489_vm0, %v9308_v63 }
  0xf8   : > { %14567 = vst [vmem:[#allocation7_spill] sm:$0xff] %v9655_v37  ;;  %1230 = vmatprep.mubr.f32.mxu0 %v14295_v7 }
  0xfa   : > { %v9660_v38 = vpop.f32.mrb[6].mxu0 }
  0xfb   : > { %14568 = vst [vmem:[#allocation8_spill] sm:$0xff] %v9660_v38  ;;  %v9662_v39 = vpop.f32.mrb[7].mxu0  ;;  %7173 = vmatmul.mubr.msk.f32.gmra.mrb[112].mxu0 %vm489_vm0, %v9326_v4 }
  0xfc   : > { %14569 = vst [vmem:[#allocation9_spill] sm:$0xff] %v9662_v39  ;;  %1236 = vmatprep.mubr.f32.mxu0 %v14295_v7 }
  0xfe   : > { %v9667_v40 = vpop.f32.mrb[8].mxu0 }
  0xff   : > { %14570 = vst [vmem:[#allocation10_spill] sm:$0xff] %v9667_v40  ;;  %v9669_v41 = vpop.f32.mrb[9].mxu0  ;;  %7174 = vmatmul.mubr.msk.f32.gmra.mrb[114].mxu0 %vm489_vm0, %v9338_v6 }
 0x100   : > { %14571 = vst [vmem:[#allocation11_spill] sm:$0xff] %v9669_v41  ;;  %1242 = vmatprep.mubr.f32.mxu0 %v14295_v7 }
 0x102   : > { %v9674_v42 = vpop.f32.mrb[10].mxu0 }
 0x103   : > { %14572 = vst [vmem:[#allocation12_spill] sm:$0xff] %v9674_v42  ;;  %v9676_v43 = vpop.f32.mrb[11].mxu0  ;;  %7175 = vmatmul.mubr.msk.f32.gmra.mrb[116].mxu0 %vm489_vm0, %v9166_v30 }
 0x104   : > { %14573 = vst [vmem:[#allocation13_spill] sm:$0xff] %v9676_v43  ;;  %1248 = vmatprep.mubr.f32.mxu0 %v14295_v7 }
 0x106   : > { %v9681_v44 = vpop.f32.mrb[12].mxu0 }
 0x107   : > { %14574 = vst [vmem:[#allocation14_spill] sm:$0xff] %v9681_v44  ;;  %v9683_v46 = vpop.f32.mrb[13].mxu0  ;;  %7176 = vmatmul.mubr.msk.f32.gmra.mrb[118].mxu0 %vm489_vm0, %v9178_v33 }
 0x108   : > { %14575 = vst [vmem:[#allocation15_spill] sm:$0xff] %v9683_v46  ;;  %1254 = vmatprep.mubr.f32.mxu0 %v14295_v7 }
 0x10a   : > { %v9688_v47 = vpop.f32.mrb[14].mxu0 }
 0x10b   : > { %14576 = vst [vmem:[#allocation16_spill] sm:$0xff] %v9688_v47  ;;  %v9690_v48 = vpop.f32.mrb[15].mxu0  ;;  %7177 = vmatmul.mubr.msk.f32.gmra.mrb[120].mxu0 %vm489_vm0, %v9214_v45 }
 0x10c   : > { %14577 = vst [vmem:[#allocation17_spill] sm:$0xff] %v9690_v48  ;;  %1260 = vmatprep.mubr.f32.mxu0 %v14295_v7 }
 0x10e   : > { %v9695_v30 = vpop.f32.mrb[16].mxu0 }
 0x10f   : > { %14578 = vst [vmem:[#allocation18_spill] sm:$0xff] %v9695_v30  ;;  %v9697_v50 = vpop.f32.mrb[17].mxu0  ;;  %7178 = vmatmul.mubr.msk.f32.gmra.mrb[122].mxu0 %vm489_vm0, %v9229_v49 }
 0x110   : > { %14579 = vst [vmem:[#allocation19_spill] sm:$0xff] %v9697_v50  ;;  %1266 = vmatprep.mubr.f32.mxu0 %v14295_v7 }
 0x112   : > { %v9702_v33 = vpop.f32.mrb[18].mxu0 }
 0x113   : > { %14580 = vst [vmem:[#allocation20_spill] sm:$0xff] %v9702_v33  ;;  %v9704_v51 = vpop.f32.mrb[19].mxu0  ;;  %7179 = vmatmul.mubr.msk.f32.gmra.mrb[124].mxu0 %vm489_vm0, %v9244_v52 }
 0x114   : > { %14581 = vst [vmem:[#allocation21_spill] sm:$0xff] %v9704_v51  ;;  %1272 = vmatprep.mubr.f32.mxu0 %v14295_v7 }
 0x116   : > { %v9709_v45 = vpop.f32.mrb[20].mxu0 }
 0x117   : > { %14582 = vst [vmem:[#allocation22_spill] sm:$0xff] %v9709_v45  ;;  %v9711_v53 = vpop.f32.mrb[21].mxu0  ;;  %7180 = vmatmul.mubr.msk.f32.gmra.mrb[126].mxu0 %vm489_vm0, %v9256_v54 }
 0x118   : > { %14583 = vst [vmem:[#allocation23_spill] sm:$0xff] %v9711_v53  ;;  %1278 = vmatprep.mubr.f32.mxu0 %v14295_v7 }
 0x11a   : > { %v9716_v49 = vpop.f32.mrb[22].mxu0 }
 0x11b   : > { %14584 = vst [vmem:[#allocation24_spill] sm:$0xff] %v9716_v49  ;;  %v9718_v55 = vpop.f32.mrb[23].mxu0  ;;  %7181 = vmatmul.mubr.msk.f32.gmra.mrb[128].mxu0 %vm489_vm0, %v9268_v56 }
 0x11c   : > { %14585 = vst [vmem:[#allocation25_spill] sm:$0xff] %v9718_v55  ;;  %1284 = vmatprep.mubr.f32.mxu0 %v14295_v7 }
 0x11e   : > { %v9723_v52 = vpop.f32.mrb[24].mxu0 }
 0x11f   : > { %14586 = vst [vmem:[#allocation26_spill] sm:$0xff] %v9723_v52  ;;  %v9725_v57 = vpop.f32.mrb[25].mxu0  ;;  %7182 = vmatmul.mubr.msk.f32.gmra.mrb[130].mxu0 %vm489_vm0, %v9280_v58 }
 0x120   : > { %14587 = vst [vmem:[#allocation27_spill] sm:$0xff] %v9725_v57  ;;  %1290 = vmatprep.mubr.f32.mxu0 %v14295_v7 }
 0x122   : > { %v9730_v54 = vpop.f32.mrb[26].mxu0 }
 0x123   : > { %14588 = vst [vmem:[#allocation28_spill] sm:$0xff] %v9730_v54  ;;  %v9732_v59 = vpop.f32.mrb[27].mxu0  ;;  %7183 = vmatmul.mubr.msk.f32.gmra.mrb[132].mxu0 %vm489_vm0, %v9292_v60 }
 0x124   : > { %14589 = vst [vmem:[#allocation29_spill] sm:$0xff] %v9732_v59  ;;  %1296 = vmatprep.mubr.f32.mxu0 %v14295_v7 }
 0x126   : > { %v9737_v56 = vpop.f32.mrb[28].mxu0 }
 0x127   : > { %14590 = vst [vmem:[#allocation30_spill] sm:$0xff] %v9737_v56  ;;  %v9739_v61 = vpop.f32.mrb[29].mxu0  ;;  %7184 = vmatmul.mubr.msk.f32.gmra.mrb[134].mxu0 %vm489_vm0, %v9304_v62 }
 0x128   : > { %14591 = vst [vmem:[#allocation31_spill] sm:$0xff] %v9739_v61  ;;  %1302 = vmatprep.mubr.f32.mxu0 %v14295_v7 }
 0x12a   : > { %v9744_v58 = vpop.f32.mrb[30].mxu0 }
 0x12b   : > { %14592 = vst [vmem:[#allocation32_spill] sm:$0xff] %v9744_v58  ;;  %v9746_v63 = vpop.f32.mrb[31].mxu0  ;;  %7185 = vmatmul.mubr.msk.f32.gmra.mrb[136].mxu0 %vm489_vm0, %v9322_v2 }
 0x12c   : > { %14593 = vst [vmem:[#allocation33_spill] sm:$0xff] %v9746_v63  ;;  %1308 = vmatprep.mubr.f32.mxu0 %v14295_v7 }
 0x12e   : > { %v9751_v60 = vpop.f32.mrb[32].mxu0 }
 0x12f   : > { %14594 = vst [vmem:[#allocation34_spill] sm:$0xff] %v9751_v60  ;;  %v9753_v0 = vpop.f32.mrb[33].mxu0  ;;  %7186 = vmatmul.mubr.msk.f32.gmra.mrb[138].mxu0 %vm489_vm0, %v9334_v5 }
 0x130   : > { %14595 = vst [vmem:[#allocation35_spill] sm:$0xff] %v9753_v0  ;;  %1314 = vmatprep.mubr.f32.mxu0 %v14295_v7 }
 0x132   : > { %v9758_v62 = vpop.f32.mrb[34].mxu0 }
 0x133   : > { %14596 = vst [vmem:[#allocation36_spill] sm:$0xff] %v9758_v62  ;;  %v9760_v1 = vpop.f32.mrb[35].mxu0  ;;  %7187 = vmatmul.mubr.msk.f32.gmra.mrb[140].mxu0 %vm489_vm0, %v9346_v8 }
 0x134   : > { %14597 = vst [vmem:[#allocation37_spill] sm:$0xff] %v9760_v1  ;;  %1320 = vmatprep.mubr.f32.mxu0 %v14295_v7 }
 0x136   : > { %v9765_v2 = vpop.f32.mrb[36].mxu0 }
 0x137   : > { %14598 = vst [vmem:[#allocation38_spill] sm:$0xff] %v9765_v2  ;;  %v9767_v3 = vpop.f32.mrb[37].mxu0  ;;  %7188 = vmatmul.mubr.msk.f32.gmra.mrb[142].mxu0 %vm489_vm0, %v9355_v9 }
 0x138   : > { %14599 = vst [vmem:[#allocation39_spill] sm:$0xff] %v9767_v3  ;;  %1326 = vmatprep.mubr.f32.mxu0 %v14295_v7 }
 0x13a   : > { %v9772_v4 = vpop.f32.mrb[38].mxu0 }
 0x13b   : > { %14600 = vst [vmem:[#allocation40_spill] sm:$0xff] %v9772_v4  ;;  %v9774_v5 = vpop.f32.mrb[39].mxu0  ;;  %7189 = vmatmul.mubr.msk.f32.gmra.mrb[144].mxu0 %vm489_vm0, %v9364_v10 }
 0x13c   : > { %14601 = vst [vmem:[#allocation41_spill] sm:$0xff] %v9774_v5  ;;  %1332 = vmatprep.mubr.f32.mxu0 %v14295_v7 }
 0x13e   : > { %v9779_v6 = vpop.f32.mrb[40].mxu0 }
 0x13f   : > { %14602 = vst [vmem:[#allocation42_spill] sm:$0xff] %v9779_v6  ;;  %v9781_v8 = vpop.f32.mrb[41].mxu0  ;;  %7190 = vmatmul.mubr.msk.f32.gmra.mrb[146].mxu0 %vm489_vm0, %v9373_v11 }
 0x140   : > { %14603 = vst [vmem:[#allocation43_spill] sm:$0xff] %v9781_v8  ;;  %1338 = vmatprep.mubr.f32.mxu0 %v14295_v7 }
 0x142   : > { %v9786_v9 = vpop.f32.mrb[42].mxu0 }
 0x143   : > { %14604 = vst [vmem:[#allocation44_spill] sm:$0xff] %v9786_v9  ;;  %v9788_v15 = vpop.f32.mrb[43].mxu0  ;;  %7191 = vmatmul.mubr.msk.f32.gmra.mrb[148].mxu0 %vm489_vm0, %v9382_v12 }
 0x144   : > { %14605 = vst [vmem:[#allocation45_spill] sm:$0xff] %v9788_v15  ;;  %1344 = vmatprep.mubr.f32.mxu0 %v14295_v7 }
 0x146   : > { %v9793_v10 = vpop.f32.mrb[44].mxu0 }
 0x147   : > { %14606 = vst [vmem:[#allocation46_spill] sm:$0xff] %v9793_v10  ;;  %v9795_v16 = vpop.f32.mrb[45].mxu0  ;;  %7192 = vmatmul.mubr.msk.f32.gmra.mrb[150].mxu0 %vm489_vm0, %v9391_v13  ;;  %v417_v13 = vld [vmem:[%s9805_s28] sm:$0xff] }
 0x148   : > { %14607 = vst [vmem:[#allocation47_spill] sm:$0xff] %v9795_v16  ;;  %1350 = vmatprep.mubr.f32.mxu0 %v14295_v7 }
 0x14a   : > { %v9807_v11 = vpop.f32.mrb[46].mxu0 }
 0x14b   : > { %14608 = vst [vmem:[#allocation48_spill] sm:$0xff] %v9807_v11  ;;  %v9809_v12 = vpop.f32.mrb[47].mxu0  ;;  %7193 = vmatmul.mubr.msk.f32.gmra.mrb[152].mxu0 %vm489_vm0, %v9400_v14  ;;  %v419_v14 = vld [vmem:[%s9805_s28 + $0x10] sm:$0xff] }
 0x14c   : > { %14609 = vst [vmem:[#allocation49_spill] sm:$0xff] %v9809_v12  ;;  %2306 = vmatprep.mubr.f32.mxu0 %v14295_v7 }
 0x14e   : > { %v9815_v17 = vpop.f32.mrb[48].mxu0 }
 0x14f   : > { %14610 = vst [vmem:[#allocation50_spill] sm:$0xff] %v9815_v17  ;;  %v9817_v18 = vpop.f32.mrb[49].mxu0  ;;  %7228 = vmatmul.mubr.msk.f32.vlgmr.msra.gmra.mrb[154].mxu0 %vm2138_vm2, %v417_v13  ;;  %v422_v13 = vld [vmem:[%s9805_s28 + $0x28] sm:$0xff] }
 0x150   : > { %14611 = vst [vmem:[#allocation51_spill] sm:$0xff] %v9817_v18  ;;  %2312 = vmatprep.mubr.f32.mxu0 %v14295_v7 }
 0x152   : > { %v9822_v20 = vpop.f32.mrb[50].mxu0 }
 0x153   : > { %14612 = vst [vmem:[#allocation52_spill] sm:$0xff] %v9822_v20  ;;  %v9824_v21 = vpop.f32.mrb[51].mxu0  ;;  %7229 = vmatmul.mubr.msk.f32.gmra.mrb[156].mxu0 %vm2138_vm2, %v418_v19 }
 0x154   : > { %14613 = vst [vmem:[#allocation53_spill] sm:$0xff] %v9824_v21  ;;  %2318 = vmatprep.mubr.f32.mxu0 %v14295_v7 }
 0x156   : > { %v9829_v22 = vpop.f32.mrb[52].mxu0 }
 0x157   : > { %14614 = vst [vmem:[#allocation54_spill] sm:$0xff] %v9829_v22  ;;  %v9831_v23 = vpop.f32.mrb[53].mxu0  ;;  %7230 = vmatmul.mubr.msk.f32.gmra.mrb[158].mxu0 %vm2138_vm2, %v419_v14 }
 0x158   : > { %14615 = vst [vmem:[#allocation55_spill] sm:$0xff] %v9831_v23  ;;  %2324 = vmatprep.mubr.f32.mxu0 %v14295_v7 }
 0x15a   : > { %v9836_v25 = vpop.f32.mrb[54].mxu0 }
 0x15b   : > { %14616 = vst [vmem:[#allocation56_spill] sm:$0xff] %v9836_v25  ;;  %v9838_v26 = vpop.f32.mrb[55].mxu0  ;;  %7231 = vmatmul.mubr.msk.f32.gmra.mrb[160].mxu0 %vm2138_vm2, %v420_v24  ;;  %v423_v24 = vld [vmem:[%s9805_s28 + $0x30] sm:$0xff] }
 0x15c   : > { %14617 = vst [vmem:[#allocation57_spill] sm:$0xff] %v9838_v26  ;;  %2330 = vmatprep.mubr.f32.mxu0 %v14295_v7 }
 0x15e   : > { %v9843_v28 = vpop.f32.mrb[56].mxu0 }
 0x15f   : > { %14618 = vst [vmem:[#allocation58_spill] sm:$0xff] %v9843_v28  ;;  %v9845_v31 = vpop.f32.mrb[57].mxu0  ;;  %7232 = vmatmul.mubr.msk.f32.gmra.mrb[162].mxu0 %vm2138_vm2, %v421_v27  ;;  %v424_v27 = vld [vmem:[%s9805_s28 + $0x38] sm:$0xff] }
 0x160   : > { %14619 = vst [vmem:[#allocation59_spill] sm:$0xff] %v9845_v31  ;;  %2336 = vmatprep.mubr.f32.mxu0 %v14295_v7 }
 0x162   : > { %v9850_v19 = vpop.f32.mrb[58].mxu0 }
 0x163   : > { %14620 = vst [vmem:[#allocation60_spill] sm:$0xff] %v9850_v19  ;;  %v9852_v14 = vpop.f32.mrb[59].mxu0  ;;  %7233 = vmatmul.mubr.msk.f32.gmra.mrb[164].mxu0 %vm2138_vm2, %v422_v13  ;;  %v425_v13 = vld [vmem:[%s9805_s28 + $0x40] sm:$0xff] }
 0x164   : > { %14621 = vst [vmem:[#allocation61_spill] sm:$0xff] %v9852_v14  ;;  %2342 = vmatprep.mubr.f32.mxu0 %v14295_v7 }
 0x166   : > { %v9857_v32 = vpop.f32.mrb[60].mxu0 }
 0x167   : > { %14622 = vst [vmem:[#allocation62_spill] sm:$0xff] %v9857_v32  ;;  %v9859_v28 = vpop.f32.mrb[61].mxu0  ;;  %7234 = vmatmul.mubr.msk.f32.gmra.mrb[166].mxu0 %vm2138_vm2, %v423_v24  ;;  %v426_v24 = vld [vmem:[%s9805_s28 + $0x48] sm:$0xff] }
 0x168   : > { %14623 = vst [vmem:[#allocation63_spill] sm:$0xff] %v9859_v28  ;;  %2348 = vmatprep.mubr.f32.mxu0 %v14295_v7 }
 0x16a   : > { %v9864_v31 = vpop.f32.mrb[62].mxu0 }
 0x16b   : > { %14624 = vst [vmem:[#allocation64_spill] sm:$0xff] %v9864_v31  ;;  %v9866_v19 = vpop.f32.mrb[63].mxu0  ;;  %7235 = vmatmul.mubr.msk.f32.gmra.mrb[168].mxu0 %vm2138_vm2, %v424_v27  ;;  %v427_v27 = vld [vmem:[%s9805_s28 + $0x50] sm:$0xff] }
 0x16c   : > { %14625 = vst [vmem:[#allocation65_spill] sm:$0xff] %v9866_v19  ;;  %2354 = vmatprep.mubr.f32.mxu0 %v14295_v7 }
 0x16e   : > { %v9871_v14 = vpop.f32.mrb[64].mxu0 }
 0x16f   : > { %v9873_v32 = vpop.f32.mrb[65].mxu0  ;;  %7236 = vmatmul.mubr.msk.f32.gmra.mrb[170].mxu0 %vm2138_vm2, %v425_v13  ;;  %v428_v13 = vld [vmem:[%s9805_s28 + $0x58] sm:$0xff] }
 0x170   : > { %2360 = vmatprep.mubr.f32.mxu0 %v14295_v7 }
 0x172   : > { %v9878_v28 = vpop.f32.mrb[66].mxu0 }
 0x173   : > { %v9880_v31 = vpop.f32.mrb[67].mxu0  ;;  %7237 = vmatmul.mubr.msk.f32.gmra.mrb[172].mxu0 %vm2138_vm2, %v426_v24  ;;  %v429_v24 = vld [vmem:[%s9805_s28 + $0x60] sm:$0xff] }
 0x174   : > { %2366 = vmatprep.mubr.f32.mxu0 %v14295_v7 }
 0x176   : > { %v9885_v19 = vpop.f32.mrb[68].mxu0 }
 0x177   : > { %v9887_v25 = vpop.f32.mrb[69].mxu0  ;;  %7238 = vmatmul.mubr.msk.f32.gmra.mrb[174].mxu0 %vm2138_vm2, %v427_v27  ;;  %v430_v27 = vld [vmem:[%s9805_s28 + $0x68] sm:$0xff] }
 0x178   : > { %2372 = vmatprep.mubr.f32.mxu0 %v14295_v7 }
 0x17a   : > { %v9892_v26 = vpop.f32.mrb[70].mxu0 }
 0x17b   : > { %v9894_v22 = vpop.f32.mrb[71].mxu0  ;;  %7239 = vmatmul.mubr.msk.f32.gmra.mrb[176].mxu0 %vm2138_vm2, %v428_v13  ;;  %v431_v13 = vld [vmem:[%s9805_s28 + $0x70] sm:$0xff] }
 0x17c   : > { %2378 = vmatprep.mubr.f32.mxu0 %v14295_v7 }
 0x17e   : > { %v9899_v23 = vpop.f32.mrb[72].mxu0 }
 0x17f   : > { %v9901_v20 = vpop.f32.mrb[73].mxu0  ;;  %7240 = vmatmul.mubr.msk.f32.gmra.mrb[178].mxu0 %vm2138_vm2, %v429_v24  ;;  %v432_v24 = vld [vmem:[%s9805_s28 + $0x78] sm:$0xff] }
 0x180   : > { %2384 = vmatprep.mubr.f32.mxu0 %v14295_v7 }
 0x182   : > { %v9906_v21 = vpop.f32.mrb[74].mxu0 }
 0x183   : > { %v9908_v17 = vpop.f32.mrb[75].mxu0  ;;  %7241 = vmatmul.mubr.msk.f32.gmra.mrb[180].mxu0 %vm2138_vm2, %v430_v27  ;;  %v433_v27 = vld [vmem:[%s9805_s28 + $0x80] sm:$0xff] }
 0x184   : > { %2390 = vmatprep.mubr.f32.mxu0 %v14295_v7 }
 0x186   : > { %v9913_v18 = vpop.f32.mrb[76].mxu0 }
 0x187   : > { %v9915_v11 = vpop.f32.mrb[77].mxu0  ;;  %7242 = vmatmul.mubr.msk.f32.gmra.mrb[182].mxu0 %vm2138_vm2, %v431_v13  ;;  %v434_v13 = vld [vmem:[%s9805_s28 + $0x88] sm:$0xff] }
 0x188   : > { %2396 = vmatprep.mubr.f32.mxu0 %v14295_v7 }
 0x18a   : > { %v9920_v12 = vpop.f32.mrb[78].mxu0 }
 0x18b   : > { %v9922_v10 = vpop.f32.mrb[79].mxu0  ;;  %7243 = vmatmul.mubr.msk.f32.gmra.mrb[184].mxu0 %vm2138_vm2, %v432_v24  ;;  %v435_v24 = vld [vmem:[%s9805_s28 + $0x90] sm:$0xff] }
 0x18c   : > { %2402 = vmatprep.mubr.f32.mxu0 %v14295_v7 }
 0x18e   : > { %v9927_v16 = vpop.f32.mrb[80].mxu0 }
 0x18f   : > { %v9929_v9 = vpop.f32.mrb[81].mxu0  ;;  %7244 = vmatmul.mubr.msk.f32.gmra.mrb[186].mxu0 %vm2138_vm2, %v433_v27  ;;  %v436_v27 = vld [vmem:[%s9805_s28 + $0x98] sm:$0xff] }
 0x190   : > { %2408 = vmatprep.mubr.f32.mxu0 %v14295_v7 }
 0x192   : > { %v9934_v15 = vpop.f32.mrb[82].mxu0 }
 0x193   : > { %v9936_v6 = vpop.f32.mrb[83].mxu0  ;;  %7245 = vmatmul.mubr.msk.f32.gmra.mrb[188].mxu0 %vm2138_vm2, %v434_v13  ;;  %v437_v13 = vld [vmem:[%s9805_s28 + $0xa0] sm:$0xff] }
 0x194   : > { %2414 = vmatprep.mubr.f32.mxu0 %v14295_v7 }
 0x196   : > { %v9941_v8 = vpop.f32.mrb[84].mxu0 }
 0x197   : > { %v9943_v4 = vpop.f32.mrb[85].mxu0  ;;  %7246 = vmatmul.mubr.msk.f32.gmra.mrb[190].mxu0 %vm2138_vm2, %v435_v24  ;;  %v438_v24 = vld [vmem:[%s9805_s28 + $0xa8] sm:$0xff] }
 0x198   : > { %2420 = vmatprep.mubr.f32.mxu0 %v14295_v7 }
 0x19a   : > { %v9948_v5 = vpop.f32.mrb[86].mxu0 }
 0x19b   : > { %v9950_v2 = vpop.f32.mrb[87].mxu0  ;;  %7247 = vmatmul.mubr.msk.f32.gmra.mrb[192].mxu0 %vm2138_vm2, %v436_v27  ;;  %v439_v27 = vld [vmem:[%s9805_s28 + $0xb0] sm:$0xff] }
 0x19c   : > { %2426 = vmatprep.mubr.f32.mxu0 %v14295_v7 }
 0x19e   : > { %v9955_v3 = vpop.f32.mrb[88].mxu0 }
 0x19f   : > { %v9957_v62 = vpop.f32.mrb[89].mxu0  ;;  %7248 = vmatmul.mubr.msk.f32.gmra.mrb[194].mxu0 %vm2138_vm2, %v437_v13  ;;  %v440_v13 = vld [vmem:[%s9805_s28 + $0xb8] sm:$0xff] }
 0x1a0   : > { %2432 = vmatprep.mubr.f32.mxu0 %v14295_v7 }
 0x1a2   : > { %v9962_v1 = vpop.f32.mrb[90].mxu0 }
 0x1a3   : > { %14626 = vst [vmem:[#allocation66_spill] sm:$0xff] %v9962_v1  ;;  %v9964_v60 = vpop.f32.mrb[91].mxu0  ;;  %7249 = vmatmul.mubr.msk.f32.gmra.mrb[196].mxu0 %vm2138_vm2, %v438_v24  ;;  %v441_v24 = vld [vmem:[%s9805_s28 + $0xc0] sm:$0xff] }
 0x1a4   : > { %14627 = vst [vmem:[#allocation67_spill] sm:$0xff] %v9964_v60  ;;  %2438 = vmatprep.mubr.f32.mxu0 %v14295_v7 }
 0x1a6   : > { %v9969_v0 = vpop.f32.mrb[92].mxu0 }
 0x1a7   : > { %14628 = vst [vmem:[#allocation68_spill] sm:$0xff] %v9969_v0  ;;  %v9971_v58 = vpop.f32.mrb[93].mxu0  ;;  %7250 = vmatmul.mubr.msk.f32.gmra.mrb[198].mxu0 %vm2138_vm2, %v439_v27  ;;  %v442_v27 = vld [vmem:[%s9805_s28 + $0xc8] sm:$0xff] }
 0x1a8   : > { %14629 = vst [vmem:[#allocation69_spill] sm:$0xff] %v9971_v58  ;;  %2444 = vmatprep.mubr.f32.mxu0 %v14295_v7 }
 0x1aa   : > { %v9976_v63 = vpop.f32.mrb[94].mxu0 }
 0x1ab   : > { %14630 = vst [vmem:[#allocation70_spill] sm:$0xff] %v9976_v63  ;;  %v9978_v56 = vpop.f32.mrb[95].mxu0  ;;  %7251 = vmatmul.mubr.msk.f32.gmra.mrb[200].mxu0 %vm2138_vm2, %v440_v13  ;;  %v443_v13 = vld [vmem:[%s9805_s28 + $0xd0] sm:$0xff]  ;;  %v14298_v63 = vmov 0.0|0.0  }
 0x1ac   : > { %14631 = vst [vmem:[#allocation71_spill] sm:$0xff] %v9978_v56  ;;  %2450 = vmatprep.mubr.f32.mxu0 %v14295_v7  ;;  %7718 = vmatprep.subr.bf16.mxu0 %v14298_v63 }
 0x1ad   : > { %7670 = vmatprep.subr.bf16.mxu1 %v14298_v63 }
 0x1ae   : > { %v9983_v61 = vpop.f32.mrb[96].mxu0 }
 0x1af   : > { %14632 = vst [vmem:[#allocation72_spill] sm:$0xff] %v9983_v61  ;;  %v9985_v54 = vpop.f32.mrb[97].mxu0  ;;  %7252 = vmatmul.mubr.msk.f32.gmra.mrb[202].mxu0 %vm2138_vm2, %v441_v24  ;;  %v444_v24 = vld [vmem:[%s9805_s28 + $0xd8] sm:$0xff] }
 0x1b0   : > { %14633 = vst [vmem:[#allocation73_spill] sm:$0xff] %v9985_v54  ;;  %2456 = vmatprep.mubr.f32.mxu0 %v14295_v7 }
 0x1b2   : > { %v9990_v59 = vpop.f32.mrb[98].mxu0 }
 0x1b3   : > { %14634 = vst [vmem:[#allocation74_spill] sm:$0xff] %v9990_v59  ;;  %v9992_v52 = vpop.f32.mrb[99].mxu0  ;;  %7253 = vmatmul.mubr.msk.f32.gmra.mrb[204].mxu0 %vm2138_vm2, %v442_v27  ;;  %v445_v27 = vld [vmem:[%s9805_s28 + $0xe0] sm:$0xff] }
 0x1b4   : > { %14635 = vst [vmem:[#allocation75_spill] sm:$0xff] %v9992_v52  ;;  %2462 = vmatprep.mubr.f32.mxu0 %v14295_v7 }
 0x1b6   : > { %v9997_v57 = vpop.f32.mrb[100].mxu0 }
 0x1b7   : > { %14636 = vst [vmem:[#allocation76_spill] sm:$0xff] %v9997_v57  ;;  %v9999_v49 = vpop.f32.mrb[101].mxu0  ;;  %7254 = vmatmul.mubr.msk.f32.gmra.mrb[206].mxu0 %vm2138_vm2, %v443_v13  ;;  %v446_v13 = vld [vmem:[%s9805_s28 + $0xe8] sm:$0xff] }
 0x1b8   : > { %14637 = vst [vmem:[#allocation77_spill] sm:$0xff] %v9999_v49  ;;  %2468 = vmatprep.mubr.f32.mxu0 %v14295_v7 }
 0x1ba   : > { %v10004_v61 = vpop.f32.mrb[102].mxu0 }
 0x1bb   : > { %14638 = vst [vmem:[#allocation78_spill] sm:$0xff] %v10004_v61  ;;  %v10006_v59 = vpop.f32.mrb[103].mxu0  ;;  %7255 = vmatmul.mubr.msk.f32.gmra.mrb[208].mxu0 %vm2138_vm2, %v444_v24  ;;  %v447_v24 = vld [vmem:[%s9805_s28 + $0xf0] sm:$0xff] }
 0x1bc   : > { %14639 = vst [vmem:[#allocation79_spill] sm:$0xff] %v10006_v59  ;;  %2474 = vmatprep.mubr.f32.mxu0 %v14295_v7 }
 0x1be   : > { %v10011_v52 = vpop.f32.mrb[104].mxu0 }
 0x1bf   : > { %14640 = vst [vmem:[#allocation80_spill] sm:$0xff] %v10011_v52  ;;  %v10013_v57 = vpop.f32.mrb[105].mxu0  ;;  %7256 = vmatmul.mubr.msk.f32.gmra.mrb[210].mxu0 %vm2138_vm2, %v445_v27  ;;  %v1617_v52 = vld [vmem:[%s14285_s2 + $0x18] sm:$0xff] }
 0x1c0   : > { %14641 = vst [vmem:[#allocation81_spill] sm:$0xff] %v10013_v57  ;;  %2480 = vmatprep.mubr.f32.mxu0 %v14295_v7  ;;  %v448_v27 = vld [vmem:[%s9805_s28 + $0xf8] sm:$0xff] }
 0x1c2   : > { %v10018_v49 = vpop.f32.mrb[106].mxu0 }
 0x1c3   : > { %14642 = vst [vmem:[#allocation82_spill] sm:$0xff] %v10018_v49  ;;  %v10020_v61 = vpop.f32.mrb[107].mxu0  ;;  %7257 = vmatmul.mubr.msk.f32.gmra.mrb[212].mxu0 %vm2138_vm2, %v446_v13  ;;  %v10036_v49 = vmul.f32 %v1617_v52, %v9873_v32 }
 0x1c4   : > { %14643 = vst [vmem:[#allocation83_spill] sm:$0xff] %v10020_v61  ;;  %2486 = vmatprep.mubr.f32.mxu0 %v14295_v7 }
 0x1c5   : > { %14646 = vst [vmem:[#allocation86_spill] sm:$0xff] %v10036_v49 }
 0x1c6   : > { %v10025_v59 = vpop.f32.mrb[108].mxu0 }
 0x1c7   : > { %14644 = vst [vmem:[#allocation84_spill] sm:$0xff] %v10025_v59  ;;  %v10030_v57 = vpop.f32.mrb[109].mxu0  ;;  %7258 = vmatmul.mubr.msk.f32.gmra.mrb[214].mxu0 %vm2138_vm2, %v447_v24 }
 0x1c8   : > { %14645 = vst [vmem:[#allocation85_spill] sm:$0xff] %v10030_v57  ;;  %2492 = vmatprep.mubr.f32.mxu0 %v14295_v7 }
 0x1ca   : > { %v10038_v13 = vpop.f32.mrb[110].mxu0 }
 0x1cb   : > { %14647 = vst [vmem:[#allocation87_spill] sm:$0xff] %v10038_v13  ;;  %v10040_v61 = vpop.f32.mrb[111].mxu0  ;;  %7259 = vmatmul.mubr.msk.f32.gmra.mrb[216].mxu0 %vm2138_vm2, %v448_v27 }
 0x1cc   : > { %14648 = vst [vmem:[#allocation88_spill] sm:$0xff] %v10040_v61  ;;  %3108 = vmatprep.mubr.f32.mxu0 %v10036_v49 }
 0x1ce   : > { %v10044_v59 = vpop.f32.mrb[112].mxu0 }
 0x1cf   : > { %14649 = vst [vmem:[#allocation89_spill] sm:$0xff] %v10044_v59  ;;  %v10046_v55 = vpop.f32.mrb[113].mxu0 }
 0x1d0   : > { %14650 = vst [vmem:[#allocation90_spill] sm:$0xff] %v10046_v55 }
 0x1d2   : > { %v10048_v57 = vpop.f32.mrb[114].mxu0 }
 0x1d3   : > { %14651 = vst [vmem:[#allocation91_spill] sm:$0xff] %v10048_v57  ;;  %v10050_v24 = vpop.f32.mrb[115].mxu0 }
 0x1d4   : > { %14652 = vst [vmem:[#allocation92_spill] sm:$0xff] %v10050_v24 }
 0x1d6   : > { %v10052_v7 = vpop.f32.mrb[116].mxu0 }
 0x1d7   : > { %14653 = vst [vmem:[#allocation93_spill] sm:$0xff] %v10052_v7  ;;  %v10054_v32 = vpop.f32.mrb[117].mxu0 }
 0x1d8   : > { %14654 = vst [vmem:[#allocation94_spill] sm:$0xff] %v10054_v32 }
 0x1da   : > { %v10056_v52 = vpop.f32.mrb[118].mxu0 }
 0x1db   : > { %14655 = vst [vmem:[#allocation95_spill] sm:$0xff] %v10056_v52  ;;  %v10058_v13 = vpop.f32.mrb[119].mxu0 }
 0x1dc   : > { %14656 = vst [vmem:[#allocation96_spill] sm:$0xff] %v10058_v13 }
 0x1de   : > { %v10060_v61 = vpop.f32.mrb[120].mxu0 }
 0x1df   : > { %14657 = vst [vmem:[#allocation97_spill] sm:$0xff] %v10060_v61  ;;  %v10062_v27 = vpop.f32.mrb[121].mxu0 }
 0x1e0   : > { %14658 = vst [vmem:[#allocation98_spill] sm:$0xff] %v10062_v27 }
 0x1e2   : > { %v10064_v49 = vpop.f32.mrb[122].mxu0 }
 0x1e3   : > { %14659 = vst [vmem:[#allocation99_spill] sm:$0xff] %v10064_v49  ;;  %v10066_v59 = vpop.f32.mrb[123].mxu0 }
 0x1e4   : > { %14660 = vst [vmem:[#allocation100_spill] sm:$0xff] %v10066_v59 }
 0x1e6   : > { %v10068_v55 = vpop.f32.mrb[124].mxu0 }
 0x1e7   : > { %14661 = vst [vmem:[#allocation101_spill] sm:$0xff] %v10068_v55  ;;  %v10070_v57 = vpop.f32.mrb[125].mxu0 }
 0x1e8   : > { %14662 = vst [vmem:[#allocation102_spill] sm:$0xff] %v10070_v57 }
 0x1ea   : > { %v10072_v24 = vpop.f32.mrb[126].mxu0 }
 0x1eb   : > { %14663 = vst [vmem:[#allocation103_spill] sm:$0xff] %v10072_v24  ;;  %v10074_v7 = vpop.f32.mrb[127].mxu0 }
 0x1ec   : > { %14664 = vst [vmem:[#allocation104_spill] sm:$0xff] %v10074_v7 }
 0x1ee   : > { %v10076_v32 = vpop.f32.mrb[128].mxu0 }
 0x1ef   : > { %14665 = vst [vmem:[#allocation105_spill] sm:$0xff] %v10076_v32  ;;  %v10078_v52 = vpop.f32.mrb[129].mxu0 }
 0x1f0   : > { %14666 = vst [vmem:[#allocation106_spill] sm:$0xff] %v10078_v52 }
 0x1f2   : > { %v10080_v13 = vpop.f32.mrb[130].mxu0 }
 0x1f3   : > { %14667 = vst [vmem:[#allocation107_spill] sm:$0xff] %v10080_v13  ;;  %v10082_v61 = vpop.f32.mrb[131].mxu0 }
 0x1f4   : > { %14668 = vst [vmem:[#allocation108_spill] sm:$0xff] %v10082_v61 }
 0x1f6   : > { %v10084_v27 = vpop.f32.mrb[132].mxu0 }
 0x1f7   : > { %14669 = vst [vmem:[#allocation109_spill] sm:$0xff] %v10084_v27  ;;  %v10086_v49 = vpop.f32.mrb[133].mxu0 }
 0x1f8   : > { %14670 = vst [vmem:[#allocation110_spill] sm:$0xff] %v10086_v49 }
 0x1fa   : > { %v10088_v59 = vpop.f32.mrb[134].mxu0 }
 0x1fb   : > { %14671 = vst [vmem:[#allocation111_spill] sm:$0xff] %v10088_v59  ;;  %v10090_v55 = vpop.f32.mrb[135].mxu0 }
 0x1fc   : > { %14672 = vst [vmem:[#allocation112_spill] sm:$0xff] %v10090_v55 }
 0x1fe   : > { %v10092_v57 = vpop.f32.mrb[136].mxu0 }
 0x1ff   : > { %14673 = vst [vmem:[#allocation113_spill] sm:$0xff] %v10092_v57  ;;  %v10094_v24 = vpop.f32.mrb[137].mxu0 }
 0x200   : > { %14674 = vst [vmem:[#allocation114_spill] sm:$0xff] %v10094_v24 }
 0x202   : > { %v10096_v7 = vpop.f32.mrb[138].mxu0 }
 0x203   : > { %14675 = vst [vmem:[#allocation115_spill] sm:$0xff] %v10096_v7  ;;  %v10098_v32 = vpop.f32.mrb[139].mxu0 }
 0x204   : > { %14676 = vst [vmem:[#allocation116_spill] sm:$0xff] %v10098_v32 }
 0x206   : > { %v10100_v52 = vpop.f32.mrb[140].mxu0 }
 0x207   : > { %14677 = vst [vmem:[#allocation117_spill] sm:$0xff] %v10100_v52  ;;  %v10102_v13 = vpop.f32.mrb[141].mxu0 }
 0x208   : > { %14678 = vst [vmem:[#allocation118_spill] sm:$0xff] %v10102_v13 }
 0x20a   : > { %v10104_v61 = vpop.f32.mrb[142].mxu0 }
 0x20b   : > { %14679 = vst [vmem:[#allocation119_spill] sm:$0xff] %v10104_v61  ;;  %v10106_v27 = vpop.f32.mrb[143].mxu0 }
 0x20c   : > { %14680 = vst [vmem:[#allocation120_spill] sm:$0xff] %v10106_v27 }
 0x20e   : > { %v10108_v49 = vpop.f32.mrb[144].mxu0 }
 0x20f   : > { %14681 = vst [vmem:[#allocation121_spill] sm:$0xff] %v10108_v49  ;;  %v10110_v59 = vpop.f32.mrb[145].mxu0 }
 0x210   : > { %14682 = vst [vmem:[#allocation122_spill] sm:$0xff] %v10110_v59 }
 0x212   : > { %v10112_v55 = vpop.f32.mrb[146].mxu0 }
 0x213   : > { %14683 = vst [vmem:[#allocation123_spill] sm:$0xff] %v10112_v55  ;;  %v10114_v57 = vpop.f32.mrb[147].mxu0 }
 0x214   : > { %14684 = vst [vmem:[#allocation124_spill] sm:$0xff] %v10114_v57 }
 0x216   : > { %v10116_v24 = vpop.f32.mrb[148].mxu0 }
 0x217   : > { %14685 = vst [vmem:[#allocation125_spill] sm:$0xff] %v10116_v24  ;;  %v10118_v7 = vpop.f32.mrb[149].mxu0 }
 0x218   : > { %14686 = vst [vmem:[#allocation126_spill] sm:$0xff] %v10118_v7 }
 0x21a   : > { %v10120_v32 = vpop.f32.mrb[150].mxu0 }
 0x21b   : > { %14687 = vst [vmem:[#allocation127_spill] sm:$0xff] %v10120_v32  ;;  %v10122_v52 = vpop.f32.mrb[151].mxu0 }
 0x21c   : > { %14688 = vst [vmem:[#allocation128_spill] sm:$0xff] %v10122_v52 }
 0x21e   : > { %v10124_v13 = vpop.f32.mrb[152].mxu0 }
 0x21f   : > { %14689 = vst [vmem:[#allocation129_spill] sm:$0xff] %v10124_v13  ;;  %v10126_v61 = vpop.f32.mrb[153].mxu0 }
 0x220   : > { %14690 = vst [vmem:[#allocation130_spill] sm:$0xff] %v10126_v61  ;;  %v2130_v61 = vlaneseq }
 0x222   : > { %v10128_v27 = vpop.f32.mrb[154].mxu0  ;;  %v2131_v54 = vshrl.u32 %v2130_v61, 7 }
 0x223   : > { %v10130_v49 = vpop.f32.mrb[155].mxu0 }
 0x224   : > { %14691 = vst [vmem:[#allocation131_spill] sm:$0xff] %v10130_v49 }
 0x226   : > { %v10132_v59 = vpop.f32.mrb[156].mxu0 }
 0x227   : > { %v10134_v55 = vpop.f32.mrb[157].mxu0 }
 0x228   : > { %14692 = vst [vmem:[#allocation132_spill] sm:$0xff] %v10134_v55 }
 0x22a   : > { %v10136_v57 = vpop.f32.mrb[158].mxu0 }
 0x22b   : > { %v10138_v24 = vpop.f32.mrb[159].mxu0 }
 0x22c   : > { %14693 = vst [vmem:[#allocation133_spill] sm:$0xff] %v10138_v24 }
 0x22e   : > { %v10140_v7 = vpop.f32.mrb[160].mxu0 }
 0x22f   : > { %v10142_v32 = vpop.f32.mrb[161].mxu0 }
 0x230   : > { %14694 = vst [vmem:[#allocation134_spill] sm:$0xff] %v10142_v32  ;;  %v10158_v32 = vsub.s32 0, %v2131_v54 }
 0x232   : > { %v10144_v52 = vpop.f32.mrb[162].mxu0  ;;  %14698 = vst [vmem:[#allocation138_spill] sm:$0xff] %v10158_v32 }
 0x233   : > { %v10146_v13 = vpop.f32.mrb[163].mxu0 }
 0x234   : > { %14695 = vst [vmem:[#allocation135_spill] sm:$0xff] %v10146_v13  ;;  %v2126_v13 = vld [vmem:[%s14287_s4] sm:$0xff] }
 0x235   : > { %v10168_v61 = vrot.slane %v2126_v13, %v10158_v32 }
 0x236   : > { %v10148_v45 = vpop.f32.mrb[164].mxu0 }
 0x237   : > { %v10150_v49 = vpop.f32.mrb[165].mxu0  ;;  %v10365_v37 = vadd.f32 %v10128_v27, %v10168_v61  ;;  %v10397_v29 = vadd.f32 %v10136_v57, %v10168_v61 }
 0x238   : > { %14696 = vst [vmem:[#allocation136_spill] sm:$0xff] %v10150_v49 }
 0x23a   : > { %v10154_v24 = vpop.f32.mrb[166].mxu0 }
 0x23b   : > { %v10156_v55 = vpop.f32.mrb[167].mxu0 }
 0x23c   : > { %14697 = vst [vmem:[#allocation137_spill] sm:$0xff] %v10156_v55 }
 0x23e   : > { %v10163_v53 = vpop.f32.mrb[168].mxu0 }
 0x23f   : > { %v10165_v33 = vpop.f32.mrb[169].mxu0 }
 0x240   : > { %14699 = vst [vmem:[#allocation139_spill] sm:$0xff] %v10165_v33 }
 0x242   : > { %v2356_v49 = vpop.f32.mrb[170].mxu0 }
 0x243   : > { %v10171_v63 = vadd.f32 %v2356_v49, %v10168_v61  ;;  %v10173_v56 = vpop.f32.mrb[171].mxu0 }
 0x244   : > { %14700 = vst [vmem:[#allocation140_spill] sm:$0xff] %v10173_v56 }
 0x245   : > { %2739 = vrot.lane.b32.xlu1 %v10171_v63, %s9019_s11  ;;  %2547 = vrot.lane.b32.xlu0 %v10171_v63, %s9020_s12 }
 0x246   : > { %v2362_v54 = vpop.f32.mrb[172].mxu0 }
 0x247   : > { %v10180_v33 = vadd.f32 %v2362_v54, %v10168_v61  ;;  %v10182_v13 = vpop.f32.mrb[173].mxu0 }
 0x248   : > { %14701 = vst [vmem:[#allocation141_spill] sm:$0xff] %v10182_v13 }
 0x249   : > { %2549 = vrot.lane.b32.xlu1 %v10180_v33, %s9020_s12  ;;  %2643 = vrot.lane.b32.xlu0 %v10171_v63, %s9021_s15 }
 0x24a   : > { %v2368_v49 = vpop.f32.mrb[174].mxu0 }
 0x24b   : > { %v10188_v56 = vpop.f32.mrb[175].mxu0  ;;  %v10195_v54 = vadd.f32 %v2368_v49, %v10168_v61 }
 0x24c   : > { %14702 = vst [vmem:[#allocation142_spill] sm:$0xff] %v10188_v56 }
 0x24d   : > { %2741 = vrot.lane.b32.xlu1 %v10180_v33, %s9019_s11  ;;  %2645 = vrot.lane.b32.xlu0 %v10180_v33, %s9021_s15 }
 0x24e   : > { %v2374_v13 = vpop.f32.mrb[176].mxu0 }
 0x24f   : > { %v10197_v55 = vpop.f32.mrb[177].mxu0  ;;  %v10204_v56 = vadd.f32 %v2374_v13, %v10168_v61 }
 0x250   : > { %14703 = vst [vmem:[#allocation143_spill] sm:$0xff] %v10197_v55 }
 0x251   : > { %2647 = vrot.lane.b32.xlu1 %v10195_v54, %s9021_s15  ;;  %2551 = vrot.lane.b32.xlu0 %v10195_v54, %s9020_s12 }
 0x252   : > { %v2380_v32 = vpop.f32.mrb[178].mxu0 }
 0x253   : > { %v10206_v0 = vpop.f32.mrb[179].mxu0  ;;  %v10219_v13 = vadd.f32 %v2380_v32, %v10168_v61 }
 0x254   : > { %14704 = vst [vmem:[#allocation144_spill] sm:$0xff] %v10206_v0 }
 0x255   : > { %2553 = vrot.lane.b32.xlu1 %v10204_v56, %s9020_s12  ;;  %2743 = vrot.lane.b32.xlu0 %v10195_v54, %s9019_s11 }
 0x256   : > { %v2386_v49 = vpop.f32.mrb[180].mxu0 }
 0x257   : > { %v10212_v55 = vpop.f32.mrb[181].mxu0 }
 0x258   : > { %14705 = vst [vmem:[#allocation145_spill] sm:$0xff] %v10212_v55  ;;  %v10228_v55 = vadd.f32 %v2386_v49, %v10168_v61 }
 0x259   : > { %2745 = vrot.lane.b32.xlu1 %v10204_v56, %s9019_s11  ;;  %2649 = vrot.lane.b32.xlu0 %v10204_v56, %s9021_s15 }
 0x25a   : > { %v2392_v51 = vpop.f32.mrb[182].mxu0 }
 0x25b   : > { %v10221_v0 = vpop.f32.mrb[183].mxu0  ;;  %v10243_v49 = vadd.f32 %v2392_v51, %v10168_v61 }
 0x25c   : > { %14706 = vst [vmem:[#allocation146_spill] sm:$0xff] %v10221_v0 }
 0x25d   : > { %2651 = vrot.lane.b32.xlu1 %v10219_v13, %s9021_s15  ;;  %2555 = vrot.lane.b32.xlu0 %v10219_v13, %s9020_s12 }
 0x25e   : > { %v2398_v30 = vpop.f32.mrb[184].mxu0 }
 0x25f   : > { %v10230_v58 = vpop.f32.mrb[185].mxu0 }
 0x260   : > { %14707 = vst [vmem:[#allocation147_spill] sm:$0xff] %v10230_v58 }
 0x261   : > { %2557 = vrot.lane.b32.xlu1 %v10228_v55, %s9020_s12  ;;  %2747 = vrot.lane.b32.xlu0 %v10219_v13, %s9019_s11 }
 0x262   : > { %v2404_v32 = vpop.f32.mrb[186].mxu0 }
 0x263   : > { %v10236_v0 = vpop.f32.mrb[187].mxu0 }
 0x264   : > { %14708 = vst [vmem:[#allocation148_spill] sm:$0xff] %v10236_v0  ;;  %v10252_v0 = vadd.f32 %v2398_v30, %v10168_v61  ;;  %v10267_v30 = vadd.f32 %v2404_v32, %v10168_v61 }
 0x265   : > { %2749 = vrot.lane.b32.xlu1 %v10228_v55, %s9019_s11  ;;  %2653 = vrot.lane.b32.xlu0 %v10228_v55, %s9021_s15 }
 0x266   : > { %v2410_v1 = vpop.f32.mrb[188].mxu0 }
 0x267   : > { %v10245_v58 = vpop.f32.mrb[189].mxu0  ;;  %v10272_v48 = vadd.f32 %v2410_v1, %v10168_v61 }
 0x268   : > { %14709 = vst [vmem:[#allocation149_spill] sm:$0xff] %v10245_v58 }
 0x269   : > { %2655 = vrot.lane.b32.xlu1 %v10243_v49, %s9021_s15  ;;  %2559 = vrot.lane.b32.xlu0 %v10243_v49, %s9020_s12 }
 0x26a   : > { %v2416_v50 = vpop.f32.mrb[190].mxu0 }
 0x26b   : > { %v10254_v47 = vpop.f32.mrb[191].mxu0  ;;  %v10287_v1 = vadd.f32 %v2416_v50, %v10168_v61 }
 0x26c   : > { %14710 = vst [vmem:[#allocation150_spill] sm:$0xff] %v10254_v47 }
 0x26d   : > { %2561 = vrot.lane.b32.xlu1 %v10252_v0, %s9020_s12  ;;  %2751 = vrot.lane.b32.xlu0 %v10243_v49, %s9019_s11 }
 0x26e   : > { %v2422_v51 = vpop.f32.mrb[192].mxu0 }
 0x26f   : > { %v10260_v58 = vpop.f32.mrb[193].mxu0  ;;  %v10296_v42 = vadd.f32 %v2422_v51, %v10168_v61 }
 0x270   : > { %14711 = vst [vmem:[#allocation151_spill] sm:$0xff] %v10260_v58 }
 0x271   : > { %2753 = vrot.lane.b32.xlu1 %v10252_v0, %s9019_s11  ;;  %2657 = vrot.lane.b32.xlu0 %v10252_v0, %s9021_s15 }
 0x272   : > { %v2428_v60 = vpop.f32.mrb[194].mxu0 }
 0x273   : > { %v10269_v47 = vpop.f32.mrb[195].mxu0  ;;  %v10311_v51 = vadd.f32 %v2428_v60, %v10168_v61 }
 0x274   : > { %14712 = vst [vmem:[#allocation152_spill] sm:$0xff] %v10269_v47 }
 0x275   : > { %2659 = vrot.lane.b32.xlu1 %v10267_v30, %s9021_s15  ;;  %2563 = vrot.lane.b32.xlu0 %v10267_v30, %s9020_s12 }
 0x276   : > { %v2434_v58 = vpop.f32.mrb[196].mxu0 }
 0x277   : > { %v10278_v44 = vpop.f32.mrb[197].mxu0  ;;  %v10320_v41 = vadd.f32 %v2434_v58, %v10168_v61 }
 0x278   : > { %14713 = vst [vmem:[#allocation153_spill] sm:$0xff] %v10278_v44 }
 0x279   : > { %2565 = vrot.lane.b32.xlu1 %v10272_v48, %s9020_s12  ;;  %2755 = vrot.lane.b32.xlu0 %v10267_v30, %s9019_s11 }
 0x27a   : > { %v2440_v32 = vpop.f32.mrb[198].mxu0 }
 0x27b   : > { %v10284_v47 = vpop.f32.mrb[199].mxu0  ;;  %v10335_v58 = vadd.f32 %v2440_v32, %v10168_v61 }
 0x27c   : > { %14714 = vst [vmem:[#allocation154_spill] sm:$0xff] %v10284_v47 }
 0x27d   : > { %2757 = vrot.lane.b32.xlu1 %v10272_v48, %s9019_s11  ;;  %2661 = vrot.lane.b32.xlu0 %v10272_v48, %s9021_s15 }
 0x27e   : > { %v2446_v46 = vpop.f32.mrb[200].mxu0 }
 0x27f   : > { %v10293_v44 = vpop.f32.mrb[201].mxu0  ;;  %v10344_v36 = vadd.f32 %v2446_v46, %v10168_v61 }
 0x280   : > { %14715 = vst [vmem:[#allocation155_spill] sm:$0xff] %v10293_v44 }
 0x281   : > { %2663 = vrot.lane.b32.xlu1 %v10287_v1, %s9021_s15  ;;  %2567 = vrot.lane.b32.xlu0 %v10287_v1, %s9020_s12  ;;  %14722 = vst [vmem:[#allocation162_spill] sm:$0xff] %v10344_v36 }
 0x282   : > { %v2452_v50 = vpop.f32.mrb[202].mxu0 }
 0x283   : > { %v10302_v47 = vpop.f32.mrb[203].mxu0  ;;  %v10361_v46 = vadd.f32 %v2452_v50, %v10168_v61  ;;  %v10378_v50 = vadd.f32 %v10132_v59, %v10168_v61 }
 0x284   : > { %14716 = vst [vmem:[#allocation156_spill] sm:$0xff] %v10302_v47 }
 0x285   : > { %2569 = vrot.lane.b32.xlu1 %v10296_v42, %s9020_s12  ;;  %2759 = vrot.lane.b32.xlu0 %v10287_v1, %s9019_s11  ;;  %14724 = vst [vmem:[#allocation164_spill] sm:$0xff] %v10361_v46  ;;  %v8467_v34 = vpack.i.bf16 %v10361_v46, %v10365_v37 }
 0x286   : > { %v2458_v43 = vpop.f32.mrb[204].mxu0 }
 0x287   : > { %v10308_v44 = vpop.f32.mrb[205].mxu0 }
 0x288   : > { %14717 = vst [vmem:[#allocation157_spill] sm:$0xff] %v10308_v44 }
 0x289   : > { %2761 = vrot.lane.b32.xlu1 %v10296_v42, %s9019_s11  ;;  %2665 = vrot.lane.b32.xlu0 %v10296_v42, %s9021_s15 }
 0x28a   : > { %v2464_v40 = vpop.f32.mrb[206].mxu0 }
 0x28b   : > { %v10317_v47 = vpop.f32.mrb[207].mxu0  ;;  %v10391_v46 = vadd.f32 %v2464_v40, %v10168_v61 }
 0x28c   : > { %14718 = vst [vmem:[#allocation158_spill] sm:$0xff] %v10317_v47 }
 0x28d   : > { %2667 = vrot.lane.b32.xlu1 %v10311_v51, %s9021_s15  ;;  %2571 = vrot.lane.b32.xlu0 %v10311_v51, %s9020_s12  ;;  %14727 = vst [vmem:[#allocation167_spill] sm:$0xff] %v10391_v46 }
 0x28e   : > { %v2470_v60 = vpop.f32.mrb[208].mxu0 }
 0x28f   : > { %v10326_v44 = vpop.f32.mrb[209].mxu0 }
 0x290   : > { %14719 = vst [vmem:[#allocation159_spill] sm:$0xff] %v10326_v44 }
 0x291   : > { %2573 = vrot.lane.b32.xlu1 %v10320_v41, %s9020_s12  ;;  %2763 = vrot.lane.b32.xlu0 %v10311_v51, %s9019_s11 }
 0x292   : > { %v2476_v38 = vpop.f32.mrb[210].mxu0 }
 0x293   : > { %v10332_v47 = vpop.f32.mrb[211].mxu0 }
 0x294   : > { %14720 = vst [vmem:[#allocation160_spill] sm:$0xff] %v10332_v47 }
 0x295   : > { %2765 = vrot.lane.b32.xlu1 %v10320_v41, %s9019_s11  ;;  %2669 = vrot.lane.b32.xlu0 %v10320_v41, %s9021_s15 }
 0x296   : > { %v2482_v39 = vpop.f32.mrb[212].mxu0 }
 0x297   : > { %v10341_v44 = vpop.f32.mrb[213].mxu0 }
 0x298   : > { %14721 = vst [vmem:[#allocation161_spill] sm:$0xff] %v10341_v44 }
 0x299   : > { %2671 = vrot.lane.b32.xlu1 %v10335_v58, %s9021_s15  ;;  %2575 = vrot.lane.b32.xlu0 %v10335_v58, %s9020_s12 }
 0x29a   : > { %v10350_v32 = vpop.f32.mrb[214].mxu0 }
 0x29b   : > { %v10352_v47 = vpop.f32.mrb[215].mxu0 }
 0x29c   : > { %14723 = vst [vmem:[#allocation163_spill] sm:$0xff] %v10352_v47  ;;  %v10372_v47 = vadd.f32 %v2458_v43, %v10168_v61  ;;  %v10388_v43 = vpop.f32.mrb[1].mxu1 }
 0x29d   : > { %2577 = vrot.lane.b32.xlu1 %v10344_v36, %s9020_s12  ;;  %2767 = vrot.lane.b32.xlu0 %v10335_v58, %s9019_s11  ;;  %v10393_v59 = vpop.f32.mrb[2].mxu1 }
 0x29e   : > { %v10358_v44 = vpop.f32.mrb[216].mxu0  ;;  %14725 = vst [vmem:[#allocation165_spill] sm:$0xff] %v10372_v47  ;;  %v8477_v27 = vpack.i.bf16 %v10372_v47, %v10378_v50  ;;  %14728 = vst [vmem:[#allocation168_spill] sm:$0xff] %v10393_v59  ;;  %v10401_v47 = vpop.f32.mrb[3].mxu1  ;;  %v10412_v59 = vadd.f32 %v10140_v7, %v10168_v61  ;;  %v10429_v7 = vadd.f32 %v2476_v38, %v10168_v61 }
 0x29f   : > { %14729 = vst [vmem:[#allocation169_spill] sm:$0xff] %v10401_v47  ;;  %v10408_v40 = vpop.f32.mrb[4].mxu1  ;;  %v10443_v38 = vadd.f32 %v2482_v39, %v10168_v61 }
 0x2a0   : > { %14731 = vst [vmem:[#allocation171_spill] sm:$0xff] %v10408_v40  ;;  %14732 = vst [vmem:[#allocation172_spill] sm:$0xff] %v10412_v59  ;;  %v10416_v57 = vpop.f32.mrb[5].mxu1 }
 0x2a1   : > { %2769 = vrot.lane.b32.xlu1 %v10344_v36, %s9019_s11  ;;  %2673 = vrot.lane.b32.xlu0 %v10344_v36, %s9021_s15  ;;  %v10404_v36 = vadd.f32 %v2470_v60, %v10168_v61  ;;  %14733 = vst [vmem:[#allocation173_spill] sm:$0xff] %v10416_v57  ;;  %v10420_v60 = vpop.f32.mrb[6].mxu1  ;;  %14737 = vst [vmem:[#allocation177_spill] sm:$0xff] %v10429_v7 }
 0x2a2   : > { %14734 = vst [vmem:[#allocation174_spill] sm:$0xff] %v10420_v60  ;;  %14739 = vst [vmem:[#allocation179_spill] sm:$0xff] %v10443_v38 }
 0x2a3   : > { %14730 = vst [vmem:[#allocation170_spill] sm:$0xff] %v10404_v36 }
 0x2a5   : > { %8468 = vrot.lane.b32.xlu1 %v8467_v34, %s9021_s15  ;;  %8463 = vrot.lane.b32.xlu0 %v8467_v34, %s9020_s12 }
 0x2a9   : > { %8478 = vrot.lane.b32.xlu1 %v8477_v27, %s9020_s12  ;;  %8473 = vrot.lane.b32.xlu0 %v8467_v34, %s9019_s11  ;;  %v8497_v34 = vpack.i.bf16 %v10391_v46, %v10397_v29  ;;  %v10424_v46 = vpop.f32.mrb[7].mxu1 }
 0x2aa   : > { %14735 = vst [vmem:[#allocation175_spill] sm:$0xff] %v10424_v46  ;;  %v10426_v40 = vpop.f32.mrb[8].mxu1 }
 0x2ab   : > { %14736 = vst [vmem:[#allocation176_spill] sm:$0xff] %v10426_v40 }
 0x2ad   : > { %8488 = vrot.lane.b32.xlu1 %v8477_v27, %s9019_s11  ;;  %8483 = vrot.lane.b32.xlu0 %v8477_v27, %s9021_s15  ;;  %v8507_v27 = vpack.i.bf16 %v10404_v36, %v10412_v59  ;;  %v10434_v36 = vadd.f32 %v10144_v52, %v10168_v61  ;;  %v14740_v59 = vmov 0.0|0.0   ;;  %v10450_v52 = vadd.f32 %v10148_v45, %v10168_v61 }
 0x2b1   : > { %8498 = vrot.lane.b32.xlu1 %v8497_v34, %s9021_s15  ;;  %8493 = vrot.lane.b32.xlu0 %v8497_v34, %s9020_s12 }
 0x2b5   : > { %8508 = vrot.lane.b32.xlu1 %v8507_v27, %s9020_s12  ;;  %8503 = vrot.lane.b32.xlu0 %v8497_v34, %s9019_s11  ;;  %v10438_v34 = vpop.f32.mrb[9].mxu1 }
 0x2b6   : > { %v10440_v60 = vpop.f32.mrb[10].mxu1 }
 0x2b7   : > { %v2740_v35 = vpop.permute.xlu1 %2739  ;;  %v2548_v47 = vpop.permute.xlu0 %2547  ;;  %14738 = vst [vmem:[#allocation178_spill] sm:$0xff] %v10440_v60 }
 0x2b8   : > { %v7719_v57 = vpack.c.bf16 %v2548_v47, %v10171_v63  ;;  %v8527_v47 = vpack.i.bf16 %v10429_v7, %v10434_v36 }
 0x2b9   : > { %8518 = vrot.lane.b32.xlu1 %v8507_v27, %s9019_s11  ;;  %8513 = vrot.lane.b32.xlu0 %v8507_v27, %s9021_s15 }
 0x2ba   : > { %7720 = vmatpush1.bf16.msra.mxu0 %v7719_v57  ;;  %v10454_v57 = vpop.f32.mrb[11].mxu1 }
 0x2bb   : > { %v2550_v40 = vpop.permute.xlu1 %2549  ;;  %v2644_v46 = vpop.permute.xlu0 %2643  ;;  %7721 = vmatprep.subr.bf16.mxu0 %v14740_v59  ;;  %14741 = vst [vmem:[#allocation180_spill] sm:$0xff] %v10454_v57 }
 0x2bc   : > { %v7722_v63 = vpack.c.bf16 %v2740_v35, %v2644_v46  ;;  %v10456_v39 = vpop.f32.mrb[12].mxu1  ;;  %v8537_v35 = vpack.i.bf16 %v10443_v38, %v10450_v52  ;;  %v7725_v46 = vpack.c.bf16 %v2550_v40, %v10180_v33  ;;  %v10475_v33 = vadd.f32 %v10154_v24, %v10168_v61 }
 0x2bd   : > { %8528 = vrot.lane.b32.xlu1 %v8527_v47, %s9021_s15  ;;  %8523 = vrot.lane.b32.xlu0 %v8527_v47, %s9020_s12  ;;  %14742 = vst [vmem:[#allocation181_spill] sm:$0xff] %v10456_v39  ;;  %v10464_v45 = vpop.f32.mrb[13].mxu1 }
 0x2be   : > { %7723 = vmatpush1.bf16.msra.mxu0 %v7722_v63  ;;  %v10466_v7 = vpop.f32.mrb[14].mxu1  ;;  %v10470_v63 = vadd.f32 %v10350_v32, %v10168_v61  ;;  %v10485_v32 = vadd.f32 %v10358_v44, %v10168_v61 }
 0x2bf   : > { %v2742_v27 = vpop.permute.xlu1 %2741  ;;  %v2646_v60 = vpop.permute.xlu0 %2645  ;;  %7724 = vmatprep.subr.bf16.mxu0 %v14740_v59  ;;  %14743 = vst [vmem:[#allocation182_spill] sm:$0xff] %v10466_v7 }
 0x2c0   : > { %14744 = vst [vmem:[#allocation183_spill] sm:$0xff] %v10470_v63  ;;  %v7728_v38 = vpack.c.bf16 %v2742_v27, %v2646_v60  ;;  %v10479_v40 = vpop.f32.mrb[15].mxu1  ;;  %14747 = vst [vmem:[#allocation186_spill] sm:$0xff] %v10485_v32  ;;  %v8557_v24 = vpack.i.bf16 %v10470_v63, %v10475_v33 }
 0x2c1   : > { %8538 = vrot.lane.b32.xlu1 %v8537_v35, %s9020_s12  ;;  %8533 = vrot.lane.b32.xlu0 %v8527_v47, %s9019_s11  ;;  %14745 = vst [vmem:[#allocation184_spill] sm:$0xff] %v10479_v40  ;;  %v10481_v47 = vpop.f32.mrb[16].mxu1 }
 0x2c2   : > { %7726 = vmatpush1.bf16.msra.mxu0 %v7725_v46  ;;  %14746 = vst [vmem:[#allocation185_spill] sm:$0xff] %v10481_v47  ;;  %v10491_v27 = vpop.f32.mrb[17].mxu1 }
 0x2c3   : > { %v2648_v39 = vpop.permute.xlu1 %2647  ;;  %v2552_v57 = vpop.permute.xlu0 %2551  ;;  %7727 = vmatprep.subr.bf16.mxu0 %v14740_v59 }
 0x2c4   : > { %v7731_v60 = vpack.c.bf16 %v2552_v57, %v10195_v54  ;;  %v10499_v44 = vpop.f32.mrb[18].mxu1 }
 0x2c5   : > { %8548 = vrot.lane.b32.xlu1 %v8537_v35, %s9019_s11  ;;  %8543 = vrot.lane.b32.xlu0 %v8537_v35, %s9021_s15  ;;  %14749 = vst [vmem:[#allocation188_spill] sm:$0xff] %v10499_v44  ;;  %v10501_v35 = vpop.f32.mrb[19].mxu1 }
 0x2c6   : > { %7729 = vmatpush1.bf16.msra.mxu0 %v7728_v38  ;;  %v10495_v38 = vadd.f32 %v10163_v53, %v10168_v61  ;;  %v10508_v53 = vpop.f32.mrb[20].mxu1 }
 0x2c7   : > { %v2554_v46 = vpop.permute.xlu1 %2553  ;;  %v2744_v7 = vpop.permute.xlu0 %2743  ;;  %7730 = vmatprep.subr.bf16.mxu0 %v14740_v59  ;;  %14750 = vst [vmem:[#allocation189_spill] sm:$0xff] %v10508_v53 }
 0x2c8   : > { %14748 = vst [vmem:[#allocation187_spill] sm:$0xff] %v10495_v38  ;;  %v8567_v54 = vpack.i.bf16 %v10485_v32, %v10495_v38  ;;  %v7734_v57 = vpack.c.bf16 %v2744_v7, %v2648_v39  ;;  %v10510_v61 = vpop.f32.mrb[21].mxu1  ;;  %v7737_v44 = vpack.c.bf16 %v2554_v46, %v10204_v56 }
 0x2c9   : > { %8558 = vrot.lane.b32.xlu1 %v8557_v24, %s9021_s15  ;;  %8553 = vrot.lane.b32.xlu0 %v8557_v24, %s9020_s12  ;;  %14751 = vst [vmem:[#allocation190_spill] sm:$0xff] %v10510_v61  ;;  %v10517_v7 = vpop.f32.mrb[22].mxu1 }
 0x2ca   : > { %7732 = vmatpush1.bf16.msra.mxu0 %v7731_v60  ;;  %14752 = vst [vmem:[#allocation191_spill] sm:$0xff] %v10517_v7  ;;  %v10519_v39 = vpop.f32.mrb[23].mxu1 }
 0x2cb   : > { %v2746_v47 = vpop.permute.xlu1 %2745  ;;  %v2650_v40 = vpop.permute.xlu0 %2649  ;;  %7733 = vmatprep.subr.bf16.mxu0 %v14740_v59  ;;  %14753 = vst [vmem:[#allocation192_spill] sm:$0xff] %v10519_v39 }
 0x2cc   : > { %v7740_v53 = vpack.c.bf16 %v2746_v47, %v2650_v40  ;;  %v10524_v61 = vpop.f32.mrb[24].mxu1 }
 0x2cd   : > { %8568 = vrot.lane.b32.xlu1 %v8567_v54, %s9020_s12  ;;  %8563 = vrot.lane.b32.xlu0 %v8557_v24, %s9019_s11  ;;  %14754 = vst [vmem:[#allocation193_spill] sm:$0xff] %v10524_v61  ;;  %v10526_v56 = vpop.f32.mrb[25].mxu1 }
 0x2ce   : > { %7735 = vmatpush1.bf16.msra.mxu0 %v7734_v57  ;;  %14755 = vst [vmem:[#allocation194_spill] sm:$0xff] %v10526_v56  ;;  %v10530_v7 = vpop.f32.mrb[26].mxu1 }
 0x2cf   : > { %v2652_v60 = vpop.permute.xlu1 %2651  ;;  %v2556_v63 = vpop.permute.xlu0 %2555  ;;  %7736 = vmatprep.subr.bf16.mxu0 %v14740_v59  ;;  %14756 = vst [vmem:[#allocation195_spill] sm:$0xff] %v10530_v7 }
 0x2d0   : > { %v10533_v47 = vpop.f32.mrb[27].mxu1 }
 0x2d1   : > { %2737 = vrot.lane.b32.xlu1 %v10495_v38, %s9019_s11  ;;  %8573 = vrot.lane.b32.xlu0 %v8567_v54, %s9021_s15  ;;  %14757 = vst [vmem:[#allocation196_spill] sm:$0xff] %v10533_v47 }
 0x2d2   : > { %7738 = vmatpush1.bf16.msra.mxu0 %v7737_v44  ;;  %v7743_v44 = vpack.c.bf16 %v2556_v63, %v10219_v13 }
 0x2d3   : > { %v2558_v24 = vpop.permute.xlu1 %2557  ;;  %v2748_v57 = vpop.permute.xlu0 %2747  ;;  %7739 = vmatprep.subr.bf16.mxu0 %v14740_v59 }
 0x2d4   : > { %v7746_v40 = vpack.c.bf16 %v2748_v57, %v2652_v60  ;;  %v7749_v56 = vpack.c.bf16 %v2558_v24, %v10228_v55 }
 0x2d5   : > { %2785 = vrot.lane.b32.xlu0 %v10485_v32, %s9019_s11  ;;  %v10535_v32 = vpop.f32.mrb[28].mxu1 }
 0x2d6   : > { %7741 = vmatpush1.bf16.msra.mxu0 %v7740_v53  ;;  %14758 = vst [vmem:[#allocation197_spill] sm:$0xff] %v10535_v32  ;;  %v10539_v13 = vpop.f32.mrb[29].mxu1 }
 0x2d7   : > { %v2750_v46 = vpop.permute.xlu1 %2749  ;;  %v2654_v54 = vpop.permute.xlu0 %2653  ;;  %7742 = vmatprep.subr.bf16.mxu0 %v14740_v59  ;;  %14759 = vst [vmem:[#allocation198_spill] sm:$0xff] %v10539_v13 }
 0x2d8   : > { %v10541_v63 = vpop.f32.mrb[30].mxu1  ;;  %v7752_v60 = vpack.c.bf16 %v2750_v46, %v2654_v54 }
 0x2d9   : > { %14760 = vst [vmem:[#allocation199_spill] sm:$0xff] %v10541_v63  ;;  %v10544_v57 = vpop.f32.mrb[31].mxu1 }
 0x2da   : > { %7744 = vmatpush1.bf16.msra.mxu0 %v7743_v44  ;;  %14761 = vst [vmem:[#allocation200_spill] sm:$0xff] %v10544_v57  ;;  %v10546_v32 = vpop.f32.mrb[32].mxu1 }
 0x2db   : > { %v2656_v39 = vpop.permute.xlu1 %2655  ;;  %v2560_v38 = vpop.permute.xlu0 %2559  ;;  %7745 = vmatprep.subr.bf16.mxu0 %v14740_v59  ;;  %14762 = vst [vmem:[#allocation201_spill] sm:$0xff] %v10546_v32 }
 0x2dc   : > { %v7755_v55 = vpack.c.bf16 %v2560_v38, %v10243_v49  ;;  %v10550_v24 = vpop.f32.mrb[33].mxu1 }
 0x2dd   : > { %v10552_v63 = vpop.f32.mrb[34].mxu1 }
 0x2de   : > { %7747 = vmatpush1.bf16.msra.mxu0 %v7746_v40  ;;  %14763 = vst [vmem:[#allocation202_spill] sm:$0xff] %v10552_v63  ;;  %v10555_v54 = vpop.f32.mrb[35].mxu1 }
 0x2df   : > { %v2562_v53 = vpop.permute.xlu1 %2561  ;;  %v2752_v61 = vpop.permute.xlu0 %2751  ;;  %7748 = vmatprep.subr.bf16.mxu0 %v14740_v59  ;;  %14764 = vst [vmem:[#allocation203_spill] sm:$0xff] %v10555_v54 }
 0x2e0   : > { %v7758_v46 = vpack.c.bf16 %v2752_v61, %v2656_v39  ;;  %v10557_v32 = vpop.f32.mrb[36].mxu1  ;;  %v7761_v49 = vpack.c.bf16 %v2562_v53, %v10252_v0  ;;  %v1616_v61 = vld [vmem:[%s14285_s2 + $0x10] sm:$0xff] }
 0x2e1   : > { %14765 = vst [vmem:[#allocation204_spill] sm:$0xff] %v10557_v32  ;;  %v10561_v38 = vpop.f32.mrb[37].mxu1  ;;  %v1625_v32 = vld [vmem:[%s14285_s2 + $0x58] sm:$0xff]  ;;  %v10575_v0 = vmul.f32 %v1616_v61, %v9871_v14 }
 0x2e2   : > { %7750 = vmatpush1.bf16.msra.mxu0 %v7749_v56  ;;  %14766 = vst [vmem:[#allocation205_spill] sm:$0xff] %v10561_v38  ;;  %v1633_v14 = vld [vmem:[%s14285_s2 + $0x98] sm:$0xff] }
 0x2e3   : > { %v2754_v44 = vpop.permute.xlu1 %2753  ;;  %v2658_v7 = vpop.permute.xlu0 %2657  ;;  %7751 = vmatprep.subr.bf16.mxu0 %v14740_v59  ;;  %14768 = vst [vmem:[#allocation207_spill] sm:$0xff] %v10575_v0 }
 0x2e4   : > { %v7764_v39 = vpack.c.bf16 %v2754_v44, %v2658_v7  ;;  %v1624_v7 = vld [vmem:[%s14285_s2 + $0x50] sm:$0xff]  ;;  %v10586_v44 = vmul.f32 %v1625_v32, %v9880_v31  ;;  %v1641_v32 = vld [vmem:[%s14285_s2 + $0xd8] sm:$0xff] }
 0x2e5   : > { %v1632_v31 = vld [vmem:[%s14285_s2 + $0x90] sm:$0xff] }
 0x2e6   : > { %7753 = vmatpush1.bf16.msra.mxu0 %v7752_v60  ;;  %14769 = vst [vmem:[#allocation208_spill] sm:$0xff] %v10586_v44 }
 0x2e7   : > { %v2660_v40 = vpop.permute.xlu1 %2659  ;;  %v2564_v47 = vpop.permute.xlu0 %2563  ;;  %7754 = vmatprep.subr.bf16.mxu0 %v14740_v59 }
 0x2ea   : > { %7756 = vmatpush1.bf16.msra.mxu0 %v7755_v55 }
 0x2eb   : > { %v2566_v56 = vpop.permute.xlu1 %2565  ;;  %v2756_v13 = vpop.permute.xlu0 %2755  ;;  %7757 = vmatprep.subr.bf16.mxu0 %v14740_v59 }
 0x2ec   : > { %v7770_v61 = vpack.c.bf16 %v2756_v13, %v2660_v40  ;;  %v10625_v40 = vmul.f32 %v1641_v32, %v9894_v22 }
 0x2ee   : > { %7759 = vmatpush1.bf16.msra.mxu0 %v7758_v46  ;;  %v10569_v46 = vpop.f32.mrb[217].mxu0  ;;  %14773 = vst [vmem:[#allocation212_spill] sm:$0xff] %v10625_v40 }
 0x2ef   : > { %v2758_v60 = vpop.permute.xlu1 %2757  ;;  %v2662_v57 = vpop.permute.xlu0 %2661  ;;  %7760 = vmatprep.subr.bf16.mxu0 %v14740_v59  ;;  %14767 = vst [vmem:[#allocation206_spill] sm:$0xff] %v10569_v46  ;;  %v7767_v46 = vpack.c.bf16 %v2564_v47, %v10267_v30  ;;  %v10606_v30 = vmul.f32 %v1633_v14, %v9887_v25  ;;  %v1640_v25 = vld [vmem:[%s14285_s2 + $0xd0] sm:$0xff] }
 0x2f0   : > { %v10634_v14 = vmul.f32 %v1640_v25, %v9892_v26 }
 0x2f1   : > { %14771 = vst [vmem:[#allocation210_spill] sm:$0xff] %v10606_v30 }
 0x2f2   : > { %7762 = vmatpush1.bf16.msra.mxu0 %v7761_v49  ;;  %14774 = vst [vmem:[#allocation213_spill] sm:$0xff] %v10634_v14 }
 0x2f3   : > { %v10563_v55 = vpop.permute.xlu1 %2663  ;;  %v2568_v63 = vpop.permute.xlu0 %2567  ;;  %7763 = vmatprep.subr.bf16.mxu0 %v14740_v59 }
 0x2f4   : > { %v7779_v25 = vpack.c.bf16 %v2568_v63, %v10287_v1  ;;  %v1664_v1 = vld [vmem:[%s14285_s2 + $0x190] sm:$0xff] }
 0x2f6   : > { %7765 = vmatpush1.bf16.msra.mxu0 %v7764_v39  ;;  %v10595_v39 = vmul.f32 %v1624_v7, %v9878_v28  ;;  %v10614_v28 = vmul.f32 %v1632_v31, %v9885_v19  ;;  %v1649_v19 = vld [vmem:[%s14285_s2 + $0x118] sm:$0xff]  ;;  %v7776_v7 = vpack.c.bf16 %v2758_v60, %v2662_v57 }
 0x2f7   : > { %v10577_v53 = vpop.permute.xlu1 %2569  ;;  %v10579_v49 = vpop.permute.xlu0 %2759  ;;  %7766 = vmatprep.subr.bf16.mxu0 %v14740_v59  ;;  %v10645_v22 = vmul.f32 %v1649_v19, %v9901_v20  ;;  %v1657_v57 = vld [vmem:[%s14285_s2 + $0x158] sm:$0xff]  ;;  %v1656_v20 = vld [vmem:[%s14285_s2 + $0x150] sm:$0xff] }
 0x2f8   : > { %14770 = vst [vmem:[#allocation209_spill] sm:$0xff] %v10595_v39  ;;  %14772 = vst [vmem:[#allocation211_spill] sm:$0xff] %v10614_v28  ;;  %v10664_v32 = vmul.f32 %v1657_v57, %v9908_v17  ;;  %v10675_v19 = vmul.f32 %v1656_v20, %v9906_v21  ;;  %v10694_v21 = vmul.f32 %v1664_v1, %v9913_v18  ;;  %v1681_v18 = vld [vmem:[%s14285_s2 + $0x218] sm:$0xff] }
 0x2f9   : > { %3109 = vmatmul.mubr.f32.vlgmr.msra.gmra.mrb[218].mxu0 %v10575_v0  ;;  %14775 = vst [vmem:[#allocation214_spill] sm:$0xff] %v10645_v22  ;;  %v7785_v20 = vpack.c.bf16 %v10577_v53, %v10296_v42  ;;  %v1680_v42 = vld [vmem:[%s14285_s2 + $0x210] sm:$0xff]  ;;  %v10728_v53 = vmul.f32 %v1681_v18, %v9929_v9  ;;  %v14905_v0 = vld [vmem:[#allocation18_spill] sm:$0xff] }
 0x2fa   : > { %3113 = vmatprep.mubr.f32.mxu0 %v10586_v44  ;;  %7768 = vmatpush1.bf16.msra.mxu0 %v7767_v46  ;;  %v7773_v46 = vpack.c.bf16 %v2566_v56, %v10272_v48  ;;  %v1648_v48 = vld [vmem:[%s14285_s2 + $0x110] sm:$0xff]  ;;  %14777 = vst [vmem:[#allocation216_spill] sm:$0xff] %v10664_v32  ;;  %14778 = vst [vmem:[#allocation217_spill] sm:$0xff] %v10675_v19  ;;  %v1635_v44 = vld [vmem:[%s14285_s2 + $0xa8] sm:$0xff] }
 0x2fb   : > { %v10597_v38 = vpop.permute.xlu1 %2761  ;;  %v10599_v54 = vpop.permute.xlu0 %2665  ;;  %7769 = vmatprep.subr.bf16.mxu0 %v14740_v59  ;;  %v10653_v26 = vmul.f32 %v1648_v48, %v9899_v23  ;;  %v1665_v23 = vld [vmem:[%s14285_s2 + $0x198] sm:$0xff]  ;;  %14780 = vst [vmem:[#allocation219_spill] sm:$0xff] %v10694_v21  ;;  %14783 = vst [vmem:[#allocation222_spill] sm:$0xff] %v10728_v53  ;;  %v1688_v9 = vld [vmem:[%s14285_s2 + $0x250] sm:$0xff] }
 0x2fc   : > { %v10686_v63 = vmul.f32 %v1665_v23, %v9915_v11  ;;  %v1672_v11 = vld [vmem:[%s14285_s2 + $0x1d0] sm:$0xff] }
 0x2fd   : > { %3114 = vmatmul.mubr.f32.gmra.mrb[220].mxu0 %v10595_v39  ;;  %14776 = vst [vmem:[#allocation215_spill] sm:$0xff] %v10653_v26  ;;  %v10717_v23 = vmul.f32 %v1672_v11, %v9920_v12  ;;  %v10736_v12 = vmul.f32 %v1680_v42, %v9927_v16  ;;  %v1697_v16 = vld [vmem:[%s14285_s2 + $0x298] sm:$0xff]  ;;  %v1696_v42 = vld [vmem:[%s14285_s2 + $0x290] sm:$0xff] }
 0x2fe   : > { %3118 = vmatprep.mubr.f32.mxu0 %v10606_v30  ;;  %7771 = vmatpush1.bf16.msra.mxu0 %v7770_v61  ;;  %14779 = vst [vmem:[#allocation218_spill] sm:$0xff] %v10686_v63 }
 0x2ff   : > { %v10616_v47 = vpop.permute.xlu1 %2667  ;;  %v10618_v13 = vpop.permute.xlu0 %2571  ;;  %7772 = vmatprep.subr.bf16.mxu0 %v14740_v59  ;;  %14782 = vst [vmem:[#allocation221_spill] sm:$0xff] %v10717_v23  ;;  %14784 = vst [vmem:[#allocation223_spill] sm:$0xff] %v10736_v12 }
 0x300   : > { %v7791_v11 = vpack.c.bf16 %v10618_v13, %v10311_v51 }
 0x301   : > { %3119 = vmatmul.mubr.f32.gmra.mrb[222].mxu0 %v10614_v28  ;;  %v14900_v28 = vld [vmem:[#allocation66_spill] sm:$0xff] }
 0x302   : > { %3123 = vmatprep.mubr.f32.mxu0 %v10625_v40  ;;  %7774 = vmatpush1.bf16.msra.mxu0 %v7773_v46  ;;  %v7782_v46 = vpack.c.bf16 %v10579_v49, %v10563_v55  ;;  %v1673_v55 = vld [vmem:[%s14285_s2 + $0x1d8] sm:$0xff] }
 0x303   : > { %v10636_v61 = vpop.permute.xlu1 %2573  ;;  %v10638_v31 = vpop.permute.xlu0 %2763  ;;  %7775 = vmatprep.subr.bf16.mxu0 %v14740_v59  ;;  %v10705_v57 = vmul.f32 %v1673_v55, %v9922_v10 }
 0x305   : > { %3124 = vmatmul.mubr.f32.gmra.mrb[224].mxu0 %v10634_v14  ;;  %14781 = vst [vmem:[#allocation220_spill] sm:$0xff] %v10705_v57 }
 0x306   : > { %3128 = vmatprep.mubr.f32.mxu0 %v10645_v22  ;;  %7777 = vmatpush1.bf16.msra.mxu0 %v7776_v7 }
 0x307   : > { %v10655_v56 = vpop.permute.xlu1 %2765  ;;  %v10657_v60 = vpop.permute.xlu0 %2669  ;;  %7778 = vmatprep.subr.bf16.mxu0 %v14740_v59 }
 0x309   : > { %3129 = vmatmul.mubr.f32.gmra.mrb[226].mxu0 %v10653_v26  ;;  %v14896_v26 = vld [vmem:[#allocation16_spill] sm:$0xff] }
 0x30a   : > { %3133 = vmatprep.mubr.f32.mxu0 %v10664_v32  ;;  %7780 = vmatpush1.bf16.msra.mxu0 %v7779_v25  ;;  %v7788_v25 = vpack.c.bf16 %v10597_v38, %v10599_v54  ;;  %v1689_v54 = vld [vmem:[%s14285_s2 + $0x258] sm:$0xff] }
 0x30b   : > { %v10677_v7 = vpop.permute.xlu1 %2671  ;;  %v10679_v17 = vpop.permute.xlu0 %2575  ;;  %7781 = vmatprep.subr.bf16.mxu0 %v14740_v59  ;;  %v10747_v55 = vmul.f32 %v1689_v54, %v9936_v6  ;;  %v7794_v6 = vpack.c.bf16 %v10638_v31, %v10616_v47  ;;  %v1705_v47 = vld [vmem:[%s14285_s2 + $0x2d8] sm:$0xff] }
 0x30d   : > { %3134 = vmatmul.mubr.f32.gmra.mrb[228].mxu0 %v10675_v19  ;;  %14785 = vst [vmem:[#allocation224_spill] sm:$0xff] %v10747_v55  ;;  %v14892_v19 = vld [vmem:[#allocation204_spill] sm:$0xff] }
 0x30e   : > { %3138 = vmatprep.mubr.f32.mxu0 %v10686_v63  ;;  %7783 = vmatpush1.bf16.msra.mxu0 %v7782_v46 }
 0x30f   : > { %v10696_v49 = vpop.permute.xlu1 %2577  ;;  %v10698_v48 = vpop.permute.xlu0 %2767  ;;  %7784 = vmatprep.subr.bf16.mxu0 %v14740_v59 }
 0x311   : > { %3139 = vmatmul.mubr.f32.gmra.mrb[230].mxu0 %v10694_v21  ;;  %v1670_v21 = vld [vmem:[%s14285_s2 + $0x1c0] sm:$0xff] }
 0x312   : > { %3143 = vmatprep.mubr.f32.mxu0 %v10705_v57  ;;  %7786 = vmatpush1.bf16.msra.mxu0 %v7785_v20  ;;  %v11309_v22 = vmul.f32 %v1670_v21, %v14896_v26  ;;  %v1687_v26 = vld [vmem:[%s14285_s2 + $0x248] sm:$0xff] }
 0x313   : > { %v10719_v10 = vpop.permute.xlu1 %2769  ;;  %v10721_v46 = vpop.permute.xlu0 %2673  ;;  %7787 = vmatprep.subr.bf16.mxu0 %v14740_v59 }
 0x314   : > { %14897 = vst [vmem:[#allocation16_spill] sm:$0xff] %v11309_v22 }
 0x315   : > { %3144 = vmatmul.mubr.f32.gmra.mrb[232].mxu0 %v10717_v23 }
 0x316   : > { %3148 = vmatprep.mubr.f32.mxu0 %v10728_v53  ;;  %7789 = vmatpush1.bf16.msra.mxu0 %v7788_v25  ;;  %v10759_v25 = vmul.f32 %v1688_v9, %v9934_v15 }
 0x317   : > { %v10738_v38 = vpop.permute.xlu1 %8468  ;;  %v10740_v1 = vpop.permute.xlu0 %8463  ;;  %7790 = vmatprep.subr.bf16.mxu0 %v14740_v59 }
 0x318   : > { %v8465_v20 = vunpack.i.l.bf16 %v10740_v1  ;;  %14786 = vst [vmem:[#allocation225_spill] sm:$0xff] %v10759_v25  ;;  %v8470_v54 = vunpack.i.l.bf16 %v10738_v38 }
 0x319   : > { %3149 = vmatmul.mubr.f32.gmra.mrb[234].mxu0 %v10736_v12  ;;  %v1662_v12 = vld [vmem:[%s14285_s2 + $0x180] sm:$0xff] }
 0x31a   : > { %v7671_v18 = vpack.c.bf16 %v8465_v20, %v10365_v37  ;;  %3153 = vmatprep.mubr.f32.mxu0 %v10747_v55  ;;  %7792 = vmatpush1.bf16.msra.mxu0 %v7791_v11  ;;  %v10772_v37 = vmul.f32 %v1697_v16, %v9943_v4  ;;  %v10784_v4 = vmul.f32 %v1696_v42, %v9941_v8  ;;  %v1704_v16 = vld [vmem:[%s14285_s2 + $0x2d0] sm:$0xff]  ;;  %v1713_v8 = vld [vmem:[%s14285_s2 + $0x318] sm:$0xff] }
 0x31b   : > { %v10763_v51 = vpop.permute.xlu1 %8478  ;;  %v10765_v13 = vpop.permute.xlu0 %8473  ;;  %7793 = vmatprep.subr.bf16.mxu0 %v14740_v59 }
 0x31c   : > { %14787 = vst [vmem:[#allocation226_spill] sm:$0xff] %v10772_v37  ;;  %v8475_v15 = vunpack.i.l.bf16 %v10765_v13  ;;  %7672 = vmatpush1.bf16.msra.mxu1 %v7671_v18  ;;  %v8480_v31 = vunpack.i.l.bf16 %v10763_v51  ;;  %14788 = vst [vmem:[#allocation227_spill] sm:$0xff] %v10784_v4  ;;  %v10794_v18 = vmul.f32 %v1705_v47, %v9950_v2  ;;  %v7800_v47 = vpack.c.bf16 %v10655_v56, %v10657_v60 }
 0x31d   : > { %3154 = vmatmul.mubr.f32.gmra.mrb[236].mxu0 %v10759_v25  ;;  %7673 = vmatprep.subr.bf16.mxu1 %v14740_v59  ;;  %v14878_v25 = vld [vmem:[#allocation201_spill] sm:$0xff] }
 0x31e   : > { %v7674_v9 = vpack.c.bf16 %v8475_v15, %v8470_v54  ;;  %3158 = vmatprep.mubr.f32.mxu0 %v10772_v37  ;;  %7795 = vmatpush1.bf16.msra.mxu0 %v7794_v6  ;;  %14789 = vst [vmem:[#allocation228_spill] sm:$0xff] %v10794_v18  ;;  %v7797_v6 = vpack.c.bf16 %v10636_v61, %v10320_v41 }
 0x31f   : > { %v10786_v11 = vpop.permute.xlu1 %8488  ;;  %v10788_v20 = vpop.permute.xlu0 %8483  ;;  %7796 = vmatprep.subr.bf16.mxu0 %v14740_v59  ;;  %v7677_v42 = vpack.c.bf16 %v8480_v31, %v10378_v50  ;;  %v10809_v15 = vmul.f32 %v1704_v16, %v9948_v5  ;;  %v1721_v50 = vld [vmem:[%s14285_s2 + $0x358] sm:$0xff]  ;;  %v1712_v31 = vld [vmem:[%s14285_s2 + $0x310] sm:$0xff] }
 0x320   : > { %7675 = vmatpush1.bf16.msra.mxu1 %v7674_v9  ;;  %v8490_v54 = vunpack.i.l.bf16 %v10786_v11  ;;  %v8485_v2 = vunpack.i.l.bf16 %v10788_v20  ;;  %v10824_v9 = vmul.f32 %v1713_v8, %v9957_v62  ;;  %v10832_v60 = vmul.f32 %v1721_v50, %v10388_v43 }
 0x321   : > { %3159 = vmatmul.mubr.f32.gmra.mrb[238].mxu0 %v10784_v4  ;;  %7676 = vmatprep.subr.bf16.mxu1 %v14740_v59  ;;  %14790 = vst [vmem:[#allocation229_spill] sm:$0xff] %v10809_v15  ;;  %v10835_v16 = vmul.f32 %v1712_v31, %v9955_v3  ;;  %v7803_v3 = vpack.c.bf16 %v10679_v17, %v10335_v58  ;;  %v14796_v31 = vld [vmem:[#allocation166_spill] sm:$0xff] }
 0x322   : > { %3163 = vmatprep.mubr.f32.mxu0 %v10794_v18  ;;  %7798 = vmatpush1.bf16.msra.mxu0 %v7797_v6  ;;  %14791 = vst [vmem:[#allocation230_spill] sm:$0xff] %v10824_v9  ;;  %v7680_v5 = vpack.c.bf16 %v8490_v54, %v8485_v2  ;;  %14792 = vst [vmem:[#allocation231_spill] sm:$0xff] %v10832_v60  ;;  %v1729_v6 = vld [vmem:[%s14285_s2 + $0x398] sm:$0xff]  ;;  %v7806_v50 = vpack.c.bf16 %v10698_v48, %v10677_v7 }
 0x323   : > { %v10813_v41 = vpop.permute.xlu1 %8498  ;;  %v10815_v61 = vpop.permute.xlu0 %8493  ;;  %7799 = vmatprep.subr.bf16.mxu0 %v14740_v59  ;;  %14793 = vst [vmem:[#allocation232_spill] sm:$0xff] %v10835_v16  ;;  %v14794_v2 = vld [vmem:[#allocation169_spill] sm:$0xff] }
 0x324   : > { %7678 = vmatpush1.bf16.msra.mxu1 %v7677_v42  ;;  %v8495_v56 = vunpack.i.l.bf16 %v10815_v61  ;;  %v1720_v42 = vld [vmem:[%s14285_s2 + $0x350] sm:$0xff]  ;;  %v8500_v17 = vunpack.i.l.bf16 %v10813_v41  ;;  %v14863_v18 = vld [vmem:[#allocation197_spill] sm:$0xff] }
 0x325   : > { %3164 = vmatmul.mubr.f32.gmra.mrb[240].mxu0 %v10809_v15  ;;  %7679 = vmatprep.subr.bf16.mxu1 %v14740_v59 }
 0x326   : > { %3168 = vmatprep.mubr.f32.mxu0 %v10824_v9  ;;  %7801 = vmatpush1.bf16.msra.mxu0 %v7800_v47  ;;  %v7683_v43 = vpack.c.bf16 %v8495_v56, %v10397_v29  ;;  %v10856_v47 = vmul.f32 %v1729_v6, %v14794_v2  ;;  %v1737_v29 = vld [vmem:[%s14285_s2 + $0x3d8] sm:$0xff]  ;;  %v1728_v56 = vld [vmem:[%s14285_s2 + $0x390] sm:$0xff] }
 0x327   : > { %v10837_v62 = vpop.permute.xlu1 %8508  ;;  %v10839_v8 = vpop.permute.xlu0 %8503  ;;  %7802 = vmatprep.subr.bf16.mxu0 %v14740_v59  ;;  %v14800_v2 = vld [vmem:[#allocation168_spill] sm:$0xff] }
 0x328   : > { %7681 = vmatpush1.bf16.msra.mxu1 %v7680_v5  ;;  %v8505_v54 = vunpack.i.l.bf16 %v10839_v8  ;;  %14795 = vst [vmem:[#allocation169_spill] sm:$0xff] %v10856_v47  ;;  %v10861_v5 = vmul.f32 %v1720_v42, %v14796_v31  ;;  %v8510_v48 = vunpack.i.l.bf16 %v10837_v62  ;;  %v14798_v42 = vld [vmem:[#allocation173_spill] sm:$0xff]  ;;  %v10883_v31 = vmul.f32 %v1728_v56, %v14800_v2  ;;  %v14804_v2 = vld [vmem:[#allocation175_spill] sm:$0xff] }
 0x329   : > { %3169 = vmatmul.mubr.f32.gmra.mrb[242].mxu0 %v10835_v16  ;;  %7682 = vmatprep.subr.bf16.mxu1 %v14740_v59  ;;  %v14806_v16 = vld [vmem:[#allocation171_spill] sm:$0xff] }
 0x32a   : > { %3173 = vmatprep.mubr.f32.mxu0 %v10832_v60  ;;  %14797 = vst [vmem:[#allocation166_spill] sm:$0xff] %v10861_v5  ;;  %7804 = vmatpush1.bf16.msra.mxu0 %v7803_v3  ;;  %v7686_v6 = vpack.c.bf16 %v8505_v54, %v8500_v17  ;;  %v10880_v3 = vmul.f32 %v1737_v29, %v14798_v42  ;;  %14801 = vst [vmem:[#allocation168_spill] sm:$0xff] %v10883_v31  ;;  %v1736_v60 = vld [vmem:[%s14285_s2 + $0x3d0] sm:$0xff]  ;;  %v14802_v54 = vld [vmem:[#allocation162_spill] sm:$0xff] }
 0x32b   : > { %v10863_v58 = vpop.permute.xlu0 %8513  ;;  %7805 = vmatprep.subr.bf16.mxu0 %v14740_v59  ;;  %v10873_v7 = vpop.permute.xlu1 %8518  ;;  %v7809_v29 = vpack.c.bf16 %v10696_v49, %v14802_v54  ;;  %v10908_v49 = vmul.f32 %v1736_v60, %v14806_v16  ;;  %v14809_v16 = vld [vmem:[#allocation174_spill] sm:$0xff] }
 0x32c   : > { %7684 = vmatpush1.bf16.msra.mxu1 %v7683_v43  ;;  %14799 = vst [vmem:[#allocation173_spill] sm:$0xff] %v10880_v3  ;;  %v8520_v56 = vunpack.i.l.bf16 %v10873_v7  ;;  %v8515_v42 = vunpack.i.l.bf16 %v10863_v58 }
 0x32d   : > { %3174 = vmatmul.mubr.f32.gmra.mrb[244].mxu0 %v10861_v5  ;;  %7685 = vmatprep.subr.bf16.mxu1 %v14740_v59  ;;  %v1745_v5 = vld [vmem:[%s14285_s2 + $0x418] sm:$0xff] }
 0x32e   : > { %3178 = vmatprep.mubr.f32.mxu0 %v10856_v47  ;;  %7807 = vmatpush1.bf16.msra.mxu0 %v7806_v50  ;;  %v14803_v50 = vld [vmem:[#allocation172_spill] sm:$0xff]  ;;  %v10903_v47 = vmul.f32 %v1745_v5, %v14804_v2 }
 0x32f   : > { %v10885_v43 = vpop.permute.xlu0 %8523  ;;  %7808 = vmatprep.subr.bf16.mxu0 %v14740_v59  ;;  %v7689_v17 = vpack.c.bf16 %v8510_v48, %v14803_v50  ;;  %14807 = vst [vmem:[#allocation172_spill] sm:$0xff] %v10908_v49  ;;  %v10910_v54 = vpop.permute.xlu1 %8528  ;;  %v1753_v48 = vld [vmem:[%s14285_s2 + $0x458] sm:$0xff]  ;;  %v1744_v50 = vld [vmem:[%s14285_s2 + $0x410] sm:$0xff] }
 0x330   : > { %7687 = vmatpush1.bf16.msra.mxu1 %v7686_v6  ;;  %14805 = vst [vmem:[#allocation162_spill] sm:$0xff] %v10903_v47  ;;  %v7812_v6 = vpack.c.bf16 %v10719_v10, %v10721_v46  ;;  %v7692_v10 = vpack.c.bf16 %v8520_v56, %v8515_v42  ;;  %v8525_v46 = vunpack.i.l.bf16 %v10885_v43  ;;  %v10926_v60 = vmul.f32 %v1753_v48, %v10438_v34  ;;  %v1752_v2 = vld [vmem:[%s14285_s2 + $0x450] sm:$0xff] }
 0x331   : > { %3179 = vmatmul.mubr.f32.gmra.mrb[246].mxu0 %v10883_v31  ;;  %7688 = vmatprep.subr.bf16.mxu1 %v14740_v59  ;;  %v14847_v31 = vld [vmem:[#allocation193_spill] sm:$0xff] }
 0x332   : > { %3183 = vmatprep.mubr.f32.mxu0 %v10880_v3  ;;  %7810 = vmatpush1.bf16.msra.mxu0 %v7809_v29  ;;  %14808 = vst [vmem:[#allocation175_spill] sm:$0xff] %v10926_v60  ;;  %v10929_v29 = vmul.f32 %v1744_v50, %v14809_v16  ;;  %v7695_v34 = vpack.c.bf16 %v8525_v46, %v10434_v36  ;;  %v14813_v50 = vld [vmem:[#allocation176_spill] sm:$0xff]  ;;  %v1622_v3 = vld [vmem:[%s14285_s2 + $0x40] sm:$0xff] }
 0x333   : > { %7811 = vmatprep.subr.bf16.mxu0 %v14740_v59  ;;  %v10919_v5 = vpop.permute.xlu0 %8533  ;;  %v10938_v56 = vpop.permute.xlu1 %8538  ;;  %v10949_v16 = vmul.f32 %v1752_v2, %v14813_v50  ;;  %v1760_v36 = vld [vmem:[%s14285_s2 + $0x490] sm:$0xff]  ;;  %v14816_v50 = vld [vmem:[#allocation178_spill] sm:$0xff] }
 0x334   : > { %7690 = vmatpush1.bf16.msra.mxu1 %v7689_v17  ;;  %14810 = vst [vmem:[#allocation171_spill] sm:$0xff] %v10929_v29  ;;  %v1761_v17 = vld [vmem:[%s14285_s2 + $0x498] sm:$0xff]  ;;  %v8535_v42 = vunpack.i.l.bf16 %v10919_v5  ;;  %v8540_v46 = vunpack.i.l.bf16 %v10938_v56 }
 0x335   : > { %3184 = vmatmul.mubr.f32.gmra.mrb[248].mxu0 %v10908_v49  ;;  %7691 = vmatprep.subr.bf16.mxu1 %v14740_v59 }
 0x336   : > { %3188 = vmatprep.mubr.f32.mxu0 %v10903_v47  ;;  %7813 = vmatpush1.bf16.msra.mxu0 %v7812_v6  ;;  %v14811_v6 = vld [vmem:[#allocation180_spill] sm:$0xff]  ;;  %v8530_v47 = vunpack.i.l.bf16 %v10910_v54 }
 0x337   : > { %7814 = vmatprep.subr.bf16.mxu0 %v14740_v59  ;;  %v10946_v48 = vmul.f32 %v1761_v17, %v14811_v6  ;;  %14814 = vst [vmem:[#allocation180_spill] sm:$0xff] %v10949_v16  ;;  %v10967_v6 = vpop.permute.xlu1 %8548 }
 0x338   : > { %7693 = vmatpush1.bf16.msra.mxu1 %v7692_v10  ;;  %v10951_v10 = vpop.permute.xlu0 %8543  ;;  %v7698_v17 = vpack.c.bf16 %v8535_v42, %v8530_v47 }
 0x339   : > { %3189 = vmatmul.mubr.f32.gmra.mrb[250].mxu0 %v10929_v29  ;;  %7694 = vmatprep.subr.bf16.mxu1 %v14740_v59  ;;  %14812 = vst [vmem:[#allocation174_spill] sm:$0xff] %v10946_v48  ;;  %v1769_v29 = vld [vmem:[%s14285_s2 + $0x4d8] sm:$0xff]  ;;  %v8545_v42 = vunpack.i.l.bf16 %v10951_v10 }
 0x33a   : > { %3193 = vmatprep.mubr.f32.mxu0 %v10926_v60  ;;  %v10965_v2 = vmul.f32 %v1769_v29, %v10464_v45  ;;  %v10970_v60 = vmul.f32 %v1760_v36, %v14816_v50  ;;  %v7701_v45 = vpack.c.bf16 %v8540_v46, %v10450_v52  ;;  %v8550_v29 = vunpack.i.l.bf16 %v10967_v6  ;;  %v14818_v36 = vld [vmem:[#allocation184_spill] sm:$0xff] }
 0x33b   : > { %v1776_v52 = vld [vmem:[%s14285_s2 + $0x510] sm:$0xff]  ;;  %v10998_v46 = vpop.permute.xlu1 %8558 }
 0x33c   : > { %7696 = vmatpush1.bf16.msra.mxu1 %v7695_v34  ;;  %14815 = vst [vmem:[#allocation176_spill] sm:$0xff] %v10965_v2  ;;  %14817 = vst [vmem:[#allocation178_spill] sm:$0xff] %v10970_v60  ;;  %v1777_v34 = vld [vmem:[%s14285_s2 + $0x518] sm:$0xff]  ;;  %v10978_v47 = vpop.permute.xlu0 %8553 }
 0x33d   : > { %3194 = vmatmul.mubr.f32.gmra.mrb[252].mxu0 %v10949_v16  ;;  %7697 = vmatprep.subr.bf16.mxu1 %v14740_v59  ;;  %v1768_v16 = vld [vmem:[%s14285_s2 + $0x4d0] sm:$0xff]  ;;  %v10987_v50 = vmul.f32 %v1777_v34, %v14818_v36  ;;  %v7704_v34 = vpack.c.bf16 %v8550_v29, %v8545_v42  ;;  %v8555_v36 = vunpack.i.l.bf16 %v10978_v47 }
 0x33e   : > { %3198 = vmatprep.mubr.f32.mxu0 %v10946_v48  ;;  %v14820_v48 = vld [vmem:[#allocation181_spill] sm:$0xff]  ;;  %v1784_v29 = vld [vmem:[%s14285_s2 + $0x550] sm:$0xff] }
 0x33f   : > { %14819 = vst [vmem:[#allocation184_spill] sm:$0xff] %v10987_v50  ;;  %v10990_v49 = vmul.f32 %v1768_v16, %v14820_v48 }
 0x340   : > { %7699 = vmatpush1.bf16.msra.mxu1 %v7698_v17  ;;  %v1785_v17 = vld [vmem:[%s14285_s2 + $0x558] sm:$0xff]  ;;  %v11007_v16 = vpop.permute.xlu0 %8563 }
 0x341   : > { %3199 = vmatmul.mubr.f32.gmra.mrb[254].mxu0 %v10970_v60  ;;  %7700 = vmatprep.subr.bf16.mxu1 %v14740_v59  ;;  %14821 = vst [vmem:[#allocation181_spill] sm:$0xff] %v10990_v49  ;;  %v11005_v48 = vmul.f32 %v1785_v17, %v10491_v27  ;;  %v7707_v27 = vpack.c.bf16 %v8555_v36, %v10475_v33  ;;  %v8565_v42 = vunpack.i.l.bf16 %v11007_v16  ;;  %v11026_v17 = vpop.permute.xlu1 %8568  ;;  %v1792_v33 = vld [vmem:[%s14285_s2 + $0x590] sm:$0xff] }
 0x342   : > { %3203 = vmatprep.mubr.f32.mxu0 %v10965_v2  ;;  %v14823_v2 = vld [vmem:[#allocation182_spill] sm:$0xff] }
 0x343   : > { %14822 = vst [vmem:[#allocation233_spill] sm:$0xff] %v11005_v48  ;;  %v11010_v60 = vmul.f32 %v1776_v52, %v14823_v2  ;;  %v14826_v52 = vld [vmem:[#allocation185_spill] sm:$0xff] }
 0x344   : > { %7702 = vmatpush1.bf16.msra.mxu1 %v7701_v45  ;;  %v1793_v45 = vld [vmem:[%s14285_s2 + $0x598] sm:$0xff] }
 0x345   : > { %3204 = vmatmul.mubr.f32.gmra.mrb[0].mxu0 %v10990_v49  ;;  %7703 = vmatprep.subr.bf16.mxu1 %v14740_v59  ;;  %14824 = vst [vmem:[#allocation182_spill] sm:$0xff] %v11010_v60  ;;  %v11024_v2 = vmul.f32 %v1793_v45, %v10501_v35  ;;  %v8570_v35 = vunpack.i.l.bf16 %v11026_v17  ;;  %v14828_v45 = vld [vmem:[#allocation190_spill] sm:$0xff] }
 0x346   : > { %3208 = vmatprep.mubr.f32.mxu0 %v10987_v50  ;;  %v11029_v50 = vmul.f32 %v1784_v29, %v14826_v52  ;;  %v11045_v52 = vpop.permute.xlu0 %8573 }
 0x347   : > { %14825 = vst [vmem:[#allocation234_spill] sm:$0xff] %v11024_v2 }
 0x348   : > { %7705 = vmatpush1.bf16.msra.mxu1 %v7704_v34  ;;  %14827 = vst [vmem:[#allocation185_spill] sm:$0xff] %v11029_v50  ;;  %v1801_v34 = vld [vmem:[%s14285_s2 + $0x5d8] sm:$0xff] }
 0x349   : > { %3209 = vmatmul.mubr.f32.gmra.mrb[2].mxu0 %v11010_v60  ;;  %7706 = vmatprep.subr.bf16.mxu1 %v14740_v59  ;;  %v8560_v60 = vunpack.i.l.bf16 %v10998_v46  ;;  %v11043_v29 = vmul.f32 %v1801_v34, %v14828_v45  ;;  %v8575_v34 = vunpack.i.l.bf16 %v11045_v52  ;;  %v14835_v45 = vld [vmem:[#allocation189_spill] sm:$0xff] }
 0x34a   : > { %3213 = vmatprep.mubr.f32.mxu0 %v11005_v48  ;;  %v14830_v48 = vld [vmem:[#allocation188_spill] sm:$0xff] }
 0x34b   : > { %v7710_v36 = vpack.c.bf16 %v8565_v42, %v8560_v60  ;;  %14829 = vst [vmem:[#allocation190_spill] sm:$0xff] %v11043_v29  ;;  %v11048_v49 = vmul.f32 %v1792_v33, %v14830_v48  ;;  %v14832_v60 = vld [vmem:[#allocation187_spill] sm:$0xff]  ;;  %v14833_v48 = vld [vmem:[#allocation192_spill] sm:$0xff] }
 0x34c   : > { %7708 = vmatpush1.bf16.msra.mxu1 %v7707_v27  ;;  %v1809_v27 = vld [vmem:[%s14285_s2 + $0x618] sm:$0xff]  ;;  %v7713_v42 = vpack.c.bf16 %v8570_v35, %v14832_v60  ;;  %v2738_v35 = vpop.permute.xlu1 %2737  ;;  %v14837_v60 = vld [vmem:[#allocation194_spill] sm:$0xff] }
 0x34d   : > { %3214 = vmatmul.mubr.f32.gmra.mrb[4].mxu0 %v11029_v50  ;;  %7709 = vmatprep.subr.bf16.mxu1 %v14740_v59  ;;  %14831 = vst [vmem:[#allocation188_spill] sm:$0xff] %v11048_v49  ;;  %v1800_v50 = vld [vmem:[%s14285_s2 + $0x5d0] sm:$0xff]  ;;  %v11062_v33 = vmul.f32 %v1809_v27, %v14833_v48  ;;  %v1614_v27 = vld [vmem:[%s14285_s2] sm:$0xff] }
 0x34e   : > { %3218 = vmatprep.mubr.f32.mxu0 %v11024_v2  ;;  %v11065_v2 = vmul.f32 %v1800_v50, %v14835_v45  ;;  %v7716_v50 = vpack.c.bf16 %v2738_v35, %v8575_v34  ;;  %v14839_v45 = vld [vmem:[#allocation191_spill] sm:$0xff]  ;;  %v1816_v34 = vld [vmem:[%s14285_s2 + $0x650] sm:$0xff]  ;;  %v14841_v35 = vld [vmem:[#allocation2_spill] sm:$0xff] }
 0x34f   : > { %14834 = vst [vmem:[#allocation187_spill] sm:$0xff] %v11062_v33  ;;  %v11109_v9 = vmul.f32 %v1816_v34, %v14847_v31  ;;  %v14849_v31 = vld [vmem:[#allocation4_spill] sm:$0xff]  ;;  %v14851_v34 = vld [vmem:[#allocation198_spill] sm:$0xff] }
 0x350   : > { %7711 = vmatpush1.bf16.msra.mxu1 %v7710_v36  ;;  %14836 = vst [vmem:[#allocation192_spill] sm:$0xff] %v11065_v2  ;;  %v1817_v36 = vld [vmem:[%s14285_s2 + $0x658] sm:$0xff] }
 0x351   : > { %3219 = vmatmul.mubr.f32.gmra.mrb[6].mxu0 %v11048_v49  ;;  %7712 = vmatprep.subr.bf16.mxu1 %v14740_v59  ;;  %v1808_v49 = vld [vmem:[%s14285_s2 + $0x610] sm:$0xff]  ;;  %v11080_v48 = vmul.f32 %v1817_v36, %v14837_v60  ;;  %v14845_v60 = vld [vmem:[#allocation5_spill] sm:$0xff] }
 0x352   : > { %3223 = vmatprep.mubr.f32.mxu0 %v11043_v29  ;;  %v11083_v29 = vmul.f32 %v1808_v49, %v14839_v45  ;;  %v14843_v49 = vld [vmem:[#allocation196_spill] sm:$0xff]  ;;  %14848 = vst [vmem:[#allocation5_spill] sm:$0xff] %v11109_v9 }
 0x353   : > { %14838 = vst [vmem:[#allocation189_spill] sm:$0xff] %v11080_v48 }
 0x354   : > { %7714 = vmatpush1.bf16.msra.mxu1 %v7713_v42  ;;  %14840 = vst [vmem:[#allocation194_spill] sm:$0xff] %v11083_v29  ;;  %v1825_v42 = vld [vmem:[%s14285_s2 + $0x698] sm:$0xff] }
 0x355   : > { %3224 = vmatmul.mubr.f32.gmra.mrb[8].mxu0 %v11065_v2  ;;  %7715 = vmatprep.subr.bf16.mxu1 %v14740_v59  ;;  %v1623_v2 = vld [vmem:[%s14285_s2 + $0x48] sm:$0xff]  ;;  %v11100_v36 = vmul.f32 %v1825_v42, %v14843_v49  ;;  %v11124_v42 = vmul.f32 %v1622_v3, %v14849_v31  ;;  %v1841_v3 = vld [vmem:[%s14285_s2 + $0x718] sm:$0xff]  ;;  %v14859_v31 = vld [vmem:[#allocation200_spill] sm:$0xff] }
 0x356   : > { %3228 = vmatprep.mubr.f32.mxu0 %v11062_v33  ;;  %v11095_v33 = vmul.f32 %v1614_v27, %v14841_v35  ;;  %v11103_v45 = vmul.f32 %v1623_v2, %v14845_v60  ;;  %v1833_v27 = vld [vmem:[%s14285_s2 + $0x6d8] sm:$0xff]  ;;  %v1824_v2 = vld [vmem:[%s14285_s2 + $0x690] sm:$0xff]  ;;  %v14853_v49 = vld [vmem:[#allocation7_spill] sm:$0xff] }
 0x357   : > { %14844 = vst [vmem:[#allocation2_spill] sm:$0xff] %v11100_v36  ;;  %14850 = vst [vmem:[#allocation193_spill] sm:$0xff] %v11124_v42  ;;  %v11128_v35 = vmul.f32 %v1833_v27, %v14851_v34  ;;  %v1639_v27 = vld [vmem:[%s14285_s2 + $0xc8] sm:$0xff]  ;;  %v11156_v34 = vmul.f32 %v1841_v3, %v14859_v31 }
 0x358   : > { %7717 = vmatpush1.bf16.msra.mxu1 %v7716_v50  ;;  %14842 = vst [vmem:[#allocation191_spill] sm:$0xff] %v11095_v33  ;;  %14846 = vst [vmem:[#allocation196_spill] sm:$0xff] %v11103_v45  ;;  %v1631_v50 = vld [vmem:[%s14285_s2 + $0x88] sm:$0xff] }
 0x359   : > { %3229 = vmatmul.mubr.f32.gmra.mrb[10].mxu0 %v11083_v29  ;;  %14852 = vst [vmem:[#allocation4_spill] sm:$0xff] %v11128_v35  ;;  %v11131_v60 = vmul.f32 %v1631_v50, %v14853_v49  ;;  %v14855_v29 = vld [vmem:[#allocation195_spill] sm:$0xff]  ;;  %v1832_v50 = vld [vmem:[%s14285_s2 + $0x6d0] sm:$0xff]  ;;  %v14861_v49 = vld [vmem:[#allocation9_spill] sm:$0xff] }
 0x35a   : > { %3233 = vmatprep.mubr.f32.mxu0 %v11080_v48  ;;  %v1630_v48 = vld [vmem:[%s14285_s2 + $0x80] sm:$0xff]  ;;  %v11137_v15 = vmul.f32 %v1824_v2, %v14855_v29  ;;  %v11165_v4 = vmul.f32 %v1832_v50, %v14863_v18  ;;  %v1647_v3 = vld [vmem:[%s14285_s2 + $0x108] sm:$0xff]  ;;  %v14865_v18 = vld [vmem:[#allocation8_spill] sm:$0xff] }
 0x35b   : > { %2884 = vmatmul.mubr.f32.vlgmr.msra.gmra.mrb[102].mxu1 %v11095_v33  ;;  %14854 = vst [vmem:[#allocation198_spill] sm:$0xff] %v11131_v60  ;;  %v14857_v29 = vld [vmem:[#allocation6_spill] sm:$0xff]  ;;  %v14868_v31 = vld [vmem:[#allocation11_spill] sm:$0xff] }
 0x35c   : > { %2888 = vmatprep.mubr.f32.mxu1 %v11103_v45  ;;  %14856 = vst [vmem:[#allocation7_spill] sm:$0xff] %v11137_v15  ;;  %v11152_v2 = vmul.f32 %v1630_v48, %v14857_v29  ;;  %14860 = vst [vmem:[#allocation6_spill] sm:$0xff] %v11156_v34  ;;  %v1849_v48 = vld [vmem:[%s14285_s2 + $0x758] sm:$0xff]  ;;  %v1683_v33 = vld [vmem:[%s14285_s2 + $0x228] sm:$0xff] }
 0x35d   : > { %3234 = vmatmul.mubr.f32.gmra.mrb[12].mxu0 %v11109_v9  ;;  %v1638_v9 = vld [vmem:[%s14285_s2 + $0xc0] sm:$0xff]  ;;  %14864 = vst [vmem:[#allocation9_spill] sm:$0xff] %v11165_v4  ;;  %v11184_v29 = vmul.f32 %v1849_v48, %v10550_v24  ;;  %v1655_v24 = vld [vmem:[%s14285_s2 + $0x148] sm:$0xff]  ;;  %v1848_v48 = vld [vmem:[%s14285_s2 + $0x750] sm:$0xff] }
 0x35e   : > { %3238 = vmatprep.mubr.f32.mxu0 %v11100_v36  ;;  %14858 = vst [vmem:[#allocation195_spill] sm:$0xff] %v11152_v2  ;;  %v11159_v36 = vmul.f32 %v1639_v27, %v14861_v49  ;;  %v1840_v27 = vld [vmem:[%s14285_s2 + $0x710] sm:$0xff]  ;;  %v11180_v50 = vmul.f32 %v1638_v9, %v14865_v18  ;;  %v11187_v49 = vmul.f32 %v1647_v3, %v14868_v31  ;;  %v1857_v9 = vld [vmem:[%s14285_s2 + $0x798] sm:$0xff] }
 0x35f   : > { %2889 = vmatmul.mubr.f32.gmra.mrb[104].mxu1 %v11124_v42  ;;  %14867 = vst [vmem:[#allocation8_spill] sm:$0xff] %v11184_v29  ;;  %v14876_v31 = vld [vmem:[#allocation13_spill] sm:$0xff]  ;;  %v11221_v55 = vmul.f32 %v1848_v48, %v14878_v25  ;;  %v14880_v25 = vld [vmem:[#allocation12_spill] sm:$0xff] }
 0x360   : > { %2893 = vmatprep.mubr.f32.mxu1 %v11131_v60  ;;  %14862 = vst [vmem:[#allocation200_spill] sm:$0xff] %v11159_v36  ;;  %14866 = vst [vmem:[#allocation197_spill] sm:$0xff] %v11180_v50 }
 0x361   : > { %3239 = vmatmul.mubr.f32.gmra.mrb[14].mxu0 %v11137_v15  ;;  %14869 = vst [vmem:[#allocation11_spill] sm:$0xff] %v11187_v49  ;;  %v14870_v15 = vld [vmem:[#allocation199_spill] sm:$0xff]  ;;  %14879 = vst [vmem:[#allocation201_spill] sm:$0xff] %v11221_v55 }
 0x362   : > { %3243 = vmatprep.mubr.f32.mxu0 %v11128_v35  ;;  %v1646_v35 = vld [vmem:[%s14285_s2 + $0x100] sm:$0xff]  ;;  %v11193_v37 = vmul.f32 %v1840_v27, %v14870_v15  ;;  %v14874_v27 = vld [vmem:[#allocation203_spill] sm:$0xff] }
 0x363   : > { %2894 = vmatmul.mubr.f32.gmra.mrb[106].mxu1 %v11152_v2  ;;  %v14872_v15 = vld [vmem:[#allocation10_spill] sm:$0xff]  ;;  %v11212_v18 = vmul.f32 %v1857_v9, %v14874_v27  ;;  %v1663_v9 = vld [vmem:[%s14285_s2 + $0x188] sm:$0xff]  ;;  %v14882_v27 = vld [vmem:[#allocation205_spill] sm:$0xff] }
 0x364   : > { %2898 = vmatprep.mubr.f32.mxu1 %v11159_v36  ;;  %14871 = vst [vmem:[#allocation199_spill] sm:$0xff] %v11193_v37  ;;  %v11208_v3 = vmul.f32 %v1646_v35, %v14872_v15  ;;  %v1865_v35 = vld [vmem:[%s14285_s2 + $0x7d8] sm:$0xff]  ;;  %v11238_v15 = vpop.f32.mrb[38].mxu1  ;;  %v14939_v36 = vld [vmem:[#allocation26_spill] sm:$0xff] }
 0x365   : > { %3244 = vmatmul.mubr.f32.gmra.mrb[16].mxu0 %v11165_v4  ;;  %14875 = vst [vmem:[#allocation203_spill] sm:$0xff] %v11212_v18  ;;  %v1654_v4 = vld [vmem:[%s14285_s2 + $0x140] sm:$0xff]  ;;  %v11250_v53 = vpop.f32.mrb[39].mxu1 }
 0x366   : > { %3248 = vmatprep.mubr.f32.mxu0 %v11156_v34  ;;  %14873 = vst [vmem:[#allocation10_spill] sm:$0xff] %v11208_v3  ;;  %v11215_v34 = vmul.f32 %v1655_v24, %v14876_v31  ;;  %v1856_v24 = vld [vmem:[%s14285_s2 + $0x790] sm:$0xff]  ;;  %v11236_v48 = vmul.f32 %v1654_v4, %v14880_v25  ;;  %v11242_v31 = vmul.f32 %v1865_v35, %v14882_v27  ;;  %v1671_v4 = vld [vmem:[%s14285_s2 + $0x1c8] sm:$0xff]  ;;  %v11259_v35 = vpop.f32.mrb[40].mxu1 }
 0x367   : > { %2899 = vmatmul.mubr.f32.gmra.mrb[108].mxu1 %v11180_v50 }
 0x368   : > { %2903 = vmatprep.mubr.f32.mxu1 %v11187_v49  ;;  %14877 = vst [vmem:[#allocation13_spill] sm:$0xff] %v11215_v34  ;;  %14881 = vst [vmem:[#allocation12_spill] sm:$0xff] %v11236_v48 }
 0x369   : > { %3249 = vmatmul.mubr.f32.gmra.mrb[18].mxu0 %v11193_v37  ;;  %14883 = vst [vmem:[#allocation205_spill] sm:$0xff] %v11242_v31 }
 0x36a   : > { %3253 = vmatprep.mubr.f32.mxu0 %v11184_v29  ;;  %v14884_v29 = vld [vmem:[#allocation15_spill] sm:$0xff] }
 0x36b   : > { %2904 = vmatmul.mubr.f32.gmra.mrb[110].mxu1 %v11208_v3  ;;  %v11245_v37 = vmul.f32 %v1663_v9, %v14884_v29  ;;  %v1864_v29 = vld [vmem:[%s14285_s2 + $0x7d0] sm:$0xff]  ;;  %v11265_v9 = vpop.f32.mrb[41].mxu1 }
 0x36c   : > { %2908 = vmatprep.mubr.f32.mxu1 %v11215_v34  ;;  %v11274_v27 = vpop.f32.mrb[42].mxu1  ;;  %v11286_v32 = vmul.f32 %v1864_v29, %v14892_v19  ;;  %v1627_v29 = vld [vmem:[%s14285_s2 + $0x68] sm:$0xff]  ;;  %v14922_v34 = vld [vmem:[#allocation22_spill] sm:$0xff] }
 0x36d   : > { %3254 = vmatmul.mubr.f32.gmra.mrb[20].mxu0 %v11221_v55  ;;  %14885 = vst [vmem:[#allocation15_spill] sm:$0xff] %v11245_v37  ;;  %v14886_v55 = vld [vmem:[#allocation202_spill] sm:$0xff]  ;;  %v11283_v63 = vpop.f32.mrb[43].mxu1 }
 0x36e   : > { %3258 = vmatprep.mubr.f32.mxu0 %v11212_v18  ;;  %v11253_v23 = vmul.f32 %v1856_v24, %v14886_v55  ;;  %v1619_v55 = vld [vmem:[%s14285_s2 + $0x28] sm:$0xff]  ;;  %v14888_v24 = vld [vmem:[#allocation14_spill] sm:$0xff]  ;;  %v14890_v18 = vld [vmem:[#allocation17_spill] sm:$0xff]  ;;  %14893 = vst [vmem:[#allocation204_spill] sm:$0xff] %v11286_v32 }
 0x36f   : > { %2909 = vmatmul.mubr.f32.gmra.mrb[112].mxu1 %v11236_v48  ;;  %v11272_v25 = vmul.f32 %v1662_v12, %v14888_v24  ;;  %v11278_v57 = vmul.f32 %v1671_v4, %v14890_v18  ;;  %v1679_v12 = vld [vmem:[%s14285_s2 + $0x208] sm:$0xff]  ;;  %v11292_v24 = vpop.f32.mrb[44].mxu1  ;;  %v1618_v18 = vld [vmem:[%s14285_s2 + $0x20] sm:$0xff] }
 0x370   : > { %14887 = vst [vmem:[#allocation202_spill] sm:$0xff] %v11253_v23  ;;  %2913 = vmatprep.mubr.f32.mxu1 %v11245_v37  ;;  %v14894_v4 = vld [vmem:[#allocation67_spill] sm:$0xff]  ;;  %v11302_v19 = vpop.f32.mrb[45].mxu1  ;;  %v11323_v30 = vmul.f32 %v1618_v18, %v14900_v28  ;;  %v8476_v28 = vunpack.i.h.bf16 %v10765_v13  ;;  %v1686_v13 = vld [vmem:[%s14285_s2 + $0x240] sm:$0xff] }
 0x371   : > { %3259 = vmatmul.mubr.f32.gmra.mrb[22].mxu0 %v11253_v23  ;;  %14889 = vst [vmem:[#allocation14_spill] sm:$0xff] %v11272_v25  ;;  %14891 = vst [vmem:[#allocation17_spill] sm:$0xff] %v11278_v57  ;;  %v8466_v23 = vunpack.i.h.bf16 %v10740_v1  ;;  %v11311_v14 = vpop.f32.mrb[46].mxu1  ;;  %v1678_v1 = vld [vmem:[%s14285_s2 + $0x200] sm:$0xff]  ;;  %v1651_v48 = vld [vmem:[%s14285_s2 + $0x128] sm:$0xff] }
 0x372   : > { %3263 = vmatprep.mubr.f32.mxu0 %v11242_v31  ;;  %v11298_v31 = vmul.f32 %v1619_v55, %v14894_v4  ;;  %v14898_v55 = vld [vmem:[#allocation19_spill] sm:$0xff]  ;;  %v11320_v40 = vpop.f32.mrb[47].mxu1  ;;  %14901 = vst [vmem:[#allocation66_spill] sm:$0xff] %v11323_v30 }
 0x373   : > { %2914 = vmatmul.mubr.f32.gmra.mrb[114].mxu1 %v11272_v25  ;;  %v11315_v4 = vmul.f32 %v1679_v12, %v14898_v55  ;;  %v11329_v21 = vpop.f32.mrb[48].mxu1  ;;  %v1626_v12 = vld [vmem:[%s14285_s2 + $0x60] sm:$0xff]  ;;  %v14902_v55 = vld [vmem:[#allocation69_spill] sm:$0xff] }
 0x374   : > { %14895 = vst [vmem:[#allocation67_spill] sm:$0xff] %v11298_v31  ;;  %2918 = vmatprep.mubr.f32.mxu1 %v11278_v57  ;;  %v11340_v18 = vpop.f32.mrb[49].mxu1 }
 0x375   : > { %3264 = vmatmul.mubr.f32.gmra.mrb[24].mxu0 %v11286_v32  ;;  %14899 = vst [vmem:[#allocation19_spill] sm:$0xff] %v11315_v4  ;;  %v14904_v32 = vld [vmem:[#allocation164_spill] sm:$0xff]  ;;  %v11349_v57 = vpop.f32.mrb[50].mxu1 }
 0x376   : > { %3333 = vmatprep.mubr.f32.mxu0 %v11298_v31  ;;  %v11335_v31 = vmul.f32 %v1627_v29, %v14902_v55  ;;  %v7815_v39 = vpack.c.bf16 %v8466_v23, %v14904_v32  ;;  %v8471_v29 = vunpack.i.h.bf16 %v10738_v38  ;;  %v14907_v32 = vld [vmem:[#allocation21_spill] sm:$0xff]  ;;  %v11359_v55 = vpop.f32.mrb[51].mxu1  ;;  %v1634_v38 = vld [vmem:[%s14285_s2 + $0xa0] sm:$0xff] }
 0x377   : > { %2919 = vmatmul.mubr.f32.gmra.mrb[116].mxu1 %v11309_v22  ;;  %v11347_v22 = vmul.f32 %v1678_v1, %v14905_v0  ;;  %v11354_v23 = vmul.f32 %v1687_v26, %v14907_v32  ;;  %v1695_v0 = vld [vmem:[%s14285_s2 + $0x288] sm:$0xff] }
 0x378   : > { %14903 = vst [vmem:[#allocation69_spill] sm:$0xff] %v11335_v31  ;;  %2923 = vmatprep.mubr.f32.mxu1 %v11315_v4  ;;  %v14911_v1 = vld [vmem:[#allocation71_spill] sm:$0xff] }
 0x379   : > { %3334 = vmatmul.mubr.f32.vlgmr.msra.gmra.mrb[218].mxu0 %v11323_v30  ;;  %14906 = vst [vmem:[#allocation164_spill] sm:$0xff] %v11347_v22  ;;  %14908 = vst [vmem:[#allocation18_spill] sm:$0xff] %v11354_v23  ;;  %v14909_v30 = vld [vmem:[#allocation68_spill] sm:$0xff]  ;;  %v11375_v26 = vmul.f32 %v1635_v44, %v14911_v1  ;;  %v14915_v44 = vld [vmem:[#allocation23_spill] sm:$0xff] }
 0x37a   : > { %7816 = vmatpush1.bf16.msra.mxu0 %v7815_v39  ;;  %3338 = vmatprep.mubr.f32.mxu0 %v11335_v31  ;;  %v11362_v4 = vmul.f32 %v1626_v12, %v14909_v30  ;;  %v11369_v39 = vpop.f32.mrb[52].mxu1  ;;  %v8481_v30 = vunpack.i.h.bf16 %v10763_v51  ;;  %v7818_v12 = vpack.c.bf16 %v8476_v28, %v8471_v29  ;;  %v1643_v31 = vld [vmem:[%s14285_s2 + $0xe8] sm:$0xff]  ;;  %v11392_v51 = vmul.f32 %v1695_v0, %v14915_v44  ;;  %v1694_v28 = vld [vmem:[%s14285_s2 + $0x280] sm:$0xff] }
 0x37b   : > { %2924 = vmatmul.mubr.f32.gmra.mrb[118].mxu1 %v11347_v22  ;;  %7817 = vmatprep.subr.bf16.mxu0 %v14740_v59  ;;  %14912 = vst [vmem:[#allocation68_spill] sm:$0xff] %v11375_v26  ;;  %v11379_v32 = vpop.f32.mrb[53].mxu1  ;;  %v14913_v22 = vld [vmem:[#allocation20_spill] sm:$0xff]  ;;  %v14917_v1 = vld [vmem:[#allocation70_spill] sm:$0xff]  ;;  %v11426_v3 = vmul.f32 %v1694_v28, %v14922_v34  ;;  %v1711_v34 = vld [vmem:[%s14285_s2 + $0x308] sm:$0xff] }
 0x37c   : > { %14910 = vst [vmem:[#allocation21_spill] sm:$0xff] %v11362_v4  ;;  %2928 = vmatprep.mubr.f32.mxu1 %v11354_v23  ;;  %v11386_v25 = vmul.f32 %v1686_v13, %v14913_v22  ;;  %v11388_v37 = vpop.f32.mrb[54].mxu1  ;;  %14916 = vst [vmem:[#allocation20_spill] sm:$0xff] %v11392_v51  ;;  %v11400_v23 = vmul.f32 %v1634_v38, %v14917_v1  ;;  %v1703_v22 = vld [vmem:[%s14285_s2 + $0x2c8] sm:$0xff]  ;;  %v1642_v0 = vld [vmem:[%s14285_s2 + $0xe0] sm:$0xff]  ;;  %v8491_v1 = vunpack.i.h.bf16 %v10786_v11 }
 0x37d   : > { %3339 = vmatmul.mubr.f32.gmra.mrb[220].mxu0 %v11362_v4  ;;  %v11397_v29 = vpop.f32.mrb[55].mxu1  ;;  %v8486_v4 = vunpack.i.h.bf16 %v10788_v20  ;;  %v14924_v11 = vld [vmem:[#allocation25_spill] sm:$0xff] }
 0x37e   : > { %14914 = vst [vmem:[#allocation71_spill] sm:$0xff] %v11386_v25  ;;  %7819 = vmatpush1.bf16.msra.mxu0 %v7818_v12  ;;  %3343 = vmatprep.mubr.f32.mxu0 %v11375_v26  ;;  %14918 = vst [vmem:[#allocation23_spill] sm:$0xff] %v11400_v23  ;;  %v11407_v13 = vpop.f32.mrb[56].mxu1  ;;  %v14919_v12 = vld [vmem:[#allocation73_spill] sm:$0xff]  ;;  %v11432_v20 = vmul.f32 %v1703_v22, %v14924_v11  ;;  %v1650_v22 = vld [vmem:[%s14285_s2 + $0x120] sm:$0xff] }
 0x37f   : > { %2929 = vmatmul.mubr.f32.gmra.mrb[120].mxu1 %v11386_v25  ;;  %7820 = vmatprep.subr.bf16.mxu0 %v14740_v59  ;;  %v11413_v44 = vmul.f32 %v1643_v31, %v14919_v12  ;;  %v14921_v26 = vld [vmem:[#allocation165_spill] sm:$0xff]  ;;  %v11419_v25 = vpop.f32.mrb[57].mxu1  ;;  %14923 = vst [vmem:[#allocation73_spill] sm:$0xff] %v11426_v3  ;;  %v14926_v12 = vld [vmem:[#allocation72_spill] sm:$0xff] }
 0x380   : > { %v7821_v38 = vpack.c.bf16 %v8481_v30, %v14921_v26  ;;  %2933 = vmatprep.mubr.f32.mxu1 %v11392_v51  ;;  %v11428_v31 = vpop.f32.mrb[58].mxu1  ;;  %14925 = vst [vmem:[#allocation165_spill] sm:$0xff] %v11432_v20  ;;  %v1702_v26 = vld [vmem:[%s14285_s2 + $0x2c0] sm:$0xff]  ;;  %v11440_v51 = vmul.f32 %v1642_v0, %v14926_v12  ;;  %v8496_v0 = vunpack.i.h.bf16 %v10815_v61 }
 0x381   : > { %14920 = vst [vmem:[#allocation70_spill] sm:$0xff] %v11413_v44  ;;  %3344 = vmatmul.mubr.f32.gmra.mrb[222].mxu0 %v11400_v23  ;;  %v11437_v30 = vpop.f32.mrb[59].mxu1  ;;  %v1659_v23 = vld [vmem:[%s14285_s2 + $0x168] sm:$0xff] }
 0x382   : > { %7822 = vmatpush1.bf16.msra.mxu0 %v7821_v38  ;;  %3348 = vmatprep.mubr.f32.mxu0 %v11413_v44  ;;  %14927 = vst [vmem:[#allocation22_spill] sm:$0xff] %v11440_v51  ;;  %v11447_v28 = vpop.f32.mrb[60].mxu1  ;;  %v14928_v38 = vld [vmem:[#allocation75_spill] sm:$0xff]  ;;  %v7824_v44 = vpack.c.bf16 %v8491_v1, %v8486_v4  ;;  %v1710_v4 = vld [vmem:[%s14285_s2 + $0x300] sm:$0xff] }
 0x383   : > { %2934 = vmatmul.mubr.f32.gmra.mrb[122].mxu1 %v11426_v3  ;;  %7823 = vmatprep.subr.bf16.mxu0 %v14740_v59  ;;  %v11453_v11 = vmul.f32 %v1651_v48, %v14928_v38  ;;  %v11457_v12 = vpop.f32.mrb[61].mxu1  ;;  %v14930_v3 = vld [vmem:[#allocation24_spill] sm:$0xff]  ;;  %v14932_v48 = vld [vmem:[#allocation27_spill] sm:$0xff]  ;;  %v14934_v38 = vld [vmem:[#allocation74_spill] sm:$0xff]  ;;  %v11503_v2 = vmul.f32 %v1710_v4, %v14939_v36 }
 0x384   : > { %2938 = vmatprep.mubr.f32.mxu1 %v11432_v20  ;;  %v11464_v49 = vmul.f32 %v1702_v26, %v14930_v3  ;;  %v11466_v50 = vpop.f32.mrb[62].mxu1  ;;  %v11470_v61 = vmul.f32 %v1711_v34, %v14932_v48  ;;  %v11478_v20 = vmul.f32 %v1650_v22, %v14934_v38  ;;  %v1719_v3 = vld [vmem:[%s14285_s2 + $0x348] sm:$0xff]  ;;  %v1658_v26 = vld [vmem:[%s14285_s2 + $0x160] sm:$0xff]  ;;  %v14936_v34 = vld [vmem:[#allocation77_spill] sm:$0xff]  ;;  %v8506_v38 = vunpack.i.h.bf16 %v10839_v8 }
 0x385   : > { %14929 = vst [vmem:[#allocation25_spill] sm:$0xff] %v11453_v11  ;;  %3349 = vmatmul.mubr.f32.gmra.mrb[224].mxu0 %v11440_v51  ;;  %v11475_v1 = vpop.f32.mrb[63].mxu1  ;;  %v11491_v48 = vmul.f32 %v1659_v23, %v14936_v34  ;;  %14940 = vst [vmem:[#allocation74_spill] sm:$0xff] %v11503_v2  ;;  %v8501_v23 = vunpack.i.h.bf16 %v10813_v41  ;;  %v14941_v8 = vld [vmem:[#allocation29_spill] sm:$0xff]  ;;  %v1727_v41 = vld [vmem:[%s14285_s2 + $0x388] sm:$0xff] }
 0x386   : > { %14931 = vst [vmem:[#allocation72_spill] sm:$0xff] %v11464_v49  ;;  %7825 = vmatpush1.bf16.msra.mxu0 %v7824_v44  ;;  %3353 = vmatprep.mubr.f32.mxu0 %v11453_v11  ;;  %14933 = vst [vmem:[#allocation75_spill] sm:$0xff] %v11470_v61  ;;  %v11485_v44 = vpop.f32.mrb[64].mxu1  ;;  %v14938_v11 = vld [vmem:[#allocation167_spill] sm:$0xff]  ;;  %v1666_v4 = vld [vmem:[%s14285_s2 + $0x1a0] sm:$0xff] }
 0x387   : > { %14935 = vst [vmem:[#allocation24_spill] sm:$0xff] %v11478_v20  ;;  %2939 = vmatmul.mubr.f32.gmra.mrb[124].mxu1 %v11464_v49  ;;  %7826 = vmatprep.subr.bf16.mxu0 %v14740_v59  ;;  %14937 = vst [vmem:[#allocation27_spill] sm:$0xff] %v11491_v48  ;;  %v7827_v22 = vpack.c.bf16 %v8496_v0, %v14938_v11  ;;  %v11496_v51 = vpop.f32.mrb[65].mxu1  ;;  %v1667_v49 = vld [vmem:[%s14285_s2 + $0x1a8] sm:$0xff]  ;;  %v11510_v11 = vmul.f32 %v1719_v3, %v14941_v8  ;;  %v1718_v0 = vld [vmem:[%s14285_s2 + $0x340] sm:$0xff] }
 0x388   : > { %2943 = vmatprep.mubr.f32.mxu1 %v11470_v61  ;;  %v11505_v60 = vpop.f32.mrb[66].mxu1  ;;  %v14945_v3 = vld [vmem:[#allocation79_spill] sm:$0xff] }
 0x389   : > { %3354 = vmatmul.mubr.f32.gmra.mrb[226].mxu0 %v11478_v20  ;;  %14942 = vst [vmem:[#allocation77_spill] sm:$0xff] %v11510_v11  ;;  %v11515_v34 = vpop.f32.mrb[67].mxu1  ;;  %v14943_v20 = vld [vmem:[#allocation76_spill] sm:$0xff] }
 0x38a   : > { %7828 = vmatpush1.bf16.msra.mxu0 %v7827_v22  ;;  %3358 = vmatprep.mubr.f32.mxu0 %v11491_v48  ;;  %v11518_v61 = vmul.f32 %v1658_v26, %v14943_v20  ;;  %v11525_v36 = vpop.f32.mrb[68].mxu1  ;;  %v11531_v22 = vmul.f32 %v1667_v49, %v14945_v3  ;;  %v8511_v20 = vunpack.i.h.bf16 %v10837_v62  ;;  %v7830_v26 = vpack.c.bf16 %v8506_v38, %v8501_v23  ;;  %v1675_v48 = vld [vmem:[%s14285_s2 + $0x1e8] sm:$0xff]  ;;  %v1726_v38 = vld [vmem:[%s14285_s2 + $0x380] sm:$0xff] }
 0x38b   : > { %2944 = vmatmul.mubr.f32.gmra.mrb[126].mxu1 %v11503_v2  ;;  %7829 = vmatprep.subr.bf16.mxu0 %v14740_v59  ;;  %v11535_v8 = vpop.f32.mrb[69].mxu1  ;;  %v14947_v2 = vld [vmem:[#allocation28_spill] sm:$0xff]  ;;  %v14950_v62 = vld [vmem:[#allocation31_spill] sm:$0xff]  ;;  %v14952_v3 = vld [vmem:[#allocation78_spill] sm:$0xff] }
 0x38c   : > { %14944 = vst [vmem:[#allocation167_spill] sm:$0xff] %v11518_v61  ;;  %14946 = vst [vmem:[#allocation26_spill] sm:$0xff] %v11531_v22  ;;  %2948 = vmatprep.mubr.f32.mxu1 %v11510_v11  ;;  %v11542_v42 = vmul.f32 %v1718_v0, %v14947_v2  ;;  %v11544_v45 = vpop.f32.mrb[70].mxu1  ;;  %v11548_v49 = vmul.f32 %v1727_v41, %v14950_v62  ;;  %v11556_v11 = vmul.f32 %v1666_v4, %v14952_v3  ;;  %v1735_v2 = vld [vmem:[%s14285_s2 + $0x3c8] sm:$0xff]  ;;  %v1674_v41 = vld [vmem:[%s14285_s2 + $0x1e0] sm:$0xff] }
 0x38d   : > { %3359 = vmatmul.mubr.f32.gmra.mrb[228].mxu0 %v11518_v61  ;;  %14949 = vst [vmem:[#allocation76_spill] sm:$0xff] %v11544_v45  ;;  %v11553_v23 = vpop.f32.mrb[71].mxu1  ;;  %v8521_v3 = vunpack.i.h.bf16 %v10873_v7  ;;  %v8516_v61 = vunpack.i.h.bf16 %v10863_v58  ;;  %v14961_v7 = vld [vmem:[#allocation33_spill] sm:$0xff] }
 0x38e   : > { %14948 = vst [vmem:[#allocation29_spill] sm:$0xff] %v11542_v42  ;;  %7831 = vmatpush1.bf16.msra.mxu0 %v7830_v26  ;;  %3363 = vmatprep.mubr.f32.mxu0 %v11531_v22  ;;  %14951 = vst [vmem:[#allocation79_spill] sm:$0xff] %v11548_v49  ;;  %v11563_v0 = vpop.f32.mrb[72].mxu1  ;;  %v14955_v26 = vld [vmem:[#allocation81_spill] sm:$0xff]  ;;  %v14957_v22 = vld [vmem:[#allocation170_spill] sm:$0xff]  ;;  %v11588_v58 = vmul.f32 %v1735_v2, %v14961_v7 }
 0x38f   : > { %14953 = vst [vmem:[#allocation28_spill] sm:$0xff] %v11556_v11  ;;  %2949 = vmatmul.mubr.f32.gmra.mrb[128].mxu1 %v11542_v42  ;;  %7832 = vmatprep.subr.bf16.mxu0 %v14740_v59  ;;  %14954 = vst [vmem:[#allocation31_spill] sm:$0xff] %v11563_v0  ;;  %v11569_v62 = vmul.f32 %v1675_v48, %v14955_v26  ;;  %v7833_v4 = vpack.c.bf16 %v8511_v20, %v14957_v22  ;;  %v11575_v42 = vpop.f32.mrb[73].mxu1  ;;  %v14958_v0 = vld [vmem:[#allocation30_spill] sm:$0xff]  ;;  %v14963_v26 = vld [vmem:[#allocation80_spill] sm:$0xff] }
 0x390   : > { %2953 = vmatprep.mubr.f32.mxu1 %v11548_v49  ;;  %v11582_v45 = vmul.f32 %v1726_v38, %v14958_v0  ;;  %v11584_v48 = vpop.f32.mrb[74].mxu1  ;;  %14962 = vst [vmem:[#allocation30_spill] sm:$0xff] %v11588_v58  ;;  %v1734_v22 = vld [vmem:[%s14285_s2 + $0x3c0] sm:$0xff]  ;;  %v11596_v49 = vmul.f32 %v1674_v41, %v14963_v26  ;;  %v1743_v38 = vld [vmem:[%s14285_s2 + $0x408] sm:$0xff]  ;;  %v8526_v41 = vunpack.i.h.bf16 %v10885_v43 }
 0x391   : > { %14956 = vst [vmem:[#allocation78_spill] sm:$0xff] %v11569_v62  ;;  %3364 = vmatmul.mubr.f32.gmra.mrb[230].mxu0 %v11556_v11  ;;  %14960 = vst [vmem:[#allocation170_spill] sm:$0xff] %v11584_v48  ;;  %v11593_v20 = vpop.f32.mrb[75].mxu1  ;;  %v1682_v2 = vld [vmem:[%s14285_s2 + $0x220] sm:$0xff]  ;;  %v1691_v11 = vld [vmem:[%s14285_s2 + $0x268] sm:$0xff] }
 0x392   : > { %14959 = vst [vmem:[#allocation81_spill] sm:$0xff] %v11582_v45  ;;  %7834 = vmatpush1.bf16.msra.mxu0 %v7833_v4  ;;  %3368 = vmatprep.mubr.f32.mxu0 %v11569_v62  ;;  %14964 = vst [vmem:[#allocation33_spill] sm:$0xff] %v11596_v49  ;;  %v11603_v0 = vpop.f32.mrb[76].mxu1  ;;  %v14966_v4 = vld [vmem:[#allocation83_spill] sm:$0xff]  ;;  %v7836_v62 = vpack.c.bf16 %v8521_v3, %v8516_v61  ;;  %v1742_v61 = vld [vmem:[%s14285_s2 + $0x400] sm:$0xff] }
 0x393   : > { %2954 = vmatmul.mubr.f32.gmra.mrb[130].mxu1 %v11582_v45  ;;  %7835 = vmatprep.subr.bf16.mxu0 %v14740_v59  ;;  %14965 = vst [vmem:[#allocation80_spill] sm:$0xff] %v11603_v0  ;;  %v11609_v7 = vmul.f32 %v1683_v33, %v14966_v4  ;;  %v11613_v26 = vpop.f32.mrb[77].mxu1  ;;  %v14968_v45 = vld [vmem:[#allocation32_spill] sm:$0xff]  ;;  %v14971_v33 = vld [vmem:[#allocation35_spill] sm:$0xff]  ;;  %v14974_v4 = vld [vmem:[#allocation82_spill] sm:$0xff] }
 0x394   : > { %2958 = vmatprep.mubr.f32.mxu1 %v11588_v58  ;;  %v11620_v0 = vmul.f32 %v1734_v22, %v14968_v45  ;;  %v11622_v48 = vpop.f32.mrb[78].mxu1  ;;  %v11626_v43 = vmul.f32 %v1743_v38, %v14971_v33  ;;  %v11634_v58 = vmul.f32 %v1682_v2, %v14974_v4  ;;  %v1751_v45 = vld [vmem:[%s14285_s2 + $0x448] sm:$0xff]  ;;  %v1690_v22 = vld [vmem:[%s14285_s2 + $0x260] sm:$0xff]  ;;  %v14977_v38 = vld [vmem:[#allocation85_spill] sm:$0xff]  ;;  %v8536_v4 = vunpack.i.h.bf16 %v10919_v5 }
 0x395   : > { %14967 = vst [vmem:[#allocation83_spill] sm:$0xff] %v11609_v7  ;;  %3369 = vmatmul.mubr.f32.gmra.mrb[232].mxu0 %v11596_v49  ;;  %14970 = vst [vmem:[#allocation235_spill] sm:$0xff] %v11622_v48  ;;  %v11631_v3 = vpop.f32.mrb[79].mxu1  ;;  %v11647_v33 = vmul.f32 %v1691_v11, %v14977_v38  ;;  %v8531_v11 = vunpack.i.h.bf16 %v10910_v54  ;;  %v14983_v5 = vld [vmem:[#allocation37_spill] sm:$0xff]  ;;  %v1759_v54 = vld [vmem:[%s14285_s2 + $0x488] sm:$0xff] }
 0x396   : > { %14969 = vst [vmem:[#allocation32_spill] sm:$0xff] %v11620_v0  ;;  %7837 = vmatpush1.bf16.msra.mxu0 %v7836_v62  ;;  %3373 = vmatprep.mubr.f32.mxu0 %v11609_v7  ;;  %14972 = vst [vmem:[#allocation35_spill] sm:$0xff] %v11626_v43  ;;  %v11641_v62 = vpop.f32.mrb[80].mxu1  ;;  %v14979_v7 = vld [vmem:[#allocation177_spill] sm:$0xff] }
 0x397   : > { %14973 = vst [vmem:[#allocation236_spill] sm:$0xff] %v11631_v3  ;;  %14975 = vst [vmem:[#allocation82_spill] sm:$0xff] %v11634_v58  ;;  %2959 = vmatmul.mubr.f32.gmra.mrb[132].mxu1 %v11620_v0  ;;  %7838 = vmatprep.subr.bf16.mxu0 %v14740_v59  ;;  %v7839_v2 = vpack.c.bf16 %v8526_v41, %v14979_v7  ;;  %v11652_v49 = vpop.f32.mrb[81].mxu1  ;;  %v1699_v0 = vld [vmem:[%s14285_s2 + $0x2a8] sm:$0xff]  ;;  %v11666_v7 = vmul.f32 %v1751_v45, %v14983_v5  ;;  %v1750_v41 = vld [vmem:[%s14285_s2 + $0x440] sm:$0xff] }
 0x398   : > { %14976 = vst [vmem:[#allocation237_spill] sm:$0xff] %v11641_v62  ;;  %14978 = vst [vmem:[#allocation85_spill] sm:$0xff] %v11647_v33  ;;  %2963 = vmatprep.mubr.f32.mxu1 %v11626_v43  ;;  %v14980_v62 = vld [vmem:[#allocation34_spill] sm:$0xff]  ;;  %v11661_v3 = vpop.f32.mrb[82].mxu1 }
 0x399   : > { %3374 = vmatmul.mubr.f32.gmra.mrb[234].mxu0 %v11634_v58  ;;  %v11659_v48 = vmul.f32 %v1742_v61, %v14980_v62  ;;  %14982 = vst [vmem:[#allocation34_spill] sm:$0xff] %v11661_v3  ;;  %14984 = vst [vmem:[#allocation37_spill] sm:$0xff] %v11666_v7  ;;  %v11671_v38 = vpop.f32.mrb[83].mxu1  ;;  %v14985_v58 = vld [vmem:[#allocation84_spill] sm:$0xff]  ;;  %v1698_v45 = vld [vmem:[%s14285_s2 + $0x2a0] sm:$0xff] }
 0x39a   : > { %7840 = vmatpush1.bf16.msra.mxu0 %v7839_v2  ;;  %3378 = vmatprep.mubr.f32.mxu0 %v11647_v33  ;;  %v11674_v43 = vmul.f32 %v1690_v22, %v14985_v58  ;;  %v11681_v61 = vpop.f32.mrb[84].mxu1  ;;  %v14988_v62 = vld [vmem:[#allocation88_spill] sm:$0xff]  ;;  %v8541_v58 = vunpack.i.h.bf16 %v10938_v56  ;;  %v7842_v22 = vpack.c.bf16 %v8536_v4, %v8531_v11  ;;  %v1707_v33 = vld [vmem:[%s14285_s2 + $0x2e8] sm:$0xff]  ;;  %v1758_v4 = vld [vmem:[%s14285_s2 + $0x480] sm:$0xff] }
 0x39b   : > { %14981 = vst [vmem:[#allocation177_spill] sm:$0xff] %v11659_v48  ;;  %2964 = vmatmul.mubr.f32.gmra.mrb[134].mxu1 %v11659_v48  ;;  %7841 = vmatprep.subr.bf16.mxu0 %v14740_v59  ;;  %14987 = vst [vmem:[#allocation238_spill] sm:$0xff] %v11681_v61  ;;  %v11687_v2 = vmul.f32 %v1699_v0, %v14988_v62  ;;  %v11691_v5 = vpop.f32.mrb[85].mxu1  ;;  %v14990_v48 = vld [vmem:[#allocation36_spill] sm:$0xff]  ;;  %v14993_v56 = vld [vmem:[#allocation39_spill] sm:$0xff] }
 0x39c   : > { %14986 = vst [vmem:[#allocation84_spill] sm:$0xff] %v11674_v43  ;;  %2968 = vmatprep.mubr.f32.mxu1 %v11666_v7  ;;  %v11698_v61 = vmul.f32 %v1750_v41, %v14990_v48  ;;  %v11700_v3 = vpop.f32.mrb[86].mxu1  ;;  %v11704_v0 = vmul.f32 %v1759_v54, %v14993_v56  ;;  %v14996_v62 = vld [vmem:[#allocation87_spill] sm:$0xff]  ;;  %v1706_v54 = vld [vmem:[%s14285_s2 + $0x2e0] sm:$0xff] }
 0x39d   : > { %14989 = vst [vmem:[#allocation88_spill] sm:$0xff] %v11687_v2  ;;  %3379 = vmatmul.mubr.f32.gmra.mrb[236].mxu0 %v11674_v43  ;;  %14992 = vst [vmem:[#allocation239_spill] sm:$0xff] %v11700_v3  ;;  %v11709_v11 = vpop.f32.mrb[87].mxu1  ;;  %v11712_v7 = vmul.f32 %v1698_v45, %v14996_v62  ;;  %v1767_v48 = vld [vmem:[%s14285_s2 + $0x4c8] sm:$0xff]  ;;  %v8551_v62 = vunpack.i.h.bf16 %v10967_v6  ;;  %v8546_v43 = vunpack.i.h.bf16 %v10951_v10  ;;  %v15002_v3 = vld [vmem:[#allocation38_spill] sm:$0xff] }
 0x39e   : > { %14991 = vst [vmem:[#allocation36_spill] sm:$0xff] %v11698_v61  ;;  %7843 = vmatpush1.bf16.msra.mxu0 %v7842_v22  ;;  %3383 = vmatprep.mubr.f32.mxu0 %v11687_v2  ;;  %14994 = vst [vmem:[#allocation39_spill] sm:$0xff] %v11704_v0  ;;  %v11719_v41 = vpop.f32.mrb[88].mxu1  ;;  %v14999_v22 = vld [vmem:[#allocation90_spill] sm:$0xff]  ;;  %v15001_v2 = vld [vmem:[#allocation179_spill] sm:$0xff] }
 0x39f   : > { %14995 = vst [vmem:[#allocation240_spill] sm:$0xff] %v11709_v11  ;;  %14997 = vst [vmem:[#allocation87_spill] sm:$0xff] %v11712_v7  ;;  %2969 = vmatmul.mubr.f32.gmra.mrb[136].mxu1 %v11698_v61  ;;  %7844 = vmatprep.subr.bf16.mxu0 %v14740_v59  ;;  %v11725_v56 = vmul.f32 %v1707_v33, %v14999_v22  ;;  %v7845_v45 = vpack.c.bf16 %v8541_v58, %v15001_v2  ;;  %v11731_v61 = vpop.f32.mrb[89].mxu1  ;;  %v15005_v6 = vld [vmem:[#allocation41_spill] sm:$0xff]  ;;  %v1766_v2 = vld [vmem:[%s14285_s2 + $0x4c0] sm:$0xff] }
 0x3a0   : > { %14998 = vst [vmem:[#allocation241_spill] sm:$0xff] %v11719_v41  ;;  %2973 = vmatprep.mubr.f32.mxu1 %v11704_v0  ;;  %v1715_v41 = vld [vmem:[%s14285_s2 + $0x328] sm:$0xff]  ;;  %v11738_v11 = vmul.f32 %v1758_v4, %v15002_v3  ;;  %v11740_v33 = vpop.f32.mrb[90].mxu1  ;;  %v11744_v10 = vmul.f32 %v1767_v48, %v15005_v6  ;;  %v15007_v22 = vld [vmem:[#allocation89_spill] sm:$0xff]  ;;  %v1714_v48 = vld [vmem:[%s14285_s2 + $0x320] sm:$0xff] }
 0x3a1   : > { %15000 = vst [vmem:[#allocation90_spill] sm:$0xff] %v11725_v56  ;;  %3384 = vmatmul.mubr.f32.gmra.mrb[238].mxu0 %v11712_v7  ;;  %15004 = vst [vmem:[#allocation38_spill] sm:$0xff] %v11740_v33  ;;  %v11749_v58 = vpop.f32.mrb[91].mxu1  ;;  %v11752_v0 = vmul.f32 %v1706_v54, %v15007_v22  ;;  %v1775_v3 = vld [vmem:[%s14285_s2 + $0x508] sm:$0xff]  ;;  %v8556_v54 = vunpack.i.h.bf16 %v10978_v47 }
 0x3a2   : > { %15003 = vst [vmem:[#allocation179_spill] sm:$0xff] %v11738_v11  ;;  %7846 = vmatpush1.bf16.msra.mxu0 %v7845_v45  ;;  %3388 = vmatprep.mubr.f32.mxu0 %v11725_v56  ;;  %15006 = vst [vmem:[#allocation41_spill] sm:$0xff] %v11744_v10  ;;  %v11759_v4 = vpop.f32.mrb[92].mxu1  ;;  %v15010_v45 = vld [vmem:[#allocation92_spill] sm:$0xff]  ;;  %v7848_v56 = vpack.c.bf16 %v8551_v62, %v8546_v43  ;;  %v1723_v7 = vld [vmem:[%s14285_s2 + $0x368] sm:$0xff] }
 0x3a3   : > { %15008 = vst [vmem:[#allocation89_spill] sm:$0xff] %v11752_v0  ;;  %2974 = vmatmul.mubr.f32.gmra.mrb[138].mxu1 %v11738_v11  ;;  %7847 = vmatprep.subr.bf16.mxu0 %v14740_v59  ;;  %15009 = vst [vmem:[#allocation242_spill] sm:$0xff] %v11759_v4  ;;  %v11765_v6 = vmul.f32 %v1715_v41, %v15010_v45  ;;  %v11769_v22 = vpop.f32.mrb[93].mxu1  ;;  %v15012_v11 = vld [vmem:[#allocation40_spill] sm:$0xff]  ;;  %v15015_v43 = vld [vmem:[#allocation43_spill] sm:$0xff] }
 0x3a4   : > { %2978 = vmatprep.mubr.f32.mxu1 %v11744_v10  ;;  %v11776_v4 = vmul.f32 %v1766_v2, %v15012_v11  ;;  %v11778_v33 = vpop.f32.mrb[94].mxu1  ;;  %v11782_v47 = vmul.f32 %v1775_v3, %v15015_v43  ;;  %v1774_v41 = vld [vmem:[%s14285_s2 + $0x500] sm:$0xff]  ;;  %v15018_v45 = vld [vmem:[#allocation91_spill] sm:$0xff] }
 0x3a5   : > { %15011 = vst [vmem:[#allocation92_spill] sm:$0xff] %v11765_v6  ;;  %3389 = vmatmul.mubr.f32.gmra.mrb[240].mxu0 %v11752_v0  ;;  %15014 = vst [vmem:[#allocation243_spill] sm:$0xff] %v11778_v33  ;;  %v11787_v62 = vpop.f32.mrb[95].mxu1  ;;  %v11790_v10 = vmul.f32 %v1714_v48, %v15018_v45  ;;  %v1783_v11 = vld [vmem:[%s14285_s2 + $0x548] sm:$0xff]  ;;  %v1722_v2 = vld [vmem:[%s14285_s2 + $0x360] sm:$0xff]  ;;  %v8566_v45 = vunpack.i.h.bf16 %v11007_v16 }
 0x3a6   : > { %15013 = vst [vmem:[#allocation40_spill] sm:$0xff] %v11776_v4  ;;  %7849 = vmatpush1.bf16.msra.mxu0 %v7848_v56  ;;  %3393 = vmatprep.mubr.f32.mxu0 %v11765_v6  ;;  %15016 = vst [vmem:[#allocation43_spill] sm:$0xff] %v11782_v47  ;;  %v11797_v56 = vpop.f32.mrb[96].mxu1  ;;  %v15021_v3 = vld [vmem:[#allocation94_spill] sm:$0xff]  ;;  %v15023_v6 = vld [vmem:[#allocation183_spill] sm:$0xff] }
 0x3a7   : > { %15017 = vst [vmem:[#allocation244_spill] sm:$0xff] %v11787_v62  ;;  %15019 = vst [vmem:[#allocation91_spill] sm:$0xff] %v11790_v10  ;;  %2979 = vmatmul.mubr.f32.gmra.mrb[140].mxu1 %v11776_v4  ;;  %7850 = vmatprep.subr.bf16.mxu0 %v14740_v59  ;;  %v11803_v43 = vmul.f32 %v1723_v7, %v15021_v3  ;;  %v7851_v48 = vpack.c.bf16 %v8556_v54, %v15023_v6  ;;  %v11808_v0 = vpop.f32.mrb[97].mxu1  ;;  %v1731_v4 = vld [vmem:[%s14285_s2 + $0x3a8] sm:$0xff]  ;;  %v8561_v7 = vunpack.i.h.bf16 %v10998_v46  ;;  %v15026_v16 = vld [vmem:[#allocation45_spill] sm:$0xff] }
 0x3a8   : > { %15020 = vst [vmem:[#allocation245_spill] sm:$0xff] %v11797_v56  ;;  %2983 = vmatprep.mubr.f32.mxu1 %v11782_v47  ;;  %v15024_v56 = vld [vmem:[#allocation42_spill] sm:$0xff]  ;;  %v11817_v62 = vpop.f32.mrb[98].mxu1  ;;  %v11822_v6 = vmul.f32 %v1783_v11, %v15026_v16  ;;  %v1791_v46 = vld [vmem:[%s14285_s2 + $0x588] sm:$0xff] }
 0x3a9   : > { %15022 = vst [vmem:[#allocation94_spill] sm:$0xff] %v11803_v43  ;;  %3394 = vmatmul.mubr.f32.gmra.mrb[242].mxu0 %v11790_v10  ;;  %v11815_v33 = vmul.f32 %v1774_v41, %v15024_v56  ;;  %v1782_v54 = vld [vmem:[%s14285_s2 + $0x540] sm:$0xff]  ;;  %v11827_v3 = vpop.f32.mrb[99].mxu1  ;;  %v15028_v10 = vld [vmem:[#allocation93_spill] sm:$0xff]  ;;  %v15031_v56 = vld [vmem:[#allocation96_spill] sm:$0xff] }
 0x3aa   : > { %7852 = vmatpush1.bf16.msra.mxu0 %v7851_v48  ;;  %3398 = vmatprep.mubr.f32.mxu0 %v11803_v43  ;;  %15027 = vst [vmem:[#allocation42_spill] sm:$0xff] %v11822_v6  ;;  %v11830_v47 = vmul.f32 %v1722_v2, %v15028_v10  ;;  %v11837_v41 = vpop.f32.mrb[100].mxu1  ;;  %v1730_v11 = vld [vmem:[%s14285_s2 + $0x3a0] sm:$0xff]  ;;  %v11843_v48 = vmul.f32 %v1731_v4, %v15031_v56  ;;  %v8571_v10 = vunpack.i.h.bf16 %v11026_v17  ;;  %v1739_v43 = vld [vmem:[%s14285_s2 + $0x3e8] sm:$0xff] }
 0x3ab   : > { %15025 = vst [vmem:[#allocation183_spill] sm:$0xff] %v11815_v33  ;;  %2984 = vmatmul.mubr.f32.gmra.mrb[142].mxu1 %v11815_v33  ;;  %7853 = vmatprep.subr.bf16.mxu0 %v14740_v59  ;;  %15030 = vst [vmem:[#allocation93_spill] sm:$0xff] %v11837_v41  ;;  %v7854_v2 = vpack.c.bf16 %v8566_v45, %v8561_v7  ;;  %v11847_v16 = vpop.f32.mrb[101].mxu1  ;;  %v15033_v33 = vld [vmem:[#allocation44_spill] sm:$0xff]  ;;  %v15035_v4 = vld [vmem:[#allocation47_spill] sm:$0xff] }
 0x3ac   : > { %15029 = vst [vmem:[#allocation45_spill] sm:$0xff] %v11830_v47  ;;  %15032 = vst [vmem:[#allocation96_spill] sm:$0xff] %v11843_v48  ;;  %2988 = vmatprep.mubr.f32.mxu1 %v11822_v6  ;;  %v11854_v41 = vmul.f32 %v1782_v54, %v15033_v33  ;;  %v11858_v56 = vmul.f32 %v1791_v46, %v15035_v4  ;;  %v1790_v17 = vld [vmem:[%s14285_s2 + $0x580] sm:$0xff]  ;;  %v15037_v45 = vld [vmem:[#allocation95_spill] sm:$0xff]  ;;  %v8576_v6 = vunpack.i.h.bf16 %v11045_v52 }
 0x3ad   : > { %3399 = vmatmul.mubr.f32.gmra.mrb[244].mxu0 %v11830_v47  ;;  %v11864_v7 = vmul.f32 %v1730_v11, %v15037_v45  ;;  %v1799_v33 = vld [vmem:[%s14285_s2 + $0x5c8] sm:$0xff]  ;;  %v1738_v54 = vld [vmem:[%s14285_s2 + $0x3e0] sm:$0xff]  ;;  %v2786_v45 = vpop.permute.xlu0 %2785 }
 0x3ae   : > { %15034 = vst [vmem:[#allocation44_spill] sm:$0xff] %v11854_v41  ;;  %7855 = vmatpush1.bf16.msra.mxu0 %v7854_v2  ;;  %3403 = vmatprep.mubr.f32.mxu0 %v11843_v48  ;;  %15036 = vst [vmem:[#allocation47_spill] sm:$0xff] %v11858_v56  ;;  %v15039_v46 = vld [vmem:[#allocation98_spill] sm:$0xff]  ;;  %v1747_v11 = vld [vmem:[%s14285_s2 + $0x428] sm:$0xff] }
 0x3af   : > { %15038 = vst [vmem:[#allocation95_spill] sm:$0xff] %v11864_v7  ;;  %2989 = vmatmul.mubr.f32.gmra.mrb[144].mxu1 %v11854_v41  ;;  %7856 = vmatprep.subr.bf16.mxu0 %v14740_v59  ;;  %v11875_v2 = vmul.f32 %v1739_v43, %v15039_v46  ;;  %v15041_v4 = vld [vmem:[#allocation186_spill] sm:$0xff]  ;;  %v15043_v43 = vld [vmem:[#allocation49_spill] sm:$0xff]  ;;  %v1807_v52 = vld [vmem:[%s14285_s2 + $0x608] sm:$0xff] }
 0x3b0   : > { %v7857_v48 = vpack.c.bf16 %v8571_v10, %v15041_v4  ;;  %2993 = vmatprep.mubr.f32.mxu1 %v11858_v56  ;;  %v15042_v47 = vld [vmem:[#allocation46_spill] sm:$0xff]  ;;  %v11889_v46 = vmul.f32 %v1799_v33, %v15043_v43  ;;  %v15044_v4 = vld [vmem:[#allocation97_spill] sm:$0xff]  ;;  %v7860_v33 = vpack.c.bf16 %v2786_v45, %v8576_v6  ;;  %v15048_v43 = vld [vmem:[#allocation48_spill] sm:$0xff] }
 0x3b1   : > { %15040 = vst [vmem:[#allocation98_spill] sm:$0xff] %v11875_v2  ;;  %3404 = vmatmul.mubr.f32.gmra.mrb[246].mxu0 %v11864_v7  ;;  %v11884_v41 = vmul.f32 %v1790_v17, %v15042_v47  ;;  %v1798_v10 = vld [vmem:[%s14285_s2 + $0x5c0] sm:$0xff]  ;;  %v11895_v56 = vmul.f32 %v1738_v54, %v15044_v4  ;;  %v1755_v54 = vld [vmem:[%s14285_s2 + $0x468] sm:$0xff] }
 0x3b2   : > { %7858 = vmatpush1.bf16.msra.mxu0 %v7857_v48  ;;  %3408 = vmatprep.mubr.f32.mxu0 %v11875_v2  ;;  %v1746_v47 = vld [vmem:[%s14285_s2 + $0x420] sm:$0xff]  ;;  %v15046_v48 = vld [vmem:[#allocation100_spill] sm:$0xff]  ;;  %v11914_v4 = vmul.f32 %v1798_v10, %v15048_v43  ;;  %v15050_v2 = vld [vmem:[#allocation51_spill] sm:$0xff] }
 0x3b3   : > { %15045 = vst [vmem:[#allocation186_spill] sm:$0xff] %v11895_v56  ;;  %2994 = vmatmul.mubr.f32.gmra.mrb[146].mxu1 %v11884_v41  ;;  %7859 = vmatprep.subr.bf16.mxu0 %v14740_v59  ;;  %v11906_v17 = vmul.f32 %v1747_v11, %v15046_v48  ;;  %v11918_v7 = vmul.f32 %v1807_v52, %v15050_v2  ;;  %v1806_v6 = vld [vmem:[%s14285_s2 + $0x600] sm:$0xff]  ;;  %v15052_v11 = vld [vmem:[#allocation99_spill] sm:$0xff] }
 0x3b4   : > { %2998 = vmatprep.mubr.f32.mxu1 %v11889_v46  ;;  %15049 = vst [vmem:[#allocation49_spill] sm:$0xff] %v11914_v4  ;;  %v11924_v45 = vmul.f32 %v1746_v47, %v15052_v11  ;;  %v1815_v10 = vld [vmem:[%s14285_s2 + $0x648] sm:$0xff]  ;;  %v1754_v48 = vld [vmem:[%s14285_s2 + $0x460] sm:$0xff]  ;;  %v15058_v11 = vld [vmem:[#allocation53_spill] sm:$0xff] }
 0x3b5   : > { %15047 = vst [vmem:[#allocation46_spill] sm:$0xff] %v11906_v17  ;;  %3409 = vmatmul.mubr.f32.gmra.mrb[248].mxu0 %v11895_v56  ;;  %15051 = vst [vmem:[#allocation97_spill] sm:$0xff] %v11918_v7  ;;  %v1763_v52 = vld [vmem:[%s14285_s2 + $0x4a8] sm:$0xff]  ;;  %v15056_v47 = vld [vmem:[#allocation50_spill] sm:$0xff] }
 0x3b6   : > { %7861 = vmatpush1.bf16.msra.mxu0 %v7860_v33  ;;  %3413 = vmatprep.mubr.f32.mxu0 %v11906_v17  ;;  %15053 = vst [vmem:[#allocation100_spill] sm:$0xff] %v11924_v45  ;;  %v15054_v33 = vld [vmem:[#allocation102_spill] sm:$0xff]  ;;  %v11942_v43 = vmul.f32 %v1806_v6, %v15056_v47  ;;  %v11946_v17 = vmul.f32 %v1815_v10, %v15058_v11  ;;  %v15062_v47 = vld [vmem:[#allocation104_spill] sm:$0xff] }
 0x3b7   : > { %2999 = vmatmul.mubr.f32.gmra.mrb[148].mxu1 %v11914_v4  ;;  %v11934_v2 = vmul.f32 %v1755_v54, %v15054_v33  ;;  %v1814_v54 = vld [vmem:[%s14285_s2 + $0x640] sm:$0xff]  ;;  %v15060_v33 = vld [vmem:[#allocation101_spill] sm:$0xff]  ;;  %v11962_v10 = vmul.f32 %v1763_v52, %v15062_v47  ;;  %v15064_v11 = vld [vmem:[#allocation52_spill] sm:$0xff] }
 0x3b8   : > { %3003 = vmatprep.mubr.f32.mxu1 %v11918_v7  ;;  %15057 = vst [vmem:[#allocation51_spill] sm:$0xff] %v11942_v43  ;;  %15059 = vst [vmem:[#allocation99_spill] sm:$0xff] %v11946_v17  ;;  %v11952_v56 = vmul.f32 %v1754_v48, %v15060_v33  ;;  %v1762_v6 = vld [vmem:[%s14285_s2 + $0x4a0] sm:$0xff]  ;;  %v1771_v48 = vld [vmem:[%s14285_s2 + $0x4e8] sm:$0xff]  ;;  %v11970_v33 = vmul.f32 %v1814_v54, %v15064_v11 }
 0x3b9   : > { %15055 = vst [vmem:[#allocation48_spill] sm:$0xff] %v11934_v2  ;;  %3414 = vmatmul.mubr.f32.gmra.mrb[250].mxu0 %v11924_v45  ;;  %v1823_v45 = vld [vmem:[%s14285_s2 + $0x688] sm:$0xff]  ;;  %15063 = vst [vmem:[#allocation50_spill] sm:$0xff] %v11962_v10  ;;  %v1822_v52 = vld [vmem:[%s14285_s2 + $0x680] sm:$0xff] }
 0x3ba   : > { %3418 = vmatprep.mubr.f32.mxu0 %v11934_v2  ;;  %15061 = vst [vmem:[#allocation102_spill] sm:$0xff] %v11952_v56  ;;  %15065 = vst [vmem:[#allocation53_spill] sm:$0xff] %v11970_v33  ;;  %v15066_v2 = vld [vmem:[#allocation55_spill] sm:$0xff]  ;;  %v1770_v54 = vld [vmem:[%s14285_s2 + $0x4e0] sm:$0xff] }
 0x3bb   : > { %3004 = vmatmul.mubr.f32.gmra.mrb[150].mxu1 %v11942_v43  ;;  %v11974_v43 = vmul.f32 %v1823_v45, %v15066_v2  ;;  %v15068_v47 = vld [vmem:[#allocation103_spill] sm:$0xff]  ;;  %v15070_v11 = vld [vmem:[#allocation106_spill] sm:$0xff] }
 0x3bc   : > { %3008 = vmatprep.mubr.f32.mxu1 %v11946_v17  ;;  %v11980_v17 = vmul.f32 %v1762_v6, %v15068_v47  ;;  %v11990_v45 = vmul.f32 %v1771_v48, %v15070_v11  ;;  %v1779_v2 = vld [vmem:[%s14285_s2 + $0x528] sm:$0xff]  ;;  %v15072_v6 = vld [vmem:[#allocation54_spill] sm:$0xff]  ;;  %v15076_v11 = vld [vmem:[#allocation105_spill] sm:$0xff] }
 0x3bd   : > { %3419 = vmatmul.mubr.f32.gmra.mrb[252].mxu0 %v11952_v56  ;;  %15067 = vst [vmem:[#allocation101_spill] sm:$0xff] %v11974_v43  ;;  %v1831_v56 = vld [vmem:[%s14285_s2 + $0x6c8] sm:$0xff]  ;;  %v11998_v47 = vmul.f32 %v1822_v52, %v15072_v6  ;;  %v1830_v48 = vld [vmem:[%s14285_s2 + $0x6c0] sm:$0xff]  ;;  %v15078_v6 = vld [vmem:[#allocation108_spill] sm:$0xff] }
 0x3be   : > { %3423 = vmatprep.mubr.f32.mxu0 %v11962_v10  ;;  %15069 = vst [vmem:[#allocation104_spill] sm:$0xff] %v11980_v17  ;;  %15071 = vst [vmem:[#allocation52_spill] sm:$0xff] %v11990_v45  ;;  %v15074_v10 = vld [vmem:[#allocation57_spill] sm:$0xff]  ;;  %v1778_v52 = vld [vmem:[%s14285_s2 + $0x520] sm:$0xff] }
 0x3bf   : > { %3009 = vmatmul.mubr.f32.gmra.mrb[152].mxu1 %v11970_v33  ;;  %15073 = vst [vmem:[#allocation55_spill] sm:$0xff] %v11998_v47  ;;  %v12002_v33 = vmul.f32 %v1831_v56, %v15074_v10  ;;  %v12018_v56 = vmul.f32 %v1779_v2, %v15078_v6  ;;  %v1787_v10 = vld [vmem:[%s14285_s2 + $0x568] sm:$0xff]  ;;  %v1838_v2 = vld [vmem:[%s14285_s2 + $0x700] sm:$0xff] }
 0x3c0   : > { %3013 = vmatprep.mubr.f32.mxu1 %v11974_v43  ;;  %v12008_v43 = vmul.f32 %v1770_v54, %v15076_v11  ;;  %v15080_v54 = vld [vmem:[#allocation56_spill] sm:$0xff]  ;;  %v1847_v6 = vld [vmem:[%s14285_s2 + $0x748] sm:$0xff] }
 0x3c1   : > { %3424 = vmatmul.mubr.f32.gmra.mrb[254].mxu0 %v11980_v17  ;;  %15075 = vst [vmem:[#allocation103_spill] sm:$0xff] %v12002_v33  ;;  %v1839_v17 = vld [vmem:[%s14285_s2 + $0x708] sm:$0xff]  ;;  %15079 = vst [vmem:[#allocation54_spill] sm:$0xff] %v12018_v56  ;;  %v12026_v11 = vmul.f32 %v1830_v48, %v15080_v54  ;;  %v1786_v48 = vld [vmem:[%s14285_s2 + $0x560] sm:$0xff] }
 0x3c2   : > { %3428 = vmatprep.mubr.f32.mxu0 %v11990_v45  ;;  %15077 = vst [vmem:[#allocation106_spill] sm:$0xff] %v12008_v43  ;;  %v15082_v45 = vld [vmem:[#allocation59_spill] sm:$0xff]  ;;  %v15086_v54 = vld [vmem:[#allocation110_spill] sm:$0xff] }
 0x3c3   : > { %3014 = vmatmul.mubr.f32.gmra.mrb[154].mxu1 %v11998_v47  ;;  %15081 = vst [vmem:[#allocation57_spill] sm:$0xff] %v12026_v11  ;;  %v12030_v47 = vmul.f32 %v1839_v17, %v15082_v45  ;;  %v12046_v17 = vmul.f32 %v1787_v10, %v15086_v54  ;;  %v1795_v45 = vld [vmem:[%s14285_s2 + $0x5a8] sm:$0xff]  ;;  %v15092_v54 = vld [vmem:[#allocation109_spill] sm:$0xff] }
 0x3c4   : > { %3018 = vmatprep.mubr.f32.mxu1 %v12002_v33  ;;  %v15084_v33 = vld [vmem:[#allocation107_spill] sm:$0xff] }
 0x3c5   : > { %3429 = vmatmul.mubr.f32.gmra.mrb[0].mxu0 %v12008_v43  ;;  %15083 = vst [vmem:[#allocation105_spill] sm:$0xff] %v12030_v47  ;;  %v12039_v7 = vmul.f32 %v1778_v52, %v15084_v33  ;;  %15087 = vst [vmem:[#allocation56_spill] sm:$0xff] %v12046_v17  ;;  %v1846_v52 = vld [vmem:[%s14285_s2 + $0x740] sm:$0xff]  ;;  %v15090_v43 = vld [vmem:[#allocation61_spill] sm:$0xff] }
 0x3c6   : > { %3433 = vmatprep.mubr.f32.mxu0 %v12018_v56  ;;  %v15088_v56 = vld [vmem:[#allocation58_spill] sm:$0xff]  ;;  %v1855_v10 = vld [vmem:[%s14285_s2 + $0x788] sm:$0xff] }
 0x3c7   : > { %15085 = vst [vmem:[#allocation108_spill] sm:$0xff] %v12039_v7  ;;  %3019 = vmatmul.mubr.f32.gmra.mrb[156].mxu1 %v12026_v11  ;;  %v12054_v33 = vmul.f32 %v1838_v2, %v15088_v56  ;;  %v12060_v11 = vmul.f32 %v1847_v6, %v15090_v43  ;;  %v1794_v56 = vld [vmem:[%s14285_s2 + $0x5a0] sm:$0xff]  ;;  %v15094_v2 = vld [vmem:[#allocation112_spill] sm:$0xff] }
 0x3c8   : > { %3023 = vmatprep.mubr.f32.mxu1 %v12030_v47  ;;  %v12067_v47 = vmul.f32 %v1786_v48, %v15092_v54  ;;  %v15096_v43 = vld [vmem:[#allocation60_spill] sm:$0xff]  ;;  %v1854_v48 = vld [vmem:[%s14285_s2 + $0x780] sm:$0xff]  ;;  %v15098_v54 = vld [vmem:[#allocation63_spill] sm:$0xff] }
 0x3c9   : > { %3434 = vmatmul.mubr.f32.gmra.mrb[2].mxu0 %v12039_v7  ;;  %15089 = vst [vmem:[#allocation59_spill] sm:$0xff] %v12054_v33  ;;  %15091 = vst [vmem:[#allocation107_spill] sm:$0xff] %v12060_v11  ;;  %v12074_v7 = vmul.f32 %v1795_v45, %v15094_v2  ;;  %v12078_v6 = vmul.f32 %v1846_v52, %v15096_v43  ;;  %v1863_v45 = vld [vmem:[%s14285_s2 + $0x7c8] sm:$0xff]  ;;  %v1802_v43 = vld [vmem:[%s14285_s2 + $0x5e0] sm:$0xff] }
 0x3ca   : > { %3438 = vmatprep.mubr.f32.mxu0 %v12046_v17  ;;  %15093 = vst [vmem:[#allocation110_spill] sm:$0xff] %v12067_v47  ;;  %v1803_v17 = vld [vmem:[%s14285_s2 + $0x5e8] sm:$0xff] }
 0x3cb   : > { %3024 = vmatmul.mubr.f32.gmra.mrb[158].mxu1 %v12054_v33  ;;  %15095 = vst [vmem:[#allocation58_spill] sm:$0xff] %v12074_v7  ;;  %15097 = vst [vmem:[#allocation61_spill] sm:$0xff] %v12078_v6  ;;  %v12088_v33 = vmul.f32 %v1855_v10, %v15098_v54  ;;  %v15100_v52 = vld [vmem:[#allocation111_spill] sm:$0xff]  ;;  %v15104_v10 = vld [vmem:[#allocation62_spill] sm:$0xff] }
 0x3cc   : > { %3028 = vmatprep.mubr.f32.mxu1 %v12060_v11  ;;  %v12095_v2 = vmul.f32 %v1794_v56, %v15100_v52  ;;  %v12106_v54 = vmul.f32 %v1854_v48, %v15104_v10  ;;  %v1862_v56 = vld [vmem:[%s14285_s2 + $0x7c0] sm:$0xff]  ;;  %v15105_v52 = vld [vmem:[#allocation65_spill] sm:$0xff]  ;;  %v15108_v10 = vld [vmem:[#allocation116_spill] sm:$0xff] }
 0x3cd   : > { %3439 = vmatmul.mubr.f32.gmra.mrb[4].mxu0 %v12067_v47  ;;  %15099 = vst [vmem:[#allocation109_spill] sm:$0xff] %v12088_v33  ;;  %v15102_v47 = vld [vmem:[#allocation114_spill] sm:$0xff] }
 0x3ce   : > { %3443 = vmatprep.mubr.f32.mxu0 %v12074_v7  ;;  %15101 = vst [vmem:[#allocation112_spill] sm:$0xff] %v12095_v2  ;;  %v12102_v11 = vmul.f32 %v1803_v17, %v15102_v47  ;;  %v1811_v7 = vld [vmem:[%s14285_s2 + $0x628] sm:$0xff]  ;;  %v15106_v47 = vld [vmem:[#allocation113_spill] sm:$0xff]  ;;  %v1810_v48 = vld [vmem:[%s14285_s2 + $0x620] sm:$0xff] }
 0x3cf   : > { %3029 = vmatmul.mubr.f32.gmra.mrb[160].mxu1 %v12078_v6  ;;  %v12116_v6 = vmul.f32 %v1863_v45, %v15105_v52  ;;  %v12120_v17 = vmul.f32 %v1802_v43, %v15106_v47  ;;  %v1819_v45 = vld [vmem:[%s14285_s2 + $0x668] sm:$0xff]  ;;  %v15113_v47 = vld [vmem:[#allocation118_spill] sm:$0xff] }
 0x3d0   : > { %15103 = vst [vmem:[#allocation60_spill] sm:$0xff] %v12102_v11  ;;  %3033 = vmatprep.mubr.f32.mxu1 %v12088_v33  ;;  %v15110_v33 = vld [vmem:[#allocation64_spill] sm:$0xff]  ;;  %v15111_v43 = vld [vmem:[#allocation115_spill] sm:$0xff] }
 0x3d1   : > { %3444 = vmatmul.mubr.f32.gmra.mrb[6].mxu0 %v12095_v2  ;;  %15107 = vst [vmem:[#allocation63_spill] sm:$0xff] %v12120_v17  ;;  %v12127_v2 = vmul.f32 %v1811_v7, %v15108_v10  ;;  %v12131_v4 = vmul.f32 %v1862_v56, %v15110_v33  ;;  %v12139_v52 = vmul.f32 %v1810_v48, %v15111_v43  ;;  %v1818_v7 = vld [vmem:[%s14285_s2 + $0x660] sm:$0xff]  ;;  %v15115_v56 = vmov 0.0   ;;  %v1827_v10 = vld [vmem:[%s14285_s2 + $0x6a8] sm:$0xff]  ;;  %v15116_v48 = vld [vmem:[#allocation117_spill] sm:$0xff] }
 0x3d2   : > { %3448 = vmatprep.mubr.f32.mxu0 %v12102_v11  ;;  %v12146_v33 = vmul.f32 %v1819_v45, %v15113_v47  ;;  %v12155_v43 = vmul.f32 %v1818_v7, %v15116_v48  ;;  %v1835_v47 = vld [vmem:[%s14285_s2 + $0x6e8] sm:$0xff]  ;;  %v1834_v7 = vld [vmem:[%s14285_s2 + $0x6e0] sm:$0xff] }
 0x3d3   : > { %3034 = vmatmul.mubr.f32.gmra.mrb[162].mxu1 %v12106_v54  ;;  %15109 = vst [vmem:[#allocation111_spill] sm:$0xff] %v12127_v2  ;;  %15112 = vst [vmem:[#allocation114_spill] sm:$0xff] %v12139_v52  ;;  %v15122_v48 = vld [vmem:[#allocation122_spill] sm:$0xff] }
 0x3d4   : > { %3038 = vmatprep.mubr.f32.mxu1 %v12116_v6  ;;  %15114 = vst [vmem:[#allocation62_spill] sm:$0xff] %v12146_v33  ;;  %15117 = vst [vmem:[#allocation65_spill] sm:$0xff] %v12155_v43  ;;  %v12175_v11 = vmul.f32 %v1835_v47, %v15122_v48  ;;  %v1851_v47 = vld [vmem:[%s14285_s2 + $0x768] sm:$0xff] }
 0x3d5   : > { %3449 = vmatmul.mubr.f32.gmra.mrb[8].mxu0 %v12120_v17  ;;  %v15118_v17 = vld [vmem:[#allocation120_spill] sm:$0xff]  ;;  %v15128_v48 = vld [vmem:[#allocation123_spill] sm:$0xff] }
 0x3d6   : > { %3453 = vmatprep.mubr.f32.mxu0 %v12127_v2  ;;  %v1826_v2 = vld [vmem:[%s14285_s2 + $0x6a0] sm:$0xff]  ;;  %v12161_v45 = vmul.f32 %v1827_v10, %v15118_v17  ;;  %15123 = vst [vmem:[#allocation64_spill] sm:$0xff] %v12175_v11  ;;  %v1843_v17 = vld [vmem:[%s14285_s2 + $0x728] sm:$0xff]  ;;  %v15124_v10 = vld [vmem:[#allocation121_spill] sm:$0xff] }
 0x3d7   : > { %3039 = vmatmul.mubr.f32.gmra.mrb[164].mxu1 %v12131_v4 }
 0x3d8   : > { %3930 = vmatprep.mubr.f32.mxu1 %v15115_v56  ;;  %15119 = vst [vmem:[#allocation113_spill] sm:$0xff] %v12161_v45 }
 0x3d9   : > { %3454 = vmatmul.mubr.f32.gmra.mrb[10].mxu0 %v12139_v52  ;;  %v15120_v52 = vld [vmem:[#allocation119_spill] sm:$0xff] }
 0x3da   : > { %3458 = vmatprep.mubr.f32.mxu0 %v12146_v33  ;;  %v12169_v33 = vmul.f32 %v1826_v2, %v15120_v52  ;;  %v1842_v2 = vld [vmem:[%s14285_s2 + $0x720] sm:$0xff]  ;;  %v15126_v52 = vld [vmem:[#allocation124_spill] sm:$0xff] }
 0x3dc   : > { %15121 = vst [vmem:[#allocation116_spill] sm:$0xff] %v12169_v33 }
 0x3dd   : > { %3459 = vmatmul.mubr.f32.gmra.mrb[12].mxu0 %v12155_v43  ;;  %v12189_v43 = vmul.f32 %v1843_v17, %v15126_v52  ;;  %v1859_v17 = vld [vmem:[%s14285_s2 + $0x7a8] sm:$0xff]  ;;  %v15132_v52 = vld [vmem:[#allocation125_spill] sm:$0xff] }
 0x3de   : > { %3463 = vmatprep.mubr.f32.mxu0 %v12161_v45  ;;  %v12183_v45 = vmul.f32 %v1834_v7, %v15124_v10  ;;  %v1850_v7 = vld [vmem:[%s14285_s2 + $0x760] sm:$0xff] }
 0x3df   : > { %15127 = vst [vmem:[#allocation118_spill] sm:$0xff] %v12189_v43  ;;  %v15130_v10 = vld [vmem:[#allocation126_spill] sm:$0xff] }
 0x3e0   : > { %15125 = vst [vmem:[#allocation115_spill] sm:$0xff] %v12183_v45 }
 0x3e1   : > { %3464 = vmatmul.mubr.f32.gmra.mrb[14].mxu0 %v12169_v33  ;;  %v12203_v33 = vmul.f32 %v1851_v47, %v15130_v10  ;;  %v1867_v47 = vld [vmem:[%s14285_s2 + $0x7e8] sm:$0xff] }
 0x3e2   : > { %3468 = vmatprep.mubr.f32.mxu0 %v12175_v11  ;;  %v12197_v11 = vmul.f32 %v1842_v2, %v15128_v48  ;;  %v1858_v2 = vld [vmem:[%s14285_s2 + $0x7a0] sm:$0xff]  ;;  %v15134_v48 = vld [vmem:[#allocation128_spill] sm:$0xff]  ;;  %v15136_v10 = vld [vmem:[#allocation127_spill] sm:$0xff] }
 0x3e3   : > { %15131 = vst [vmem:[#allocation120_spill] sm:$0xff] %v12203_v33 }
 0x3e4   : > { %15129 = vst [vmem:[#allocation117_spill] sm:$0xff] %v12197_v11 }
 0x3e5   : > { %3469 = vmatmul.mubr.f32.gmra.mrb[16].mxu0 %v12183_v45  ;;  %v12217_v45 = vmul.f32 %v1859_v17, %v15134_v48  ;;  %v1866_v17 = vld [vmem:[%s14285_s2 + $0x7e0] sm:$0xff] }
 0x3e6   : > { %3473 = vmatprep.mubr.f32.mxu0 %v12189_v43  ;;  %v12211_v43 = vmul.f32 %v1850_v7, %v15132_v52  ;;  %v1621_v7 = vld [vmem:[%s14285_s2 + $0x38] sm:$0xff]  ;;  %v15138_v52 = vld [vmem:[#allocation130_spill] sm:$0xff] }
 0x3e7   : > { %15135 = vst [vmem:[#allocation122_spill] sm:$0xff] %v12217_v45  ;;  %v12234_v48 = vmul.f32 %v1867_v47, %v15138_v52 }
 0x3e8   : > { %15133 = vst [vmem:[#allocation119_spill] sm:$0xff] %v12211_v43 }
 0x3e9   : > { %3474 = vmatmul.mubr.f32.gmra.mrb[18].mxu0 %v12197_v11  ;;  %15139 = vst [vmem:[#allocation124_spill] sm:$0xff] %v12234_v48  ;;  %v1620_v11 = vld [vmem:[%s14285_s2 + $0x30] sm:$0xff] }
 0x3ea   : > { %3478 = vmatprep.mubr.f32.mxu0 %v12203_v33  ;;  %v12225_v33 = vmul.f32 %v1858_v2, %v15136_v10  ;;  %v15141_v2 = vld [vmem:[#allocation129_spill] sm:$0xff] }
 0x3eb   : > { %v12242_v10 = vmul.f32 %v1866_v17, %v15141_v2  ;;  %v1637_v17 = vld [vmem:[%s14285_s2 + $0xb8] sm:$0xff] }
 0x3ec   : > { %15137 = vst [vmem:[#allocation121_spill] sm:$0xff] %v12225_v33  ;;  %v1653_v2 = vld [vmem:[%s14285_s2 + $0x138] sm:$0xff] }
 0x3ed   : > { %3479 = vmatmul.mubr.f32.gmra.mrb[20].mxu0 %v12211_v43  ;;  %15142 = vst [vmem:[#allocation126_spill] sm:$0xff] %v12242_v10  ;;  %v1629_v43 = vld [vmem:[%s14285_s2 + $0x78] sm:$0xff] }
 0x3ee   : > { %3483 = vmatprep.mubr.f32.mxu0 %v12217_v45  ;;  %v12239_v45 = vmul.f32 %v1621_v7, %v11250_v53  ;;  %v12253_v47 = vmul.f32 %v1629_v43, %v11265_v9  ;;  %v1628_v53 = vld [vmem:[%s14285_s2 + $0x70] sm:$0xff]  ;;  %v12259_v7 = vmul.f32 %v1620_v11, %v11238_v15  ;;  %v12270_v9 = vmul.f32 %v1637_v17, %v11283_v63  ;;  %v1645_v15 = vld [vmem:[%s14285_s2 + $0xf8] sm:$0xff] }
 0x3ef   : > { %v12266_v52 = vmul.f32 %v1628_v53, %v11259_v35  ;;  %v1636_v43 = vld [vmem:[%s14285_s2 + $0xb0] sm:$0xff]  ;;  %v12284_v35 = vmul.f32 %v1645_v15, %v11302_v19  ;;  %v1661_v17 = vld [vmem:[%s14285_s2 + $0x178] sm:$0xff] }
 0x3f0   : > { %15140 = vst [vmem:[#allocation123_spill] sm:$0xff] %v12239_v45  ;;  %15143 = vst [vmem:[#allocation125_spill] sm:$0xff] %v12253_v47  ;;  %v12280_v11 = vmul.f32 %v1636_v43, %v11274_v27  ;;  %v1644_v63 = vld [vmem:[%s14285_s2 + $0xf0] sm:$0xff]  ;;  %v12298_v27 = vmul.f32 %v1653_v2, %v11320_v40  ;;  %v1669_v15 = vld [vmem:[%s14285_s2 + $0x1b8] sm:$0xff] }
 0x3f1   : > { %3484 = vmatmul.mubr.f32.gmra.mrb[22].mxu0 %v12225_v33  ;;  %15144 = vst [vmem:[#allocation128_spill] sm:$0xff] %v12259_v7  ;;  %15145 = vst [vmem:[#allocation127_spill] sm:$0xff] %v12266_v52  ;;  %v12294_v53 = vmul.f32 %v1644_v63, %v11292_v24  ;;  %v1652_v19 = vld [vmem:[%s14285_s2 + $0x130] sm:$0xff]  ;;  %v12312_v24 = vmul.f32 %v1661_v17, %v11340_v18  ;;  %v1677_v2 = vld [vmem:[%s14285_s2 + $0x1f8] sm:$0xff] }
 0x3f2   : > { %3488 = vmatprep.mubr.f32.mxu0 %v12234_v48  ;;  %15146 = vst [vmem:[#allocation130_spill] sm:$0xff] %v12270_v9  ;;  %15147 = vst [vmem:[#allocation129_spill] sm:$0xff] %v12280_v11  ;;  %v12308_v43 = vmul.f32 %v1652_v19, %v11311_v14  ;;  %v1660_v40 = vld [vmem:[%s14285_s2 + $0x170] sm:$0xff]  ;;  %v12326_v14 = vmul.f32 %v1669_v15, %v11359_v55  ;;  %v1685_v17 = vld [vmem:[%s14285_s2 + $0x238] sm:$0xff] }
 0x3f3   : > { %15148 = vst [vmem:[#allocation246_spill] sm:$0xff] %v12284_v35  ;;  %15149 = vst [vmem:[#allocation247_spill] sm:$0xff] %v12294_v53  ;;  %v12322_v63 = vmul.f32 %v1660_v40, %v11329_v21  ;;  %v1668_v18 = vld [vmem:[%s14285_s2 + $0x1b0] sm:$0xff]  ;;  %v12340_v21 = vmul.f32 %v1677_v2, %v11379_v32  ;;  %v1693_v15 = vld [vmem:[%s14285_s2 + $0x278] sm:$0xff] }
 0x3f4   : > { %15150 = vst [vmem:[#allocation248_spill] sm:$0xff] %v12298_v27  ;;  %15151 = vst [vmem:[#allocation249_spill] sm:$0xff] %v12308_v43  ;;  %v12336_v19 = vmul.f32 %v1668_v18, %v11349_v57  ;;  %v1676_v55 = vld [vmem:[%s14285_s2 + $0x1f0] sm:$0xff]  ;;  %v12354_v57 = vmul.f32 %v1685_v17, %v11397_v29  ;;  %v1701_v2 = vld [vmem:[%s14285_s2 + $0x2b8] sm:$0xff] }
 0x3f5   : > { %3489 = vmatmul.mubr.f32.gmra.mrb[24].mxu0 %v12242_v10  ;;  %15152 = vst [vmem:[#allocation250_spill] sm:$0xff] %v12312_v24  ;;  %15153 = vst [vmem:[#allocation251_spill] sm:$0xff] %v12322_v63  ;;  %v12350_v40 = vmul.f32 %v1676_v55, %v11369_v39  ;;  %v1684_v32 = vld [vmem:[%s14285_s2 + $0x230] sm:$0xff]  ;;  %v12368_v39 = vmul.f32 %v1693_v15, %v11419_v25  ;;  %v1709_v17 = vld [vmem:[%s14285_s2 + $0x2f8] sm:$0xff] }
 0x3f6   : > { %3558 = vmatprep.mubr.f32.mxu0 %v12239_v45  ;;  %15154 = vst [vmem:[#allocation252_spill] sm:$0xff] %v12326_v14  ;;  %15155 = vst [vmem:[#allocation253_spill] sm:$0xff] %v12336_v19  ;;  %v12364_v18 = vmul.f32 %v1684_v32, %v11388_v37  ;;  %v1692_v29 = vld [vmem:[%s14285_s2 + $0x270] sm:$0xff]  ;;  %v12382_v37 = vmul.f32 %v1701_v2, %v11437_v30  ;;  %v3754_v32 = vld [vmem:[%s14288_s5 + $0x18] sm:$0xff] }
 0x3f7   : > { %15156 = vst [vmem:[#allocation254_spill] sm:$0xff] %v12340_v21  ;;  %15157 = vst [vmem:[#allocation255_spill] sm:$0xff] %v12350_v40  ;;  %v12378_v55 = vmul.f32 %v1692_v29, %v11407_v13  ;;  %v1700_v25 = vld [vmem:[%s14285_s2 + $0x2b0] sm:$0xff]  ;;  %v3756_v13 = vld [vmem:[%s14288_s5 + $0x28] sm:$0xff] }
 0x3f8   : > { %15158 = vst [vmem:[#allocation256_spill] sm:$0xff] %v12354_v57  ;;  %15159 = vst [vmem:[#allocation257_spill] sm:$0xff] %v12364_v18  ;;  %v3753_v30 = vld [vmem:[%s14288_s5 + $0x10] sm:$0xff]  ;;  %v7862_v15 = vpack.c.bf16 %v3756_v13, %v3754_v32  ;;  %v3755_v29 = vld [vmem:[%s14288_s5 + $0x20] sm:$0xff]  ;;  %v12404_v2 = vmul.f32 %v1700_v25, %v11428_v31 }
 0x3f9   : > { %3559 = vmatmul.mubr.f32.vlgmr.msra.gmra.mrb[218].mxu0 %v12259_v7  ;;  %15160 = vst [vmem:[#allocation258_spill] sm:$0xff] %v12368_v39  ;;  %15161 = vst [vmem:[#allocation259_spill] sm:$0xff] %v12378_v55  ;;  %v1717_v32 = vld [vmem:[%s14285_s2 + $0x338] sm:$0xff]  ;;  %v1716_v25 = vld [vmem:[%s14285_s2 + $0x330] sm:$0xff] }
 0x3fa   : > { %3563 = vmatprep.mubr.f32.mxu0 %v12253_v47  ;;  %15162 = vst [vmem:[#allocation260_spill] sm:$0xff] %v12382_v37  ;;  %15163 = vst [vmem:[#allocation261_spill] sm:$0xff] %v12404_v2  ;;  %7863 = vmatprep.subr.bf16.mxu1 %v7862_v15  ;;  %v1733_v13 = vld [vmem:[%s14285_s2 + $0x3b8] sm:$0xff] }
 0x3fd   : > { %3564 = vmatmul.mubr.f32.gmra.mrb[220].mxu0 %v12266_v52 }
 0x3fe   : > { %3568 = vmatprep.mubr.f32.mxu0 %v12270_v9 }
 0x401   : > { %3569 = vmatmul.mubr.f32.gmra.mrb[222].mxu0 %v12280_v11 }
 0x402   : > { %3573 = vmatprep.mubr.f32.mxu0 %v12284_v35 }
 0x405   : > { %3574 = vmatmul.mubr.f32.gmra.mrb[224].mxu0 %v12294_v53 }
 0x406   : > { %3578 = vmatprep.mubr.f32.mxu0 %v12298_v27 }
 0x409   : > { %3579 = vmatmul.mubr.f32.gmra.mrb[226].mxu0 %v12308_v43 }
 0x40a   : > { %3583 = vmatprep.mubr.f32.mxu0 %v12312_v24 }
 0x40d   : > { %3584 = vmatmul.mubr.f32.gmra.mrb[228].mxu0 %v12322_v63 }
 0x40e   : > { %3588 = vmatprep.mubr.f32.mxu0 %v12326_v14 }
 0x411   : > { %3589 = vmatmul.mubr.f32.gmra.mrb[230].mxu0 %v12336_v19 }
 0x412   : > { %3593 = vmatprep.mubr.f32.mxu0 %v12340_v21 }
 0x415   : > { %3594 = vmatmul.mubr.f32.gmra.mrb[232].mxu0 %v12350_v40 }
 0x416   : > { %3598 = vmatprep.mubr.f32.mxu0 %v12354_v57  ;;  %v1708_v57 = vld [vmem:[%s14285_s2 + $0x2f0] sm:$0xff] }
 0x417   : > { %v12418_v31 = vmul.f32 %v1708_v57, %v11447_v28  ;;  %v2127_v28 = vld [vmem:[%s14287_s4 + $0x8] sm:$0xff]  ;;  %v1724_v57 = vld [vmem:[%s14285_s2 + $0x370] sm:$0xff] }
 0x418   : > { %v12452_v15 = vmul.f32 %v1724_v57, %v11485_v44  ;;  %v1740_v57 = vld [vmem:[%s14285_s2 + $0x3f0] sm:$0xff] }
 0x419   : > { %3599 = vmatmul.mubr.f32.gmra.mrb[234].mxu0 %v12364_v18  ;;  %v12408_v18 = vmul.f32 %v1709_v17, %v11457_v12  ;;  %15165 = vst [vmem:[#allocation263_spill] sm:$0xff] %v12418_v31  ;;  %v12422_v12 = vmul.f32 %v1717_v32, %v11475_v1  ;;  %v1725_v17 = vld [vmem:[%s14285_s2 + $0x378] sm:$0xff] }
 0x41a   : > { %3603 = vmatprep.mubr.f32.mxu0 %v12368_v39  ;;  %v7864_v39 = vpack.c.bf16 %v3755_v29, %v3753_v30  ;;  %v12439_v1 = vmul.f32 %v1725_v17, %v11496_v51  ;;  %v15169_v30 = vld [vmem:[#allocation138_spill] sm:$0xff]  ;;  %v12456_v51 = vmul.f32 %v1733_v13, %v11515_v34  ;;  %v1732_v29 = vld [vmem:[%s14285_s2 + $0x3b0] sm:$0xff]  ;;  %v1741_v32 = vld [vmem:[%s14285_s2 + $0x3f8] sm:$0xff] }
 0x41b   : > { %15164 = vst [vmem:[#allocation262_spill] sm:$0xff] %v12408_v18  ;;  %15166 = vst [vmem:[#allocation264_spill] sm:$0xff] %v12422_v12  ;;  %v12468_v44 = vmul.f32 %v1732_v29, %v11505_v60  ;;  %v12472_v34 = vmul.f32 %v1741_v32, %v11535_v8  ;;  %v15175_v60 = vld [vmem:[#allocation132_spill] sm:$0xff] }
 0x41c   : > { %7865 = vmatpush1.bf16.msra.mxu1 %v7864_v39  ;;  %v12432_v39 = vmul.f32 %v1716_v25, %v11466_v50  ;;  %15168 = vst [vmem:[#allocation266_spill] sm:$0xff] %v12439_v1  ;;  %v12448_v50 = vrot.slane %v2127_v28, %v15169_v30  ;;  %15170 = vst [vmem:[#allocation138_spill] sm:$0xff] %v12452_v15  ;;  %v15172_v25 = vld [vmem:[#allocation131_spill] sm:$0xff] }
 0x41d   : > { %3604 = vmatmul.mubr.f32.gmra.mrb[236].mxu0 %v12378_v55  ;;  %15171 = vst [vmem:[#allocation267_spill] sm:$0xff] %v12456_v51  ;;  %15173 = vst [vmem:[#allocation131_spill] sm:$0xff] %v12468_v44 }
 0x41e   : > { %3608 = vmatprep.mubr.f32.mxu0 %v12382_v37  ;;  %15167 = vst [vmem:[#allocation265_spill] sm:$0xff] %v12432_v39  ;;  %v2311_v17 = vadd.f32 %v15172_v25, %v12448_v50  ;;  %15174 = vst [vmem:[#allocation268_spill] sm:$0xff] %v12472_v34  ;;  %v1749_v25 = vld [vmem:[%s14285_s2 + $0x438] sm:$0xff]  ;;  %v2317_v29 = vadd.f32 %v15175_v60, %v12448_v50 }
 0x41f   : > { %v12490_v32 = vmul.f32 %v1749_v25, %v11553_v23  ;;  %v1757_v60 = vld [vmem:[%s14285_s2 + $0x478] sm:$0xff] }
 0x420   : > { %v12508_v25 = vmul.f32 %v1757_v60, %v11575_v42 }
 0x421   : > { %3609 = vmatmul.mubr.f32.gmra.mrb[238].mxu0 %v12404_v2  ;;  %15177 = vst [vmem:[#allocation269_spill] sm:$0xff] %v12490_v32  ;;  %v15217_v2 = vld [vmem:[#allocation241_spill] sm:$0xff] }
 0x422   : > { %3613 = vmatprep.mubr.f32.mxu0 %v12408_v18 }
 0x425   : > { %3614 = vmatmul.mubr.f32.gmra.mrb[240].mxu0 %v12418_v31 }
 0x426   : > { %3618 = vmatprep.mubr.f32.mxu0 %v12422_v12  ;;  %v1820_v12 = vld [vmem:[%s14285_s2 + $0x670] sm:$0xff] }
 0x427   : > { %v12677_v37 = vmul.f32 %v1820_v12, %v15217_v2  ;;  %v1837_v2 = vld [vmem:[%s14285_s2 + $0x6f8] sm:$0xff]  ;;  %v15220_v12 = vld [vmem:[#allocation144_spill] sm:$0xff] }
 0x429   : > { %3619 = vmatmul.mubr.f32.gmra.mrb[242].mxu0 %v12432_v39 }
 0x42a   : > { %3623 = vmatprep.mubr.f32.mxu0 %v12439_v1 }
 0x42d   : > { %3624 = vmatmul.mubr.f32.gmra.mrb[244].mxu0 %v12452_v15 }
 0x42e   : > { %v2885_v28 = vpop.f32.mrb[102].mxu1  ;;  %3628 = vmatprep.mubr.f32.mxu0 %v12456_v51  ;;  %v12486_v51 = vmul.f32 %v1740_v57, %v11525_v36  ;;  %v15178_v36 = vld [vmem:[#allocation133_spill] sm:$0xff] }
 0x42f   : > { %v12477_v13 = vadd.f32 %v2885_v28, %v2311_v17  ;;  %v2887_v1 = vpop.f32.mrb[103].mxu1  ;;  %v2323_v57 = vadd.f32 %v15178_v36, %v12448_v50  ;;  %v1765_v36 = vld [vmem:[%s14285_s2 + $0x4b8] sm:$0xff] }
 0x430   : > { %15176 = vst [vmem:[#allocation132_spill] sm:$0xff] %v12486_v51  ;;  %v1748_v1 = vld [vmem:[%s14285_s2 + $0x430] sm:$0xff]  ;;  %v12526_v60 = vmul.f32 %v1765_v36, %v11593_v20 }
 0x431   : > { %3629 = vmatmul.mubr.f32.gmra.mrb[246].mxu0 %v12468_v44  ;;  %v1772_v20 = vld [vmem:[%s14285_s2 + $0x4f0] sm:$0xff] }
 0x432   : > { %v2890_v8 = vpop.f32.mrb[104].mxu1  ;;  %3633 = vmatprep.mubr.f32.mxu0 %v12472_v34  ;;  %v15179_v34 = vld [vmem:[#allocation76_spill] sm:$0xff] }
 0x433   : > { %v12495_v17 = vadd.f32 %v2890_v8, %v2317_v29  ;;  %v2892_v28 = vpop.f32.mrb[105].mxu1  ;;  %v12504_v44 = vmul.f32 %v1748_v1, %v15179_v34  ;;  %15181 = vst [vmem:[#allocation76_spill] sm:$0xff] %v12508_v25  ;;  %v1756_v29 = vld [vmem:[%s14285_s2 + $0x470] sm:$0xff]  ;;  %v15182_v34 = vld [vmem:[#allocation134_spill] sm:$0xff] }
 0x434   : > { %v2329_v1 = vadd.f32 %v15182_v34, %v12448_v50  ;;  %v1773_v34 = vld [vmem:[%s14285_s2 + $0x4f8] sm:$0xff] }
 0x435   : > { %3634 = vmatmul.mubr.f32.gmra.mrb[248].mxu0 %v12486_v51  ;;  %15180 = vst [vmem:[#allocation133_spill] sm:$0xff] %v12504_v44 }
 0x436   : > { %v2895_v23 = vpop.f32.mrb[106].mxu1  ;;  %3638 = vmatprep.mubr.f32.mxu0 %v12490_v32  ;;  %v15183_v32 = vld [vmem:[#allocation31_spill] sm:$0xff] }
 0x437   : > { %v12513_v8 = vadd.f32 %v2895_v23, %v2323_v57  ;;  %v2897_v28 = vpop.f32.mrb[107].mxu1  ;;  %v12522_v51 = vmul.f32 %v1756_v29, %v15183_v32  ;;  %15185 = vst [vmem:[#allocation31_spill] sm:$0xff] %v12526_v60  ;;  %v1764_v57 = vld [vmem:[%s14285_s2 + $0x4b0] sm:$0xff]  ;;  %v15186_v32 = vld [vmem:[#allocation135_spill] sm:$0xff] }
 0x438   : > { %v2335_v29 = vadd.f32 %v15186_v32, %v12448_v50  ;;  %v1781_v32 = vld [vmem:[%s14285_s2 + $0x538] sm:$0xff] }
 0x439   : > { %3639 = vmatmul.mubr.f32.gmra.mrb[250].mxu0 %v12504_v44  ;;  %15184 = vst [vmem:[#allocation134_spill] sm:$0xff] %v12522_v51 }
 0x43a   : > { %v2900_v42 = vpop.f32.mrb[108].mxu1  ;;  %3643 = vmatprep.mubr.f32.mxu0 %v12508_v25  ;;  %v15187_v25 = vld [vmem:[#allocation170_spill] sm:$0xff] }
 0x43b   : > { %v12531_v23 = vadd.f32 %v2900_v42, %v2329_v1  ;;  %v2902_v28 = vpop.f32.mrb[109].mxu1  ;;  %v12540_v44 = vmul.f32 %v1764_v57, %v15187_v25  ;;  %v12547_v1 = vmul.f32 %v1773_v34, %v11613_v26  ;;  %v15190_v25 = vld [vmem:[#allocation136_spill] sm:$0xff] }
 0x43c   : > { %v2341_v57 = vadd.f32 %v15190_v25, %v12448_v50  ;;  %v1780_v26 = vld [vmem:[%s14285_s2 + $0x530] sm:$0xff] }
 0x43d   : > { %3644 = vmatmul.mubr.f32.gmra.mrb[252].mxu0 %v12522_v51  ;;  %15188 = vst [vmem:[#allocation135_spill] sm:$0xff] %v12540_v44  ;;  %15189 = vst [vmem:[#allocation170_spill] sm:$0xff] %v12547_v1  ;;  %v15191_v51 = vld [vmem:[#allocation80_spill] sm:$0xff] }
 0x43e   : > { %v2905_v36 = vpop.f32.mrb[110].mxu1  ;;  %3648 = vmatprep.mubr.f32.mxu0 %v12526_v60  ;;  %v12557_v15 = vmul.f32 %v1772_v20, %v15191_v51  ;;  %v1789_v51 = vld [vmem:[%s14285_s2 + $0x578] sm:$0xff] }
 0x43f   : > { %v12549_v42 = vadd.f32 %v2905_v36, %v2335_v29  ;;  %v2907_v28 = vpop.f32.mrb[111].mxu1  ;;  %v15193_v29 = vld [vmem:[#allocation236_spill] sm:$0xff]  ;;  %v15195_v20 = vld [vmem:[#allocation137_spill] sm:$0xff] }
 0x440   : > { %15192 = vst [vmem:[#allocation136_spill] sm:$0xff] %v12557_v15  ;;  %v12565_v36 = vmul.f32 %v1781_v32, %v15193_v29  ;;  %v2347_v25 = vadd.f32 %v15195_v20, %v12448_v50  ;;  %v1788_v32 = vld [vmem:[%s14285_s2 + $0x570] sm:$0xff] }
 0x441   : > { %3649 = vmatmul.mubr.f32.gmra.mrb[254].mxu0 %v12540_v44  ;;  %v15196_v44 = vld [vmem:[#allocation235_spill] sm:$0xff] }
 0x442   : > { %v2910_v34 = vpop.f32.mrb[112].mxu1  ;;  %3653 = vmatprep.mubr.f32.mxu0 %v12547_v1  ;;  %15194 = vst [vmem:[#allocation80_spill] sm:$0xff] %v12565_v36  ;;  %v12575_v39 = vmul.f32 %v1780_v26, %v15196_v44  ;;  %v1797_v44 = vld [vmem:[%s14285_s2 + $0x5b8] sm:$0xff]  ;;  %v15199_v26 = vld [vmem:[#allocation139_spill] sm:$0xff] }
 0x443   : > { %v12567_v28 = vadd.f32 %v2910_v34, %v2341_v57  ;;  %v2912_v60 = vpop.f32.mrb[113].mxu1  ;;  %v2353_v20 = vadd.f32 %v15199_v26, %v12448_v50 }
 0x444   : > { %15197 = vst [vmem:[#allocation236_spill] sm:$0xff] %v12575_v39  ;;  %v12583_v60 = vmul.f32 %v1789_v51, %v11652_v49  ;;  %v1796_v49 = vld [vmem:[%s14285_s2 + $0x5b0] sm:$0xff] }
 0x445   : > { %3654 = vmatmul.mubr.f32.gmra.mrb[0].mxu0 %v12557_v15  ;;  %v15200_v15 = vld [vmem:[#allocation237_spill] sm:$0xff] }
 0x446   : > { %v2915_v29 = vpop.f32.mrb[114].mxu1  ;;  %3658 = vmatprep.mubr.f32.mxu0 %v12565_v36  ;;  %15198 = vst [vmem:[#allocation137_spill] sm:$0xff] %v12583_v60  ;;  %v12593_v1 = vmul.f32 %v1788_v32, %v15200_v15  ;;  %v1805_v15 = vld [vmem:[%s14285_s2 + $0x5f8] sm:$0xff]  ;;  %v15203_v32 = vld [vmem:[#allocation140_spill] sm:$0xff] }
 0x447   : > { %v12585_v57 = vadd.f32 %v2915_v29, %v2347_v25  ;;  %v2917_v34 = vpop.f32.mrb[115].mxu1  ;;  %v12601_v25 = vmul.f32 %v1797_v44, %v11671_v38  ;;  %v2359_v26 = vadd.f32 %v15203_v32, %v12448_v50  ;;  %v1804_v38 = vld [vmem:[%s14285_s2 + $0x5f0] sm:$0xff] }
 0x448   : > { %15201 = vst [vmem:[#allocation235_spill] sm:$0xff] %v12593_v1 }
 0x449   : > { %3659 = vmatmul.mubr.f32.gmra.mrb[2].mxu0 %v12575_v39  ;;  %15202 = vst [vmem:[#allocation139_spill] sm:$0xff] %v12601_v25  ;;  %v15204_v39 = vld [vmem:[#allocation34_spill] sm:$0xff] }
 0x44a   : > { %v2920_v51 = vpop.f32.mrb[116].mxu1  ;;  %3663 = vmatprep.mubr.f32.mxu0 %v12583_v60  ;;  %v12611_v36 = vmul.f32 %v1796_v49, %v15204_v39  ;;  %v1813_v39 = vld [vmem:[%s14285_s2 + $0x638] sm:$0xff] }
 0x44b   : > { %v12603_v29 = vadd.f32 %v2920_v51, %v2353_v20  ;;  %v2922_v34 = vpop.f32.mrb[117].mxu1  ;;  %v12619_v20 = vmul.f32 %v1805_v15, %v11691_v5  ;;  %v15207_v49 = vld [vmem:[#allocation141_spill] sm:$0xff]  ;;  %v1812_v5 = vld [vmem:[%s14285_s2 + $0x630] sm:$0xff] }
 0x44c   : > { %15205 = vst [vmem:[#allocation237_spill] sm:$0xff] %v12611_v36  ;;  %v2365_v32 = vadd.f32 %v15207_v49, %v12448_v50  ;;  %v3760_v49 = vld [vmem:[%s14288_s5 + $0x48] sm:$0xff] }
 0x44d   : > { %3664 = vmatmul.mubr.f32.gmra.mrb[4].mxu0 %v12593_v1  ;;  %15206 = vst [vmem:[#allocation140_spill] sm:$0xff] %v12619_v20  ;;  %v15208_v1 = vld [vmem:[#allocation238_spill] sm:$0xff] }
 0x44e   : > { %v2925_v44 = vpop.f32.mrb[118].mxu1  ;;  %3668 = vmatprep.mubr.f32.mxu0 %v12601_v25  ;;  %v12629_v60 = vmul.f32 %v1804_v38, %v15208_v1  ;;  %v1821_v1 = vld [vmem:[%s14285_s2 + $0x678] sm:$0xff] }
 0x44f   : > { %v12621_v51 = vadd.f32 %v2925_v44, %v2359_v26  ;;  %v2927_v34 = vpop.f32.mrb[119].mxu1  ;;  %v15210_v26 = vld [vmem:[#allocation240_spill] sm:$0xff]  ;;  %v3758_v38 = vld [vmem:[%s14288_s5 + $0x38] sm:$0xff] }
 0x450   : > { %15209 = vst [vmem:[#allocation34_spill] sm:$0xff] %v12629_v60  ;;  %v12637_v44 = vmul.f32 %v1813_v39, %v15210_v26  ;;  %v15213_v39 = vld [vmem:[#allocation239_spill] sm:$0xff] }
 0x451   : > { %3669 = vmatmul.mubr.f32.gmra.mrb[6].mxu0 %v12611_v36  ;;  %v12653_v26 = vmul.f32 %v1812_v5, %v15213_v39  ;;  %v1829_v39 = vld [vmem:[%s14285_s2 + $0x6b8] sm:$0xff] }
 0x452   : > { %v2930_v15 = vpop.f32.mrb[120].mxu1  ;;  %3673 = vmatprep.mubr.f32.mxu0 %v12619_v20  ;;  %15211 = vst [vmem:[#allocation141_spill] sm:$0xff] %v12637_v44  ;;  %v15212_v20 = vld [vmem:[#allocation142_spill] sm:$0xff] }
 0x453   : > { %v12639_v34 = vadd.f32 %v2930_v15, %v2365_v32  ;;  %v2932_v25 = vpop.f32.mrb[121].mxu1  ;;  %v2371_v36 = vadd.f32 %v15212_v20, %v12448_v50  ;;  %15214 = vst [vmem:[#allocation238_spill] sm:$0xff] %v12653_v26  ;;  %v3757_v32 = vld [vmem:[%s14288_s5 + $0x30] sm:$0xff]  ;;  %v3759_v15 = vld [vmem:[%s14288_s5 + $0x40] sm:$0xff]  ;;  %v12667_v20 = vmul.f32 %v1821_v1, %v11731_v61  ;;  %15218 = vst [vmem:[#allocation142_spill] sm:$0xff] %v12677_v37 }
 0x454   : > { %v7866_v25 = vpack.c.bf16 %v3760_v49, %v3758_v38  ;;  %v7868_v5 = vpack.c.bf16 %v3759_v15, %v3757_v32  ;;  %v1828_v61 = vld [vmem:[%s14285_s2 + $0x6b0] sm:$0xff]  ;;  %v15221_v32 = vld [vmem:[#allocation38_spill] sm:$0xff] }
 0x455   : > { %3674 = vmatmul.mubr.f32.gmra.mrb[8].mxu0 %v12629_v60  ;;  %15215 = vst [vmem:[#allocation240_spill] sm:$0xff] %v12667_v20  ;;  %v15216_v60 = vld [vmem:[#allocation143_spill] sm:$0xff]  ;;  %v12696_v15 = vmul.f32 %v1828_v61, %v15221_v32  ;;  %v1845_v61 = vld [vmem:[%s14285_s2 + $0x738] sm:$0xff] }
 0x456   : > { %v2935_v31 = vpop.f32.mrb[122].mxu1  ;;  %3678 = vmatprep.mubr.f32.mxu0 %v12637_v44  ;;  %7867 = vmatprep.subr.bf16.mxu1 %v7866_v25  ;;  %v2377_v18 = vadd.f32 %v15216_v60, %v12448_v50  ;;  %v2383_v25 = vadd.f32 %v15220_v12, %v12448_v50  ;;  %v15225_v12 = vld [vmem:[#allocation242_spill] sm:$0xff] }
 0x457   : > { %v12669_v38 = vadd.f32 %v2935_v31, %v2371_v36  ;;  %v2937_v49 = vpop.f32.mrb[123].mxu1  ;;  %7869 = vmatpush1.bf16.msra.mxu1 %v7868_v5  ;;  %v12686_v36 = vmul.f32 %v1829_v39, %v11749_v58  ;;  %15222 = vst [vmem:[#allocation143_spill] sm:$0xff] %v12696_v15  ;;  %v1836_v58 = vld [vmem:[%s14285_s2 + $0x6f0] sm:$0xff] }
 0x458   : > { %7870 = vmatprep.subr.bf16.mxu1 %v14740_v59  ;;  %v12714_v32 = vmul.f32 %v1836_v58, %v15225_v12  ;;  %v1853_v58 = vld [vmem:[%s14285_s2 + $0x778] sm:$0xff] }
 0x459   : > { %3679 = vmatmul.mubr.f32.gmra.mrb[10].mxu0 %v12653_v26  ;;  %15219 = vst [vmem:[#allocation239_spill] sm:$0xff] %v12686_v36  ;;  %v15246_v26 = vld [vmem:[#allocation153_spill] sm:$0xff] }
 0x45a   : > { %v2940_v31 = vpop.f32.mrb[124].mxu1  ;;  %3683 = vmatprep.mubr.f32.mxu0 %v12667_v20  ;;  %15226 = vst [vmem:[#allocation144_spill] sm:$0xff] %v12714_v32 }
 0x45b   : > { %v12688_v1 = vadd.f32 %v2940_v31, %v2377_v18  ;;  %v2942_v60 = vpop.f32.mrb[125].mxu1  ;;  %v12704_v18 = vmul.f32 %v1837_v2, %v11769_v22  ;;  %v15224_v31 = vld [vmem:[#allocation145_spill] sm:$0xff]  ;;  %v1844_v22 = vld [vmem:[%s14285_s2 + $0x730] sm:$0xff] }
 0x45c   : > { %v2389_v60 = vadd.f32 %v15224_v31, %v12448_v50  ;;  %v15229_v31 = vld [vmem:[#allocation146_spill] sm:$0xff] }
 0x45d   : > { %3684 = vmatmul.mubr.f32.gmra.mrb[12].mxu0 %v12677_v37  ;;  %15223 = vst [vmem:[#allocation241_spill] sm:$0xff] %v12704_v18  ;;  %v2395_v12 = vadd.f32 %v15229_v31, %v12448_v50 }
 0x45e   : > { %v2945_v5 = vpop.f32.mrb[126].mxu1  ;;  %3688 = vmatprep.mubr.f32.mxu0 %v12686_v36 }
 0x45f   : > { %v12706_v49 = vadd.f32 %v2945_v5, %v2383_v25  ;;  %v2947_v39 = vpop.f32.mrb[127].mxu1  ;;  %v15227_v25 = vld [vmem:[#allocation244_spill] sm:$0xff] }
 0x460   : > { %v12722_v5 = vmul.f32 %v1845_v61, %v15227_v25  ;;  %v1852_v61 = vld [vmem:[%s14285_s2 + $0x770] sm:$0xff] }
 0x461   : > { %3689 = vmatmul.mubr.f32.gmra.mrb[14].mxu0 %v12696_v15  ;;  %v15230_v15 = vld [vmem:[#allocation243_spill] sm:$0xff] }
 0x462   : > { %v2950_v2 = vpop.f32.mrb[128].mxu1  ;;  %3693 = vmatprep.mubr.f32.mxu0 %v12704_v18  ;;  %15228 = vst [vmem:[#allocation38_spill] sm:$0xff] %v12722_v5  ;;  %v12732_v37 = vmul.f32 %v1844_v22, %v15230_v15  ;;  %v1861_v15 = vld [vmem:[%s14285_s2 + $0x7b8] sm:$0xff]  ;;  %v15233_v22 = vld [vmem:[#allocation147_spill] sm:$0xff] }
 0x463   : > { %v12724_v39 = vadd.f32 %v2950_v2, %v2389_v60  ;;  %v2952_v36 = vpop.f32.mrb[129].mxu1  ;;  %v2401_v31 = vadd.f32 %v15233_v22, %v12448_v50 }
 0x464   : > { %15231 = vst [vmem:[#allocation145_spill] sm:$0xff] %v12732_v37  ;;  %v12740_v36 = vmul.f32 %v1853_v58, %v11808_v0  ;;  %v1860_v0 = vld [vmem:[%s14285_s2 + $0x7b0] sm:$0xff] }
 0x465   : > { %3694 = vmatmul.mubr.f32.gmra.mrb[16].mxu0 %v12714_v32  ;;  %v15234_v32 = vld [vmem:[#allocation245_spill] sm:$0xff] }
 0x466   : > { %v2955_v25 = vpop.f32.mrb[130].mxu1  ;;  %3698 = vmatprep.mubr.f32.mxu0 %v12722_v5  ;;  %15232 = vst [vmem:[#allocation242_spill] sm:$0xff] %v12740_v36  ;;  %v12750_v18 = vmul.f32 %v1852_v61, %v15234_v32  ;;  %v1869_v32 = vld [vmem:[%s14285_s2 + $0x7f8] sm:$0xff]  ;;  %v15237_v61 = vld [vmem:[#allocation148_spill] sm:$0xff] }
 0x467   : > { %v12742_v60 = vadd.f32 %v2955_v25, %v2395_v12  ;;  %v2957_v2 = vpop.f32.mrb[131].mxu1  ;;  %v12758_v12 = vmul.f32 %v1861_v15, %v11827_v3  ;;  %v2407_v22 = vadd.f32 %v15237_v61, %v12448_v50  ;;  %v1868_v3 = vld [vmem:[%s14285_s2 + $0x7f0] sm:$0xff]  ;;  %v15240_v61 = vld [vmem:[#allocation149_spill] sm:$0xff] }
 0x468   : > { %15235 = vst [vmem:[#allocation244_spill] sm:$0xff] %v12750_v18 }
 0x469   : > { %3699 = vmatmul.mubr.f32.gmra.mrb[18].mxu0 %v12732_v37  ;;  %15236 = vst [vmem:[#allocation146_spill] sm:$0xff] %v12758_v12  ;;  %v12768_v37 = vmul.f32 %v1860_v0, %v11817_v62  ;;  %v2413_v62 = vadd.f32 %v15240_v61, %v12448_v50  ;;  %v15241_v0 = vld [vmem:[#allocation93_spill] sm:$0xff]  ;;  %v15244_v61 = vld [vmem:[#allocation151_spill] sm:$0xff] }
 0x46a   : > { %v2960_v58 = vpop.f32.mrb[132].mxu1  ;;  %3703 = vmatprep.mubr.f32.mxu0 %v12740_v36  ;;  %v12783_v36 = vmul.f32 %v1868_v3, %v15241_v0  ;;  %v2425_v0 = vadd.f32 %v15244_v61, %v12448_v50  ;;  %v15247_v61 = vld [vmem:[#allocation154_spill] sm:$0xff] }
 0x46b   : > { %v12760_v25 = vadd.f32 %v2960_v58, %v2401_v31  ;;  %v2962_v2 = vpop.f32.mrb[133].mxu1  ;;  %15238 = vst [vmem:[#allocation243_spill] sm:$0xff] %v12768_v37  ;;  %v12776_v31 = vmul.f32 %v1869_v32, %v11847_v16  ;;  %v15243_v16 = vld [vmem:[#allocation150_spill] sm:$0xff]  ;;  %v2443_v44 = vadd.f32 %v15247_v61, %v12448_v50  ;;  %v15250_v61 = vld [vmem:[#allocation157_spill] sm:$0xff] }
 0x46c   : > { %15242 = vst [vmem:[#allocation245_spill] sm:$0xff] %v12783_v36  ;;  %v2419_v32 = vadd.f32 %v15243_v16, %v12448_v50  ;;  %v2461_v21 = vadd.f32 %v15250_v61, %v12448_v50  ;;  %v15253_v61 = vld [vmem:[#allocation160_spill] sm:$0xff] }
 0x46d   : > { %3704 = vmatmul.mubr.f32.gmra.mrb[20].mxu0 %v12750_v18  ;;  %15239 = vst [vmem:[#allocation147_spill] sm:$0xff] %v12776_v31  ;;  %v2479_v63 = vadd.f32 %v15253_v61, %v12448_v50  ;;  %v15256_v61 = vld [vmem:[#allocation206_spill] sm:$0xff] }
 0x46e   : > { %v2965_v15 = vpop.f32.mrb[134].mxu1  ;;  %3708 = vmatprep.mubr.f32.mxu0 %v12758_v12  ;;  %v2497_v27 = vadd.f32 %v15256_v61, %v12448_v50 }
 0x46f   : > { %v12778_v58 = vadd.f32 %v2965_v15, %v2407_v22  ;;  %v2967_v2 = vpop.f32.mrb[135].mxu1  ;;  %v8977_v15 = vld [vmem:[%s9805_s28] sm:$0xff] }
 0x471   : > { %3709 = vmatmul.mubr.f32.gmra.mrb[22].mxu0 %v12768_v37 }
 0x472   : > { %v2970_v18 = vpop.f32.mrb[136].mxu1  ;;  %3713 = vmatprep.mubr.f32.mxu0 %v12776_v31 }
 0x473   : > { %v12787_v5 = vadd.f32 %v2970_v18, %v2413_v62  ;;  %v2972_v12 = vpop.f32.mrb[137].mxu1 }
 0x474   : > { %v15245_v12 = vld [vmem:[#allocation152_spill] sm:$0xff] }
 0x475   : > { %3714 = vmatmul.mubr.f32.gmra.mrb[24].mxu0 %v12783_v36  ;;  %v2431_v62 = vadd.f32 %v15245_v12, %v12448_v50  ;;  %v15248_v12 = vld [vmem:[#allocation155_spill] sm:$0xff] }
 0x476   : > { %v2975_v22 = vpop.f32.mrb[138].mxu1  ;;  %7496 = vmatprep.mubr.msk.f32.mxu0 %vm2138_vm2, %v8977_v15  ;;  %v2437_v15 = vadd.f32 %v15246_v26, %v12448_v50  ;;  %v2449_v55 = vadd.f32 %v15248_v12, %v12448_v50  ;;  %v15249_v26 = vld [vmem:[#allocation156_spill] sm:$0xff]  ;;  %v15251_v12 = vld [vmem:[#allocation158_spill] sm:$0xff] }
 0x477   : > { %v12794_v2 = vadd.f32 %v2975_v22, %v2419_v32  ;;  %v2977_v3 = vpop.f32.mrb[139].mxu1  ;;  %v2455_v40 = vadd.f32 %v15249_v26, %v12448_v50  ;;  %v2467_v19 = vadd.f32 %v15251_v12, %v12448_v50  ;;  %v15252_v26 = vld [vmem:[#allocation159_spill] sm:$0xff]  ;;  %v15254_v12 = vld [vmem:[#allocation161_spill] sm:$0xff] }
 0x478   : > { %v2473_v14 = vadd.f32 %v15252_v26, %v12448_v50  ;;  %v2485_v24 = vadd.f32 %v15254_v12, %v12448_v50  ;;  %v15255_v26 = vld [vmem:[#allocation163_spill] sm:$0xff] }
 0x479   : > { %v2491_v43 = vadd.f32 %v15255_v26, %v12448_v50 }
 0x47a   : > { %v2980_v37 = vpop.f32.mrb[140].mxu1 }
 0x47b   : > { %v12798_v31 = vadd.f32 %v2980_v37, %v2425_v0  ;;  %v2982_v18 = vpop.f32.mrb[141].mxu1 }
 0x47e   : > { %v2985_v16 = vpop.f32.mrb[142].mxu1 }
 0x47f   : > { %v12802_v20 = vadd.f32 %v2985_v16, %v2431_v62  ;;  %v2987_v36 = vpop.f32.mrb[143].mxu1 }
 0x482   : > { %v2990_v32 = vpop.f32.mrb[144].mxu1 }
 0x483   : > { %v12806_v22 = vadd.f32 %v2990_v32, %v2437_v15  ;;  %v2992_v3 = vpop.f32.mrb[145].mxu1 }
 0x486   : > { %v2995_v37 = vpop.f32.mrb[146].mxu1 }
 0x487   : > { %v12810_v0 = vadd.f32 %v2995_v37, %v2443_v44  ;;  %v2997_v18 = vpop.f32.mrb[147].mxu1 }
 0x48a   : > { %v3000_v62 = vpop.f32.mrb[148].mxu1 }
 0x48b   : > { %v12814_v16 = vadd.f32 %v3000_v62, %v2449_v55  ;;  %v3002_v36 = vpop.f32.mrb[149].mxu1 }
 0x48e   : > { %v3005_v15 = vpop.f32.mrb[150].mxu1 }
 0x48f   : > { %v12818_v32 = vadd.f32 %v3005_v15, %v2455_v40  ;;  %v3007_v3 = vpop.f32.mrb[151].mxu1 }
 0x492   : > { %v3010_v44 = vpop.f32.mrb[152].mxu1 }
 0x493   : > { %v12822_v37 = vadd.f32 %v3010_v44, %v2461_v21  ;;  %v3012_v18 = vpop.f32.mrb[153].mxu1 }
 0x496   : > { %v3015_v55 = vpop.f32.mrb[154].mxu1 }
 0x497   : > { %v12826_v62 = vadd.f32 %v3015_v55, %v2467_v19  ;;  %v3017_v36 = vpop.f32.mrb[155].mxu1 }
 0x49a   : > { %v3020_v40 = vpop.f32.mrb[156].mxu1 }
 0x49b   : > { %v12830_v15 = vadd.f32 %v3020_v40, %v2473_v14  ;;  %v3022_v3 = vpop.f32.mrb[157].mxu1 }
 0x49e   : > { %v3025_v21 = vpop.f32.mrb[158].mxu1 }
 0x49f   : > { %v12834_v44 = vadd.f32 %v3025_v21, %v2479_v63  ;;  %v3027_v18 = vpop.f32.mrb[159].mxu1 }
 0x4a2   : > { %v3030_v19 = vpop.f32.mrb[160].mxu1 }
 0x4a3   : > { %v12838_v55 = vadd.f32 %v3030_v19, %v2485_v24  ;;  %v3032_v36 = vpop.f32.mrb[161].mxu1 }
 0x4a6   : > { %v3035_v14 = vpop.f32.mrb[162].mxu1 }
 0x4a7   : > { %v12842_v40 = vadd.f32 %v3035_v14, %v2491_v43  ;;  %v3037_v3 = vpop.f32.mrb[163].mxu1 }
 0x4aa   : > { %v3040_v63 = vpop.f32.mrb[164].mxu1 }
 0x4ab   : > { %v12846_v21 = vadd.f32 %v3040_v63, %v2497_v27  ;;  %v3042_v18 = vpop.f32.mrb[165].mxu1 }
 0x4cc   : > { %v3560_v53 = vpop.f32.mrb[218].mxu0 }
 0x4cd   : > { %v8096_v12 = vadd.f32 %v3560_v53, %v12477_v13  ;;  %v3562_v24 = vpop.f32.mrb[219].mxu0 }
 0x4cf   : > { %8577 = vtanh.f32 %v8096_v12 }
 0x4d0   : > { %v3565_v19 = vpop.f32.mrb[220].mxu0 }
 0x4d1   : > { %v8097_v36 = vadd.f32 %v3565_v19, %v12495_v17  ;;  %v3567_v26 = vpop.f32.mrb[221].mxu0 }
 0x4d3   : > { %8579 = vtanh.f32 %v8097_v36 }
 0x4d4   : > { %v3570_v43 = vpop.f32.mrb[222].mxu0 }
 0x4d5   : > { %v8098_v14 = vadd.f32 %v3570_v43, %v12513_v8  ;;  %v3572_v3 = vpop.f32.mrb[223].mxu0 }
 0x4d7   : > { %8581 = vtanh.f32 %v8098_v14 }
 0x4d8   : > { %v3575_v50 = vpop.f32.mrb[224].mxu0 }
 0x4d9   : > { %v8578_v27 = vpop.eup %8577  ;;  %v8099_v61 = vadd.f32 %v3575_v50, %v12531_v23  ;;  %v3577_v63 = vpop.f32.mrb[225].mxu0 }
 0x4da   : > { %7260 = vmatmul.mubr.msk.f32.vlgmr.msra.gmra.mrb[166].mxu1 %vm3769_vm3, %v8578_v27 }
 0x4db   : > { %8583 = vtanh.f32 %v8099_v61  ;;  %3936 = vmatprep.mubr.f32.mxu1 %v15115_v56 }
 0x4dc   : > { %v3580_v53 = vpop.f32.mrb[226].mxu0 }
 0x4dd   : > { %v8580_v13 = vpop.eup %8579  ;;  %v8100_v17 = vadd.f32 %v3580_v53, %v12549_v42  ;;  %v3582_v18 = vpop.f32.mrb[227].mxu0 }
 0x4de   : > { %7261 = vmatmul.mubr.msk.f32.gmra.mrb[168].mxu1 %vm3769_vm3, %v8580_v13 }
 0x4df   : > { %8585 = vtanh.f32 %v8100_v17  ;;  %3942 = vmatprep.mubr.f32.mxu1 %v15115_v56 }
 0x4e0   : > { %v3585_v8 = vpop.f32.mrb[228].mxu0 }
 0x4e1   : > { %v8582_v12 = vpop.eup %8581  ;;  %v8101_v23 = vadd.f32 %v3585_v8, %v12567_v28  ;;  %v3587_v24 = vpop.f32.mrb[229].mxu0 }
 0x4e2   : > { %7262 = vmatmul.mubr.msk.f32.gmra.mrb[170].mxu1 %vm3769_vm3, %v8582_v12 }
 0x4e3   : > { %8587 = vtanh.f32 %v8101_v23  ;;  %3948 = vmatprep.mubr.f32.mxu1 %v15115_v56 }
 0x4e4   : > { %v3590_v19 = vpop.f32.mrb[230].mxu0 }
 0x4e5   : > { %v8584_v36 = vpop.eup %8583  ;;  %v8102_v42 = vadd.f32 %v3590_v19, %v12585_v57  ;;  %v3592_v26 = vpop.f32.mrb[231].mxu0 }
 0x4e6   : > { %7263 = vmatmul.mubr.msk.f32.gmra.mrb[172].mxu1 %vm3769_vm3, %v8584_v36 }
 0x4e7   : > { %8589 = vtanh.f32 %v8102_v42  ;;  %3954 = vmatprep.mubr.f32.mxu1 %v15115_v56 }
 0x4e8   : > { %v3595_v43 = vpop.f32.mrb[232].mxu0 }
 0x4e9   : > { %v8586_v14 = vpop.eup %8585  ;;  %v8103_v28 = vadd.f32 %v3595_v43, %v12603_v29  ;;  %v3597_v3 = vpop.f32.mrb[233].mxu0 }
 0x4ea   : > { %7264 = vmatmul.mubr.msk.f32.gmra.mrb[174].mxu1 %vm3769_vm3, %v8586_v14 }
 0x4eb   : > { %8591 = vtanh.f32 %v8103_v28  ;;  %3960 = vmatprep.mubr.f32.mxu1 %v15115_v56 }
 0x4ec   : > { %v3600_v50 = vpop.f32.mrb[234].mxu0 }
 0x4ed   : > { %v8588_v27 = vpop.eup %8587  ;;  %v8104_v57 = vadd.f32 %v3600_v50, %v12621_v51  ;;  %v3602_v61 = vpop.f32.mrb[235].mxu0 }
 0x4ee   : > { %7265 = vmatmul.mubr.msk.f32.gmra.mrb[176].mxu1 %vm3769_vm3, %v8588_v27 }
 0x4ef   : > { %8593 = vtanh.f32 %v8104_v57  ;;  %3966 = vmatprep.mubr.f32.mxu1 %v15115_v56 }
 0x4f0   : > { %v3605_v63 = vpop.f32.mrb[236].mxu0 }
 0x4f1   : > { %v8590_v53 = vpop.eup %8589  ;;  %v8105_v29 = vadd.f32 %v3605_v63, %v12639_v34  ;;  %v3607_v13 = vpop.f32.mrb[237].mxu0 }
 0x4f2   : > { %7266 = vmatmul.mubr.msk.f32.gmra.mrb[178].mxu1 %vm3769_vm3, %v8590_v53 }
 0x4f3   : > { %8595 = vtanh.f32 %v8105_v29  ;;  %3972 = vmatprep.mubr.f32.mxu1 %v15115_v56 }
 0x4f4   : > { %v3610_v17 = vpop.f32.mrb[238].mxu0 }
 0x4f5   : > { %v8592_v18 = vpop.eup %8591  ;;  %v8106_v51 = vadd.f32 %v3610_v17, %v12669_v38  ;;  %v3612_v8 = vpop.f32.mrb[239].mxu0 }
 0x4f6   : > { %7267 = vmatmul.mubr.msk.f32.gmra.mrb[180].mxu1 %vm3769_vm3, %v8592_v18 }
 0x4f7   : > { %8597 = vtanh.f32 %v8106_v51  ;;  %3978 = vmatprep.mubr.f32.mxu1 %v15115_v56 }
 0x4f8   : > { %v3615_v12 = vpop.f32.mrb[240].mxu0 }
 0x4f9   : > { %v8594_v23 = vpop.eup %8593  ;;  %v8107_v34 = vadd.f32 %v3615_v12, %v12688_v1  ;;  %v3617_v24 = vpop.f32.mrb[241].mxu0 }
 0x4fa   : > { %7268 = vmatmul.mubr.msk.f32.gmra.mrb[182].mxu1 %vm3769_vm3, %v8594_v23 }
 0x4fb   : > { %8599 = vtanh.f32 %v8107_v34  ;;  %3984 = vmatprep.mubr.f32.mxu1 %v15115_v56 }
 0x4fc   : > { %v3620_v19 = vpop.f32.mrb[242].mxu0 }
 0x4fd   : > { %v8596_v36 = vpop.eup %8595  ;;  %v8108_v38 = vadd.f32 %v3620_v19, %v12706_v49  ;;  %v3622_v42 = vpop.f32.mrb[243].mxu0 }
 0x4fe   : > { %7269 = vmatmul.mubr.msk.f32.gmra.mrb[184].mxu1 %vm3769_vm3, %v8596_v36 }
 0x4ff   : > { %8601 = vtanh.f32 %v8108_v38  ;;  %3990 = vmatprep.mubr.f32.mxu1 %v15115_v56 }
 0x500   : > { %v3625_v26 = vpop.f32.mrb[244].mxu0 }
 0x501   : > { %v8598_v43 = vpop.eup %8597  ;;  %v8109_v1 = vadd.f32 %v3625_v26, %v12724_v39  ;;  %v3627_v14 = vpop.f32.mrb[245].mxu0 }
 0x502   : > { %7270 = vmatmul.mubr.msk.f32.gmra.mrb[186].mxu1 %vm3769_vm3, %v8598_v43 }
 0x503   : > { %8603 = vtanh.f32 %v8109_v1  ;;  %3996 = vmatprep.mubr.f32.mxu1 %v15115_v56 }
 0x504   : > { %v3630_v28 = vpop.f32.mrb[246].mxu0 }
 0x505   : > { %v8600_v3 = vpop.eup %8599  ;;  %v8110_v49 = vadd.f32 %v3630_v28, %v12742_v60  ;;  %v3632_v50 = vpop.f32.mrb[247].mxu0 }
 0x506   : > { %7271 = vmatmul.mubr.msk.f32.gmra.mrb[188].mxu1 %vm3769_vm3, %v8600_v3 }
 0x507   : > { %8605 = vtanh.f32 %v8110_v49  ;;  %4002 = vmatprep.mubr.f32.mxu1 %v15115_v56 }
 0x508   : > { %v3635_v27 = vpop.f32.mrb[248].mxu0 }
 0x509   : > { %v8602_v57 = vpop.eup %8601  ;;  %v8111_v39 = vadd.f32 %v3635_v27, %v12760_v25  ;;  %v3637_v61 = vpop.f32.mrb[249].mxu0 }
 0x50a   : > { %7272 = vmatmul.mubr.msk.f32.gmra.mrb[190].mxu1 %vm3769_vm3, %v8602_v57 }
 0x50b   : > { %8607 = vtanh.f32 %v8111_v39  ;;  %4008 = vmatprep.mubr.f32.mxu1 %v15115_v56 }
 0x50c   : > { %v3640_v63 = vpop.f32.mrb[250].mxu0 }
 0x50d   : > { %v8604_v53 = vpop.eup %8603  ;;  %v8112_v60 = vadd.f32 %v3640_v63, %v12778_v58  ;;  %v3642_v29 = vpop.f32.mrb[251].mxu0 }
 0x50e   : > { %7273 = vmatmul.mubr.msk.f32.gmra.mrb[192].mxu1 %vm3769_vm3, %v8604_v53 }
 0x50f   : > { %8609 = vtanh.f32 %v8112_v60  ;;  %4014 = vmatprep.mubr.f32.mxu1 %v15115_v56 }
 0x510   : > { %v3645_v13 = vpop.f32.mrb[252].mxu0 }
 0x511   : > { %v8606_v17 = vpop.eup %8605  ;;  %v8113_v25 = vadd.f32 %v3645_v13, %v12787_v5  ;;  %v3647_v18 = vpop.f32.mrb[253].mxu0 }
 0x512   : > { %7274 = vmatmul.mubr.msk.f32.gmra.mrb[194].mxu1 %vm3769_vm3, %v8606_v17 }
 0x513   : > { %8611 = vtanh.f32 %v8113_v25  ;;  %4020 = vmatprep.mubr.f32.mxu1 %v15115_v56 }
 0x514   : > { %v3650_v51 = vpop.f32.mrb[254].mxu0 }
 0x515   : > { %v8608_v8 = vpop.eup %8607  ;;  %v8114_v58 = vadd.f32 %v3650_v51, %v12794_v2  ;;  %v3652_v12 = vpop.f32.mrb[255].mxu0 }
 0x516   : > { %7275 = vmatmul.mubr.msk.f32.gmra.mrb[196].mxu1 %vm3769_vm3, %v8608_v8 }
 0x517   : > { %8613 = vtanh.f32 %v8114_v58  ;;  %4026 = vmatprep.mubr.f32.mxu1 %v15115_v56 }
 0x518   : > { %v3655_v23 = vpop.f32.mrb[0].mxu0 }
 0x519   : > { %v8610_v34 = vpop.eup %8609  ;;  %v8115_v5 = vadd.f32 %v3655_v23, %v12798_v31  ;;  %v3657_v24 = vpop.f32.mrb[1].mxu0 }
 0x51a   : > { %7276 = vmatmul.mubr.msk.f32.gmra.mrb[198].mxu1 %vm3769_vm3, %v8610_v34 }
 0x51b   : > { %8615 = vtanh.f32 %v8115_v5  ;;  %4032 = vmatprep.mubr.f32.mxu1 %v15115_v56 }
 0x51c   : > { %v3660_v19 = vpop.f32.mrb[2].mxu0 }
 0x51d   : > { %v8612_v36 = vpop.eup %8611  ;;  %v8116_v2 = vadd.f32 %v3660_v19, %v12802_v20  ;;  %v3662_v38 = vpop.f32.mrb[3].mxu0 }
 0x51e   : > { %7277 = vmatmul.mubr.msk.f32.gmra.mrb[200].mxu1 %vm3769_vm3, %v8612_v36 }
 0x51f   : > { %8617 = vtanh.f32 %v8116_v2  ;;  %4038 = vmatprep.mubr.f32.mxu1 %v15115_v56 }
 0x520   : > { %v3665_v42 = vpop.f32.mrb[4].mxu0 }
 0x521   : > { %v8614_v26 = vpop.eup %8613  ;;  %v8117_v31 = vadd.f32 %v3665_v42, %v12806_v22  ;;  %v3667_v43 = vpop.f32.mrb[5].mxu0 }
 0x522   : > { %7278 = vmatmul.mubr.msk.f32.gmra.mrb[202].mxu1 %vm3769_vm3, %v8614_v26 }
 0x523   : > { %8619 = vtanh.f32 %v8117_v31  ;;  %4044 = vmatprep.mubr.f32.mxu1 %v15115_v56  ;;  %v3751_v31 = vld [vmem:[%s14288_s5] sm:$0xff] }
 0x524   : > { %v3670_v1 = vpop.f32.mrb[6].mxu0  ;;  %v12948_v43 = vrot.slane %v3751_v31, %v15169_v30 }
 0x525   : > { %v8616_v14 = vpop.eup %8615  ;;  %v8118_v20 = vadd.f32 %v3670_v1, %v12810_v0  ;;  %v3672_v28 = vpop.f32.mrb[7].mxu0 }
 0x526   : > { %7279 = vmatmul.mubr.msk.f32.gmra.mrb[204].mxu1 %vm3769_vm3, %v8616_v14 }
 0x527   : > { %8621 = vtanh.f32 %v8118_v20  ;;  %4050 = vmatprep.mubr.f32.mxu1 %v15115_v56 }
 0x528   : > { %v3675_v3 = vpop.f32.mrb[8].mxu0 }
 0x529   : > { %v8618_v49 = vpop.eup %8617  ;;  %v8119_v22 = vadd.f32 %v3675_v3, %v12814_v16  ;;  %v3677_v50 = vpop.f32.mrb[9].mxu0 }
 0x52a   : > { %7280 = vmatmul.mubr.msk.f32.gmra.mrb[206].mxu1 %vm3769_vm3, %v8618_v49 }
 0x52b   : > { %8623 = vtanh.f32 %v8119_v22  ;;  %4056 = vmatprep.mubr.f32.mxu1 %v15115_v56 }
 0x52c   : > { %v3680_v27 = vpop.f32.mrb[10].mxu0 }
 0x52d   : > { %v8620_v57 = vpop.eup %8619  ;;  %v8120_v0 = vadd.f32 %v3680_v27, %v12818_v32  ;;  %v3682_v39 = vpop.f32.mrb[11].mxu0 }
 0x52e   : > { %7281 = vmatmul.mubr.msk.f32.gmra.mrb[208].mxu1 %vm3769_vm3, %v8620_v57 }
 0x52f   : > { %8625 = vtanh.f32 %v8120_v0  ;;  %4062 = vmatprep.mubr.f32.mxu1 %v15115_v56 }
 0x530   : > { %v3685_v61 = vpop.f32.mrb[12].mxu0 }
 0x531   : > { %v8622_v63 = vpop.eup %8621  ;;  %v8121_v16 = vadd.f32 %v3685_v61, %v12822_v37  ;;  %v3687_v53 = vpop.f32.mrb[13].mxu0 }
 0x532   : > { %7282 = vmatmul.mubr.msk.f32.gmra.mrb[210].mxu1 %vm3769_vm3, %v8622_v63 }
 0x533   : > { %8627 = vtanh.f32 %v8121_v16  ;;  %4068 = vmatprep.mubr.f32.mxu1 %v15115_v56 }
 0x534   : > { %v3690_v60 = vpop.f32.mrb[14].mxu0 }
 0x535   : > { %v8624_v29 = vpop.eup %8623  ;;  %v8122_v32 = vadd.f32 %v3690_v60, %v12826_v62  ;;  %v3692_v13 = vpop.f32.mrb[15].mxu0 }
 0x536   : > { %7283 = vmatmul.mubr.msk.f32.gmra.mrb[212].mxu1 %vm3769_vm3, %v8624_v29 }
 0x537   : > { %8629 = vtanh.f32 %v8122_v32  ;;  %4074 = vmatprep.mubr.f32.mxu1 %v15115_v56 }
 0x538   : > { %v3695_v17 = vpop.f32.mrb[16].mxu0 }
 0x539   : > { %v8626_v25 = vpop.eup %8625  ;;  %v8123_v37 = vadd.f32 %v3695_v17, %v12830_v15  ;;  %v3697_v18 = vpop.f32.mrb[17].mxu0 }
 0x53a   : > { %7284 = vmatmul.mubr.msk.f32.gmra.mrb[214].mxu1 %vm3769_vm3, %v8626_v25 }
 0x53b   : > { %8631 = vtanh.f32 %v8123_v37  ;;  %4080 = vmatprep.mubr.f32.mxu1 %v15115_v56 }
 0x53c   : > { %v3700_v51 = vpop.f32.mrb[18].mxu0 }
 0x53d   : > { %v8628_v8 = vpop.eup %8627  ;;  %v8124_v62 = vadd.f32 %v3700_v51, %v12834_v44  ;;  %v3702_v58 = vpop.f32.mrb[19].mxu0 }
 0x53e   : > { %7285 = vmatmul.mubr.msk.f32.gmra.mrb[216].mxu1 %vm3769_vm3, %v8628_v8 }
 0x53f   : > { %8633 = vtanh.f32 %v8124_v62  ;;  %4086 = vmatprep.mubr.f32.mxu1 %v15115_v56 }
 0x540   : > { %v3705_v12 = vpop.f32.mrb[20].mxu0 }
 0x541   : > { %v8630_v23 = vpop.eup %8629  ;;  %v8125_v15 = vadd.f32 %v3705_v12, %v12838_v55  ;;  %v3707_v34 = vpop.f32.mrb[21].mxu0 }
 0x542   : > { %7286 = vmatmul.mubr.msk.f32.gmra.mrb[218].mxu1 %vm3769_vm3, %v8630_v23 }
 0x543   : > { %8635 = vtanh.f32 %v8125_v15  ;;  %4092 = vmatprep.mubr.f32.mxu1 %v15115_v56 }
 0x544   : > { %v3710_v5 = vpop.f32.mrb[22].mxu0 }
 0x545   : > { %v8632_v24 = vpop.eup %8631  ;;  %v8126_v44 = vadd.f32 %v3710_v5, %v12842_v40  ;;  %v3712_v19 = vpop.f32.mrb[23].mxu0 }
 0x546   : > { %7287 = vmatmul.mubr.msk.f32.gmra.mrb[220].mxu1 %vm3769_vm3, %v8632_v24 }
 0x547   : > { %8637 = vtanh.f32 %v8126_v44  ;;  %4098 = vmatprep.mubr.f32.mxu1 %v15115_v56 }
 0x548   : > { %v3715_v36 = vpop.f32.mrb[24].mxu0 }
 0x549   : > { %v8634_v2 = vpop.eup %8633  ;;  %v8127_v55 = vadd.f32 %v3715_v36, %v12846_v21  ;;  %v3717_v38 = vpop.f32.mrb[25].mxu0  ;;  %v15257_v21 = vld [vmem:[#allocation3_spill] sm:$0xff] }
 0x54a   : > { %7288 = vmatmul.mubr.msk.f32.gmra.mrb[222].mxu1 %vm3769_vm3, %v8634_v2 }
 0x54b   : > { %8639 = vtanh.f32 %v8127_v55  ;;  %4104 = vmatprep.mubr.f32.mxu1 %v15115_v56 }
 0x54d   : > { %v8636_v42 = vpop.eup %8635 }
 0x54e   : > { %7289 = vmatmul.mubr.msk.f32.gmra.mrb[224].mxu1 %vm3769_vm3, %v8636_v42 }
 0x54f   : > { %4110 = vmatprep.mubr.f32.mxu1 %v15115_v56 }
 0x551   : > { %v8638_v40 = vpop.eup %8637 }
 0x552   : > { %7290 = vmatmul.mubr.msk.f32.gmra.mrb[226].mxu1 %vm3769_vm3, %v8638_v40 }
 0x553   : > { %4116 = vmatprep.mubr.f32.mxu1 %v15115_v56 }
 0x555   : > { %v8640_v26 = vpop.eup %8639 }
 0x556   : > { %7291 = vmatmul.mubr.msk.f32.gmra.mrb[228].mxu1 %vm3769_vm3, %v8640_v26 }
 0x557   : > { %4507 = vmatprep.mubr.f32.mxu1 %v15257_v21 }
 0x5ad   : > { %v3932_v1 = vpop.f32.mrb[166].mxu1 }
 0x5ae   : > { %v12951_v14 = vadd.f32 %v3932_v1, %v12948_v43  ;;  %v12953_v20 = vpop.f32.mrb[167].mxu1 }
 0x5b0   : > { %4251 = vrot.lane.b32.xlu0 %v12951_v14, %s9021_s15  ;;  %4155 = vrot.lane.b32.xlu1 %v12951_v14, %s9020_s12 }
 0x5b1   : > { %v3938_v56 = vpop.f32.mrb[168].mxu1 }
 0x5b2   : > { %v12960_v28 = vadd.f32 %v3938_v56, %v12948_v43  ;;  %v12962_v3 = vpop.f32.mrb[169].mxu1 }
 0x5b4   : > { %4157 = vrot.lane.b32.xlu0 %v12960_v28, %s9020_s12  ;;  %4347 = vrot.lane.b32.xlu1 %v12951_v14, %s9019_s11 }
 0x5b5   : > { %v3944_v49 = vpop.f32.mrb[170].mxu1 }
 0x5b6   : > { %v12968_v22 = vpop.f32.mrb[171].mxu1  ;;  %v12975_v27 = vadd.f32 %v3944_v49, %v12948_v43 }
 0x5b8   : > { %4349 = vrot.lane.b32.xlu0 %v12960_v28, %s9019_s11  ;;  %4253 = vrot.lane.b32.xlu1 %v12960_v28, %s9021_s15 }
 0x5b9   : > { %v3950_v50 = vpop.f32.mrb[172].mxu1 }
 0x5ba   : > { %v12977_v57 = vpop.f32.mrb[173].mxu1  ;;  %v12984_v39 = vadd.f32 %v3950_v50, %v12948_v43 }
 0x5bc   : > { %4255 = vrot.lane.b32.xlu0 %v12975_v27, %s9021_s15  ;;  %4159 = vrot.lane.b32.xlu1 %v12975_v27, %s9020_s12 }
 0x5bd   : > { %v3956_v0 = vpop.f32.mrb[174].mxu1 }
 0x5be   : > { %v12986_v61 = vpop.f32.mrb[175].mxu1  ;;  %v12999_v60 = vadd.f32 %v3956_v0, %v12948_v43 }
 0x5c0   : > { %4161 = vrot.lane.b32.xlu0 %v12984_v39, %s9020_s12  ;;  %4351 = vrot.lane.b32.xlu1 %v12975_v27, %s9019_s11 }
 0x5c1   : > { %v3962_v63 = vpop.f32.mrb[176].mxu1 }
 0x5c2   : > { %v12992_v16 = vpop.f32.mrb[177].mxu1  ;;  %v13008_v13 = vadd.f32 %v3962_v63, %v12948_v43 }
 0x5c4   : > { %4353 = vrot.lane.b32.xlu0 %v12984_v39, %s9019_s11  ;;  %4257 = vrot.lane.b32.xlu1 %v12984_v39, %s9021_s15 }
 0x5c5   : > { %v3968_v53 = vpop.f32.mrb[178].mxu1 }
 0x5c6   : > { %v13001_v29 = vpop.f32.mrb[179].mxu1  ;;  %v13023_v51 = vadd.f32 %v3968_v53, %v12948_v43 }
 0x5c8   : > { %4259 = vrot.lane.b32.xlu0 %v12999_v60, %s9021_s15  ;;  %4163 = vrot.lane.b32.xlu1 %v12999_v60, %s9020_s12 }
 0x5c9   : > { %v3974_v32 = vpop.f32.mrb[180].mxu1 }
 0x5ca   : > { %v13010_v17 = vpop.f32.mrb[181].mxu1  ;;  %v13032_v58 = vadd.f32 %v3974_v32, %v12948_v43 }
 0x5cc   : > { %4165 = vrot.lane.b32.xlu0 %v13008_v13, %s9020_s12  ;;  %4355 = vrot.lane.b32.xlu1 %v12999_v60, %s9019_s11 }
 0x5cd   : > { %v3980_v25 = vpop.f32.mrb[182].mxu1 }
 0x5ce   : > { %v13016_v37 = vpop.f32.mrb[183].mxu1  ;;  %v13047_v5 = vadd.f32 %v3980_v25, %v12948_v43 }
 0x5d0   : > { %4357 = vrot.lane.b32.xlu0 %v13008_v13, %s9019_s11  ;;  %4261 = vrot.lane.b32.xlu1 %v13008_v13, %s9021_s15 }
 0x5d1   : > { %v3986_v18 = vpop.f32.mrb[184].mxu1 }
 0x5d2   : > { %v13025_v8 = vpop.f32.mrb[185].mxu1  ;;  %v13056_v19 = vadd.f32 %v3986_v18, %v12948_v43 }
 0x5d4   : > { %4263 = vrot.lane.b32.xlu0 %v13023_v51, %s9021_s15  ;;  %4167 = vrot.lane.b32.xlu1 %v13023_v51, %s9020_s12 }
 0x5d5   : > { %v3992_v62 = vpop.f32.mrb[186].mxu1 }
 0x5d6   : > { %v13034_v12 = vpop.f32.mrb[187].mxu1  ;;  %v13071_v42 = vadd.f32 %v3992_v62, %v12948_v43 }
 0x5d8   : > { %4169 = vrot.lane.b32.xlu0 %v13032_v58, %s9020_s12  ;;  %4359 = vrot.lane.b32.xlu1 %v13023_v51, %s9019_s11 }
 0x5d9   : > { %v3998_v23 = vpop.f32.mrb[188].mxu1 }
 0x5da   : > { %v13040_v15 = vpop.f32.mrb[189].mxu1  ;;  %v13080_v21 = vadd.f32 %v3998_v23, %v12948_v43 }
 0x5dc   : > { %4361 = vrot.lane.b32.xlu0 %v13032_v58, %s9019_s11  ;;  %4265 = vrot.lane.b32.xlu1 %v13032_v58, %s9021_s15 }
 0x5dd   : > { %v4004_v34 = vpop.f32.mrb[190].mxu1 }
 0x5de   : > { %v13049_v24 = vpop.f32.mrb[191].mxu1  ;;  %v13095_v50 = vadd.f32 %v4004_v34, %v12948_v43 }
 0x5e0   : > { %4267 = vrot.lane.b32.xlu0 %v13047_v5, %s9021_s15  ;;  %4171 = vrot.lane.b32.xlu1 %v13047_v5, %s9020_s12 }
 0x5e1   : > { %v4010_v44 = vpop.f32.mrb[192].mxu1 }
 0x5e2   : > { %v13058_v36 = vpop.f32.mrb[193].mxu1  ;;  %v13104_v53 = vadd.f32 %v4010_v44, %v12948_v43 }
 0x5e4   : > { %4173 = vrot.lane.b32.xlu0 %v13056_v19, %s9020_s12  ;;  %4363 = vrot.lane.b32.xlu1 %v13047_v5, %s9019_s11 }
 0x5e5   : > { %v4016_v2 = vpop.f32.mrb[194].mxu1 }
 0x5e6   : > { %v13064_v55 = vpop.f32.mrb[195].mxu1  ;;  %v13119_v23 = vadd.f32 %v4016_v2, %v12948_v43 }
 0x5e8   : > { %4365 = vrot.lane.b32.xlu0 %v13056_v19, %s9019_s11  ;;  %4269 = vrot.lane.b32.xlu1 %v13056_v19, %s9021_s15 }
 0x5e9   : > { %v4022_v38 = vpop.f32.mrb[196].mxu1 }
 0x5ea   : > { %v13073_v40 = vpop.f32.mrb[197].mxu1  ;;  %v13130_v35 = vadd.f32 %v4022_v38, %v12948_v43 }
 0x5ec   : > { %4271 = vrot.lane.b32.xlu0 %v13071_v42, %s9021_s15  ;;  %4175 = vrot.lane.b32.xlu1 %v13071_v42, %s9020_s12 }
 0x5ed   : > { %v4028_v26 = vpop.f32.mrb[198].mxu1 }
 0x5ee   : > { %v13082_v31 = vpop.f32.mrb[199].mxu1  ;;  %v13149_v52 = vadd.f32 %v4028_v26, %v12948_v43 }
 0x5ef   : > { %15258 = vst [vmem:[#allocation148_spill] sm:$0xff] %v13082_v31 }
 0x5f0   : > { %4177 = vrot.lane.b32.xlu0 %v13080_v21, %s9020_s12  ;;  %4367 = vrot.lane.b32.xlu1 %v13071_v42, %s9019_s11 }
 0x5f1   : > { %v4034_v1 = vpop.f32.mrb[200].mxu1 }
 0x5f2   : > { %v13088_v56 = vpop.f32.mrb[201].mxu1  ;;  %v13160_v45 = vadd.f32 %v4034_v1, %v12948_v43 }
 0x5f3   : > { %15259 = vst [vmem:[#allocation149_spill] sm:$0xff] %v13088_v56 }
 0x5f4   : > { %4369 = vrot.lane.b32.xlu0 %v13080_v21, %s9019_s11  ;;  %4273 = vrot.lane.b32.xlu1 %v13080_v21, %s9021_s15 }
 0x5f5   : > { %v4040_v49 = vpop.f32.mrb[202].mxu1 }
 0x5f6   : > { %v13097_v0 = vpop.f32.mrb[203].mxu1  ;;  %v13179_v33 = vadd.f32 %v4040_v49, %v12948_v43 }
 0x5f7   : > { %15260 = vst [vmem:[#allocation93_spill] sm:$0xff] %v13097_v0 }
 0x5f8   : > { %4275 = vrot.lane.b32.xlu0 %v13095_v50, %s9021_s15  ;;  %4179 = vrot.lane.b32.xlu1 %v13095_v50, %s9020_s12 }
 0x5f9   : > { %v4046_v63 = vpop.f32.mrb[204].mxu1 }
 0x5fa   : > { %v13106_v32 = vpop.f32.mrb[205].mxu1 }
 0x5fb   : > { %15261 = vst [vmem:[#allocation150_spill] sm:$0xff] %v13106_v32 }
 0x5fc   : > { %4181 = vrot.lane.b32.xlu0 %v13104_v53, %s9020_s12  ;;  %4371 = vrot.lane.b32.xlu1 %v13095_v50, %s9019_s11 }
 0x5fd   : > { %v4052_v25 = vpop.f32.mrb[206].mxu1 }
 0x5fe   : > { %v13112_v18 = vpop.f32.mrb[207].mxu1 }
 0x5ff   : > { %15262 = vst [vmem:[#allocation151_spill] sm:$0xff] %v13112_v18 }
 0x600   : > { %4373 = vrot.lane.b32.xlu0 %v13104_v53, %s9019_s11  ;;  %4277 = vrot.lane.b32.xlu1 %v13104_v53, %s9021_s15 }
 0x601   : > { %v4058_v62 = vpop.f32.mrb[208].mxu1 }
 0x602   : > { %v13121_v34 = vpop.f32.mrb[209].mxu1 }
 0x603   : > { %15263 = vst [vmem:[#allocation152_spill] sm:$0xff] %v13121_v34 }
 0x604   : > { %4279 = vrot.lane.b32.xlu0 %v13119_v23, %s9021_s15  ;;  %4183 = vrot.lane.b32.xlu1 %v13119_v23, %s9020_s12 }
 0x605   : > { %v13127_v44 = vpop.f32.mrb[210].mxu1 }
 0x606   : > { %v13132_v11 = vpop.f32.mrb[211].mxu1 }
 0x607   : > { %15264 = vst [vmem:[#allocation153_spill] sm:$0xff] %v13132_v11 }
 0x608   : > { %4185 = vrot.lane.b32.xlu0 %v13130_v35, %s9020_s12  ;;  %4375 = vrot.lane.b32.xlu1 %v13119_v23, %s9019_s11 }
 0x609   : > { %v13138_v2 = vpop.f32.mrb[212].mxu1 }
 0x60a   : > { %v13140_v9 = vpop.f32.mrb[213].mxu1 }
 0x60b   : > { %15265 = vst [vmem:[#allocation154_spill] sm:$0xff] %v13140_v9 }
 0x60c   : > { %4377 = vrot.lane.b32.xlu0 %v13130_v35, %s9019_s11  ;;  %4281 = vrot.lane.b32.xlu1 %v13130_v35, %s9021_s15 }
 0x60d   : > { %v13146_v38 = vpop.f32.mrb[214].mxu1 }
 0x60e   : > { %v13151_v47 = vpop.f32.mrb[215].mxu1 }
 0x60f   : > { %15266 = vst [vmem:[#allocation155_spill] sm:$0xff] %v13151_v47  ;;  %v13190_v47 = vadd.f32 %v4046_v63, %v12948_v43 }
 0x610   : > { %4283 = vrot.lane.b32.xlu0 %v13149_v52, %s9021_s15  ;;  %4187 = vrot.lane.b32.xlu1 %v13149_v52, %s9020_s12 }
 0x611   : > { %v13157_v7 = vpop.f32.mrb[216].mxu1 }
 0x612   : > { %v13162_v10 = vpop.f32.mrb[217].mxu1 }
 0x613   : > { %15267 = vst [vmem:[#allocation156_spill] sm:$0xff] %v13162_v10 }
 0x614   : > { %4189 = vrot.lane.b32.xlu0 %v13160_v45, %s9020_s12  ;;  %4379 = vrot.lane.b32.xlu1 %v13149_v52, %s9019_s11 }
 0x615   : > { %v13168_v26 = vpop.f32.mrb[218].mxu1 }
 0x616   : > { %v13170_v48 = vpop.f32.mrb[219].mxu1 }
 0x617   : > { %15268 = vst [vmem:[#allocation157_spill] sm:$0xff] %v13170_v48 }
 0x618   : > { %4381 = vrot.lane.b32.xlu0 %v13160_v45, %s9019_s11  ;;  %4285 = vrot.lane.b32.xlu1 %v13160_v45, %s9021_s15 }
 0x619   : > { %v13176_v1 = vpop.f32.mrb[220].mxu1 }
 0x61a   : > { %v13181_v10 = vpop.f32.mrb[221].mxu1 }
 0x61b   : > { %15269 = vst [vmem:[#allocation158_spill] sm:$0xff] %v13181_v10 }
 0x61c   : > { %4287 = vrot.lane.b32.xlu0 %v13179_v33, %s9021_s15  ;;  %4191 = vrot.lane.b32.xlu1 %v13179_v33, %s9020_s12 }
 0x61d   : > { %v13187_v48 = vpop.f32.mrb[222].mxu1 }
 0x61e   : > { %v13192_v9 = vpop.f32.mrb[223].mxu1 }
 0x61f   : > { %15270 = vst [vmem:[#allocation159_spill] sm:$0xff] %v13192_v9  ;;  %v13210_v9 = vadd.f32 %v4052_v25, %v12948_v43 }
 0x620   : > { %4193 = vrot.lane.b32.xlu0 %v13190_v47, %s9020_s12  ;;  %4383 = vrot.lane.b32.xlu1 %v13179_v33, %s9019_s11 }
 0x621   : > { %v13198_v49 = vpop.f32.mrb[224].mxu1 }
 0x622   : > { %v13200_v10 = vpop.f32.mrb[225].mxu1  ;;  %v4252_v11 = vpop.permute.xlu0 %4251 }
 0x623   : > { %15271 = vst [vmem:[#allocation160_spill] sm:$0xff] %v13200_v10  ;;  %v4156_v34 = vpop.permute.xlu1 %4155 }
 0x624   : > { %v7871_v18 = vpack.c.bf16 %v4156_v34, %v12951_v14  ;;  %4385 = vrot.lane.b32.xlu0 %v13190_v47, %s9019_s11  ;;  %4289 = vrot.lane.b32.xlu1 %v13190_v47, %s9021_s15  ;;  %v13222_v34 = vadd.f32 %v4058_v62, %v12948_v43 }
 0x625   : > { %v13207_v63 = vpop.f32.mrb[226].mxu1 }
 0x626   : > { %7872 = vmatpush1.bf16.msra.mxu1 %v7871_v18  ;;  %v13212_v32 = vpop.f32.mrb[227].mxu1  ;;  %v4158_v0 = vpop.permute.xlu0 %4157 }
 0x627   : > { %15272 = vst [vmem:[#allocation161_spill] sm:$0xff] %v13212_v32  ;;  %v4348_v10 = vpop.permute.xlu1 %4347  ;;  %7873 = vmatprep.subr.bf16.mxu1 %v14740_v59 }
 0x628   : > { %v7874_v56 = vpack.c.bf16 %v4348_v10, %v4252_v11  ;;  %4291 = vrot.lane.b32.xlu0 %v13210_v9, %s9021_s15  ;;  %4195 = vrot.lane.b32.xlu1 %v13210_v9, %s9020_s12  ;;  %v7877_v10 = vpack.c.bf16 %v4158_v0, %v12960_v28  ;;  %v13239_v28 = vadd.f32 %v13127_v44, %v12948_v43 }
 0x629   : > { %v13219_v14 = vpop.f32.mrb[228].mxu1 }
 0x62a   : > { %7875 = vmatpush1.bf16.msra.mxu1 %v7874_v56  ;;  %v13224_v25 = vpop.f32.mrb[229].mxu1  ;;  %v4350_v18 = vpop.permute.xlu0 %4349 }
 0x62b   : > { %v4254_v32 = vpop.permute.xlu1 %4253  ;;  %7876 = vmatprep.subr.bf16.mxu1 %v14740_v59 }
 0x62c   : > { %4197 = vrot.lane.b32.xlu0 %v13222_v34, %s9020_s12  ;;  %4387 = vrot.lane.b32.xlu1 %v13210_v9, %s9019_s11  ;;  %v7880_v56 = vpack.c.bf16 %v4350_v18, %v4254_v32  ;;  %v13249_v32 = vadd.f32 %v13138_v2, %v12948_v43 }
 0x62e   : > { %7878 = vmatpush1.bf16.msra.mxu1 %v7877_v10  ;;  %v4256_v11 = vpop.permute.xlu0 %4255 }
 0x62f   : > { %v4160_v31 = vpop.permute.xlu1 %4159  ;;  %7879 = vmatprep.subr.bf16.mxu1 %v14740_v59 }
 0x630   : > { %4389 = vrot.lane.b32.xlu0 %v13222_v34, %s9019_s11  ;;  %4293 = vrot.lane.b32.xlu1 %v13222_v34, %s9021_s15  ;;  %v7883_v10 = vpack.c.bf16 %v4160_v31, %v12975_v27 }
 0x632   : > { %7881 = vmatpush1.bf16.msra.mxu1 %v7880_v56  ;;  %v4162_v0 = vpop.permute.xlu0 %4161 }
 0x633   : > { %v4352_v62 = vpop.permute.xlu1 %4351  ;;  %7882 = vmatprep.subr.bf16.mxu1 %v14740_v59  ;;  %v7889_v2 = vpack.c.bf16 %v4162_v0, %v12984_v39  ;;  %v13273_v39 = vadd.f32 %v13157_v7, %v12948_v43 }
 0x634   : > { %4295 = vrot.lane.b32.xlu0 %v13239_v28, %s9021_s15  ;;  %4199 = vrot.lane.b32.xlu1 %v13239_v28, %s9020_s12  ;;  %v7886_v56 = vpack.c.bf16 %v4352_v62, %v4256_v11  ;;  %v13264_v11 = vadd.f32 %v13146_v38, %v12948_v43 }
 0x636   : > { %7884 = vmatpush1.bf16.msra.mxu1 %v7883_v10  ;;  %v4354_v44 = vpop.permute.xlu0 %4353 }
 0x637   : > { %v4258_v18 = vpop.permute.xlu1 %4257  ;;  %7885 = vmatprep.subr.bf16.mxu1 %v14740_v59 }
 0x638   : > { %4201 = vrot.lane.b32.xlu0 %v13249_v32, %s9020_s12  ;;  %4391 = vrot.lane.b32.xlu1 %v13239_v28, %s9019_s11 }
 0x63a   : > { %7887 = vmatpush1.bf16.msra.mxu1 %v7886_v56  ;;  %v4260_v27 = vpop.permute.xlu0 %4259  ;;  %v7892_v56 = vpack.c.bf16 %v4354_v44, %v4258_v18 }
 0x63b   : > { %v4164_v31 = vpop.permute.xlu1 %4163  ;;  %7888 = vmatprep.subr.bf16.mxu1 %v14740_v59 }
 0x63c   : > { %4393 = vrot.lane.b32.xlu0 %v13249_v32, %s9019_s11  ;;  %4297 = vrot.lane.b32.xlu1 %v13249_v32, %s9021_s15 }
 0x63e   : > { %7890 = vmatpush1.bf16.msra.mxu1 %v7889_v2  ;;  %v4166_v62 = vpop.permute.xlu0 %4165  ;;  %v7895_v2 = vpack.c.bf16 %v4164_v31, %v12999_v60  ;;  %v13288_v60 = vadd.f32 %v13168_v26, %v12948_v43 }
 0x63f   : > { %v4356_v10 = vpop.permute.xlu1 %4355  ;;  %7891 = vmatprep.subr.bf16.mxu1 %v14740_v59  ;;  %v7901_v31 = vpack.c.bf16 %v4166_v62, %v13008_v13 }
 0x640   : > { %4299 = vrot.lane.b32.xlu0 %v13264_v11, %s9021_s15  ;;  %4203 = vrot.lane.b32.xlu1 %v13264_v11, %s9020_s12  ;;  %v7898_v18 = vpack.c.bf16 %v4356_v10, %v4260_v27  ;;  %v13298_v10 = vadd.f32 %v13176_v1, %v12948_v43 }
 0x642   : > { %7893 = vmatpush1.bf16.msra.mxu1 %v7892_v56  ;;  %v4358_v0 = vpop.permute.xlu0 %4357 }
 0x643   : > { %v4262_v38 = vpop.permute.xlu1 %4261  ;;  %7894 = vmatprep.subr.bf16.mxu1 %v14740_v59 }
 0x644   : > { %4205 = vrot.lane.b32.xlu0 %v13273_v39, %s9020_s12  ;;  %4395 = vrot.lane.b32.xlu1 %v13264_v11, %s9019_s11  ;;  %v7904_v26 = vpack.c.bf16 %v4358_v0, %v4262_v38  ;;  %v13313_v0 = vadd.f32 %v13187_v48, %v12948_v43 }
 0x646   : > { %7896 = vmatpush1.bf16.msra.mxu1 %v7895_v2  ;;  %v4264_v7 = vpop.permute.xlu0 %4263  ;;  %v13322_v2 = vadd.f32 %v13198_v49, %v12948_v43 }
 0x647   : > { %v4168_v44 = vpop.permute.xlu1 %4167  ;;  %7897 = vmatprep.subr.bf16.mxu1 %v14740_v59 }
 0x648   : > { %4397 = vrot.lane.b32.xlu0 %v13273_v39, %s9019_s11  ;;  %4301 = vrot.lane.b32.xlu1 %v13273_v39, %s9021_s15  ;;  %v7907_v62 = vpack.c.bf16 %v4168_v44, %v13023_v51 }
 0x64a   : > { %7899 = vmatpush1.bf16.msra.mxu1 %v7898_v18  ;;  %v4170_v56 = vpop.permute.xlu0 %4169 }
 0x64b   : > { %7900 = vmatprep.subr.bf16.mxu1 %v14740_v59  ;;  %v4360_v27 = vpop.permute.xlu1 %4359  ;;  %v7913_v48 = vpack.c.bf16 %v4170_v56, %v13032_v58  ;;  %v13337_v58 = vadd.f32 %v13207_v63, %v12948_v43  ;;  %v15273_v56 = vld [vmem:[#allocation191_spill] sm:$0xff]  ;;  %v15274_v63 = vld [vmem:[#allocation196_spill] sm:$0xff] }
 0x64c   : > { %4303 = vrot.lane.b32.xlu0 %v13288_v60, %s9021_s15  ;;  %4207 = vrot.lane.b32.xlu1 %v13288_v60, %s9020_s12  ;;  %v7910_v38 = vpack.c.bf16 %v4360_v27, %v4264_v7 }
 0x64e   : > { %7902 = vmatpush1.bf16.msra.mxu1 %v7901_v31  ;;  %v4362_v1 = vpop.permute.xlu0 %4361 }
 0x64f   : > { %7903 = vmatprep.subr.bf16.mxu1 %v14740_v59  ;;  %v4266_v13 = vpop.permute.xlu1 %4265 }
 0x650   : > { %4209 = vrot.lane.b32.xlu0 %v13298_v10, %s9020_s12  ;;  %4399 = vrot.lane.b32.xlu1 %v13288_v60, %s9019_s11  ;;  %v7916_v7 = vpack.c.bf16 %v4362_v1, %v4266_v13  ;;  %v15276_v1 = vld [vmem:[#allocation198_spill] sm:$0xff] }
 0x652   : > { %7905 = vmatpush1.bf16.msra.mxu1 %v7904_v26  ;;  %v4268_v44 = vpop.permute.xlu0 %4267  ;;  %v13348_v26 = vadd.f32 %v13219_v14, %v12948_v43 }
 0x653   : > { %7906 = vmatprep.subr.bf16.mxu1 %v14740_v59  ;;  %v4172_v51 = vpop.permute.xlu1 %4171 }
 0x654   : > { %4401 = vrot.lane.b32.xlu0 %v13298_v10, %s9019_s11  ;;  %4305 = vrot.lane.b32.xlu1 %v13298_v10, %s9021_s15  ;;  %v7919_v31 = vpack.c.bf16 %v4172_v51, %v13047_v5  ;;  %v15277_v51 = vld [vmem:[#allocation195_spill] sm:$0xff] }
 0x656   : > { %7908 = vmatpush1.bf16.msra.mxu1 %v7907_v62  ;;  %v4174_v49 = vpop.permute.xlu0 %4173  ;;  %v15275_v62 = vld [vmem:[#allocation193_spill] sm:$0xff] }
 0x657   : > { %7909 = vmatprep.subr.bf16.mxu1 %v14740_v59  ;;  %v4364_v18 = vpop.permute.xlu1 %4363  ;;  %v7925_v14 = vpack.c.bf16 %v4174_v49, %v13056_v19 }
 0x658   : > { %4307 = vrot.lane.b32.xlu0 %v13313_v0, %s9021_s15  ;;  %4211 = vrot.lane.b32.xlu1 %v13313_v0, %s9020_s12  ;;  %v7922_v5 = vpack.c.bf16 %v4364_v18, %v4268_v44  ;;  %v15278_v44 = vld [vmem:[#allocation200_spill] sm:$0xff] }
 0x65a   : > { %7911 = vmatpush1.bf16.msra.mxu1 %v7910_v38  ;;  %v4366_v13 = vpop.permute.xlu0 %4365 }
 0x65b   : > { %7912 = vmatprep.subr.bf16.mxu1 %v14740_v59  ;;  %v4270_v27 = vpop.permute.xlu1 %4269 }
 0x65c   : > { %4213 = vrot.lane.b32.xlu0 %v13322_v2, %s9020_s12  ;;  %4403 = vrot.lane.b32.xlu1 %v13313_v0, %s9019_s11 }
 0x65e   : > { %7914 = vmatpush1.bf16.msra.mxu1 %v7913_v48  ;;  %v4272_v38 = vpop.permute.xlu0 %4271  ;;  %v7928_v48 = vpack.c.bf16 %v4366_v13, %v4270_v27 }
 0x65f   : > { %7915 = vmatprep.subr.bf16.mxu1 %v14740_v59  ;;  %v4176_v43 = vpop.permute.xlu1 %4175 }
 0x660   : > { %4405 = vrot.lane.b32.xlu0 %v13322_v2, %s9019_s11  ;;  %4309 = vrot.lane.b32.xlu1 %v13322_v2, %s9021_s15  ;;  %v7931_v49 = vpack.c.bf16 %v4176_v43, %v13071_v42  ;;  %v15285_v43 = vld [vmem:[#allocation14_spill] sm:$0xff] }
 0x662   : > { %7917 = vmatpush1.bf16.msra.mxu1 %v7916_v7  ;;  %v15279_v7 = vld [vmem:[#allocation197_spill] sm:$0xff]  ;;  %v4178_v19 = vpop.permute.xlu0 %4177 }
 0x663   : > { %7918 = vmatprep.subr.bf16.mxu1 %v14740_v59  ;;  %v4368_v18 = vpop.permute.xlu1 %4367 }
 0x664   : > { %4311 = vrot.lane.b32.xlu0 %v13337_v58, %s9021_s15  ;;  %4215 = vrot.lane.b32.xlu1 %v13337_v58, %s9020_s12  ;;  %v7934_v27 = vpack.c.bf16 %v4368_v18, %v4272_v38  ;;  %v15288_v18 = vld [vmem:[#allocation19_spill] sm:$0xff] }
 0x665   : > { %4508 = vmatmul.mubr.f32.vlgmr.msra.gmra.mrb[230].mxu1 %v15273_v56  ;;  %v15281_v56 = vld [vmem:[#allocation10_spill] sm:$0xff] }
 0x666   : > { %4512 = vmatprep.mubr.f32.mxu1 %v15274_v63  ;;  %7920 = vmatpush1.bf16.msra.mxu1 %v7919_v31  ;;  %v15280_v31 = vld [vmem:[#allocation11_spill] sm:$0xff]  ;;  %v15282_v63 = vld [vmem:[#allocation13_spill] sm:$0xff]  ;;  %v4370_v13 = vpop.permute.xlu0 %4369 }
 0x667   : > { %7921 = vmatprep.subr.bf16.mxu1 %v14740_v59 }
 0x668   : > { %4217 = vrot.lane.b32.xlu0 %v13348_v26, %s9020_s12  ;;  %4407 = vrot.lane.b32.xlu1 %v13337_v58, %s9019_s11 }
 0x669   : > { %4513 = vmatmul.mubr.f32.gmra.mrb[232].mxu1 %v15275_v62  ;;  %v15283_v62 = vld [vmem:[#allocation12_spill] sm:$0xff] }
 0x66a   : > { %4517 = vmatprep.mubr.f32.mxu1 %v15276_v1  ;;  %7923 = vmatpush1.bf16.msra.mxu1 %v7922_v5  ;;  %v4274_v5 = vpop.permute.xlu1 %4273  ;;  %v15284_v1 = vld [vmem:[#allocation15_spill] sm:$0xff] }
 0x66b   : > { %7924 = vmatprep.subr.bf16.mxu1 %v14740_v59  ;;  %v7940_v38 = vpack.c.bf16 %v4370_v13, %v4274_v5  ;;  %v15291_v5 = vld [vmem:[#allocation71_spill] sm:$0xff] }
 0x66c   : > { %4409 = vrot.lane.b32.xlu0 %v13348_v26, %s9019_s11  ;;  %4313 = vrot.lane.b32.xlu1 %v13348_v26, %s9021_s15 }
 0x66d   : > { %4518 = vmatmul.mubr.f32.gmra.mrb[234].mxu1 %v15277_v51  ;;  %v15286_v51 = vld [vmem:[#allocation17_spill] sm:$0xff] }
 0x66e   : > { %4522 = vmatprep.mubr.f32.mxu1 %v15278_v44  ;;  %7926 = vmatpush1.bf16.msra.mxu1 %v7925_v14  ;;  %v7937_v14 = vpack.c.bf16 %v4178_v19, %v13080_v21  ;;  %v4180_v42 = vpop.permute.xlu1 %4179  ;;  %v4276_v44 = vpop.permute.xlu0 %4275  ;;  %v15289_v19 = vld [vmem:[#allocation164_spill] sm:$0xff] }
 0x66f   : > { %7927 = vmatprep.subr.bf16.mxu1 %v14740_v59  ;;  %v7943_v21 = vpack.c.bf16 %v4180_v42, %v13095_v50 }
 0x671   : > { %4523 = vmatmul.mubr.f32.gmra.mrb[236].mxu1 %v15279_v7 }
 0x672   : > { %4527 = vmatprep.mubr.f32.mxu1 %v15280_v31  ;;  %7929 = vmatpush1.bf16.msra.mxu1 %v7928_v48  ;;  %v15287_v48 = vld [vmem:[#allocation16_spill] sm:$0xff]  ;;  %v4372_v7 = vpop.permute.xlu1 %4371  ;;  %v4182_v31 = vpop.permute.xlu0 %4181 }
 0x673   : > { %7930 = vmatprep.subr.bf16.mxu1 %v14740_v59  ;;  %v7949_v50 = vpack.c.bf16 %v4182_v31, %v13104_v53  ;;  %v15299_v31 = vld [vmem:[#allocation29_spill] sm:$0xff] }
 0x675   : > { %4528 = vmatmul.mubr.f32.gmra.mrb[238].mxu1 %v15281_v56  ;;  %v7946_v56 = vpack.c.bf16 %v4372_v7, %v4276_v44  ;;  %v15296_v44 = vld [vmem:[#allocation75_spill] sm:$0xff] }
 0x676   : > { %4532 = vmatprep.mubr.f32.mxu1 %v15282_v63  ;;  %7932 = vmatpush1.bf16.msra.mxu1 %v7931_v49  ;;  %v15290_v49 = vld [vmem:[#allocation18_spill] sm:$0xff]  ;;  %v4278_v63 = vpop.permute.xlu1 %4277  ;;  %v4374_v13 = vpop.permute.xlu0 %4373 }
 0x677   : > { %7933 = vmatprep.subr.bf16.mxu1 %v14740_v59  ;;  %v7952_v42 = vpack.c.bf16 %v4374_v13, %v4278_v63  ;;  %v15301_v63 = vld [vmem:[#allocation81_spill] sm:$0xff]  ;;  %v15303_v13 = vld [vmem:[#allocation32_spill] sm:$0xff] }
 0x679   : > { %4533 = vmatmul.mubr.f32.gmra.mrb[240].mxu1 %v15283_v62  ;;  %v15293_v62 = vld [vmem:[#allocation73_spill] sm:$0xff] }
 0x67a   : > { %4537 = vmatprep.mubr.f32.mxu1 %v15284_v1  ;;  %7935 = vmatpush1.bf16.msra.mxu1 %v7934_v27  ;;  %v15292_v27 = vld [vmem:[#allocation20_spill] sm:$0xff]  ;;  %v15294_v1 = vld [vmem:[#allocation165_spill] sm:$0xff] }
 0x67b   : > { %7936 = vmatprep.subr.bf16.mxu1 %v14740_v59 }
 0x67d   : > { %4538 = vmatmul.mubr.f32.gmra.mrb[242].mxu1 %v15285_v43  ;;  %v4280_v43 = vpop.permute.xlu0 %4279 }
 0x67e   : > { %4542 = vmatprep.mubr.f32.mxu1 %v15286_v51  ;;  %7938 = vmatpush1.bf16.msra.mxu1 %v7937_v14  ;;  %v4184_v14 = vpop.permute.xlu1 %4183  ;;  %v15295_v51 = vld [vmem:[#allocation72_spill] sm:$0xff] }
 0x67f   : > { %7939 = vmatprep.subr.bf16.mxu1 %v14740_v59 }
 0x681   : > { %4543 = vmatmul.mubr.f32.gmra.mrb[244].mxu1 %v15287_v48  ;;  %v15297_v48 = vld [vmem:[#allocation74_spill] sm:$0xff]  ;;  %v4186_v7 = vpop.permute.xlu0 %4185 }
 0x682   : > { %4547 = vmatprep.mubr.f32.mxu1 %v15288_v18  ;;  %7941 = vmatpush1.bf16.msra.mxu1 %v7940_v38  ;;  %v7955_v38 = vpack.c.bf16 %v4184_v14, %v13119_v23  ;;  %v4376_v53 = vpop.permute.xlu1 %4375  ;;  %v15298_v18 = vld [vmem:[#allocation77_spill] sm:$0xff]  ;;  %v15308_v14 = vld [vmem:[#allocation39_spill] sm:$0xff] }
 0x683   : > { %7942 = vmatprep.subr.bf16.mxu1 %v14740_v59 }
 0x685   : > { %4548 = vmatmul.mubr.f32.gmra.mrb[246].mxu1 %v15289_v19  ;;  %v15300_v19 = vld [vmem:[#allocation79_spill] sm:$0xff]  ;;  %v4378_v23 = vpop.permute.xlu0 %4377 }
 0x686   : > { %4552 = vmatprep.mubr.f32.mxu1 %v15290_v49  ;;  %7944 = vmatpush1.bf16.msra.mxu1 %v7943_v21  ;;  %v7958_v21 = vpack.c.bf16 %v4376_v53, %v4280_v43  ;;  %v7961_v49 = vpack.c.bf16 %v4186_v7, %v13130_v35  ;;  %v15306_v35 = vld [vmem:[#allocation37_spill] sm:$0xff]  ;;  %v15314_v53 = vld [vmem:[#allocation42_spill] sm:$0xff] }
 0x687   : > { %7945 = vmatprep.subr.bf16.mxu1 %v14740_v59  ;;  %v15310_v43 = vld [vmem:[#allocation41_spill] sm:$0xff] }
 0x688   : > { %v15317_v7 = vld [vmem:[#allocation49_spill] sm:$0xff] }
 0x689   : > { %4553 = vmatmul.mubr.f32.gmra.mrb[248].mxu1 %v15291_v5  ;;  %v15302_v5 = vld [vmem:[#allocation30_spill] sm:$0xff] }
 0x68a   : > { %4557 = vmatprep.mubr.f32.mxu1 %v15292_v27  ;;  %7947 = vmatpush1.bf16.msra.mxu1 %v7946_v56  ;;  %v4282_v56 = vpop.permute.xlu1 %4281 }
 0x68b   : > { %7948 = vmatprep.subr.bf16.mxu1 %v14740_v59  ;;  %v7964_v27 = vpack.c.bf16 %v4378_v23, %v4282_v56  ;;  %v15322_v23 = vld [vmem:[#allocation101_spill] sm:$0xff]  ;;  %v15323_v56 = vld [vmem:[#allocation55_spill] sm:$0xff] }
 0x68d   : > { %4558 = vmatmul.mubr.f32.gmra.mrb[250].mxu1 %v15293_v62  ;;  %v15305_v62 = vld [vmem:[#allocation177_spill] sm:$0xff] }
 0x68e   : > { %4562 = vmatprep.mubr.f32.mxu1 %v15294_v1  ;;  %7950 = vmatpush1.bf16.msra.mxu1 %v7949_v50  ;;  %v15304_v50 = vld [vmem:[#allocation35_spill] sm:$0xff]  ;;  %v15307_v1 = vld [vmem:[#allocation36_spill] sm:$0xff] }
 0x68f   : > { %7951 = vmatprep.subr.bf16.mxu1 %v14740_v59 }
 0x691   : > { %4563 = vmatmul.mubr.f32.gmra.mrb[252].mxu1 %v15295_v51  ;;  %v15311_v51 = vld [vmem:[#allocation40_spill] sm:$0xff] }
 0x692   : > { %4567 = vmatprep.mubr.f32.mxu1 %v15296_v44  ;;  %7953 = vmatpush1.bf16.msra.mxu1 %v7952_v42  ;;  %v15309_v42 = vld [vmem:[#allocation179_spill] sm:$0xff] }
 0x693   : > { %7954 = vmatprep.subr.bf16.mxu1 %v14740_v59  ;;  %v15312_v44 = vld [vmem:[#allocation43_spill] sm:$0xff] }
 0x695   : > { %4568 = vmatmul.mubr.f32.gmra.mrb[254].mxu1 %v15297_v48  ;;  %v15315_v48 = vld [vmem:[#allocation44_spill] sm:$0xff] }
 0x696   : > { %4572 = vmatprep.mubr.f32.mxu1 %v15298_v18  ;;  %7956 = vmatpush1.bf16.msra.mxu1 %v7955_v38  ;;  %v15313_v38 = vld [vmem:[#allocation183_spill] sm:$0xff] }
 0x697   : > { %7957 = vmatprep.subr.bf16.mxu1 %v14740_v59  ;;  %v15316_v18 = vld [vmem:[#allocation47_spill] sm:$0xff] }
 0x699   : > { %4573 = vmatmul.mubr.f32.gmra.mrb[0].mxu1 %v15299_v31  ;;  %v15319_v31 = vld [vmem:[#allocation51_spill] sm:$0xff] }
 0x69a   : > { %4577 = vmatprep.mubr.f32.mxu1 %v15300_v19  ;;  %7959 = vmatpush1.bf16.msra.mxu1 %v7958_v21  ;;  %v15318_v21 = vld [vmem:[#allocation97_spill] sm:$0xff]  ;;  %v15320_v19 = vld [vmem:[#allocation99_spill] sm:$0xff] }
 0x69b   : > { %7960 = vmatprep.subr.bf16.mxu1 %v14740_v59 }
 0x69d   : > { %4578 = vmatmul.mubr.f32.gmra.mrb[2].mxu1 %v15301_v63  ;;  %v15324_v63 = vld [vmem:[#allocation103_spill] sm:$0xff] }
 0x69e   : > { %4582 = vmatprep.mubr.f32.mxu1 %v15302_v5  ;;  %7962 = vmatpush1.bf16.msra.mxu1 %v7961_v49  ;;  %v15321_v49 = vld [vmem:[#allocation53_spill] sm:$0xff] }
 0x69f   : > { %7963 = vmatprep.subr.bf16.mxu1 %v14740_v59  ;;  %v15325_v5 = vld [vmem:[#allocation57_spill] sm:$0xff] }
 0x6a1   : > { %4583 = vmatmul.mubr.f32.gmra.mrb[4].mxu1 %v15303_v13  ;;  %v4188_v13 = vpop.permute.xlu1 %4187 }
 0x6a2   : > { %4587 = vmatprep.mubr.f32.mxu1 %v15304_v50  ;;  %7965 = vmatpush1.bf16.msra.mxu1 %v7964_v27  ;;  %v15328_v27 = vld [vmem:[#allocation107_spill] sm:$0xff]  ;;  %v15329_v50 = vld [vmem:[#allocation61_spill] sm:$0xff] }
 0x6a3   : > { %7966 = vmatprep.subr.bf16.mxu1 %v14740_v59 }
 0x6a5   : > { %4588 = vmatmul.mubr.f32.gmra.mrb[6].mxu1 %v15305_v62  ;;  %v15330_v62 = vld [vmem:[#allocation109_spill] sm:$0xff] }
 0x6a6   : > { %4592 = vmatprep.mubr.f32.mxu1 %v15306_v35  ;;  %v4284_v35 = vpop.permute.xlu0 %4283 }
 0x6a9   : > { %4593 = vmatmul.mubr.f32.gmra.mrb[8].mxu1 %v15307_v1  ;;  %v4380_v1 = vpop.permute.xlu1 %4379 }
 0x6aa   : > { %4597 = vmatprep.mubr.f32.mxu1 %v15308_v14  ;;  %v4190_v14 = vpop.permute.xlu0 %4189 }
 0x6ad   : > { %4598 = vmatmul.mubr.f32.gmra.mrb[10].mxu1 %v15309_v42  ;;  %v15331_v42 = vld [vmem:[#allocation86_spill] sm:$0xff] }
 0x6ae   : > { %4602 = vmatprep.mubr.f32.mxu1 %v15310_v43  ;;  %v7967_v43 = vpack.c.bf16 %v4188_v13, %v13149_v52  ;;  %v7973_v52 = vpack.c.bf16 %v4190_v14, %v13160_v45  ;;  %v15342_v13 = vld [vmem:[#allocation217_spill] sm:$0xff] }
 0x6b1   : > { %4603 = vmatmul.mubr.f32.gmra.mrb[12].mxu1 %v15311_v51  ;;  %v4286_v51 = vpop.permute.xlu1 %4285 }
 0x6b2   : > { %4607 = vmatprep.mubr.f32.mxu1 %v15312_v44  ;;  %v15332_v44 = vld [vmem:[#allocation207_spill] sm:$0xff] }
 0x6b5   : > { %4608 = vmatmul.mubr.f32.gmra.mrb[14].mxu1 %v15313_v38  ;;  %v15333_v38 = vld [vmem:[#allocation208_spill] sm:$0xff] }
 0x6b6   : > { %4612 = vmatprep.mubr.f32.mxu1 %v15314_v53  ;;  %v4382_v53 = vpop.permute.xlu0 %4381 }
 0x6b9   : > { %4613 = vmatmul.mubr.f32.gmra.mrb[16].mxu1 %v15315_v48  ;;  %v15334_v48 = vld [vmem:[#allocation209_spill] sm:$0xff] }
 0x6ba   : > { %4617 = vmatprep.mubr.f32.mxu1 %v15316_v18  ;;  %v4288_v18 = vpop.permute.xlu0 %4287 }
 0x6bd   : > { %4618 = vmatmul.mubr.f32.gmra.mrb[18].mxu1 %v11884_v41  ;;  %v15326_v41 = vld [vmem:[#allocation105_spill] sm:$0xff] }
 0x6be   : > { %4622 = vmatprep.mubr.f32.mxu1 %v11889_v46  ;;  %v15327_v46 = vld [vmem:[#allocation59_spill] sm:$0xff] }
 0x6c1   : > { %4623 = vmatmul.mubr.f32.gmra.mrb[20].mxu1 %v15317_v7  ;;  %v15336_v7 = vld [vmem:[#allocation211_spill] sm:$0xff] }
 0x6c2   : > { %4627 = vmatprep.mubr.f32.mxu1 %v15318_v21  ;;  %v15337_v21 = vld [vmem:[#allocation212_spill] sm:$0xff] }
 0x6c5   : > { %4628 = vmatmul.mubr.f32.gmra.mrb[22].mxu1 %v15319_v31  ;;  %v7976_v31 = vpack.c.bf16 %v4382_v53, %v4286_v51  ;;  %v15347_v51 = vld [vmem:[#allocation222_spill] sm:$0xff]  ;;  %v15348_v53 = vld [vmem:[#allocation223_spill] sm:$0xff] }
 0x6c6   : > { %4632 = vmatprep.mubr.f32.mxu1 %v15320_v19 }
 0x6c9   : > { %4633 = vmatmul.mubr.f32.gmra.mrb[24].mxu1 %v15321_v49  ;;  %v15338_v49 = vld [vmem:[#allocation213_spill] sm:$0xff] }
 0x6ca   : > { %4637 = vmatprep.mubr.f32.mxu1 %v15322_v23  ;;  %v15339_v23 = vld [vmem:[#allocation214_spill] sm:$0xff] }
 0x6cd   : > { %4638 = vmatmul.mubr.f32.gmra.mrb[26].mxu1 %v15323_v56  ;;  %v4194_v56 = vpop.permute.xlu0 %4193 }
 0x6ce   : > { %4642 = vmatprep.mubr.f32.mxu1 %v15324_v63  ;;  %v15340_v63 = vld [vmem:[#allocation215_spill] sm:$0xff] }
 0x6d1   : > { %4643 = vmatmul.mubr.f32.gmra.mrb[28].mxu1 %v15325_v5  ;;  %v15341_v5 = vld [vmem:[#allocation216_spill] sm:$0xff] }
 0x6d2   : > { %4647 = vmatprep.mubr.f32.mxu1 %v15326_v41 }
 0x6d5   : > { %4648 = vmatmul.mubr.f32.gmra.mrb[30].mxu1 %v15327_v46 }
 0x6d6   : > { %4652 = vmatprep.mubr.f32.mxu1 %v15328_v27  ;;  %v4386_v27 = vpop.permute.xlu0 %4385 }
 0x6d9   : > { %4653 = vmatmul.mubr.f32.gmra.mrb[32].mxu1 %v15329_v50  ;;  %v15343_v50 = vld [vmem:[#allocation218_spill] sm:$0xff] }
 0x6da   : > { %4657 = vmatprep.mubr.f32.mxu1 %v15330_v62  ;;  %v7985_v62 = vpack.c.bf16 %v4194_v56, %v13190_v47  ;;  %v4292_v14 = vpop.permute.xlu0 %4291  ;;  %v15355_v56 = vld [vmem:[#allocation230_spill] sm:$0xff] }
 0x6dd   : > { %4658 = vmatmul.mubr.f32.gmra.mrb[34].mxu1 %v12106_v54  ;;  %v7970_v54 = vpack.c.bf16 %v4380_v1, %v4284_v35  ;;  %v15344_v35 = vld [vmem:[#allocation219_spill] sm:$0xff]  ;;  %v15345_v1 = vld [vmem:[#allocation220_spill] sm:$0xff] }
 0x6de   : > { %4662 = vmatprep.mubr.f32.mxu1 %v12116_v6  ;;  %v15335_v6 = vld [vmem:[#allocation210_spill] sm:$0xff] }
 0x6e1   : > { %4663 = vmatmul.mubr.f32.gmra.mrb[36].mxu1 %v12131_v4  ;;  %v4192_v4 = vpop.permute.xlu1 %4191 }
 0x6e2   : > { %4732 = vmatprep.mubr.f32.mxu1 %v15331_v42  ;;  %v7979_v45 = vpack.c.bf16 %v4192_v4, %v13179_v33  ;;  %v15350_v4 = vld [vmem:[#allocation225_spill] sm:$0xff] }
 0x6e5   : > { %4733 = vmatmul.mubr.f32.vlgmr.msra.gmra.mrb[38].mxu1 %v15332_v44  ;;  %v4384_v19 = vpop.permute.xlu1 %4383 }
 0x6e6   : > { %7968 = vmatpush1.bf16.msra.mxu1 %v7967_v43  ;;  %4737 = vmatprep.mubr.f32.mxu1 %v15333_v38  ;;  %v7982_v46 = vpack.c.bf16 %v4384_v19, %v4288_v18  ;;  %v15346_v43 = vld [vmem:[#allocation221_spill] sm:$0xff]  ;;  %v4198_v38 = vpop.permute.xlu0 %4197 }
 0x6e7   : > { %7969 = vmatprep.subr.bf16.mxu1 %v14740_v59 }
 0x6e9   : > { %4738 = vmatmul.mubr.f32.gmra.mrb[40].mxu1 %v15334_v48  ;;  %v4290_v41 = vpop.permute.xlu1 %4289 }
 0x6ea   : > { %7971 = vmatpush1.bf16.msra.mxu1 %v7970_v54  ;;  %4742 = vmatprep.mubr.f32.mxu1 %v15335_v6  ;;  %v7988_v42 = vpack.c.bf16 %v4386_v27, %v4290_v41  ;;  %v15349_v54 = vld [vmem:[#allocation224_spill] sm:$0xff]  ;;  %v4390_v18 = vpop.permute.xlu0 %4389  ;;  %v15358_v27 = vld [vmem:[#allocation166_spill] sm:$0xff] }
 0x6eb   : > { %7972 = vmatprep.subr.bf16.mxu1 %v14740_v59 }
 0x6ed   : > { %4743 = vmatmul.mubr.f32.gmra.mrb[42].mxu1 %v15336_v7  ;;  %v4196_v33 = vpop.permute.xlu1 %4195  ;;  %v15352_v7 = vld [vmem:[#allocation227_spill] sm:$0xff] }
 0x6ee   : > { %7974 = vmatpush1.bf16.msra.mxu1 %v7973_v52  ;;  %4747 = vmatprep.mubr.f32.mxu1 %v15337_v21  ;;  %v7991_v47 = vpack.c.bf16 %v4196_v33, %v13210_v9  ;;  %v15351_v52 = vld [vmem:[#allocation226_spill] sm:$0xff]  ;;  %v7997_v9 = vpack.c.bf16 %v4198_v38, %v13222_v34  ;;  %v15353_v21 = vld [vmem:[#allocation228_spill] sm:$0xff] }
 0x6ef   : > { %7975 = vmatprep.subr.bf16.mxu1 %v14740_v59  ;;  %v15360_v33 = vld [vmem:[#allocation168_spill] sm:$0xff] }
 0x6f0   : > { %v15369_v38 = vld [vmem:[#allocation176_spill] sm:$0xff] }
 0x6f1   : > { %4748 = vmatmul.mubr.f32.gmra.mrb[44].mxu1 %v15338_v49  ;;  %v4388_v44 = vpop.permute.xlu1 %4387  ;;  %v4296_v49 = vpop.permute.xlu0 %4295 }
 0x6f2   : > { %7977 = vmatpush1.bf16.msra.mxu1 %v7976_v31  ;;  %4752 = vmatprep.mubr.f32.mxu1 %v15339_v23  ;;  %v7994_v48 = vpack.c.bf16 %v4388_v44, %v4292_v14  ;;  %v15354_v23 = vld [vmem:[#allocation229_spill] sm:$0xff]  ;;  %v15362_v14 = vld [vmem:[#allocation172_spill] sm:$0xff]  ;;  %v15367_v44 = vld [vmem:[#allocation174_spill] sm:$0xff] }
 0x6f3   : > { %7978 = vmatprep.subr.bf16.mxu1 %v14740_v59 }
 0x6f5   : > { %4753 = vmatmul.mubr.f32.gmra.mrb[46].mxu1 %v15340_v63  ;;  %v4294_v6 = vpop.permute.xlu1 %4293  ;;  %v15356_v63 = vld [vmem:[#allocation232_spill] sm:$0xff]  ;;  %v4202_v41 = vpop.permute.xlu0 %4201 }
 0x6f6   : > { %7980 = vmatpush1.bf16.msra.mxu1 %v7979_v45  ;;  %4757 = vmatprep.mubr.f32.mxu1 %v15341_v5  ;;  %v8000_v19 = vpack.c.bf16 %v4390_v18, %v4294_v6  ;;  %v15357_v5 = vld [vmem:[#allocation231_spill] sm:$0xff] }
 0x6f7   : > { %7981 = vmatprep.subr.bf16.mxu1 %v14740_v59 }
 0x6f9   : > { %4758 = vmatmul.mubr.f32.gmra.mrb[48].mxu1 %v15342_v13  ;;  %v4200_v31 = vpop.permute.xlu1 %4199  ;;  %v15359_v13 = vld [vmem:[#allocation169_spill] sm:$0xff] }
 0x6fa   : > { %7983 = vmatpush1.bf16.msra.mxu1 %v7982_v46  ;;  %4762 = vmatprep.mubr.f32.mxu1 %v15343_v50  ;;  %v8003_v45 = vpack.c.bf16 %v4200_v31, %v13239_v28  ;;  %v8009_v50 = vpack.c.bf16 %v4202_v41, %v13249_v32  ;;  %v4394_v28 = vpop.permute.xlu0 %4393  ;;  %v15365_v32 = vld [vmem:[#allocation175_spill] sm:$0xff]  ;;  %v15374_v31 = vld [vmem:[#allocation185_spill] sm:$0xff] }
 0x6fb   : > { %7984 = vmatprep.subr.bf16.mxu1 %v14740_v59 }
 0x6fd   : > { %4763 = vmatmul.mubr.f32.gmra.mrb[50].mxu1 %v15344_v35  ;;  %v4392_v34 = vpop.permute.xlu1 %4391  ;;  %v15361_v35 = vld [vmem:[#allocation173_spill] sm:$0xff] }
 0x6fe   : > { %7986 = vmatpush1.bf16.msra.mxu1 %v7985_v62  ;;  %4767 = vmatprep.mubr.f32.mxu1 %v15345_v1  ;;  %v8006_v46 = vpack.c.bf16 %v4392_v34, %v4296_v49  ;;  %v15376_v34 = vld [vmem:[#allocation188_spill] sm:$0xff] }
 0x6ff   : > { %7987 = vmatprep.subr.bf16.mxu1 %v14740_v59 }
 0x701   : > { %4768 = vmatmul.mubr.f32.gmra.mrb[52].mxu1 %v15346_v43  ;;  %v4298_v62 = vpop.permute.xlu1 %4297  ;;  %v15364_v43 = vld [vmem:[#allocation171_spill] sm:$0xff] }
 0x702   : > { %7989 = vmatpush1.bf16.msra.mxu1 %v7988_v42  ;;  %4772 = vmatprep.mubr.f32.mxu1 %v15347_v51  ;;  %v8012_v1 = vpack.c.bf16 %v4394_v28, %v4298_v62  ;;  %v15363_v42 = vld [vmem:[#allocation162_spill] sm:$0xff]  ;;  %v15366_v51 = vld [vmem:[#allocation180_spill] sm:$0xff] }
 0x703   : > { %7990 = vmatprep.subr.bf16.mxu1 %v14740_v59 }
 0x705   : > { %4773 = vmatmul.mubr.f32.gmra.mrb[54].mxu1 %v15348_v53  ;;  %v3752_v53 = vld [vmem:[%s14288_s5 + $0x8] sm:$0xff] }
 0x706   : > { %7992 = vmatpush1.bf16.msra.mxu1 %v7991_v47  ;;  %4777 = vmatprep.mubr.f32.mxu1 %v15349_v54  ;;  %v15368_v47 = vld [vmem:[#allocation178_spill] sm:$0xff]  ;;  %v15370_v54 = vld [vmem:[#allocation181_spill] sm:$0xff]  ;;  %v13512_v6 = vrot.slane %v3752_v53, %v15169_v30  ;;  %v15385_v53 = vld [vmem:[#allocation4_spill] sm:$0xff] }
 0x707   : > { %7993 = vmatprep.subr.bf16.mxu1 %v14740_v59 }
 0x708   : > { %v3935_v18 = vadd.f32 %v12953_v20, %v13512_v6  ;;  %v3941_v49 = vadd.f32 %v12962_v3, %v13512_v6  ;;  %v3947_v20 = vadd.f32 %v12968_v22, %v13512_v6  ;;  %v3953_v3 = vadd.f32 %v12977_v57, %v13512_v6 }
 0x709   : > { %4778 = vmatmul.mubr.f32.gmra.mrb[56].mxu1 %v15350_v4  ;;  %v15372_v4 = vld [vmem:[#allocation182_spill] sm:$0xff]  ;;  %v3959_v22 = vadd.f32 %v12986_v61, %v13512_v6  ;;  %v3965_v57 = vadd.f32 %v12992_v16, %v13512_v6  ;;  %v3971_v61 = vadd.f32 %v13001_v29, %v13512_v6  ;;  %v3977_v16 = vadd.f32 %v13010_v17, %v13512_v6  ;;  %v15391_v17 = vld [vmem:[#allocation203_spill] sm:$0xff] }
 0x70a   : > { %7995 = vmatpush1.bf16.msra.mxu1 %v7994_v48  ;;  %4782 = vmatprep.mubr.f32.mxu1 %v15351_v52  ;;  %v15371_v48 = vld [vmem:[#allocation184_spill] sm:$0xff]  ;;  %v15373_v52 = vld [vmem:[#allocation233_spill] sm:$0xff]  ;;  %v3983_v29 = vadd.f32 %v13016_v37, %v13512_v6 }
 0x70b   : > { %7996 = vmatprep.subr.bf16.mxu1 %v14740_v59  ;;  %v15393_v37 = vld [vmem:[#allocation205_spill] sm:$0xff] }
 0x70d   : > { %4783 = vmatmul.mubr.f32.gmra.mrb[58].mxu1 %v15352_v7 }
 0x70e   : > { %7998 = vmatpush1.bf16.msra.mxu1 %v7997_v9  ;;  %4787 = vmatprep.mubr.f32.mxu1 %v15353_v21 }
 0x70f   : > { %7999 = vmatprep.subr.bf16.mxu1 %v14740_v59 }
 0x711   : > { %4788 = vmatmul.mubr.f32.gmra.mrb[60].mxu1 %v15354_v23 }
 0x712   : > { %8001 = vmatpush1.bf16.msra.mxu1 %v8000_v19  ;;  %4792 = vmatprep.mubr.f32.mxu1 %v15355_v56  ;;  %v15375_v19 = vld [vmem:[#allocation234_spill] sm:$0xff] }
 0x713   : > { %8002 = vmatprep.subr.bf16.mxu1 %v14740_v59 }
 0x715   : > { %4793 = vmatmul.mubr.f32.gmra.mrb[62].mxu1 %v15356_v63  ;;  %v15377_v63 = vld [vmem:[#allocation190_spill] sm:$0xff] }
 0x716   : > { %8004 = vmatpush1.bf16.msra.mxu1 %v8003_v45  ;;  %4797 = vmatprep.mubr.f32.mxu1 %v15357_v5 }
 0x717   : > { %8005 = vmatprep.subr.bf16.mxu1 %v14740_v59 }
 0x719   : > { %4798 = vmatmul.mubr.f32.gmra.mrb[64].mxu1 %v15358_v27  ;;  %v15378_v27 = vld [vmem:[#allocation192_spill] sm:$0xff] }
 0x71a   : > { %8007 = vmatpush1.bf16.msra.mxu1 %v8006_v46  ;;  %4802 = vmatprep.mubr.f32.mxu1 %v15359_v13  ;;  %v15379_v13 = vld [vmem:[#allocation187_spill] sm:$0xff] }
 0x71b   : > { %8008 = vmatprep.subr.bf16.mxu1 %v14740_v59 }
 0x71d   : > { %4803 = vmatmul.mubr.f32.gmra.mrb[66].mxu1 %v15360_v33  ;;  %v15380_v33 = vld [vmem:[#allocation194_spill] sm:$0xff] }
 0x71e   : > { %8010 = vmatpush1.bf16.msra.mxu1 %v8009_v50  ;;  %4807 = vmatprep.mubr.f32.mxu1 %v15361_v35  ;;  %v15381_v35 = vld [vmem:[#allocation189_spill] sm:$0xff] }
 0x71f   : > { %8011 = vmatprep.subr.bf16.mxu1 %v14740_v59 }
 0x721   : > { %4808 = vmatmul.mubr.f32.gmra.mrb[68].mxu1 %v15362_v14 }
 0x722   : > { %8013 = vmatpush1.bf16.msra.mxu1 %v8012_v1  ;;  %4812 = vmatprep.mubr.f32.mxu1 %v15363_v42 }
 0x723   : > { %8014 = vmatprep.subr.bf16.mxu1 %v14740_v59 }
 0x725   : > { %4813 = vmatmul.mubr.f32.gmra.mrb[70].mxu1 %v15364_v43  ;;  %v15382_v43 = vld [vmem:[#allocation5_spill] sm:$0xff] }
 0x726   : > { %4817 = vmatprep.mubr.f32.mxu1 %v15365_v32  ;;  %v15383_v32 = vld [vmem:[#allocation2_spill] sm:$0xff] }
 0x729   : > { %4818 = vmatmul.mubr.f32.gmra.mrb[72].mxu1 %v15366_v51 }
 0x72a   : > { %4822 = vmatprep.mubr.f32.mxu1 %v15367_v44 }
 0x72d   : > { %4823 = vmatmul.mubr.f32.gmra.mrb[74].mxu1 %v15368_v47 }
 0x72e   : > { %4827 = vmatprep.mubr.f32.mxu1 %v15369_v38  ;;  %v15384_v38 = vld [vmem:[#allocation7_spill] sm:$0xff] }
 0x731   : > { %4828 = vmatmul.mubr.f32.gmra.mrb[76].mxu1 %v15370_v54 }
 0x732   : > { %4832 = vmatprep.mubr.f32.mxu1 %v15371_v48 }
 0x735   : > { %4833 = vmatmul.mubr.f32.gmra.mrb[78].mxu1 %v15372_v4 }
 0x736   : > { %4837 = vmatprep.mubr.f32.mxu1 %v15373_v52  ;;  %v15386_v52 = vld [vmem:[#allocation9_spill] sm:$0xff] }
 0x738   : > { %v4509_v9 = vpop.f32.mrb[230].mxu1 }
 0x739   : > { %v13518_v7 = vadd.f32 %v4509_v9, %v3935_v18  ;;  %v4511_v21 = vpop.f32.mrb[231].mxu1  ;;  %4838 = vmatmul.mubr.f32.gmra.mrb[80].mxu1 %v15374_v31  ;;  %v15387_v18 = vld [vmem:[#allocation6_spill] sm:$0xff] }
 0x73a   : > { %4842 = vmatprep.mubr.f32.mxu1 %v15375_v19  ;;  %v15388_v19 = vld [vmem:[#allocation199_spill] sm:$0xff] }
 0x73c   : > { %v4514_v23 = vpop.f32.mrb[232].mxu1 }
 0x73d   : > { %v13524_v56 = vadd.f32 %v4514_v23, %v3941_v49  ;;  %v4516_v45 = vpop.f32.mrb[233].mxu1  ;;  %4843 = vmatmul.mubr.f32.gmra.mrb[82].mxu1 %v15376_v34  ;;  %v15389_v49 = vld [vmem:[#allocation8_spill] sm:$0xff] }
 0x73e   : > { %4847 = vmatprep.mubr.f32.mxu1 %v15377_v63  ;;  %v4204_v45 = vpop.permute.xlu1 %4203 }
 0x740   : > { %v4519_v5 = vpop.f32.mrb[234].mxu1 }
 0x741   : > { %v13530_v41 = vadd.f32 %v4519_v5, %v3947_v20  ;;  %v4521_v46 = vpop.f32.mrb[235].mxu1  ;;  %4848 = vmatmul.mubr.f32.gmra.mrb[84].mxu1 %v15378_v27  ;;  %v15390_v20 = vld [vmem:[#allocation201_spill] sm:$0xff]  ;;  %v4300_v5 = vpop.permute.xlu0 %4299 }
 0x742   : > { %4852 = vmatprep.mubr.f32.mxu1 %v15379_v13  ;;  %v3989_v46 = vadd.f32 %v13025_v8, %v13512_v6  ;;  %v15395_v8 = vld [vmem:[#allocation67_spill] sm:$0xff] }
 0x744   : > { %v4524_v50 = vpop.f32.mrb[236].mxu1 }
 0x745   : > { %v13536_v28 = vadd.f32 %v4524_v50, %v3953_v3  ;;  %v4526_v62 = vpop.f32.mrb[237].mxu1  ;;  %4853 = vmatmul.mubr.f32.gmra.mrb[86].mxu1 %v15380_v33  ;;  %v15392_v50 = vld [vmem:[#allocation202_spill] sm:$0xff]  ;;  %v4396_v33 = vpop.permute.xlu1 %4395 }
 0x746   : > { %4857 = vmatprep.mubr.f32.mxu1 %v15381_v35  ;;  %v3995_v62 = vadd.f32 %v13034_v12, %v13512_v6  ;;  %v4206_v35 = vpop.permute.xlu0 %4205 }
 0x748   : > { %v4529_v1 = vpop.f32.mrb[238].mxu1 }
 0x749   : > { %v13542_v14 = vadd.f32 %v4529_v1, %v3959_v22  ;;  %v4531_v42 = vpop.f32.mrb[239].mxu1  ;;  %4858 = vmatmul.mubr.f32.gmra.mrb[88].mxu1 %v15382_v43  ;;  %v15394_v43 = vld [vmem:[#allocation204_spill] sm:$0xff] }
 0x74a   : > { %4862 = vmatprep.mubr.f32.mxu1 %v15383_v32  ;;  %v4001_v32 = vadd.f32 %v13040_v15, %v13512_v6 }
 0x74c   : > { %v4534_v51 = vpop.f32.mrb[240].mxu1 }
 0x74d   : > { %v13548_v44 = vadd.f32 %v4534_v51, %v3965_v57  ;;  %v4536_v47 = vpop.f32.mrb[241].mxu1  ;;  %4863 = vmatmul.mubr.f32.gmra.mrb[90].mxu1 %v15384_v38  ;;  %v8015_v57 = vpack.c.bf16 %v4204_v45, %v13264_v11 }
 0x74e   : > { %4867 = vmatprep.mubr.f32.mxu1 %v15385_v53  ;;  %v4302_v47 = vpop.permute.xlu1 %4301  ;;  %v15396_v53 = vld [vmem:[#allocation66_spill] sm:$0xff] }
 0x750   : > { %v4539_v54 = vpop.f32.mrb[242].mxu1 }
 0x751   : > { %v13554_v48 = vadd.f32 %v4539_v54, %v3971_v61  ;;  %v4541_v4 = vpop.f32.mrb[243].mxu1  ;;  %4868 = vmatmul.mubr.f32.gmra.mrb[92].mxu1 %v15386_v52  ;;  %v4398_v61 = vpop.permute.xlu0 %4397  ;;  %v15397_v54 = vld [vmem:[#allocation69_spill] sm:$0xff]  ;;  %v8018_v52 = vpack.c.bf16 %v4396_v33, %v4300_v5  ;;  %v4019_v5 = vadd.f32 %v13064_v55, %v13512_v6 }
 0x752   : > { %4872 = vmatprep.mubr.f32.mxu1 %v15387_v18  ;;  %v4007_v4 = vadd.f32 %v13049_v24, %v13512_v6  ;;  %v8021_v24 = vpack.c.bf16 %v4206_v35, %v13273_v39 }
 0x754   : > { %v4544_v9 = vpop.f32.mrb[244].mxu1 }
 0x755   : > { %v13560_v21 = vadd.f32 %v4544_v9, %v3977_v16  ;;  %v4546_v31 = vpop.f32.mrb[245].mxu1  ;;  %4873 = vmatmul.mubr.f32.gmra.mrb[94].mxu1 %v15388_v19  ;;  %v15398_v16 = vld [vmem:[#allocation21_spill] sm:$0xff]  ;;  %v15399_v9 = vld [vmem:[#allocation68_spill] sm:$0xff]  ;;  %v4208_v19 = vpop.permute.xlu1 %4207 }
 0x756   : > { %4877 = vmatprep.mubr.f32.mxu1 %v15389_v49  ;;  %v4013_v31 = vadd.f32 %v13058_v36, %v13512_v6  ;;  %v4304_v49 = vpop.permute.xlu0 %4303  ;;  %v8024_v36 = vpack.c.bf16 %v4398_v61, %v4302_v47  ;;  %v8027_v55 = vpack.c.bf16 %v4208_v19, %v13288_v60  ;;  %v15408_v61 = vld [vmem:[#allocation26_spill] sm:$0xff] }
 0x758   : > { %v4549_v23 = vpop.f32.mrb[246].mxu1 }
 0x759   : > { %v13566_v34 = vadd.f32 %v4549_v23, %v3983_v29  ;;  %v4551_v63 = vpop.f32.mrb[247].mxu1  ;;  %4878 = vmatmul.mubr.f32.gmra.mrb[96].mxu1 %v15390_v20  ;;  %v15401_v20 = vld [vmem:[#allocation70_spill] sm:$0xff] }
 0x75a   : > { %4882 = vmatprep.mubr.f32.mxu1 %v15391_v17  ;;  %v15400_v63 = vld [vmem:[#allocation23_spill] sm:$0xff] }
 0x75c   : > { %v4554_v27 = vpop.f32.mrb[248].mxu1 }
 0x75d   : > { %v13572_v13 = vadd.f32 %v4554_v27, %v3989_v46  ;;  %v4556_v3 = vpop.f32.mrb[249].mxu1  ;;  %4883 = vmatmul.mubr.f32.gmra.mrb[98].mxu1 %v15392_v50  ;;  %v4400_v46 = vpop.permute.xlu1 %4399 }
 0x75e   : > { %4887 = vmatprep.mubr.f32.mxu1 %v15393_v37  ;;  %v15402_v3 = vld [vmem:[#allocation22_spill] sm:$0xff]  ;;  %v4210_v50 = vpop.permute.xlu0 %4209  ;;  %v15403_v37 = vld [vmem:[#allocation25_spill] sm:$0xff] }
 0x760   : > { %v4559_v22 = vpop.f32.mrb[250].mxu1 }
 0x761   : > { %v13578_v1 = vadd.f32 %v4559_v22, %v3995_v62  ;;  %v4561_v42 = vpop.f32.mrb[251].mxu1  ;;  %4888 = vmatmul.mubr.f32.gmra.mrb[100].mxu1 %v15394_v43  ;;  %v4025_v62 = vadd.f32 %v13073_v40, %v13512_v6  ;;  %v15405_v43 = vld [vmem:[#allocation27_spill] sm:$0xff]  ;;  %v8030_v40 = vpack.c.bf16 %v4400_v46, %v4304_v49  ;;  %v15412_v49 = vld [vmem:[#allocation93_spill] sm:$0xff] }
 0x762   : > { %4957 = vmatprep.mubr.f32.mxu1 %v15395_v8  ;;  %v15404_v42 = vld [vmem:[#allocation24_spill] sm:$0xff] }
 0x763   : > { %v15406_v8 = vld [vmem:[#allocation148_spill] sm:$0xff] }
 0x764   : > { %v4564_v51 = vpop.f32.mrb[252].mxu1 }
 0x765   : > { %v13585_v38 = vadd.f32 %v4564_v51, %v4001_v32  ;;  %v4566_v12 = vpop.f32.mrb[253].mxu1  ;;  %4958 = vmatmul.mubr.f32.vlgmr.msra.gmra.mrb[38].mxu1 %v15396_v53  ;;  %v4031_v32 = vadd.f32 %v15406_v8, %v13512_v6  ;;  %v4402_v51 = vpop.permute.xlu0 %4401  ;;  %v15407_v53 = vld [vmem:[#allocation167_spill] sm:$0xff] }
 0x766   : > { %8016 = vmatpush1.bf16.msra.mxu1 %v8015_v57  ;;  %4962 = vmatprep.mubr.f32.mxu1 %v15397_v54  ;;  %v4306_v57 = vpop.permute.xlu1 %4305  ;;  %v15409_v54 = vld [vmem:[#allocation149_spill] sm:$0xff] }
 0x767   : > { %8017 = vmatprep.subr.bf16.mxu1 %v14740_v59 }
 0x768   : > { %v4569_v15 = vpop.f32.mrb[254].mxu1 }
 0x769   : > { %v13592_v18 = vadd.f32 %v4569_v15, %v4007_v4  ;;  %v4571_v11 = vpop.f32.mrb[255].mxu1  ;;  %4963 = vmatmul.mubr.f32.gmra.mrb[40].mxu1 %v15398_v16  ;;  %v4037_v4 = vadd.f32 %v15409_v54, %v13512_v6  ;;  %v4308_v19 = vpop.permute.xlu0 %4307 }
 0x76a   : > { %8019 = vmatpush1.bf16.msra.mxu1 %v8018_v52  ;;  %4967 = vmatprep.mubr.f32.mxu1 %v15399_v9  ;;  %v8033_v52 = vpack.c.bf16 %v4210_v50, %v13298_v10  ;;  %v4212_v11 = vpop.permute.xlu1 %4211 }
 0x76b   : > { %8020 = vmatprep.subr.bf16.mxu1 %v14740_v59 }
 0x76c   : > { %v4574_v29 = vpop.f32.mrb[0].mxu1 }
 0x76d   : > { %v13600_v23 = vadd.f32 %v4574_v29, %v4013_v31  ;;  %v4576_v45 = vpop.f32.mrb[1].mxu1  ;;  %4968 = vmatmul.mubr.f32.gmra.mrb[42].mxu1 %v15400_v63  ;;  %v15410_v31 = vld [vmem:[#allocation28_spill] sm:$0xff]  ;;  %v4043_v29 = vadd.f32 %v15412_v49, %v13512_v6  ;;  %v4214_v50 = vpop.permute.xlu0 %4213 }
 0x76e   : > { %8022 = vmatpush1.bf16.msra.mxu1 %v8021_v24  ;;  %4972 = vmatprep.mubr.f32.mxu1 %v15401_v20  ;;  %v15411_v24 = vld [vmem:[#allocation78_spill] sm:$0xff]  ;;  %v8036_v45 = vpack.c.bf16 %v4402_v51, %v4306_v57  ;;  %v15419_v51 = vld [vmem:[#allocation84_spill] sm:$0xff]  ;;  %v8045_v54 = vpack.c.bf16 %v4214_v50, %v13322_v2 }
 0x76f   : > { %8023 = vmatprep.subr.bf16.mxu1 %v14740_v59 }
 0x770   : > { %v4579_v17 = vpop.f32.mrb[2].mxu1 }
 0x771   : > { %v13607_v27 = vadd.f32 %v4579_v17, %v4019_v5  ;;  %v4581_v39 = vpop.f32.mrb[3].mxu1  ;;  %4973 = vmatmul.mubr.f32.gmra.mrb[44].mxu1 %v15402_v3  ;;  %v15413_v5 = vld [vmem:[#allocation33_spill] sm:$0xff]  ;;  %v15415_v17 = vld [vmem:[#allocation150_spill] sm:$0xff]  ;;  %v8039_v3 = vpack.c.bf16 %v4212_v11, %v13313_v0  ;;  %v15422_v11 = vld [vmem:[#allocation87_spill] sm:$0xff] }
 0x772   : > { %8025 = vmatpush1.bf16.msra.mxu1 %v8024_v36  ;;  %4977 = vmatprep.mubr.f32.mxu1 %v15403_v37  ;;  %v15414_v36 = vld [vmem:[#allocation83_spill] sm:$0xff]  ;;  %v4049_v46 = vadd.f32 %v15415_v17, %v13512_v6  ;;  %v4404_v39 = vpop.permute.xlu1 %4403 }
 0x773   : > { %8026 = vmatprep.subr.bf16.mxu1 %v14740_v59  ;;  %v8042_v8 = vpack.c.bf16 %v4404_v39, %v4308_v19 }
 0x774   : > { %v4584_v33 = vpop.f32.mrb[4].mxu1 }
 0x775   : > { %v13615_v35 = vadd.f32 %v4584_v33, %v4025_v62  ;;  %v4586_v22 = vpop.f32.mrb[5].mxu1  ;;  %4978 = vmatmul.mubr.f32.gmra.mrb[46].mxu1 %v15404_v42  ;;  %v15416_v33 = vld [vmem:[#allocation82_spill] sm:$0xff]  ;;  %v15418_v42 = vld [vmem:[#allocation151_spill] sm:$0xff] }
 0x776   : > { %8028 = vmatpush1.bf16.msra.mxu1 %v8027_v55  ;;  %4982 = vmatprep.mubr.f32.mxu1 %v15405_v43  ;;  %v15417_v22 = vld [vmem:[#allocation85_spill] sm:$0xff]  ;;  %v4055_v43 = vadd.f32 %v15418_v42, %v13512_v6  ;;  %v4310_v57 = vpop.permute.xlu1 %4309  ;;  %v15430_v42 = vld [vmem:[#allocation155_spill] sm:$0xff] }
 0x777   : > { %8029 = vmatprep.subr.bf16.mxu1 %v14740_v59 }
 0x778   : > { %v4589_v47 = vpop.f32.mrb[6].mxu1 }
 0x779   : > { %v13622_v12 = vadd.f32 %v4589_v47, %v4031_v32  ;;  %v4591_v60 = vpop.f32.mrb[7].mxu1  ;;  %4983 = vmatmul.mubr.f32.gmra.mrb[48].mxu1 %v15407_v53  ;;  %v4406_v47 = vpop.permute.xlu0 %4405  ;;  %v15421_v53 = vld [vmem:[#allocation152_spill] sm:$0xff] }
 0x77a   : > { %8031 = vmatpush1.bf16.msra.mxu1 %v8030_v40  ;;  %4987 = vmatprep.mubr.f32.mxu1 %v15408_v61  ;;  %v15420_v60 = vld [vmem:[#allocation88_spill] sm:$0xff]  ;;  %v4061_v61 = vadd.f32 %v15421_v53, %v13512_v6  ;;  %v8048_v49 = vpack.c.bf16 %v4406_v47, %v4310_v57 }
 0x77b   : > { %8032 = vmatprep.subr.bf16.mxu1 %v14740_v59  ;;  %v15433_v47 = vld [vmem:[#allocation156_spill] sm:$0xff] }
 0x77c   : > { %v4594_v15 = vpop.f32.mrb[8].mxu1 }
 0x77d   : > { %v13630_v16 = vadd.f32 %v4594_v15, %v4037_v4  ;;  %v4596_v9 = vpop.f32.mrb[9].mxu1  ;;  %4988 = vmatmul.mubr.f32.gmra.mrb[50].mxu1 %v15410_v31  ;;  %v15424_v31 = vld [vmem:[#allocation153_spill] sm:$0xff] }
 0x77e   : > { %8034 = vmatpush1.bf16.msra.mxu1 %v8033_v52  ;;  %4992 = vmatprep.mubr.f32.mxu1 %v15411_v24  ;;  %v15423_v9 = vld [vmem:[#allocation90_spill] sm:$0xff]  ;;  %v4067_v19 = vadd.f32 %v15424_v31, %v13512_v6  ;;  %v4216_v24 = vpop.permute.xlu1 %4215 }
 0x77f   : > { %8035 = vmatprep.subr.bf16.mxu1 %v14740_v59  ;;  %v15435_v31 = vld [vmem:[#allocation98_spill] sm:$0xff] }
 0x780   : > { %v4599_v63 = vpop.f32.mrb[10].mxu1 }
 0x781   : > { %v13637_v20 = vadd.f32 %v4599_v63, %v4043_v29  ;;  %v4601_v10 = vpop.f32.mrb[11].mxu1  ;;  %4993 = vmatmul.mubr.f32.gmra.mrb[52].mxu1 %v15413_v5  ;;  %v4312_v29 = vpop.permute.xlu0 %4311  ;;  %v15426_v5 = vld [vmem:[#allocation92_spill] sm:$0xff] }
 0x782   : > { %8037 = vmatpush1.bf16.msra.mxu1 %v8036_v45  ;;  %4997 = vmatprep.mubr.f32.mxu1 %v15414_v36  ;;  %v15425_v10 = vld [vmem:[#allocation89_spill] sm:$0xff]  ;;  %v15427_v36 = vld [vmem:[#allocation154_spill] sm:$0xff] }
 0x783   : > { %8038 = vmatprep.subr.bf16.mxu1 %v14740_v59  ;;  %v4073_v17 = vadd.f32 %v15427_v36, %v13512_v6 }
 0x784   : > { %v4604_v37 = vpop.f32.mrb[12].mxu1 }
 0x785   : > { %v13645_v62 = vadd.f32 %v4604_v37, %v4049_v46  ;;  %v4606_v55 = vpop.f32.mrb[13].mxu1  ;;  %4998 = vmatmul.mubr.f32.gmra.mrb[54].mxu1 %v15416_v33  ;;  %v8051_v46 = vpack.c.bf16 %v4216_v24, %v13337_v58  ;;  %v4218_v33 = vpop.permute.xlu0 %4217 }
 0x786   : > { %8040 = vmatpush1.bf16.msra.mxu1 %v8039_v3  ;;  %5002 = vmatprep.mubr.f32.mxu1 %v15417_v22  ;;  %v4408_v3 = vpop.permute.xlu1 %4407  ;;  %v15428_v55 = vld [vmem:[#allocation91_spill] sm:$0xff]  ;;  %v15429_v22 = vld [vmem:[#allocation94_spill] sm:$0xff]  ;;  %v8057_v53 = vpack.c.bf16 %v4218_v33, %v13348_v26 }
 0x787   : > { %8041 = vmatprep.subr.bf16.mxu1 %v14740_v59 }
 0x788   : > { %v4609_v32 = vpop.f32.mrb[14].mxu1 }
 0x789   : > { %v13652_v40 = vadd.f32 %v4609_v32, %v4055_v43  ;;  %v4611_v0 = vpop.f32.mrb[15].mxu1  ;;  %5003 = vmatmul.mubr.f32.gmra.mrb[56].mxu1 %v15419_v51  ;;  %v4079_v43 = vadd.f32 %v15430_v42, %v13512_v6  ;;  %v15432_v51 = vld [vmem:[#allocation96_spill] sm:$0xff] }
 0x78a   : > { %8043 = vmatpush1.bf16.msra.mxu1 %v8042_v8  ;;  %5007 = vmatprep.mubr.f32.mxu1 %v15420_v60  ;;  %v8054_v8 = vpack.c.bf16 %v4408_v3, %v4312_v29  ;;  %v15431_v0 = vld [vmem:[#allocation45_spill] sm:$0xff]  ;;  %v4085_v60 = vadd.f32 %v15433_v47, %v13512_v6  ;;  %v15440_v3 = vld [vmem:[#allocation100_spill] sm:$0xff] }
 0x78b   : > { %8044 = vmatprep.subr.bf16.mxu1 %v14740_v59 }
 0x78c   : > { %v4614_v4 = vpop.f32.mrb[16].mxu1 }
 0x78d   : > { %v13660_v52 = vadd.f32 %v4614_v4, %v4061_v61  ;;  %v4616_v15 = vpop.f32.mrb[17].mxu1  ;;  %5008 = vmatmul.mubr.f32.gmra.mrb[58].mxu1 %v15422_v11  ;;  %v4410_v61 = vpop.permute.xlu0 %4409 }
 0x78e   : > { %8046 = vmatpush1.bf16.msra.mxu1 %v8045_v54  ;;  %5012 = vmatprep.mubr.f32.mxu1 %v15423_v9  ;;  %v4314_v4 = vpop.permute.xlu1 %4313  ;;  %v15434_v9 = vld [vmem:[#allocation95_spill] sm:$0xff] }
 0x78f   : > { %8047 = vmatprep.subr.bf16.mxu1 %v14740_v59 }
 0x790   : > { %v4619_v45 = vpop.f32.mrb[18].mxu1 }
 0x791   : > { %v13667_v63 = vadd.f32 %v4619_v45, %v4067_v19  ;;  %v4621_v2 = vpop.f32.mrb[19].mxu1  ;;  %5013 = vmatmul.mubr.f32.gmra.mrb[60].mxu1 %v15425_v10  ;;  %v15436_v19 = vld [vmem:[#allocation157_spill] sm:$0xff]  ;;  %v15438_v10 = vld [vmem:[#allocation46_spill] sm:$0xff] }
 0x792   : > { %8049 = vmatpush1.bf16.msra.mxu1 %v8048_v49  ;;  %5017 = vmatprep.mubr.f32.mxu1 %v15426_v5  ;;  %v4091_v24 = vadd.f32 %v15436_v19, %v13512_v6  ;;  %v8060_v49 = vpack.c.bf16 %v4410_v61, %v4314_v4  ;;  %v15437_v2 = vld [vmem:[#allocation186_spill] sm:$0xff]  ;;  %v15448_v61 = vld [vmem:[#allocation161_spill] sm:$0xff] }
 0x793   : > { %8050 = vmatprep.subr.bf16.mxu1 %v14740_v59  ;;  %v15439_v5 = vld [vmem:[#allocation158_spill] sm:$0xff] }
 0x794   : > { %v4624_v39 = vpop.f32.mrb[20].mxu1  ;;  %v4097_v36 = vadd.f32 %v15439_v5, %v13512_v6  ;;  %v15450_v19 = vld [vmem:[#allocation54_spill] sm:$0xff] }
 0x795   : > { %v13675_v50 = vadd.f32 %v4624_v39, %v4073_v17  ;;  %v4626_v37 = vpop.f32.mrb[21].mxu1  ;;  %5018 = vmatmul.mubr.f32.gmra.mrb[62].mxu1 %v15428_v55  ;;  %v15453_v5 = vld [vmem:[#allocation110_spill] sm:$0xff] }
 0x796   : > { %8052 = vmatpush1.bf16.msra.mxu1 %v8051_v46  ;;  %5022 = vmatprep.mubr.f32.mxu1 %v15429_v22  ;;  %v15442_v37 = vld [vmem:[#allocation159_spill] sm:$0xff] }
 0x797   : > { %8053 = vmatprep.subr.bf16.mxu1 %v14740_v59  ;;  %v4103_v55 = vadd.f32 %v15442_v37, %v13512_v6  ;;  %v15461_v37 = vld [vmem:[#allocation65_spill] sm:$0xff] }
 0x798   : > { %v4629_v32 = vpop.f32.mrb[22].mxu1 }
 0x799   : > { %v13682_v57 = vadd.f32 %v4629_v32, %v4079_v43  ;;  %v4631_v58 = vpop.f32.mrb[23].mxu1  ;;  %5023 = vmatmul.mubr.f32.gmra.mrb[64].mxu1 %v15431_v0  ;;  %v15443_v43 = vld [vmem:[#allocation102_spill] sm:$0xff]  ;;  %v15445_v32 = vld [vmem:[#allocation160_spill] sm:$0xff] }
 0x79a   : > { %8055 = vmatpush1.bf16.msra.mxu1 %v8054_v8  ;;  %5027 = vmatprep.mubr.f32.mxu1 %v15432_v51  ;;  %v15444_v8 = vld [vmem:[#allocation50_spill] sm:$0xff]  ;;  %v4109_v58 = vadd.f32 %v15445_v32, %v13512_v6  ;;  %v15467_v32 = vld [vmem:[#allocation117_spill] sm:$0xff] }
 0x79b   : > { %8056 = vmatprep.subr.bf16.mxu1 %v14740_v59 }
 0x79c   : > { %v4634_v54 = vpop.f32.mrb[24].mxu1 }
 0x79d   : > { %v13690_v15 = vadd.f32 %v4634_v54, %v4085_v60  ;;  %v4636_v11 = vpop.f32.mrb[25].mxu1  ;;  %5028 = vmatmul.mubr.f32.gmra.mrb[66].mxu1 %v15434_v9  ;;  %v15446_v60 = vld [vmem:[#allocation104_spill] sm:$0xff]  ;;  %v4115_v54 = vadd.f32 %v15448_v61, %v13512_v6  ;;  %v15473_v61 = vld [vmem:[#allocation126_spill] sm:$0xff] }
 0x79e   : > { %8058 = vmatpush1.bf16.msra.mxu1 %v8057_v53  ;;  %5032 = vmatprep.mubr.f32.mxu1 %v15435_v31  ;;  %v15447_v53 = vld [vmem:[#allocation52_spill] sm:$0xff]  ;;  %v15449_v31 = vld [vmem:[#allocation106_spill] sm:$0xff] }
 0x79f   : > { %8059 = vmatprep.subr.bf16.mxu1 %v14740_v59  ;;  %v15441_v59 = vld [vmem:[#allocation48_spill] sm:$0xff] }
 0x7a0   : > { %v4639_v29 = vpop.f32.mrb[26].mxu1 }
 0x7a1   : > { %v13697_v45 = vadd.f32 %v4639_v29, %v4091_v24  ;;  %v4641_v26 = vpop.f32.mrb[27].mxu1  ;;  %5033 = vmatmul.mubr.f32.gmra.mrb[68].mxu1 %v15437_v2  ;;  %v4121_v24 = vadd.f32 %v13224_v25, %v13512_v6  ;;  %v15451_v2 = vld [vmem:[#allocation108_spill] sm:$0xff]  ;;  %v15459_v25 = vld [vmem:[#allocation114_spill] sm:$0xff] }
 0x7a2   : > { %8061 = vmatpush1.bf16.msra.mxu1 %v8060_v49  ;;  %5037 = vmatprep.mubr.f32.mxu1 %v15438_v10  ;;  %v15452_v10 = vld [vmem:[#allocation56_spill] sm:$0xff]  ;;  %v15460_v6 = vld [vmem:[#allocation62_spill] sm:$0xff] }
 0x7a4   : > { %v4644_v17 = vpop.f32.mrb[28].mxu1 }
 0x7a5   : > { %v13703_v46 = vadd.f32 %v4644_v17, %v4097_v36  ;;  %v4646_v39 = vpop.f32.mrb[29].mxu1  ;;  %5038 = vmatmul.mubr.f32.gmra.mrb[70].mxu1 %v15440_v3  ;;  %v15454_v36 = vld [vmem:[#allocation58_spill] sm:$0xff]  ;;  %v15455_v17 = vld [vmem:[#allocation112_spill] sm:$0xff]  ;;  %v15457_v3 = vld [vmem:[#allocation63_spill] sm:$0xff] }
 0x7a6   : > { %5042 = vmatprep.mubr.f32.mxu1 %v15441_v59  ;;  %v15456_v39 = vld [vmem:[#allocation60_spill] sm:$0xff]  ;;  %v15458_v59 = vld [vmem:[#allocation111_spill] sm:$0xff] }
 0x7a8   : > { %v4649_v33 = vpop.f32.mrb[30].mxu1 }
 0x7a9   : > { %v13709_v22 = vadd.f32 %v4649_v33, %v4103_v55  ;;  %v4651_v42 = vpop.f32.mrb[31].mxu1  ;;  %5043 = vmatmul.mubr.f32.gmra.mrb[72].mxu1 %v15443_v43  ;;  %v15462_v55 = vld [vmem:[#allocation113_spill] sm:$0xff]  ;;  %v15463_v33 = vld [vmem:[#allocation116_spill] sm:$0xff]  ;;  %v15465_v43 = vld [vmem:[#allocation115_spill] sm:$0xff] }
 0x7aa   : > { %5047 = vmatprep.mubr.f32.mxu1 %v15444_v8  ;;  %v15464_v42 = vld [vmem:[#allocation64_spill] sm:$0xff]  ;;  %v15466_v8 = vld [vmem:[#allocation118_spill] sm:$0xff] }
 0x7ac   : > { %v4654_v0 = vpop.f32.mrb[32].mxu1 }
 0x7ad   : > { %v13715_v51 = vadd.f32 %v4654_v0, %v4109_v58  ;;  %v4656_v47 = vpop.f32.mrb[33].mxu1  ;;  %5048 = vmatmul.mubr.f32.gmra.mrb[74].mxu1 %v15446_v60  ;;  %v15468_v58 = vld [vmem:[#allocation120_spill] sm:$0xff]  ;;  %v15469_v0 = vld [vmem:[#allocation119_spill] sm:$0xff]  ;;  %v15471_v60 = vld [vmem:[#allocation121_spill] sm:$0xff] }
 0x7ae   : > { %5052 = vmatprep.mubr.f32.mxu1 %v15447_v53  ;;  %v15470_v47 = vld [vmem:[#allocation122_spill] sm:$0xff]  ;;  %v15472_v53 = vld [vmem:[#allocation124_spill] sm:$0xff] }
 0x7b0   : > { %v4659_v4 = vpop.f32.mrb[34].mxu1 }
 0x7b1   : > { %v13721_v11 = vadd.f32 %v4659_v4, %v4115_v54  ;;  %v4661_v9 = vpop.f32.mrb[35].mxu1  ;;  %5053 = vmatmul.mubr.f32.gmra.mrb[76].mxu1 %v15449_v31  ;;  %v5380_v54 = vld [vmem:[%s14289_s6 + $0x28] sm:$0xf]  ;;  %v15475_v31 = vld [vmem:[#allocation128_spill] sm:$0xff] }
 0x7b2   : > { %5057 = vmatprep.mubr.f32.mxu1 %v15450_v19  ;;  %v15474_v4 = vld [vmem:[#allocation123_spill] sm:$0xff]  ;;  %7494 = vmatprep.subr.msk.mxu0 %vm2235_vm1, %v5380_v54  ;;  %v8979_v19 = vld [vmem:[%s9805_s28 + $0x10] sm:$0xff] }
 0x7b3   : > { %7495 = vmatpush3.msk.msra.mxu0 %vm2235_vm1, %v5380_v54  ;;  %v8978_v9 = vld [vmem:[%s9805_s28 + $0x8] sm:$0xff] }
 0x7b4   : > { %v4664_v49 = vpop.f32.mrb[36].mxu1  ;;  %7497 = vmatmul.mubr.msk.f32.vlgmr.msra.gmra.mrb[26].mxu0 %vm2138_vm2, %v8978_v9  ;;  %v15489_v54 = vld [vmem:[#allocation255_spill] sm:$0xff]  ;;  %v15490_v9 = vld [vmem:[#allocation256_spill] sm:$0xff] }
 0x7b5   : > { %v13727_v29 = vadd.f32 %v4664_v49, %v4121_v24  ;;  %v4666_v26 = vpop.f32.mrb[37].mxu1  ;;  %5058 = vmatmul.mubr.f32.gmra.mrb[78].mxu1 %v15451_v2  ;;  %7499 = vmatprep.mubr.msk.f32.mxu0 %vm2138_vm2, %v8979_v19  ;;  %v15476_v24 = vld [vmem:[#allocation125_spill] sm:$0xff]  ;;  %v8981_v2 = vld [vmem:[%s9805_s28 + $0x20] sm:$0xff] }
 0x7b6   : > { %5062 = vmatprep.mubr.f32.mxu1 %v15452_v10  ;;  %v8980_v49 = vld [vmem:[%s9805_s28 + $0x18] sm:$0xff]  ;;  %v15477_v26 = vld [vmem:[#allocation127_spill] sm:$0xff]  ;;  %v15478_v10 = vld [vmem:[#allocation130_spill] sm:$0xff] }
 0x7b7   : > { %v15491_v19 = vld [vmem:[#allocation257_spill] sm:$0xff] }
 0x7b8   : > { %7500 = vmatmul.mubr.msk.f32.gmra.mrb[28].mxu0 %vm2138_vm2, %v8980_v49  ;;  %v15492_v49 = vld [vmem:[#allocation258_spill] sm:$0xff] }
 0x7b9   : > { %5063 = vmatmul.mubr.f32.gmra.mrb[80].mxu1 %v15453_v5  ;;  %7502 = vmatprep.mubr.msk.f32.mxu0 %vm2138_vm2, %v8981_v2  ;;  %v8982_v5 = vld [vmem:[%s9805_s28 + $0x28] sm:$0xff] }
 0x7ba   : > { %5067 = vmatprep.mubr.f32.mxu1 %v15454_v36  ;;  %v15479_v36 = vld [vmem:[#allocation129_spill] sm:$0xff]  ;;  %v15493_v2 = vld [vmem:[#allocation259_spill] sm:$0xff] }
 0x7bc   : > { %7503 = vmatmul.mubr.msk.f32.gmra.mrb[30].mxu0 %vm2138_vm2, %v8982_v5  ;;  %v15494_v5 = vld [vmem:[#allocation260_spill] sm:$0xff] }
 0x7bd   : > { %5068 = vmatmul.mubr.f32.gmra.mrb[82].mxu1 %v15455_v17  ;;  %v8983_v17 = vld [vmem:[%s9805_s28 + $0x30] sm:$0xff] }
 0x7be   : > { %5072 = vmatprep.mubr.f32.mxu1 %v15456_v39  ;;  %7505 = vmatprep.mubr.msk.f32.mxu0 %vm2138_vm2, %v8983_v17  ;;  %v15480_v39 = vld [vmem:[#allocation246_spill] sm:$0xff]  ;;  %v15495_v17 = vld [vmem:[#allocation261_spill] sm:$0xff] }
 0x7c1   : > { %5073 = vmatmul.mubr.f32.gmra.mrb[84].mxu1 %v15457_v3  ;;  %v8984_v3 = vld [vmem:[%s9805_s28 + $0x38] sm:$0xff] }
 0x7c2   : > { %5077 = vmatprep.mubr.f32.mxu1 %v15458_v59  ;;  %7506 = vmatmul.mubr.msk.f32.gmra.mrb[32].mxu0 %vm2138_vm2, %v8984_v3  ;;  %v15481_v59 = vld [vmem:[#allocation247_spill] sm:$0xff]  ;;  %v15496_v3 = vld [vmem:[#allocation262_spill] sm:$0xff] }
 0x7c5   : > { %5078 = vmatmul.mubr.f32.gmra.mrb[86].mxu1 %v15459_v25  ;;  %v8985_v25 = vld [vmem:[%s9805_s28 + $0x40] sm:$0xff] }
 0x7c6   : > { %5082 = vmatprep.mubr.f32.mxu1 %v15460_v6  ;;  %7508 = vmatprep.mubr.msk.f32.mxu0 %vm2138_vm2, %v8985_v25  ;;  %v15482_v6 = vld [vmem:[#allocation248_spill] sm:$0xff]  ;;  %v15497_v25 = vld [vmem:[#allocation263_spill] sm:$0xff] }
 0x7c9   : > { %5083 = vmatmul.mubr.f32.gmra.mrb[88].mxu1 %v15461_v37  ;;  %v8986_v37 = vld [vmem:[%s9805_s28 + $0x48] sm:$0xff] }
 0x7ca   : > { %5087 = vmatprep.mubr.f32.mxu1 %v15462_v55  ;;  %7509 = vmatmul.mubr.msk.f32.gmra.mrb[34].mxu0 %vm2138_vm2, %v8986_v37  ;;  %v15483_v55 = vld [vmem:[#allocation249_spill] sm:$0xff]  ;;  %v15498_v37 = vld [vmem:[#allocation264_spill] sm:$0xff] }
 0x7cd   : > { %5088 = vmatmul.mubr.f32.gmra.mrb[90].mxu1 %v15463_v33  ;;  %v8987_v33 = vld [vmem:[%s9805_s28 + $0x50] sm:$0xff] }
 0x7ce   : > { %5092 = vmatprep.mubr.f32.mxu1 %v15464_v42  ;;  %7511 = vmatprep.mubr.msk.f32.mxu0 %vm2138_vm2, %v8987_v33  ;;  %v15484_v42 = vld [vmem:[#allocation250_spill] sm:$0xff]  ;;  %v15499_v33 = vld [vmem:[#allocation265_spill] sm:$0xff] }
 0x7d1   : > { %5093 = vmatmul.mubr.f32.gmra.mrb[92].mxu1 %v15465_v43  ;;  %v8988_v43 = vld [vmem:[%s9805_s28 + $0x58] sm:$0xff] }
 0x7d2   : > { %5097 = vmatprep.mubr.f32.mxu1 %v15466_v8  ;;  %7512 = vmatmul.mubr.msk.f32.gmra.mrb[36].mxu0 %vm2138_vm2, %v8988_v43  ;;  %v15485_v8 = vld [vmem:[#allocation251_spill] sm:$0xff]  ;;  %v15500_v43 = vld [vmem:[#allocation266_spill] sm:$0xff] }
 0x7d5   : > { %5098 = vmatmul.mubr.f32.gmra.mrb[94].mxu1 %v15467_v32  ;;  %v8989_v32 = vld [vmem:[%s9805_s28 + $0x60] sm:$0xff] }
 0x7d6   : > { %5102 = vmatprep.mubr.f32.mxu1 %v15468_v58  ;;  %7514 = vmatprep.mubr.msk.f32.mxu0 %vm2138_vm2, %v8989_v32  ;;  %v15486_v58 = vld [vmem:[#allocation252_spill] sm:$0xff]  ;;  %v15501_v32 = vld [vmem:[#allocation138_spill] sm:$0xff] }
 0x7d9   : > { %5103 = vmatmul.mubr.f32.gmra.mrb[96].mxu1 %v15469_v0  ;;  %v8990_v0 = vld [vmem:[%s9805_s28 + $0x68] sm:$0xff] }
 0x7da   : > { %5107 = vmatprep.mubr.f32.mxu1 %v15470_v47  ;;  %7515 = vmatmul.mubr.msk.f32.gmra.mrb[38].mxu0 %vm2138_vm2, %v8990_v0  ;;  %v15487_v47 = vld [vmem:[#allocation253_spill] sm:$0xff]  ;;  %v15502_v0 = vld [vmem:[#allocation267_spill] sm:$0xff] }
 0x7dd   : > { %5108 = vmatmul.mubr.f32.gmra.mrb[98].mxu1 %v15471_v60  ;;  %v8991_v60 = vld [vmem:[%s9805_s28 + $0x70] sm:$0xff] }
 0x7de   : > { %5112 = vmatprep.mubr.f32.mxu1 %v15472_v53  ;;  %7517 = vmatprep.mubr.msk.f32.mxu0 %vm2138_vm2, %v8991_v60  ;;  %v15488_v53 = vld [vmem:[#allocation254_spill] sm:$0xff]  ;;  %v15503_v60 = vld [vmem:[#allocation131_spill] sm:$0xff] }
 0x7e1   : > { %5113 = vmatmul.mubr.f32.gmra.mrb[100].mxu1 %v15473_v61  ;;  %v8992_v61 = vld [vmem:[%s9805_s28 + $0x78] sm:$0xff] }
 0x7e2   : > { %5182 = vmatprep.mubr.f32.mxu1 %v15474_v4  ;;  %7518 = vmatmul.mubr.msk.f32.gmra.mrb[40].mxu0 %vm2138_vm2, %v8992_v61  ;;  %v8993_v4 = vld [vmem:[%s9805_s28 + $0x80] sm:$0xff]  ;;  %v15504_v61 = vld [vmem:[#allocation268_spill] sm:$0xff] }
 0x7e3   : > { %7520 = vmatprep.mubr.msk.f32.mxu0 %vm2138_vm2, %v8993_v4  ;;  %v15505_v4 = vld [vmem:[#allocation132_spill] sm:$0xff] }
 0x7e5   : > { %5183 = vmatmul.mubr.f32.vlgmr.msra.gmra.mrb[38].mxu1 %v15475_v31  ;;  %v8994_v31 = vld [vmem:[%s9805_s28 + $0x88] sm:$0xff] }
 0x7e6   : > { %5187 = vmatprep.mubr.f32.mxu1 %v15476_v24  ;;  %7521 = vmatmul.mubr.msk.f32.gmra.mrb[42].mxu0 %vm2138_vm2, %v8994_v31  ;;  %v8995_v24 = vld [vmem:[%s9805_s28 + $0x90] sm:$0xff]  ;;  %v15507_v31 = vld [vmem:[#allocation133_spill] sm:$0xff] }
 0x7e7   : > { %7523 = vmatprep.mubr.msk.f32.mxu0 %vm2138_vm2, %v8995_v24  ;;  %v15509_v24 = vld [vmem:[#allocation134_spill] sm:$0xff] }
 0x7e9   : > { %5188 = vmatmul.mubr.f32.gmra.mrb[40].mxu1 %v15477_v26  ;;  %v8996_v26 = vld [vmem:[%s9805_s28 + $0x98] sm:$0xff] }
 0x7ea   : > { %5192 = vmatprep.mubr.f32.mxu1 %v15478_v10  ;;  %7524 = vmatmul.mubr.msk.f32.gmra.mrb[44].mxu0 %vm2138_vm2, %v8996_v26  ;;  %v8997_v10 = vld [vmem:[%s9805_s28 + $0xa0] sm:$0xff]  ;;  %v15511_v26 = vld [vmem:[#allocation135_spill] sm:$0xff] }
 0x7eb   : > { %7526 = vmatprep.mubr.msk.f32.mxu0 %vm2138_vm2, %v8997_v10  ;;  %v15513_v10 = vld [vmem:[#allocation136_spill] sm:$0xff] }
 0x7ed   : > { %5193 = vmatmul.mubr.f32.gmra.mrb[42].mxu1 %v15479_v36  ;;  %v8998_v36 = vld [vmem:[%s9805_s28 + $0xa8] sm:$0xff] }
 0x7ee   : > { %5197 = vmatprep.mubr.f32.mxu1 %v15480_v39  ;;  %7527 = vmatmul.mubr.msk.f32.gmra.mrb[46].mxu0 %vm2138_vm2, %v8998_v36  ;;  %v8999_v39 = vld [vmem:[%s9805_s28 + $0xb0] sm:$0xff] }
 0x7ef   : > { %7529 = vmatprep.mubr.msk.f32.mxu0 %vm2138_vm2, %v8999_v39  ;;  %v15515_v36 = vld [vmem:[#allocation236_spill] sm:$0xff]  ;;  %v15517_v39 = vld [vmem:[#allocation235_spill] sm:$0xff] }
 0x7f1   : > { %5198 = vmatmul.mubr.f32.gmra.mrb[44].mxu1 %v15481_v59  ;;  %v9000_v59 = vld [vmem:[%s9805_s28 + $0xb8] sm:$0xff] }
 0x7f2   : > { %5202 = vmatprep.mubr.f32.mxu1 %v15482_v6  ;;  %7530 = vmatmul.mubr.msk.f32.gmra.mrb[48].mxu0 %vm2138_vm2, %v9000_v59  ;;  %v9001_v6 = vld [vmem:[%s9805_s28 + $0xc0] sm:$0xff]  ;;  %v15519_v59 = vld [vmem:[#allocation237_spill] sm:$0xff] }
 0x7f3   : > { %7532 = vmatprep.mubr.msk.f32.mxu0 %vm2138_vm2, %v9001_v6  ;;  %v5376_v6 = vld [vmem:[%s14289_s6 + $0x8] sm:$0xff] }
 0x7f5   : > { %5203 = vmatmul.mubr.f32.gmra.mrb[46].mxu1 %v15483_v55  ;;  %v9002_v55 = vld [vmem:[%s9805_s28 + $0xc8] sm:$0xff] }
 0x7f6   : > { %5207 = vmatprep.mubr.f32.mxu1 %v15484_v42  ;;  %7533 = vmatmul.mubr.msk.f32.gmra.mrb[50].mxu0 %vm2138_vm2, %v9002_v55  ;;  %v9003_v42 = vld [vmem:[%s9805_s28 + $0xd0] sm:$0xff]  ;;  %v15521_v55 = vld [vmem:[#allocation34_spill] sm:$0xff] }
 0x7f7   : > { %7535 = vmatprep.mubr.msk.f32.mxu0 %vm2138_vm2, %v9003_v42  ;;  %v15522_v42 = vld [vmem:[#allocation141_spill] sm:$0xff] }
 0x7f9   : > { %5208 = vmatmul.mubr.f32.gmra.mrb[48].mxu1 %v15485_v8  ;;  %v9004_v8 = vld [vmem:[%s9805_s28 + $0xd8] sm:$0xff] }
 0x7fa   : > { %5212 = vmatprep.mubr.f32.mxu1 %v15486_v58  ;;  %7536 = vmatmul.mubr.msk.f32.gmra.mrb[52].mxu0 %vm2138_vm2, %v9004_v8  ;;  %v9005_v58 = vld [vmem:[%s9805_s28 + $0xe0] sm:$0xff] }
 0x7fb   : > { %7538 = vmatprep.mubr.msk.f32.mxu0 %vm2138_vm2, %v9005_v58  ;;  %v5379_v8 = vld [vmem:[%s14289_s6 + $0x20] sm:$0xff] }
 0x7fd   : > { %5213 = vmatmul.mubr.f32.gmra.mrb[50].mxu1 %v15487_v47  ;;  %v9006_v47 = vld [vmem:[%s9805_s28 + $0xe8] sm:$0xff] }
 0x7fe   : > { %5217 = vmatprep.mubr.f32.mxu1 %v15488_v53  ;;  %7539 = vmatmul.mubr.msk.f32.gmra.mrb[54].mxu0 %vm2138_vm2, %v9006_v47  ;;  %v9007_v53 = vld [vmem:[%s9805_s28 + $0xf0] sm:$0xff]  ;;  %v15525_v47 = vld [vmem:[#allocation142_spill] sm:$0xff] }
 0x7ff   : > { %7541 = vmatprep.mubr.msk.f32.mxu0 %vm2138_vm2, %v9007_v53  ;;  %v15527_v53 = vld [vmem:[#allocation143_spill] sm:$0xff] }
 0x801   : > { %5218 = vmatmul.mubr.f32.gmra.mrb[52].mxu1 %v15489_v54  ;;  %v9008_v54 = vld [vmem:[%s9805_s28 + $0xf8] sm:$0xff] }
 0x802   : > { %5222 = vmatprep.mubr.f32.mxu1 %v15490_v9  ;;  %7542 = vmatmul.mubr.msk.f32.gmra.mrb[56].mxu0 %vm2138_vm2, %v9008_v54  ;;  %v15506_v9 = vld [vmem:[#allocation269_spill] sm:$0xff]  ;;  %v15529_v54 = vld [vmem:[#allocation144_spill] sm:$0xff] }
 0x805   : > { %5223 = vmatmul.mubr.f32.gmra.mrb[54].mxu1 %v15491_v19  ;;  %v15508_v19 = vld [vmem:[#allocation76_spill] sm:$0xff] }
 0x806   : > { %5227 = vmatprep.mubr.f32.mxu1 %v15492_v49  ;;  %v15510_v49 = vld [vmem:[#allocation31_spill] sm:$0xff] }
 0x809   : > { %5228 = vmatmul.mubr.f32.gmra.mrb[56].mxu1 %v15493_v2  ;;  %v15512_v2 = vld [vmem:[#allocation170_spill] sm:$0xff] }
 0x80a   : > { %5232 = vmatprep.mubr.f32.mxu1 %v15494_v5  ;;  %v15514_v5 = vld [vmem:[#allocation80_spill] sm:$0xff] }
 0x80d   : > { %5233 = vmatmul.mubr.f32.gmra.mrb[58].mxu1 %v15495_v17  ;;  %v15516_v17 = vld [vmem:[#allocation137_spill] sm:$0xff] }
 0x80e   : > { %5237 = vmatprep.mubr.f32.mxu1 %v15496_v3  ;;  %v15518_v3 = vld [vmem:[#allocation139_spill] sm:$0xff] }
 0x811   : > { %5238 = vmatmul.mubr.f32.gmra.mrb[60].mxu1 %v15497_v25  ;;  %v15520_v25 = vld [vmem:[#allocation140_spill] sm:$0xff] }
 0x812   : > { %5242 = vmatprep.mubr.f32.mxu1 %v15498_v37  ;;  %v5377_v37 = vld [vmem:[%s14289_s6 + $0x10] sm:$0xff] }
 0x815   : > { %5243 = vmatmul.mubr.f32.gmra.mrb[62].mxu1 %v15499_v33  ;;  %v8062_v33 = vpack.c.bf16 %v5377_v37, %v5376_v6 }
 0x816   : > { %5247 = vmatprep.mubr.f32.mxu1 %v15500_v43  ;;  %v5378_v43 = vld [vmem:[%s14289_s6 + $0x18] sm:$0xff] }
 0x817   : > { %8063 = vmatprep.subr.bf16.mxu0 %v8062_v33  ;;  %v8066_v58 = vpack.c.bf16 %v5379_v8, %v5378_v43 }
 0x818   : > { %8065 = vmatpush3.bf16.msra.mxu0 %v8062_v33 }
 0x819   : > { %5248 = vmatmul.mubr.f32.gmra.mrb[64].mxu1 %v15501_v32  ;;  %v15523_v32 = vld [vmem:[#allocation238_spill] sm:$0xff]  ;;  %8067 = vmatprep.subr.bf16.mxu0 %v8066_v58 }
 0x81a   : > { %5252 = vmatprep.mubr.f32.mxu1 %v15502_v0  ;;  %v15524_v0 = vld [vmem:[#allocation240_spill] sm:$0xff] }
 0x81c   : > { %8069 = vmatpush3.bf16.msra.mxu0 %v8066_v58 }
 0x81d   : > { %5253 = vmatmul.mubr.f32.gmra.mrb[66].mxu1 %v15503_v60  ;;  %v15526_v60 = vld [vmem:[#allocation239_spill] sm:$0xff] }
 0x81e   : > { %5257 = vmatprep.mubr.f32.mxu1 %v15504_v61  ;;  %v15528_v61 = vld [vmem:[#allocation241_spill] sm:$0xff] }
 0x821   : > { %5258 = vmatmul.mubr.f32.gmra.mrb[68].mxu1 %v15505_v4  ;;  %v15530_v4 = vld [vmem:[#allocation38_spill] sm:$0xff] }
 0x822   : > { %5262 = vmatprep.mubr.f32.mxu1 %v15506_v9  ;;  %v15531_v9 = vld [vmem:[#allocation145_spill] sm:$0xff] }
 0x825   : > { %5263 = vmatmul.mubr.f32.gmra.mrb[70].mxu1 %v15507_v31  ;;  %v15532_v31 = vld [vmem:[#allocation242_spill] sm:$0xff] }
 0x826   : > { %5267 = vmatprep.mubr.f32.mxu1 %v15508_v19  ;;  %v15533_v19 = vld [vmem:[#allocation244_spill] sm:$0xff] }
 0x829   : > { %5268 = vmatmul.mubr.f32.gmra.mrb[72].mxu1 %v15509_v24  ;;  %v15534_v24 = vld [vmem:[#allocation146_spill] sm:$0xff] }
 0x82a   : > { %5272 = vmatprep.mubr.f32.mxu1 %v15510_v49  ;;  %v15535_v49 = vld [vmem:[#allocation243_spill] sm:$0xff] }
 0x82d   : > { %5273 = vmatmul.mubr.f32.gmra.mrb[74].mxu1 %v15511_v26  ;;  %v15536_v26 = vld [vmem:[#allocation147_spill] sm:$0xff] }
 0x82e   : > { %5277 = vmatprep.mubr.f32.mxu1 %v15512_v2  ;;  %v15537_v2 = vld [vmem:[#allocation245_spill] sm:$0xff] }
 0x831   : > { %5278 = vmatmul.mubr.f32.gmra.mrb[76].mxu1 %v15513_v10 }
 0x832   : > { %5282 = vmatprep.mubr.f32.mxu1 %v15514_v5 }
 0x835   : > { %5283 = vmatmul.mubr.f32.gmra.mrb[78].mxu1 %v15515_v36 }
 0x836   : > { %5287 = vmatprep.mubr.f32.mxu1 %v15516_v17 }
 0x839   : > { %5288 = vmatmul.mubr.f32.gmra.mrb[80].mxu1 %v15517_v39 }
 0x83a   : > { %5292 = vmatprep.mubr.f32.mxu1 %v15518_v3 }
 0x83d   : > { %5293 = vmatmul.mubr.f32.gmra.mrb[82].mxu1 %v15519_v59 }
 0x83e   : > { %5297 = vmatprep.mubr.f32.mxu1 %v15520_v25 }
 0x841   : > { %5298 = vmatmul.mubr.f32.gmra.mrb[84].mxu1 %v15521_v55 }
 0x842   : > { %5302 = vmatprep.mubr.f32.mxu1 %v15522_v42 }
 0x845   : > { %5303 = vmatmul.mubr.f32.gmra.mrb[86].mxu1 %v15523_v32 }
 0x846   : > { %5307 = vmatprep.mubr.f32.mxu1 %v15524_v0 }
 0x849   : > { %5308 = vmatmul.mubr.f32.gmra.mrb[88].mxu1 %v15525_v47 }
 0x84a   : > { %5312 = vmatprep.mubr.f32.mxu1 %v15526_v60 }
 0x84d   : > { %5313 = vmatmul.mubr.f32.gmra.mrb[90].mxu1 %v15527_v53 }
 0x84e   : > { %5317 = vmatprep.mubr.f32.mxu1 %v15528_v61 }
 0x851   : > { %5318 = vmatmul.mubr.f32.gmra.mrb[92].mxu1 %v15529_v54 }
 0x852   : > { %5322 = vmatprep.mubr.f32.mxu1 %v15530_v4 }
 0x855   : > { %5323 = vmatmul.mubr.f32.gmra.mrb[94].mxu1 %v15531_v9 }
 0x856   : > { %5327 = vmatprep.mubr.f32.mxu1 %v15532_v31 }
 0x859   : > { %5328 = vmatmul.mubr.f32.gmra.mrb[96].mxu1 %v15533_v19 }
 0x85a   : > { %5332 = vmatprep.mubr.f32.mxu1 %v15534_v24 }
 0x85d   : > { %5333 = vmatmul.mubr.f32.gmra.mrb[98].mxu1 %v15535_v49 }
 0x85e   : > { %5337 = vmatprep.mubr.f32.mxu1 %v15536_v26 }
 0x861   : > { %5338 = vmatmul.mubr.f32.gmra.mrb[100].mxu1 %v15537_v2 }
 0x8b8   : > { %v5184_v10 = vpop.f32.mrb[38].mxu1 }
 0x8b9   : > { %v8128_v5 = vadd.f32 %v5184_v10, %v13518_v7  ;;  %v5186_v36 = vpop.f32.mrb[39].mxu1 }
 0x8bb   : > { %8641 = vtanh.f32 %v8128_v5 }
 0x8bc   : > { %v5189_v17 = vpop.f32.mrb[40].mxu1 }
 0x8bd   : > { %v8129_v39 = vadd.f32 %v5189_v17, %v13524_v56  ;;  %v5191_v3 = vpop.f32.mrb[41].mxu1 }
 0x8bf   : > { %8643 = vtanh.f32 %v8129_v39 }
 0x8c0   : > { %v5194_v59 = vpop.f32.mrb[42].mxu1 }
 0x8c1   : > { %v8130_v25 = vadd.f32 %v5194_v59, %v13530_v41  ;;  %v5196_v6 = vpop.f32.mrb[43].mxu1 }
 0x8c3   : > { %8645 = vtanh.f32 %v8130_v25 }
 0x8c4   : > { %v5199_v37 = vpop.f32.mrb[44].mxu1 }
 0x8c5   : > { %v8642_v55 = vpop.eup %8641  ;;  %v8131_v33 = vadd.f32 %v5199_v37, %v13536_v28  ;;  %v5201_v42 = vpop.f32.mrb[45].mxu1 }
 0x8c6   : > { %7552 = vmatprep.mubr.msk.f32.mxu0 %vm3769_vm3, %v8642_v55 }
 0x8c7   : > { %8647 = vtanh.f32 %v8131_v33 }
 0x8c8   : > { %v5204_v7 = vpop.f32.mrb[46].mxu1 }
 0x8c9   : > { %v8644_v43 = vpop.eup %8643  ;;  %v8132_v8 = vadd.f32 %v5204_v7, %v13542_v14  ;;  %v5206_v56 = vpop.f32.mrb[47].mxu1 }
 0x8ca   : > { %7553 = vmatmul.mubr.msk.f32.vlgmr.msra.gmra.mrb[26].mxu0 %vm3769_vm3, %v8644_v43 }
 0x8cb   : > { %8649 = vtanh.f32 %v8132_v8 }
 0x8cc   : > { %v5209_v32 = vpop.f32.mrb[48].mxu1 }
 0x8cd   : > { %v8646_v41 = vpop.eup %8645  ;;  %v8133_v58 = vadd.f32 %v5209_v32, %v13548_v44  ;;  %v5211_v0 = vpop.f32.mrb[49].mxu1 }
 0x8ce   : > { %7555 = vmatprep.mubr.msk.f32.mxu0 %vm3769_vm3, %v8646_v41 }
 0x8cf   : > { %8651 = vtanh.f32 %v8133_v58 }
 0x8d0   : > { %v5214_v28 = vpop.f32.mrb[50].mxu1 }
 0x8d1   : > { %v8648_v47 = vpop.eup %8647  ;;  %v8134_v60 = vadd.f32 %v5214_v28, %v13554_v48  ;;  %v5216_v53 = vpop.f32.mrb[51].mxu1 }
 0x8d2   : > { %7556 = vmatmul.mubr.msk.f32.gmra.mrb[28].mxu0 %vm3769_vm3, %v8648_v47 }
 0x8d3   : > { %8653 = vtanh.f32 %v8134_v60 }
 0x8d4   : > { %v5219_v14 = vpop.f32.mrb[52].mxu1 }
 0x8d5   : > { %v8650_v61 = vpop.eup %8649  ;;  %v8135_v54 = vadd.f32 %v5219_v14, %v13560_v21  ;;  %v5221_v4 = vpop.f32.mrb[53].mxu1 }
 0x8d6   : > { %7558 = vmatprep.mubr.msk.f32.mxu0 %vm3769_vm3, %v8650_v61 }
 0x8d7   : > { %8655 = vtanh.f32 %v8135_v54 }
 0x8d8   : > { %v5224_v44 = vpop.f32.mrb[54].mxu1 }
 0x8d9   : > { %v8652_v9 = vpop.eup %8651  ;;  %v8136_v31 = vadd.f32 %v5224_v44, %v13566_v34  ;;  %v5226_v19 = vpop.f32.mrb[55].mxu1 }
 0x8da   : > { %7559 = vmatmul.mubr.msk.f32.gmra.mrb[30].mxu0 %vm3769_vm3, %v8652_v9 }
 0x8db   : > { %8657 = vtanh.f32 %v8136_v31 }
 0x8dc   : > { %v5229_v48 = vpop.f32.mrb[56].mxu1 }
 0x8dd   : > { %v8654_v24 = vpop.eup %8653  ;;  %v8137_v49 = vadd.f32 %v5229_v48, %v13572_v13  ;;  %v5231_v26 = vpop.f32.mrb[57].mxu1 }
 0x8de   : > { %7561 = vmatprep.mubr.msk.f32.mxu0 %vm3769_vm3, %v8654_v24 }
 0x8df   : > { %8659 = vtanh.f32 %v8137_v49 }
 0x8e0   : > { %v5234_v21 = vpop.f32.mrb[58].mxu1 }
 0x8e1   : > { %v8656_v2 = vpop.eup %8655  ;;  %v8138_v10 = vadd.f32 %v5234_v21, %v13578_v1  ;;  %v5236_v5 = vpop.f32.mrb[59].mxu1 }
 0x8e2   : > { %7562 = vmatmul.mubr.msk.f32.gmra.mrb[32].mxu0 %vm3769_vm3, %v8656_v2 }
 0x8e3   : > { %8661 = vtanh.f32 %v8138_v10 }
 0x8e4   : > { %v5239_v34 = vpop.f32.mrb[60].mxu1 }
 0x8e5   : > { %v8658_v36 = vpop.eup %8657  ;;  %v8139_v17 = vadd.f32 %v5239_v34, %v13585_v38  ;;  %v5241_v39 = vpop.f32.mrb[61].mxu1 }
 0x8e6   : > { %7564 = vmatprep.mubr.msk.f32.mxu0 %vm3769_vm3, %v8658_v36 }
 0x8e7   : > { %8663 = vtanh.f32 %v8139_v17 }
 0x8e8   : > { %v5244_v13 = vpop.f32.mrb[62].mxu1 }
 0x8e9   : > { %v8660_v3 = vpop.eup %8659  ;;  %v8140_v59 = vadd.f32 %v5244_v13, %v13592_v18  ;;  %v5246_v25 = vpop.f32.mrb[63].mxu1 }
 0x8ea   : > { %7565 = vmatmul.mubr.msk.f32.gmra.mrb[34].mxu0 %vm3769_vm3, %v8660_v3 }
 0x8eb   : > { %8665 = vtanh.f32 %v8140_v59 }
 0x8ec   : > { %v5249_v1 = vpop.f32.mrb[64].mxu1 }
 0x8ed   : > { %v8662_v6 = vpop.eup %8661  ;;  %v8141_v37 = vadd.f32 %v5249_v1, %v13600_v23  ;;  %v5251_v55 = vpop.f32.mrb[65].mxu1 }
 0x8ee   : > { %7567 = vmatprep.mubr.msk.f32.mxu0 %vm3769_vm3, %v8662_v6 }
 0x8ef   : > { %8667 = vtanh.f32 %v8141_v37 }
 0x8f0   : > { %v5254_v38 = vpop.f32.mrb[66].mxu1 }
 0x8f1   : > { %v8664_v33 = vpop.eup %8663  ;;  %v8142_v42 = vadd.f32 %v5254_v38, %v13607_v27  ;;  %v5256_v7 = vpop.f32.mrb[67].mxu1 }
 0x8f2   : > { %7568 = vmatmul.mubr.msk.f32.gmra.mrb[36].mxu0 %vm3769_vm3, %v8664_v33 }
 0x8f3   : > { %8669 = vtanh.f32 %v8142_v42 }
 0x8f4   : > { %v5259_v18 = vpop.f32.mrb[68].mxu1 }
 0x8f5   : > { %v8666_v43 = vpop.eup %8665  ;;  %v8143_v8 = vadd.f32 %v5259_v18, %v13615_v35  ;;  %v5261_v56 = vpop.f32.mrb[69].mxu1 }
 0x8f6   : > { %7570 = vmatprep.mubr.msk.f32.mxu0 %vm3769_vm3, %v8666_v43 }
 0x8f7   : > { %8671 = vtanh.f32 %v8143_v8 }
 0x8f8   : > { %v5264_v23 = vpop.f32.mrb[70].mxu1 }
 0x8f9   : > { %v8668_v32 = vpop.eup %8667  ;;  %v8144_v41 = vadd.f32 %v5264_v23, %v13622_v12  ;;  %v5266_v58 = vpop.f32.mrb[71].mxu1 }
 0x8fa   : > { %7571 = vmatmul.mubr.msk.f32.gmra.mrb[38].mxu0 %vm3769_vm3, %v8668_v32 }
 0x8fb   : > { %8673 = vtanh.f32 %v8144_v41 }
 0x8fc   : > { %v5269_v27 = vpop.f32.mrb[72].mxu1 }
 0x8fd   : > { %v8670_v0 = vpop.eup %8669  ;;  %v8145_v28 = vadd.f32 %v5269_v27, %v13630_v16  ;;  %v5271_v47 = vpop.f32.mrb[73].mxu1 }
 0x8fe   : > { %7573 = vmatprep.mubr.msk.f32.mxu0 %vm3769_vm3, %v8670_v0 }
 0x8ff   : > { %8675 = vtanh.f32 %v8145_v28 }
 0x900   : > { %v5274_v35 = vpop.f32.mrb[74].mxu1 }
 0x901   : > { %v8672_v60 = vpop.eup %8671  ;;  %v8146_v53 = vadd.f32 %v5274_v35, %v13637_v20  ;;  %v5276_v14 = vpop.f32.mrb[75].mxu1 }
 0x902   : > { %7574 = vmatmul.mubr.msk.f32.gmra.mrb[40].mxu0 %vm3769_vm3, %v8672_v60 }
 0x903   : > { %8677 = vtanh.f32 %v8146_v53 }
 0x904   : > { %v5279_v12 = vpop.f32.mrb[76].mxu1 }
 0x905   : > { %v8674_v61 = vpop.eup %8673  ;;  %v8147_v54 = vadd.f32 %v5279_v12, %v13645_v62  ;;  %v5281_v4 = vpop.f32.mrb[77].mxu1 }
 0x906   : > { %7576 = vmatprep.mubr.msk.f32.mxu0 %vm3769_vm3, %v8674_v61 }
 0x907   : > { %8679 = vtanh.f32 %v8147_v54 }
 0x908   : > { %v5284_v16 = vpop.f32.mrb[78].mxu1 }
 0x909   : > { %v8676_v44 = vpop.eup %8675  ;;  %v8148_v9 = vadd.f32 %v5284_v16, %v13652_v40  ;;  %v5286_v31 = vpop.f32.mrb[79].mxu1 }
 0x90a   : > { %7577 = vmatmul.mubr.msk.f32.gmra.mrb[42].mxu0 %vm3769_vm3, %v8676_v44 }
 0x90b   : > { %8681 = vtanh.f32 %v8148_v9 }
 0x90c   : > { %v5289_v20 = vpop.f32.mrb[80].mxu1 }
 0x90d   : > { %v8678_v19 = vpop.eup %8677  ;;  %v8149_v48 = vadd.f32 %v5289_v20, %v13660_v52  ;;  %v5291_v24 = vpop.f32.mrb[81].mxu1 }
 0x90e   : > { %7579 = vmatprep.mubr.msk.f32.mxu0 %vm3769_vm3, %v8678_v19 }
 0x90f   : > { %8683 = vtanh.f32 %v8149_v48 }
 0x910   : > { %v5294_v62 = vpop.f32.mrb[82].mxu1 }
 0x911   : > { %v8680_v49 = vpop.eup %8679  ;;  %v8150_v26 = vadd.f32 %v5294_v62, %v13667_v63  ;;  %v5296_v21 = vpop.f32.mrb[83].mxu1 }
 0x912   : > { %7580 = vmatmul.mubr.msk.f32.gmra.mrb[44].mxu0 %vm3769_vm3, %v8680_v49 }
 0x913   : > { %8685 = vtanh.f32 %v8150_v26 }
 0x914   : > { %v5299_v40 = vpop.f32.mrb[84].mxu1 }
 0x915   : > { %v8682_v2 = vpop.eup %8681  ;;  %v8151_v10 = vadd.f32 %v5299_v40, %v13675_v50  ;;  %v5301_v5 = vpop.f32.mrb[85].mxu1 }
 0x916   : > { %7582 = vmatprep.mubr.msk.f32.mxu0 %vm3769_vm3, %v8682_v2 }
 0x917   : > { %8687 = vtanh.f32 %v8151_v10 }
 0x918   : > { %v5304_v52 = vpop.f32.mrb[86].mxu1 }
 0x919   : > { %v8684_v34 = vpop.eup %8683  ;;  %v8152_v36 = vadd.f32 %v5304_v52, %v13682_v57  ;;  %v5306_v17 = vpop.f32.mrb[87].mxu1 }
 0x91a   : > { %7583 = vmatmul.mubr.msk.f32.gmra.mrb[46].mxu0 %vm3769_vm3, %v8684_v34 }
 0x91b   : > { %8689 = vtanh.f32 %v8152_v36 }
 0x91c   : > { %v5309_v63 = vpop.f32.mrb[88].mxu1 }
 0x91d   : > { %v8686_v39 = vpop.eup %8685  ;;  %v8153_v13 = vadd.f32 %v5309_v63, %v13690_v15  ;;  %v5311_v3 = vpop.f32.mrb[89].mxu1 }
 0x91e   : > { %7585 = vmatprep.mubr.msk.f32.mxu0 %vm3769_vm3, %v8686_v39 }
 0x91f   : > { %8691 = vtanh.f32 %v8153_v13 }
 0x920   : > { %v5314_v50 = vpop.f32.mrb[90].mxu1 }
 0x921   : > { %v8688_v59 = vpop.eup %8687  ;;  %v8154_v25 = vadd.f32 %v5314_v50, %v13697_v45  ;;  %v5316_v1 = vpop.f32.mrb[91].mxu1 }
 0x922   : > { %7586 = vmatmul.mubr.msk.f32.gmra.mrb[48].mxu0 %vm3769_vm3, %v8688_v59 }
 0x923   : > { %8693 = vtanh.f32 %v8154_v25 }
 0x924   : > { %v5319_v57 = vpop.f32.mrb[92].mxu1 }
 0x925   : > { %v8690_v6 = vpop.eup %8689  ;;  %v8155_v37 = vadd.f32 %v5319_v57, %v13703_v46  ;;  %v5321_v55 = vpop.f32.mrb[93].mxu1 }
 0x926   : > { %7588 = vmatprep.mubr.msk.f32.mxu0 %vm3769_vm3, %v8690_v6 }
 0x927   : > { %8695 = vtanh.f32 %v8155_v37 }
 0x928   : > { %v5324_v15 = vpop.f32.mrb[94].mxu1 }
 0x929   : > { %v8692_v38 = vpop.eup %8691  ;;  %v8156_v33 = vadd.f32 %v5324_v15, %v13709_v22  ;;  %v5326_v42 = vpop.f32.mrb[95].mxu1 }
 0x92a   : > { %7589 = vmatmul.mubr.msk.f32.gmra.mrb[50].mxu0 %vm3769_vm3, %v8692_v38 }
 0x92b   : > { %8697 = vtanh.f32 %v8156_v33 }
 0x92c   : > { %v5329_v45 = vpop.f32.mrb[96].mxu1 }
 0x92d   : > { %v8694_v7 = vpop.eup %8693  ;;  %v8157_v18 = vadd.f32 %v5329_v45, %v13715_v51  ;;  %v5331_v43 = vpop.f32.mrb[97].mxu1 }
 0x92e   : > { %7591 = vmatprep.mubr.msk.f32.mxu0 %vm3769_vm3, %v8694_v7 }
 0x92f   : > { %8699 = vtanh.f32 %v8157_v18 }
 0x930   : > { %v5334_v46 = vpop.f32.mrb[98].mxu1 }
 0x931   : > { %v8696_v8 = vpop.eup %8695  ;;  %v8158_v56 = vadd.f32 %v5334_v46, %v13721_v11  ;;  %v5336_v23 = vpop.f32.mrb[99].mxu1  ;;  %v5375_v11 = vld [vmem:[%s14289_s6] sm:$0xff] }
 0x932   : > { %7592 = vmatmul.mubr.msk.f32.gmra.mrb[52].mxu0 %vm3769_vm3, %v8696_v8  ;;  %v13963_v28 = vrot.slane %v5375_v11, %v15169_v30 }
 0x933   : > { %8701 = vtanh.f32 %v8158_v56 }
 0x934   : > { %v5339_v22 = vpop.f32.mrb[100].mxu1 }
 0x935   : > { %v8698_v32 = vpop.eup %8697  ;;  %v8159_v41 = vadd.f32 %v5339_v22, %v13727_v29  ;;  %v5341_v58 = vpop.f32.mrb[101].mxu1 }
 0x936   : > { %7594 = vmatprep.mubr.msk.f32.mxu0 %vm3769_vm3, %v8698_v32 }
 0x937   : > { %8703 = vtanh.f32 %v8159_v41 }
 0x939   : > { %v8700_v51 = vpop.eup %8699 }
 0x93a   : > { %7595 = vmatmul.mubr.msk.f32.gmra.mrb[54].mxu0 %vm3769_vm3, %v8700_v51  ;;  %v6607_v51 = vld [vmem:[%s14290_s7 + $0x8] sm:$0xff] }
 0x93d   : > { %v8702_v27 = vpop.eup %8701 }
 0x93e   : > { %7597 = vmatprep.mubr.msk.f32.mxu0 %vm3769_vm3, %v8702_v27  ;;  %v6608_v27 = vld [vmem:[%s14290_s7 + $0x10] sm:$0xff] }
 0x941   : > { %v8704_v0 = vpop.eup %8703 }
 0x942   : > { %7598 = vmatmul.mubr.msk.f32.gmra.mrb[56].mxu0 %vm3769_vm3, %v8704_v0 }
 0x99d   : > { %v7554_v29 = vpop.f32.mrb[26].mxu0 }
 0x99e   : > { %v13966_v47 = vadd.f32 %v7554_v29, %v13963_v28  ;;  %v5771_v35 = vpop.f32.mrb[27].mxu0 }
 0x99f   : > { %v13969_v60 = vadd.f32 %v13963_v28, %v5771_v35  ;;  %v8070_v35 = vpack.c.bf16 %v6608_v27, %v6607_v51 }
 0x9a0   : > { %8705 = vtanh.f32 %v13966_v47 }
 0x9a1   : > { %8707 = vtanh.f32 %v13969_v60  ;;  %8071 = vmatprep.subr.bf16.mxu0 %v8070_v35 }
 0x9a2   : > { %8073 = vmatpush3.bf16.msra.mxu0 %v8070_v35 }
 0x9a5   : > { %v7557_v53 = vpop.f32.mrb[28].mxu0 }
 0x9a6   : > { %v13974_v14 = vadd.f32 %v7557_v53, %v13963_v28  ;;  %v5781_v12 = vpop.f32.mrb[29].mxu0 }
 0x9a7   : > { %v13977_v61 = vadd.f32 %v13963_v28, %v5781_v12  ;;  %v6609_v12 = vld [vmem:[%s14290_s7 + $0x18] sm:$0xff] }
 0x9a8   : > { %8709 = vtanh.f32 %v13974_v14 }
 0x9a9   : > { %8711 = vtanh.f32 %v13977_v61 }
 0x9aa   : > { %v8706_v54 = vpop.eup %8705 }
 0x9ab   : > { %v8708_v4 = vpop.eup %8707  ;;  %6224 = vrot.lane.b32.xlu0 %v8706_v54, %s9020_s12  ;;  %v6610_v54 = vld [vmem:[%s14290_s7 + $0x20] sm:$0xff] }
 0x9ac   : > { %6222 = vrot.lane.b32.xlu1 %v8708_v4, %s9020_s12  ;;  %v8074_v4 = vpack.c.bf16 %v6610_v54, %v6609_v12 }
 0x9ad   : > { %v7560_v16 = vpop.f32.mrb[30].mxu0 }
 0x9ae   : > { %v13984_v44 = vadd.f32 %v7560_v16, %v13963_v28  ;;  %v5791_v9 = vpop.f32.mrb[31].mxu0  ;;  %8075 = vmatprep.subr.bf16.mxu0 %v8074_v4 }
 0x9af   : > { %v13988_v31 = vadd.f32 %v13963_v28, %v5791_v9  ;;  %8077 = vmatpush3.bf16.msra.mxu0 %v8074_v4 }
 0x9b0   : > { %8713 = vtanh.f32 %v13984_v44 }
 0x9b1   : > { %8715 = vtanh.f32 %v13988_v31 }
 0x9b2   : > { %v8710_v20 = vpop.eup %8709 }
 0x9b3   : > { %v8712_v19 = vpop.eup %8711  ;;  %6228 = vrot.lane.b32.xlu0 %v8710_v20, %s9020_s12 }
 0x9b4   : > { %6226 = vrot.lane.b32.xlu1 %v8712_v19, %s9020_s12 }
 0x9b5   : > { %v7563_v48 = vpop.f32.mrb[32].mxu0 }
 0x9b6   : > { %v13994_v24 = vadd.f32 %v7563_v48, %v13963_v28  ;;  %v5801_v62 = vpop.f32.mrb[33].mxu0 }
 0x9b7   : > { %v13997_v49 = vadd.f32 %v13963_v28, %v5801_v62 }
 0x9b8   : > { %8717 = vtanh.f32 %v13994_v24 }
 0x9b9   : > { %8719 = vtanh.f32 %v13997_v49  ;;  %v7363_v4 = vmul.f32 -1.442695, %v13997_v49 }
 0x9ba   : > { %v8714_v26 = vpop.eup %8713 }
 0x9bb   : > { %6232 = vrot.lane.b32.xlu0 %v8714_v26, %s9020_s12  ;;  %v8716_v10 = vpop.eup %8715 }
 0x9bd   : > { %v7566_v21 = vpop.f32.mrb[34].mxu0 }
 0x9be   : > { %v14003_v40 = vadd.f32 %v7566_v21, %v13963_v28  ;;  %v5811_v2 = vpop.f32.mrb[35].mxu0  ;;  %v7358_v21 = vmul.f32 -1.442695, %v13966_v47 }
 0x9bf   : > { %v14006_v5 = vadd.f32 %v13963_v28, %v5811_v2  ;;  %6230 = vrot.lane.b32.xlu0 %v8716_v10, %s9020_s12 }
 0x9c0   : > { %8721 = vtanh.f32 %v14003_v40 }
 0x9c1   : > { %8723 = vtanh.f32 %v14006_v5  ;;  %v7365_v49 = vmul.f32 -1.442695, %v14006_v5 }
 0x9c2   : > { %v8718_v52 = vpop.eup %8717 }
 0x9c3   : > { %6236 = vrot.lane.b32.xlu1 %v8718_v52, %s9020_s12  ;;  %v8720_v36 = vpop.eup %8719 }
 0x9c4   : > { %6234 = vrot.lane.b32.xlu0 %v8720_v36, %s9020_s12 }
 0x9c5   : > { %v7569_v34 = vpop.f32.mrb[36].mxu0 }
 0x9c6   : > { %v14013_v17 = vadd.f32 %v7569_v34, %v13963_v28  ;;  %v5821_v63 = vpop.f32.mrb[37].mxu0  ;;  %v7357_v34 = vmul.f32 -1.442695, %v13969_v60 }
 0x9c7   : > { %v14018_v39 = vadd.f32 %v13963_v28, %v5821_v63  ;;  %v7360_v63 = vmul.f32 -1.442695, %v13974_v14 }
 0x9c8   : > { %8725 = vtanh.f32 %v14013_v17 }
 0x9c9   : > { %8727 = vtanh.f32 %v14018_v39 }
 0x9ca   : > { %v8722_v13 = vpop.eup %8721 }
 0x9cb   : > { %6240 = vrot.lane.b32.xlu1 %v8722_v13, %s9020_s12  ;;  %v8724_v50 = vpop.eup %8723 }
 0x9cc   : > { %6238 = vrot.lane.b32.xlu0 %v8724_v50, %s9020_s12 }
 0x9cd   : > { %v7572_v3 = vpop.f32.mrb[38].mxu0 }
 0x9ce   : > { %v14023_v59 = vadd.f32 %v7572_v3, %v13963_v28  ;;  %v5831_v25 = vpop.f32.mrb[39].mxu0  ;;  %v7359_v3 = vmul.f32 -1.442695, %v13977_v61 }
 0x9cf   : > { %v14028_v1 = vadd.f32 %v13963_v28, %v5831_v25 }
 0x9d0   : > { %8729 = vtanh.f32 %v14023_v59 }
 0x9d1   : > { %8731 = vtanh.f32 %v14028_v1 }
 0x9d2   : > { %v8726_v57 = vpop.eup %8725 }
 0x9d3   : > { %6244 = vrot.lane.b32.xlu1 %v8726_v57, %s9020_s12  ;;  %v8728_v15 = vpop.eup %8727  ;;  %v7362_v57 = vmul.f32 -1.442695, %v13984_v44 }
 0x9d5   : > { %v7575_v6 = vpop.f32.mrb[40].mxu0 }
 0x9d6   : > { %v14033_v37 = vadd.f32 %v7575_v6, %v13963_v28  ;;  %v5841_v55 = vpop.f32.mrb[41].mxu0 }
 0x9d7   : > { %v14036_v38 = vadd.f32 %v13963_v28, %v5841_v55  ;;  %6242 = vrot.lane.b32.xlu1 %v8728_v15, %s9020_s12 }
 0x9d8   : > { %8733 = vtanh.f32 %v14033_v37 }
 0x9d9   : > { %8735 = vtanh.f32 %v14036_v38 }
 0x9da   : > { %v8730_v33 = vpop.eup %8729 }
 0x9db   : > { %6248 = vrot.lane.b32.xlu1 %v8730_v33, %s9020_s12  ;;  %v8732_v18 = vpop.eup %8731 }
 0x9dd   : > { %v7578_v42 = vpop.f32.mrb[42].mxu0 }
 0x9de   : > { %v14043_v45 = vadd.f32 %v7578_v42, %v13963_v28  ;;  %v5851_v7 = vpop.f32.mrb[43].mxu0 }
 0x9df   : > { %v14046_v43 = vadd.f32 %v13963_v28, %v5851_v7  ;;  %6246 = vrot.lane.b32.xlu1 %v8732_v18, %s9020_s12 }
 0x9e0   : > { %8737 = vtanh.f32 %v14043_v45 }
 0x9e1   : > { %8739 = vtanh.f32 %v14046_v43 }
 0x9e2   : > { %v8734_v46 = vpop.eup %8733 }
 0x9e3   : > { %6252 = vrot.lane.b32.xlu1 %v8734_v46, %s9020_s12  ;;  %v8736_v56 = vpop.eup %8735 }
 0x9e4   : > { %6250 = vrot.lane.b32.xlu0 %v8736_v56, %s9020_s12 }
 0x9e5   : > { %v7581_v8 = vpop.f32.mrb[44].mxu0 }
 0x9e6   : > { %v14053_v23 = vadd.f32 %v7581_v8, %v13963_v28  ;;  %v5861_v22 = vpop.f32.mrb[45].mxu0 }
 0x9e7   : > { %v14057_v32 = vadd.f32 %v13963_v28, %v5861_v22  ;;  %v7361_v22 = vmul.f32 -1.442695, %v13988_v31 }
 0x9e8   : > { %8741 = vtanh.f32 %v14053_v23 }
 0x9e9   : > { %8743 = vtanh.f32 %v14057_v32 }
 0x9ea   : > { %v8738_v41 = vpop.eup %8737 }
 0x9eb   : > { %6256 = vrot.lane.b32.xlu1 %v8738_v41, %s9020_s12  ;;  %v8740_v0 = vpop.eup %8739 }
 0x9ec   : > { %6254 = vrot.lane.b32.xlu0 %v8740_v0, %s9020_s12 }
 0x9ed   : > { %v7584_v58 = vpop.f32.mrb[46].mxu0 }
 0x9ee   : > { %v14069_v11 = vadd.f32 %v7584_v58, %v13963_v28  ;;  %v5871_v29 = vpop.f32.mrb[47].mxu0  ;;  %v7364_v58 = vmul.f32 -1.442695, %v13994_v24 }
 0x9ef   : > { %v14074_v53 = vadd.f32 %v13963_v28, %v5871_v29 }
 0x9f0   : > { %8745 = vtanh.f32 %v14069_v11 }
 0x9f1   : > { %8747 = vtanh.f32 %v14074_v53 }
 0x9f2   : > { %v8742_v16 = vpop.eup %8741 }
 0x9f3   : > { %6260 = vrot.lane.b32.xlu1 %v8742_v16, %s9020_s12  ;;  %v8744_v20 = vpop.eup %8743 }
 0x9f4   : > { %6258 = vrot.lane.b32.xlu0 %v8744_v20, %s9020_s12 }
 0x9f5   : > { %v7587_v9 = vpop.f32.mrb[48].mxu0 }
 0x9f6   : > { %v5881_v19 = vpop.f32.mrb[49].mxu0  ;;  %v14113_v55 = vadd.f32 %v7587_v9, %v13963_v28 }
 0x9f7   : > { %v14086_v48 = vadd.f32 %v13963_v28, %v5881_v19 }
 0x9f9   : > { %8749 = vtanh.f32 %v14086_v48 }
 0x9fa   : > { %v8746_v62 = vpop.eup %8745 }
 0x9fb   : > { %6264 = vrot.lane.b32.xlu0 %v8746_v62, %s9020_s12  ;;  %v8748_v52 = vpop.eup %8747 }
 0x9fd   : > { %v7590_v26 = vpop.f32.mrb[50].mxu0 }
 0x9fe   : > { %v14092_v2 = vadd.f32 %v7590_v26, %v13963_v28  ;;  %v5891_v10 = vpop.f32.mrb[51].mxu0 }
 0x9ff   : > { %v14096_v36 = vadd.f32 %v13963_v28, %v5891_v10  ;;  %6262 = vrot.lane.b32.xlu0 %v8748_v52, %s9020_s12  ;;  %v7366_v10 = vmul.f32 -1.442695, %v14003_v40 }
 0xa00   : > { %8751 = vtanh.f32 %v14092_v2 }
 0xa01   : > { %8753 = vpow2.f32 %v7358_v21 }
 0xa02   : > { %8755 = vpow2.f32 %v7357_v34 }
 0xa03   : > { %8757 = vtanh.f32 %v14096_v36  ;;  %v8750_v13 = vpop.eup %8749 }
 0xa04   : > { %6266 = vrot.lane.b32.xlu0 %v8750_v13, %s9020_s12  ;;  %8759 = vpow2.f32 %v7360_v63 }
 0xa05   : > { %v7593_v47 = vpop.f32.mrb[52].mxu0 }
 0xa06   : > { %v14104_v50 = vadd.f32 %v7593_v47, %v13963_v28  ;;  %v5901_v60 = vpop.f32.mrb[53].mxu0 }
 0xa07   : > { %v14108_v25 = vadd.f32 %v13963_v28, %v5901_v60 }
 0xa08   : > { %8761 = vtanh.f32 %v14104_v50 }
 0xa09   : > { %8763 = vpow2.f32 %v7359_v3 }
 0xa0a   : > { %v8752_v14 = vpop.eup %8751  ;;  %8765 = vtanh.f32 %v14108_v25 }
 0xa0b   : > { %v8754_v6 = vpop.eup %8753  ;;  %6272 = vrot.lane.b32.xlu0 %v8752_v14, %s9020_s12  ;;  %8767 = vpow2.f32 %v7362_v57 }
 0xa0c   : > { %v8756_v61 = vpop.eup %8755  ;;  %v6063_v18 = vadd.f32 1.0, %v8754_v6  ;;  %8769 = vtanh.f32 %v14113_v55 }
 0xa0d   : > { %v7596_v15 = vpop.f32.mrb[54].mxu0  ;;  %v8758_v33 = vpop.eup %8757  ;;  %v6062_v44 = vadd.f32 1.0, %v8756_v61 }
 0xa0e   : > { %v14118_v42 = vadd.f32 %v7596_v15, %v13963_v28  ;;  %v5911_v7 = vpop.f32.mrb[55].mxu0  ;;  %6270 = vrot.lane.b32.xlu1 %v8758_v33, %s9020_s12  ;;  %v8760_v8 = vpop.eup %8759 }
 0xa0f   : > { %v14124_v46 = vadd.f32 %v13963_v28, %v5911_v7  ;;  %v6065_v0 = vadd.f32 1.0, %v8760_v8 }
 0xa10   : > { %8771 = vtanh.f32 %v14118_v42 }
 0xa11   : > { %8773 = vrcp.f32 %v6063_v18 }
 0xa12   : > { %v8762_v56 = vpop.eup %8761  ;;  %8775 = vrcp.f32 %v6062_v44 }
 0xa13   : > { %v8764_v41 = vpop.eup %8763  ;;  %6276 = vrot.lane.b32.xlu1 %v8762_v56, %s9020_s12  ;;  %8777 = vtanh.f32 %v14124_v46 }
 0xa14   : > { %v8766_v27 = vpop.eup %8765  ;;  %v6064_v12 = vadd.f32 1.0, %v8764_v41  ;;  %8779 = vpow2.f32 %v7361_v22  ;;  %v7368_v22 = vmul.f32 -1.442695, %v14013_v17 }
 0xa15   : > { %v7599_v51 = vpop.f32.mrb[56].mxu0  ;;  %6274 = vrot.lane.b32.xlu0 %v8766_v27, %s9020_s12  ;;  %8781 = vpow2.f32 %v7364_v58  ;;  %v8768_v24 = vpop.eup %8767  ;;  %v7367_v27 = vmul.f32 -1.442695, %v14018_v39 }
 0xa16   : > { %v14131_v29 = vadd.f32 %v7599_v51, %v13963_v28  ;;  %v5921_v35 = vpop.f32.mrb[57].mxu0  ;;  %v8770_v54 = vpop.eup %8769 }
 0xa17   : > { %v14135_v31 = vadd.f32 %v13963_v28, %v5921_v35  ;;  %v6067_v28 = vadd.f32 1.0, %v8768_v24 }
 0xa18   : > { %8783 = vtanh.f32 %v14131_v29 }
 0xa19   : > { %8785 = vrcp.f32 %v6065_v0  ;;  %6268 = vrot.lane.b32.xlu0 %v8770_v54, %s9020_s12 }
 0xa1a   : > { %v8772_v16 = vpop.eup %8771  ;;  %8787 = vrcp.f32 %v6064_v12 }
 0xa1b   : > { %8789 = vtanh.f32 %v14135_v31  ;;  %6280 = vrot.lane.b32.xlu1 %v8772_v16, %s9020_s12  ;;  %v8774_v9 = vpop.eup %8773 }
 0xa1c   : > { %v8776_v19 = vpop.eup %8775  ;;  %8791 = vpow2.f32 %v7363_v4 }
 0xa1d   : > { %v6225_v20 = vpop.permute.xlu0 %6224  ;;  %v8778_v21 = vpop.eup %8777  ;;  %8793 = vrcp.f32 %v6067_v28 }
 0xa1e   : > { %v6319_v62 = vmul.f32 %v8774_v9, %v6225_v20  ;;  %v6223_v26 = vpop.permute.xlu1 %6222  ;;  %v8780_v63 = vpop.eup %8779  ;;  %8795 = vpow2.f32 %v7366_v10 }
 0xa1f   : > { %v6318_v52 = vmul.f32 %v8776_v19, %v6223_v26  ;;  %6278 = vrot.lane.b32.xlu1 %v8778_v21, %s9020_s12  ;;  %v8782_v3 = vpop.eup %8781  ;;  %v6066_v61 = vadd.f32 1.0, %v8780_v63  ;;  %8797 = vpow2.f32 %v7365_v49  ;;  %v7370_v49 = vmul.f32 -1.442695, %v14023_v59 }
 0xa20   : > { %v6357_v34 = vsel %vm3769_vm3, %v6319_v62, 0.0  ;;  %v6069_v18 = vadd.f32 1.0, %v8782_v3 }
 0xa21   : > { %v6358_v47 = vrot.slane %v6357_v34, 4  ;;  %v6350_v13 = vsel %vm3769_vm3, %v6318_v52, 0.0  ;;  %8799 = vrcp.f32 %v6066_v61 }
 0xa22   : > { %v6351_v60 = vrot.slane %v6350_v13, 4  ;;  %v8784_v14 = vpop.eup %8783  ;;  %8801 = vrcp.f32 %v6069_v18 }
 0xa23   : > { %v6359_v57 = vadd.f32 %v6358_v47, %v6357_v34  ;;  %v8786_v6 = vpop.eup %8785  ;;  %6284 = vrot.lane.b32.xlu0 %v8784_v14, %s9020_s12  ;;  %8803 = vpow2.f32 %v7368_v22 }
 0xa24   : > { %v6352_v40 = vadd.f32 %v6351_v60, %v6350_v13  ;;  %v8788_v5 = vpop.eup %8787  ;;  %8805 = vpow2.f32 %v7367_v27 }
 0xa25   : > { %v6360_v15 = vrot.slane %v6359_v57, 2  ;;  %v6229_v33 = vpop.permute.xlu0 %6228  ;;  %v8790_v7 = vpop.eup %8789 }
 0xa26   : > { %v6353_v44 = vrot.slane %v6352_v40, 2  ;;  %v6321_v8 = vmul.f32 %v8786_v6, %v6229_v33  ;;  %v6227_v56 = vpop.permute.xlu1 %6226  ;;  %6282 = vrot.lane.b32.xlu1 %v8790_v7, %s9020_s12  ;;  %v8792_v51 = vpop.eup %8791  ;;  %s9022_s12 = smov 16  }
 0xa27   : > { %v6361_v41 = vadd.f32 %v6360_v15, %v6359_v57  ;;  %v6320_v58 = vmul.f32 %v8788_v5, %v6227_v56  ;;  %v6068_v9 = vadd.f32 1.0, %v8792_v51  ;;  %v8794_v19 = vpop.eup %8793  ;;  %v7369_v5 = vmul.f32 -1.442695, %v14028_v1 }
 0xa28   : > { %v6354_v0 = vadd.f32 %v6353_v44, %v6352_v40  ;;  %v6371_v35 = vsel %vm3769_vm3, %v6321_v8, 0.0  ;;  %v8796_v26 = vpop.eup %8795  ;;  %v7372_v1 = vmul.f32 -1.442695, %v14033_v37 }
 0xa29   : > { %v6362_v12 = vrot.slane %v6361_v41, 1  ;;  %v6372_v24 = vrot.slane %v6371_v35, 4  ;;  %v6364_v54 = vsel %vm3769_vm3, %v6320_v58, 0.0  ;;  %v8798_v21 = vpop.eup %8797  ;;  %v6071_v47 = vadd.f32 1.0, %v8796_v26 }
 0xa2a   : > { %v6355_v4 = vrot.slane %v6354_v0, 1  ;;  %v6365_v16 = vrot.slane %v6364_v54, 4  ;;  %v6070_v3 = vadd.f32 1.0, %v8798_v21 }
 0xa2b   : > { %v6363_v17 = vadd.f32 %v6362_v12, %v6361_v41  ;;  %v6373_v20 = vadd.f32 %v6372_v24, %v6371_v35  ;;  %v8800_v57 = vpop.eup %8799 }
 0xa2c   : > { %v6356_v28 = vadd.f32 %v6355_v4, %v6354_v0  ;;  %v6366_v62 = vadd.f32 %v6365_v16, %v6364_v54  ;;  %v8802_v33 = vpop.eup %8801 }
 0xa2d   : > { %8807 = vtanh.f32 %v6363_v17  ;;  %v6374_v39 = vrot.slane %v6373_v20, 2  ;;  %v6233_v52 = vpop.permute.xlu0 %6232  ;;  %v8804_v44 = vpop.eup %8803 }
 0xa2e   : > { %8809 = vtanh.f32 %v6356_v28  ;;  %v6367_v10 = vrot.slane %v6366_v62, 2  ;;  %v6323_v63 = vmul.f32 %v8794_v19, %v6233_v52  ;;  %v8806_v56 = vpop.eup %8805  ;;  %v6073_v35 = vadd.f32 1.0, %v8804_v44 }
 0xa2f   : > { %8811 = vrcp.f32 %v6068_v9  ;;  %v6375_v34 = vadd.f32 %v6374_v39, %v6373_v20  ;;  %v6072_v17 = vadd.f32 1.0, %v8806_v56  ;;  %v7374_v52 = vmul.f32 -1.442695, %v14043_v45 }
 0xa30   : > { %v6368_v13 = vadd.f32 %v6367_v10, %v6366_v62  ;;  %v6385_v14 = vsel %vm3769_vm3, %v6323_v63, 0.0  ;;  %8813 = vpow2.f32 %v7370_v49  ;;  %v7371_v62 = vmul.f32 -1.442695, %v14036_v38 }
 0xa31   : > { %v6376_v60 = vrot.slane %v6375_v34, 1  ;;  %v6386_v61 = vrot.slane %v6385_v14, 4  ;;  %v6231_v40 = vpop.permute.xlu0 %6230  ;;  %8815 = vrcp.f32 %v6071_v47 }
 0xa32   : > { %v6369_v6 = vrot.slane %v6368_v13, 1  ;;  %v6322_v15 = vmul.f32 %v8800_v57, %v6231_v40  ;;  %8817 = vrcp.f32 %v6070_v3 }
 0xa33   : > { %v6377_v7 = vadd.f32 %v6376_v60, %v6375_v34  ;;  %v6387_v18 = vadd.f32 %v6386_v61, %v6385_v14  ;;  %v7373_v61 = vmul.f32 -1.442695, %v14046_v43 }
 0xa34   : > { %v6370_v59 = vadd.f32 %v6369_v6, %v6368_v13  ;;  %v6378_v8 = vsel %vm3769_vm3, %v6322_v15, 0.0 }
 0xa35   : > { %v6388_v22 = vrot.slane %v6387_v18, 2  ;;  %v6379_v41 = vrot.slane %v6378_v8, 4  ;;  %v6237_v58 = vpop.permute.xlu1 %6236 }
 0xa36   : > { %8819 = vtanh.f32 %v6370_v59  ;;  %v6325_v27 = vmul.f32 %v8802_v33, %v6237_v58  ;;  %v6235_v16 = vpop.permute.xlu0 %6234 }
 0xa37   : > { %v8808_v51 = vpop.eup %8807  ;;  %8821 = vpow2.f32 %v7369_v5  ;;  %v6389_v12 = vadd.f32 %v6388_v22, %v6387_v18  ;;  %v6380_v24 = vadd.f32 %v6379_v41, %v6378_v8 }
 0xa38   : > { %v8810_v0 = vpop.eup %8809  ;;  %8823 = vtanh.f32 %v6377_v7  ;;  %v6399_v4 = vsel %vm3769_vm3, %v6325_v27, 0.0 }
 0xa39   : > { %v8812_v54 = vpop.eup %8811  ;;  %v6648_v9 = vsel %vm6647_vm4, %v8808_v51, %v8810_v0  ;;  %v6381_v20 = vrot.slane %v6380_v24, 2  ;;  %v6400_v19 = vrot.slane %v6399_v4, 4  ;;  %8825 = vpow2.f32 %v7372_v1 }
 0xa3a   : > { %v6324_v28 = vmul.f32 %v8812_v54, %v6235_v16  ;;  %v6390_v37 = vrot.slane %v6389_v12, 1  ;;  %8827 = vrcp.f32 %v6073_v35  ;;  %v8814_v10 = vpop.eup %8813 }
 0xa3b   : > { %v6382_v26 = vadd.f32 %v6381_v20, %v6380_v24  ;;  %v6401_v39 = vadd.f32 %v6400_v19, %v6399_v4  ;;  %v8816_v34 = vpop.eup %8815  ;;  %8829 = vrcp.f32 %v6072_v17  ;;  %v6075_v6 = vadd.f32 1.0, %v8814_v10 }
 0xa3c   : > { %v6392_v21 = vsel %vm3769_vm3, %v6324_v28, 0.0  ;;  %v8818_v3 = vpop.eup %8817  ;;  %8831 = vpow2.f32 %v7371_v62  ;;  %v6391_v38 = vadd.f32 %v6390_v37, %v6389_v12  ;;  %v7376_v4 = vmul.f32 -1.442695, %v14053_v23 }
 0xa3d   : > { %v6393_v49 = vrot.slane %v6392_v21, 4  ;;  %v6383_v63 = vrot.slane %v6382_v26, 1  ;;  %v6402_v47 = vrot.slane %v6401_v39, 2  ;;  %v6241_v13 = vpop.permute.xlu1 %6240  ;;  %8833 = vpow2.f32 %v7374_v52 }
 0xa3e   : > { %v6327_v14 = vmul.f32 %v8816_v34, %v6241_v13  ;;  %v6239_v7 = vpop.permute.xlu0 %6238 }
 0xa3f   : > { %v6394_v60 = vadd.f32 %v6393_v49, %v6392_v21  ;;  %v6384_v40 = vadd.f32 %v6383_v63, %v6382_v26  ;;  %v6403_v5 = vadd.f32 %v6402_v47, %v6401_v39  ;;  %v6326_v56 = vmul.f32 %v8818_v3, %v6239_v7 }
 0xa40   : > { %v8820_v57 = vpop.eup %8819  ;;  %v6413_v33 = vsel %vm3769_vm3, %v6327_v14, 0.0  ;;  %v7375_v39 = vmul.f32 -1.442695, %v14057_v32 }
 0xa41   : > { %v8822_v45 = vpop.eup %8821  ;;  %v6395_v15 = vrot.slane %v6394_v60, 2  ;;  %v6650_v59 = vsel %vm6649_vm5, %v8820_v57, %v6648_v9  ;;  %8835 = vtanh.f32 %v6384_v40  ;;  %v6404_v44 = vrot.slane %v6403_v5, 1 }
 0xa42   : > { %v8824_v18 = vpop.eup %8823  ;;  %v6414_v8 = vrot.slane %v6413_v33, 4  ;;  %8837 = vtanh.f32 %v6391_v38  ;;  %v6074_v43 = vadd.f32 1.0, %v8822_v45  ;;  %v6406_v51 = vsel %vm3769_vm3, %v6326_v56, 0.0 }
 0xa43   : > { %v6396_v22 = vadd.f32 %v6395_v15, %v6394_v60  ;;  %v6652_v41 = vsel %vm6651_vm6, %v8824_v18, %v6650_v59  ;;  %8839 = vrcp.f32 %v6075_v6  ;;  %v8826_v1 = vpop.eup %8825  ;;  %v6407_v0 = vrot.slane %v6406_v51, 4 }
 0xa44   : > { %v6415_v58 = vadd.f32 %v6414_v8, %v6413_v33  ;;  %8841 = vpow2.f32 %v7373_v61  ;;  %v8828_v35 = vpop.eup %8827  ;;  %v6405_v12 = vadd.f32 %v6404_v44, %v6403_v5  ;;  %v6077_v19 = vadd.f32 1.0, %v8826_v1 }
 0xa45   : > { %v6397_v27 = vrot.slane %v6396_v22, 1  ;;  %v6245_v54 = vpop.permute.xlu1 %6244  ;;  %v6408_v9 = vadd.f32 %v6407_v0, %v6406_v51  ;;  %v8830_v20 = vpop.eup %8829  ;;  %8843 = vrcp.f32 %v6074_v43  ;;  %v7378_v15 = vmul.f32 -1.442695, %v14069_v11 }
 0xa46   : > { %v6416_v24 = vrot.slane %v6415_v58, 2  ;;  %v6329_v17 = vmul.f32 %v8828_v35, %v6245_v54  ;;  %v8832_v62 = vpop.eup %8831  ;;  %v7377_v11 = vmul.f32 -1.442695, %v14074_v53 }
 0xa47   : > { %v6398_v16 = vadd.f32 %v6397_v27, %v6396_v22  ;;  %v6409_v37 = vrot.slane %v6408_v9, 2  ;;  %v8834_v23 = vpop.eup %8833  ;;  %v6076_v47 = vadd.f32 1.0, %v8832_v62 }
 0xa48   : > { %v6417_v28 = vadd.f32 %v6416_v24, %v6415_v58  ;;  %v6427_v26 = vsel %vm3769_vm3, %v6329_v17, 0.0  ;;  %v6079_v59 = vadd.f32 1.0, %v8834_v23 }
 0xa49   : > { %8845 = vtanh.f32 %v6398_v16  ;;  %v6428_v10 = vrot.slane %v6427_v26, 4  ;;  %v6243_v52 = vpop.permute.xlu1 %6242  ;;  %v6410_v49 = vadd.f32 %v6409_v37, %v6408_v9 }
 0xa4a   : > { %8847 = vtanh.f32 %v6405_v12  ;;  %v6418_v21 = vrot.slane %v6417_v28, 1  ;;  %v6328_v34 = vmul.f32 %v8830_v20, %v6243_v52 }
 0xa4b   : > { %8849 = vpow2.f32 %v7376_v4  ;;  %v8836_v63 = vpop.eup %8835  ;;  %v6429_v3 = vadd.f32 %v6428_v10, %v6427_v26  ;;  %v6411_v60 = vrot.slane %v6410_v49, 1 }
 0xa4c   : > { %8851 = vrcp.f32 %v6077_v19  ;;  %v6419_v13 = vadd.f32 %v6418_v21, %v6417_v28  ;;  %v8838_v38 = vpop.eup %8837  ;;  %v6420_v14 = vsel %vm3769_vm3, %v6328_v34, 0.0  ;;  %v6654_v32 = vsel %vm6653_vm7, %v8836_v63, %v6652_v41 }
 0xa4d   : > { %v8840_v57 = vpop.eup %8839  ;;  %8853 = vpow2.f32 %v7375_v39  ;;  %v6430_v6 = vrot.slane %v6429_v3, 2  ;;  %v6421_v61 = vrot.slane %v6420_v14, 4  ;;  %v6249_v40 = vpop.permute.xlu1 %6248  ;;  %v6656_v5 = vsel %vm6655_vm8, %v8838_v38, %v6654_v32 }
 0xa4e   : > { %v8842_v45 = vpop.eup %8841  ;;  %8855 = vtanh.f32 %v6419_v13  ;;  %v6412_v33 = vadd.f32 %v6411_v60, %v6410_v49  ;;  %v6331_v7 = vmul.f32 %v8840_v57, %v6249_v40  ;;  %v7379_v63 = vmul.f32 -1.442695, %v14086_v48 }
 0xa4f   : > { %8857 = vrcp.f32 %v6076_v47  ;;  %v6431_v18 = vadd.f32 %v6430_v6, %v6429_v3  ;;  %v6422_v44 = vadd.f32 %v6421_v61, %v6420_v14  ;;  %v8844_v56 = vpop.eup %8843  ;;  %v6078_v22 = vadd.f32 1.0, %v8842_v45 }
 0xa50   : > { %8859 = vtanh.f32 %v6412_v33  ;;  %v6441_v8 = vsel %vm3769_vm3, %v6331_v7, 0.0  ;;  %v7382_v40 = vmul.f32 -1.442695, %v14092_v2 }
 0xa51   : > { %v6423_v41 = vrot.slane %v6422_v44, 2  ;;  %v6442_v43 = vrot.slane %v6441_v8, 4  ;;  %v6247_v58 = vpop.permute.xlu1 %6246  ;;  %8861 = vpow2.f32 %v7378_v15  ;;  %v6432_v1 = vrot.slane %v6431_v18, 1 }
 0xa52   : > { %v6330_v27 = vmul.f32 %v8844_v56, %v6247_v58  ;;  %8863 = vrcp.f32 %v6079_v59 }
 0xa53   : > { %v8846_v51 = vpop.eup %8845  ;;  %v6424_v35 = vadd.f32 %v6423_v41, %v6422_v44  ;;  %v6443_v12 = vadd.f32 %v6442_v43, %v6441_v8  ;;  %8865 = vrcp.f32 %v6078_v22  ;;  %v6433_v28 = vadd.f32 %v6432_v1, %v6431_v18 }
 0xa54   : > { %v8848_v0 = vpop.eup %8847  ;;  %v6658_v24 = vsel %vm6657_vm9, %v8846_v51, %v6656_v5  ;;  %v6434_v4 = vsel %vm3769_vm3, %v6330_v27, 0.0  ;;  %8867 = vpow2.f32 %v7377_v11  ;;  %v7381_v51 = vmul.f32 -1.442695, %v14096_v36 }
 0xa55   : > { %v8850_v54 = vpop.eup %8849  ;;  %v6660_v16 = vsel %vm6659_vm10, %v8848_v0, %v6658_v24  ;;  %v6425_v17 = vrot.slane %v6424_v35, 1  ;;  %v6444_v20 = vrot.slane %v6443_v12, 2  ;;  %v6435_v19 = vrot.slane %v6434_v4, 4  ;;  %v6253_v53 = vpop.permute.xlu1 %6252 }
 0xa56   : > { %v8852_v9 = vpop.eup %8851  ;;  %7608 = vmatprep.mubr.msk.f32.mxu0 %vm3769_vm3, %v6660_v16  ;;  %v6081_v26 = vadd.f32 1.0, %v8850_v54  ;;  %v6251_v49 = vpop.permute.xlu0 %6250  ;;  %v7384_v16 = vmul.f32 -1.442695, %v14104_v50  ;;  %v7383_v50 = vmul.f32 -1.442695, %v14108_v25 }
 0xa57   : > { %v6333_v62 = vmul.f32 %v8852_v9, %v6253_v53  ;;  %v8854_v37 = vpop.eup %8853  ;;  %v6426_v39 = vadd.f32 %v6425_v17, %v6424_v35  ;;  %v6445_v21 = vadd.f32 %v6444_v20, %v6443_v12  ;;  %v6436_v10 = vadd.f32 %v6435_v19, %v6434_v4 }
 0xa58   : > { %v8856_v52 = vpop.eup %8855  ;;  %v6080_v38 = vadd.f32 1.0, %v8854_v37 }
 0xa59   : > { %v6455_v23 = vsel %vm3769_vm3, %v6333_v62, 0.0  ;;  %v8858_v34 = vpop.eup %8857  ;;  %8869 = vtanh.f32 %v6426_v39  ;;  %v6437_v47 = vrot.slane %v6436_v10, 2  ;;  %v6446_v60 = vrot.slane %v6445_v21, 1 }
 0xa5a   : > { %v6456_v13 = vrot.slane %v6455_v23, 4  ;;  %v8860_v3 = vpop.eup %8859  ;;  %8871 = vtanh.f32 %v6433_v28  ;;  %v6332_v14 = vmul.f32 %v8858_v34, %v6251_v49 }
 0xa5b   : > { %8873 = vrcp.f32 %v6081_v26  ;;  %v6438_v32 = vadd.f32 %v6437_v47, %v6436_v10  ;;  %v6661_v57 = vsel %vm6647_vm4, %v8856_v52, %v8860_v3  ;;  %v8862_v61 = vpop.eup %8861  ;;  %v6447_v59 = vadd.f32 %v6446_v60, %v6445_v21 }
 0xa5c   : > { %v6457_v6 = vadd.f32 %v6456_v13, %v6455_v23  ;;  %v6448_v5 = vsel %vm3769_vm3, %v6332_v14, 0.0  ;;  %v8864_v45 = vpop.eup %8863  ;;  %8875 = vpow2.f32 %v7379_v63  ;;  %v6083_v8 = vadd.f32 1.0, %v8862_v61 }
 0xa5d   : > { %v6439_v48 = vrot.slane %v6438_v32, 1  ;;  %v6449_v33 = vrot.slane %v6448_v5, 4  ;;  %v6257_v7 = vpop.permute.xlu1 %6256  ;;  %8877 = vrcp.f32 %v6080_v38  ;;  %v8866_v44 = vpop.eup %8865 }
 0xa5e   : > { %v6458_v15 = vrot.slane %v6457_v6, 2  ;;  %v6335_v18 = vmul.f32 %v8864_v45, %v6257_v7  ;;  %v8868_v43 = vpop.eup %8867  ;;  %8879 = vpow2.f32 %v7382_v40  ;;  %v6255_v58 = vpop.permute.xlu0 %6254 }
 0xa5f   : > { %v6440_v56 = vadd.f32 %v6439_v48, %v6438_v32  ;;  %v6450_v41 = vadd.f32 %v6449_v33, %v6448_v5  ;;  %v6334_v0 = vmul.f32 %v8866_v44, %v6255_v58  ;;  %v6082_v12 = vadd.f32 1.0, %v8868_v43 }
 0xa60   : > { %v6459_v22 = vadd.f32 %v6458_v15, %v6457_v6  ;;  %v6469_v2 = vsel %vm3769_vm3, %v6335_v18, 0.0  ;;  %v7380_v32 = vmul.f32 -1.442695, %v14113_v55  ;;  %v7386_v15 = vmul.f32 -1.442695, %v14118_v42 }
 0xa61   : > { %8881 = vtanh.f32 %v6440_v56  ;;  %v6451_v11 = vrot.slane %v6450_v41, 2  ;;  %v6470_v1 = vrot.slane %v6469_v2, 4  ;;  %v6462_v17 = vsel %vm3769_vm3, %v6334_v0, 0.0 }
 0xa62   : > { %8883 = vtanh.f32 %v6447_v59  ;;  %v6460_v27 = vrot.slane %v6459_v22, 1  ;;  %v6463_v37 = vrot.slane %v6462_v17, 4 }
 0xa63   : > { %v8870_v35 = vpop.eup %8869  ;;  %8885 = vrcp.f32 %v6083_v8  ;;  %v6452_v24 = vadd.f32 %v6451_v11, %v6450_v41  ;;  %v6471_v54 = vadd.f32 %v6470_v1, %v6469_v2 }
 0xa64   : > { %v8872_v4 = vpop.eup %8871  ;;  %v6662_v9 = vsel %vm6649_vm5, %v8870_v35, %v6661_v57  ;;  %8887 = vpow2.f32 %v7381_v51  ;;  %v6461_v62 = vadd.f32 %v6460_v27, %v6459_v22  ;;  %v6464_v23 = vadd.f32 %v6463_v37, %v6462_v17 }
 0xa65   : > { %v8874_v20 = vpop.eup %8873  ;;  %v6663_v36 = vsel %vm6651_vm6, %v8872_v4, %v6662_v9  ;;  %v6453_v19 = vrot.slane %v6452_v24, 1  ;;  %v6472_v53 = vrot.slane %v6471_v54, 2  ;;  %v6261_v28 = vpop.permute.xlu1 %6260  ;;  %8889 = vrcp.f32 %v6082_v12 }
 0xa66   : > { %v6337_v26 = vmul.f32 %v8874_v20, %v6261_v28  ;;  %v8876_v39 = vpop.eup %8875  ;;  %8891 = vpow2.f32 %v7384_v16  ;;  %v6259_v34 = vpop.permute.xlu0 %6258  ;;  %v6465_v60 = vrot.slane %v6464_v23, 2  ;;  %v7385_v22 = vmul.f32 -1.442695, %v14124_v46 }
 0xa67   : > { %v6454_v21 = vadd.f32 %v6453_v19, %v6452_v24  ;;  %v6473_v10 = vadd.f32 %v6472_v53, %v6471_v54  ;;  %v8878_v52 = vpop.eup %8877  ;;  %v6084_v38 = vadd.f32 1.0, %v8876_v39  ;;  %v7388_v53 = vmul.f32 -1.442695, %v14131_v29 }
 0xa68   : > { %v6483_v49 = vsel %vm3769_vm3, %v6337_v26, 0.0  ;;  %v6336_v13 = vmul.f32 %v8878_v52, %v6259_v34  ;;  %v8880_v3 = vpop.eup %8879  ;;  %v6466_v5 = vadd.f32 %v6465_v60, %v6464_v23 }
 0xa69   : > { %8893 = vtanh.f32 %v6454_v21  ;;  %v6474_v63 = vrot.slane %v6473_v10, 1  ;;  %v6484_v47 = vrot.slane %v6483_v49, 4  ;;  %v6087_v56 = vadd.f32 1.0, %v8880_v3 }
 0xa6a   : > { %8895 = vtanh.f32 %v6461_v62  ;;  %v6476_v6 = vsel %vm3769_vm3, %v6336_v13, 0.0  ;;  %v6467_v18 = vrot.slane %v6466_v5, 1 }
 0xa6b   : > { %v8882_v14 = vpop.eup %8881  ;;  %v6485_v57 = vadd.f32 %v6484_v47, %v6483_v49  ;;  %v6475_v40 = vadd.f32 %v6474_v63, %v6473_v10  ;;  %v6477_v45 = vrot.slane %v6476_v6, 4  ;;  %8897 = vpow2.f32 %v7383_v50 }
 0xa6c   : > { %v8884_v61 = vpop.eup %8883  ;;  %v6664_v25 = vsel %vm6653_vm7, %v8882_v14, %v6663_v36  ;;  %8899 = vrcp.f32 %v6084_v38  ;;  %v6468_v43 = vadd.f32 %v6467_v18, %v6466_v5  ;;  %v7387_v50 = vmul.f32 -1.442695, %v14135_v31 }
 0xa6d   : > { %v8886_v48 = vpop.eup %8885  ;;  %v6665_v33 = vsel %vm6655_vm8, %v8884_v61, %v6664_v25  ;;  %v6486_v7 = vrot.slane %v6485_v57, 2  ;;  %v6265_v59 = vpop.permute.xlu0 %6264  ;;  %v6478_v55 = vadd.f32 %v6477_v45, %v6476_v6  ;;  %8901 = vpow2.f32 %v7380_v32 }
 0xa6e   : > { %v6339_v44 = vmul.f32 %v8886_v48, %v6265_v59  ;;  %v8888_v8 = vpop.eup %8887  ;;  %8903 = vtanh.f32 %v6475_v40 }
 0xa6f   : > { %v6487_v41 = vadd.f32 %v6486_v7, %v6485_v57  ;;  %v6479_v2 = vrot.slane %v6478_v55, 2  ;;  %v8890_v42 = vpop.eup %8889  ;;  %8905 = vpow2.f32 %v7386_v15  ;;  %v6086_v0 = vadd.f32 1.0, %v8888_v8 }
 0xa70   : > { %v6497_v58 = vsel %vm3769_vm3, %v6339_v44, 0.0  ;;  %v8892_v27 = vpop.eup %8891  ;;  %8907 = vtanh.f32 %v6468_v43 }
 0xa71   : > { %v6488_v51 = vrot.slane %v6487_v41, 1  ;;  %v6498_v11 = vrot.slane %v6497_v58, 4  ;;  %v6263_v1 = vpop.permute.xlu0 %6262  ;;  %v6480_v35 = vadd.f32 %v6479_v2, %v6478_v55  ;;  %8909 = vrcp.f32 %v6087_v56 }
 0xa72   : > { %v6338_v12 = vmul.f32 %v8890_v42, %v6263_v1  ;;  %8911 = vpow2.f32 %v7385_v22  ;;  %v6089_v37 = vadd.f32 1.0, %v8892_v27 }
 0xa73   : > { %v8894_v24 = vpop.eup %8893  ;;  %v6499_v54 = vadd.f32 %v6498_v11, %v6497_v58  ;;  %v6481_v4 = vrot.slane %v6480_v35, 1  ;;  %v6489_v17 = vadd.f32 %v6488_v51, %v6487_v41  ;;  %8913 = vrcp.f32 %v6086_v0 }
 0xa74   : > { %v8896_v46 = vpop.eup %8895  ;;  %v6490_v16 = vsel %vm3769_vm3, %v6338_v12, 0.0  ;;  %v6666_v9 = vsel %vm6657_vm9, %v8894_v24, %v6665_v33 }
 0xa75   : > { %v6500_v20 = vrot.slane %v6499_v54, 2  ;;  %v6491_v36 = vrot.slane %v6490_v16, 4  ;;  %v6667_v19 = vsel %vm6659_vm10, %v8896_v46, %v6666_v9  ;;  %v6482_v28 = vadd.f32 %v6481_v4, %v6480_v35  ;;  %v8898_v62 = vpop.eup %8897 }
 0xa76   : > { %7609 = vmatmul.mubr.msk.f32.vlgmr.msra.gmra.mrb[58].mxu0 %vm3769_vm3, %v6667_v19  ;;  %v8900_v21 = vpop.eup %8899  ;;  %v6267_v10 = vpop.permute.xlu0 %6266  ;;  %v6088_v63 = vadd.f32 1.0, %v8898_v62 }
 0xa77   : > { %v6501_v26 = vadd.f32 %v6500_v20, %v6499_v54  ;;  %v6492_v39 = vadd.f32 %v6491_v36, %v6490_v16  ;;  %8915 = vtanh.f32 %v6482_v28  ;;  %v8902_v52 = vpop.eup %8901  ;;  %v6340_v49 = vmul.f32 %v8900_v21, %v6267_v10 }
 0xa78   : > { %8917 = vtanh.f32 %v6489_v17  ;;  %v8904_v34 = vpop.eup %8903  ;;  %v6085_v60 = vadd.f32 1.0, %v8902_v52 }
 0xa79   : > { %v6493_v23 = vrot.slane %v6492_v39, 2  ;;  %8919 = vpow2.f32 %v7388_v53  ;;  %v6502_v29 = vrot.slane %v6501_v26, 1  ;;  %v8906_v47 = vpop.eup %8905  ;;  %v6504_v3 = vsel %vm3769_vm3, %v6340_v49, 0.0 }
 0xa7a   : > { %8921 = vrcp.f32 %v6089_v37  ;;  %v8908_v38 = vpop.eup %8907  ;;  %v6505_v14 = vrot.slane %v6504_v3, 4  ;;  %v6091_v45 = vadd.f32 1.0, %v8906_v47 }
 0xa7b   : > { %v6494_v13 = vadd.f32 %v6493_v23, %v6492_v39  ;;  %v8910_v32 = vpop.eup %8909  ;;  %8923 = vpow2.f32 %v7387_v50  ;;  %v6668_v31 = vsel %vm6647_vm4, %v8904_v34, %v8908_v38  ;;  %v6503_v25 = vadd.f32 %v6502_v29, %v6501_v26 }
 0xa7c   : > { %v8912_v61 = vpop.eup %8911  ;;  %8925 = vrcp.f32 %v6088_v63  ;;  %v6506_v40 = vadd.f32 %v6505_v14, %v6504_v3 }
 0xa7d   : > { %v6495_v57 = vrot.slane %v6494_v13, 1  ;;  %v6273_v6 = vpop.permute.xlu0 %6272  ;;  %v8914_v15 = vpop.eup %8913  ;;  %8927 = vrcp.f32 %v6085_v60  ;;  %v6090_v8 = vadd.f32 1.0, %v8912_v61 }
 0xa7e   : > { %v6343_v5 = vmul.f32 %v8910_v32, %v6273_v6  ;;  %v6507_v33 = vrot.slane %v6506_v40, 2 }
 0xa7f   : > { %v6496_v48 = vadd.f32 %v6495_v57, %v6494_v13 }
 0xa80   : > { %v6525_v7 = vsel %vm3769_vm3, %v6343_v5, 0.0  ;;  %v6271_v59 = vpop.permute.xlu1 %6270  ;;  %v6508_v56 = vadd.f32 %v6507_v33, %v6506_v40 }
 0xa81   : > { %8929 = vtanh.f32 %v6496_v48  ;;  %v6526_v18 = vrot.slane %v6525_v7, 4  ;;  %v6342_v55 = vmul.f32 %v8914_v15, %v6271_v59  ;;  %v8916_v44 = vpop.eup %8915 }
 0xa82   : > { %8931 = vtanh.f32 %v6503_v25  ;;  %v8918_v22 = vpop.eup %8917  ;;  %v6669_v2 = vsel %vm6649_vm5, %v8916_v44, %v6668_v31  ;;  %v6509_v42 = vrot.slane %v6508_v56, 1 }
 0xa83   : > { %8933 = vrcp.f32 %v6091_v45  ;;  %v6527_v41 = vadd.f32 %v6526_v18, %v6525_v7  ;;  %v6518_v43 = vsel %vm3769_vm3, %v6342_v55, 0.0  ;;  %v8920_v58 = vpop.eup %8919  ;;  %v6670_v11 = vsel %vm6651_vm6, %v8918_v22, %v6669_v2 }
 0xa84   : > { %v6519_v51 = vrot.slane %v6518_v43, 4  ;;  %v8922_v1 = vpop.eup %8921  ;;  %v6510_v35 = vadd.f32 %v6509_v42, %v6508_v56  ;;  %8935 = vrcp.f32 %v6090_v8  ;;  %v6093_v46 = vadd.f32 1.0, %v8920_v58 }
 0xa85   : > { %v6528_v27 = vrot.slane %v6527_v41, 2  ;;  %v6277_v0 = vpop.permute.xlu1 %6276  ;;  %v8924_v54 = vpop.eup %8923 }
 0xa86   : > { %v6520_v12 = vadd.f32 %v6519_v51, %v6518_v43  ;;  %v6345_v24 = vmul.f32 %v8922_v1, %v6277_v0  ;;  %v8926_v16 = vpop.eup %8925  ;;  %8937 = vtanh.f32 %v6510_v35  ;;  %v6092_v62 = vadd.f32 1.0, %v8924_v54 }
 0xa87   : > { %v6529_v4 = vadd.f32 %v6528_v27, %v6527_v41  ;;  %v6275_v20 = vpop.permute.xlu0 %6274  ;;  %v8928_v28 = vpop.eup %8927  ;;  %8939 = vrcp.f32 %v6093_v46 }
 0xa88   : > { %v6521_v9 = vrot.slane %v6520_v12, 2  ;;  %v6539_v17 = vsel %vm3769_vm3, %v6345_v24, 0.0  ;;  %v6344_v53 = vmul.f32 %v8926_v16, %v6275_v20  ;;  %8941 = vrcp.f32 %v6092_v62 }
 0xa89   : > { %v6530_v36 = vrot.slane %v6529_v4, 1  ;;  %v6540_v19 = vrot.slane %v6539_v17, 4 }
 0xa8a   : > { %v6522_v37 = vadd.f32 %v6521_v9, %v6520_v12  ;;  %v6532_v10 = vsel %vm3769_vm3, %v6344_v53, 0.0 }
 0xa8b   : > { %v8930_v26 = vpop.eup %8929  ;;  %v6531_v39 = vadd.f32 %v6530_v36, %v6529_v4  ;;  %v6541_v21 = vadd.f32 %v6540_v19, %v6539_v17  ;;  %v6533_v23 = vrot.slane %v6532_v10, 4  ;;  %v6269_v49 = vpop.permute.xlu0 %6268 }
 0xa8c   : > { %v8932_v52 = vpop.eup %8931  ;;  %v6523_v50 = vrot.slane %v6522_v37, 1  ;;  %v6671_v34 = vsel %vm6653_vm7, %v8930_v26, %v6670_v11  ;;  %v6341_v47 = vmul.f32 %v8928_v28, %v6269_v49 }
 0xa8d   : > { %v8934_v63 = vpop.eup %8933  ;;  %v6542_v29 = vrot.slane %v6541_v21, 2  ;;  %v6281_v13 = vpop.permute.xlu1 %6280  ;;  %v6672_v3 = vsel %vm6655_vm8, %v8932_v52, %v6671_v34  ;;  %v6534_v60 = vadd.f32 %v6533_v23, %v6532_v10  ;;  %8943 = vtanh.f32 %v6531_v39 }
 0xa8e   : > { %v6524_v38 = vadd.f32 %v6523_v50, %v6522_v37  ;;  %v6347_v14 = vmul.f32 %v8934_v63, %v6281_v13  ;;  %v6511_v57 = vsel %vm3769_vm3, %v6341_v47, 0.0  ;;  %v8936_v25 = vpop.eup %8935 }
 0xa8f   : > { %v6543_v32 = vadd.f32 %v6542_v29, %v6541_v21  ;;  %v6535_v6 = vrot.slane %v6534_v60, 2  ;;  %v6512_v31 = vrot.slane %v6511_v57, 4 }
 0xa90   : > { %8945 = vtanh.f32 %v6524_v38  ;;  %v6553_v61 = vsel %vm3769_vm3, %v6347_v14, 0.0  ;;  %v8938_v48 = vpop.eup %8937 }
 0xa91   : > { %v6544_v40 = vrot.slane %v6543_v32, 1  ;;  %v6554_v5 = vrot.slane %v6553_v61, 4  ;;  %v6279_v45 = vpop.permute.xlu1 %6278  ;;  %v6536_v15 = vadd.f32 %v6535_v6, %v6534_v60  ;;  %v6513_v33 = vadd.f32 %v6512_v31, %v6511_v57  ;;  %v8940_v56 = vpop.eup %8939 }
 0xa92   : > { %v6346_v7 = vmul.f32 %v8936_v25, %v6279_v45  ;;  %v6673_v18 = vsel %vm6657_vm9, %v8938_v48, %v6672_v3  ;;  %v8942_v27 = vpop.eup %8941  ;;  %v6781_v45 = vld [vmem:[%s14291_s8 + $0x10] sm:$0xff]  ;;  %v6782_v48 = vld [vmem:[%s14291_s8 + $0x18] sm:$0xff] }
 0xa93   : > { %v6555_v59 = vadd.f32 %v6554_v5, %v6553_v61  ;;  %v6537_v55 = vrot.slane %v6536_v15, 1  ;;  %v6514_v44 = vrot.slane %v6513_v33, 2  ;;  %v6545_v22 = vadd.f32 %v6544_v40, %v6543_v32  ;;  %v6780_v5 = vld [vmem:[%s14291_s8 + $0x8] sm:$0xff] }
 0xa94   : > { %v6546_v8 = vsel %vm3769_vm3, %v6346_v7, 0.0 }
 0xa95   : > { %v6556_v41 = vrot.slane %v6555_v59, 2  ;;  %v6547_v43 = vrot.slane %v6546_v8, 4  ;;  %v6285_v2 = vpop.permute.xlu0 %6284  ;;  %v6538_v58 = vadd.f32 %v6537_v55, %v6536_v15  ;;  %v6515_v42 = vadd.f32 %v6514_v44, %v6513_v33  ;;  %v6783_v33 = vld [vmem:[%s14291_s8 + $0x20] sm:$0xff] }
 0xa96   : > { %v6349_v51 = vmul.f32 %v8940_v56, %v6285_v2  ;;  %v8078_v15 = vpack.c.bf16 %v6781_v45, %v6780_v5  ;;  %v8082_v7 = vpack.c.bf16 %v6783_v33, %v6782_v48 }
 0xa97   : > { %v6557_v11 = vadd.f32 %v6556_v41, %v6555_v59  ;;  %v6548_v1 = vadd.f32 %v6547_v43, %v6546_v8  ;;  %8947 = vtanh.f32 %v6538_v58  ;;  %v6516_v0 = vrot.slane %v6515_v42, 1  ;;  %v8944_v24 = vpop.eup %8943  ;;  %v6606_v59 = vld [vmem:[%s14290_s7] sm:$0xff] }
 0xa98   : > { %v6567_v35 = vsel %vm3769_vm3, %v6349_v51, 0.0  ;;  %v6283_v12 = vpop.permute.xlu1 %6282  ;;  %8949 = vtanh.f32 %v6545_v22  ;;  %8079 = vmatprep.subr.bf16.mxu0 %v8078_v15 }
 0xa99   : > { %v6549_v54 = vrot.slane %v6548_v1, 2  ;;  %v6568_v46 = vrot.slane %v6567_v35, 4  ;;  %v6348_v4 = vmul.f32 %v8942_v27, %v6283_v12  ;;  %v6517_v9 = vadd.f32 %v6516_v0, %v6515_v42  ;;  %8081 = vmatpush3.bf16.msra.mxu0 %v8078_v15  ;;  %v6891_v27 = vld [vmem:[%s14292_s9 + $0x10] sm:$0xff] }
 0xa9a   : > { %v8946_v16 = vpop.eup %8945  ;;  %v6558_v17 = vrot.slane %v6557_v11, 1  ;;  %8083 = vmatprep.subr.bf16.mxu0 %v8082_v7 }
 0xa9b   : > { %v6550_v20 = vadd.f32 %v6549_v54, %v6548_v1  ;;  %v6569_v36 = vadd.f32 %v6568_v46, %v6567_v35  ;;  %v6560_v19 = vsel %vm3769_vm3, %v6348_v4, 0.0  ;;  %8951 = vtanh.f32 %v6517_v9  ;;  %v6890_v1 = vld [vmem:[%s14292_s9 + $0x8] sm:$0xff]  ;;  %v6779_v35 = vld [vmem:[%s14291_s8] sm:$0xff] }
 0xa9c   : > { %v6561_v53 = vrot.slane %v6560_v19, 4  ;;  %v6675_v28 = vsel %vm6647_vm4, %v8944_v24, %v8946_v16  ;;  %v6559_v26 = vadd.f32 %v6558_v17, %v6557_v11  ;;  %v8086_v0 = vpack.c.bf16 %v6891_v27, %v6890_v1 }
 0xa9d   : > { %v6551_v62 = vrot.slane %v6550_v20, 1  ;;  %v6570_v37 = vrot.slane %v6569_v36, 2  ;;  %8085 = vmatpush3.bf16.msra.mxu0 %v8082_v7  ;;  %v6787_v12 = vrot.slane %v6779_v35, %v15169_v30 }
 0xa9e   : > { %v6562_v39 = vadd.f32 %v6561_v53, %v6560_v19  ;;  %8087 = vmatprep.subr.bf16.mxu0 %v8086_v0 }
 0xa9f   : > { %v6552_v21 = vadd.f32 %v6551_v62, %v6550_v20  ;;  %v6571_v10 = vadd.f32 %v6570_v37, %v6569_v36  ;;  %v6889_v62 = vld [vmem:[%s14292_s9] sm:$0xff] }
 0xaa0   : > { %v6563_v52 = vrot.slane %v6562_v39, 2  ;;  %v6895_v37 = vrot.slane %v6889_v62, %v15169_v30 }
 0xaa1   : > { %8953 = vtanh.f32 %v6552_v21  ;;  %v6572_v50 = vrot.slane %v6571_v10, 1  ;;  %v8948_v23 = vpop.eup %8947 }
 0xaa2   : > { %8955 = vtanh.f32 %v6559_v26  ;;  %v6564_v49 = vadd.f32 %v6563_v52, %v6562_v39  ;;  %v8950_v34 = vpop.eup %8949  ;;  %v6676_v63 = vsel %vm6649_vm5, %v8948_v23, %v6675_v28 }
 0xaa3   : > { %v6677_v47 = vsel %vm6651_vm6, %v8950_v34, %v6676_v63  ;;  %v6573_v13 = vadd.f32 %v6572_v50, %v6571_v10 }
 0xaa4   : > { %v6565_v29 = vrot.slane %v6564_v49, 1 }
 0xaa5   : > { %v8952_v3 = vpop.eup %8951 }
 0xaa6   : > { %v6566_v38 = vadd.f32 %v6565_v29, %v6564_v49  ;;  %v6674_v60 = vsel %vm6659_vm10, %v8952_v3, %v6673_v18  ;;  %v6614_v18 = vrot.slane %v6606_v59, %v15169_v30 }
 0xaa7   : > { %7611 = vmatprep.mubr.msk.f32.mxu0 %vm3769_vm3, %v6674_v60 }
 0xaa8   : > { %8957 = vtanh.f32 %v6566_v38 }
 0xaa9   : > { %8959 = vtanh.f32 %v6573_v13 }
 0xaab   : > { %v8954_v14 = vpop.eup %8953 }
 0xaac   : > { %v8956_v32 = vpop.eup %8955  ;;  %v6678_v57 = vsel %vm6653_vm7, %v8954_v14, %v6677_v47 }
 0xaad   : > { %v6679_v6 = vsel %vm6655_vm8, %v8956_v32, %v6678_v57 }
 0xab2   : > { %v8958_v31 = vpop.eup %8957 }
 0xab3   : > { %v8960_v61 = vpop.eup %8959  ;;  %v6680_v25 = vsel %vm6657_vm9, %v8958_v31, %v6679_v6 }
 0xab4   : > { %v6681_v40 = vsel %vm6659_vm10, %v8960_v61, %v6680_v25 }
 0xab5   : > { %7612 = vmatmul.mubr.msk.f32.gmra.mrb[60].mxu0 %vm3769_vm3, %v6681_v40 }
 0xb49   : > { %v7610_v55 = vpop.f32.mrb[58].mxu0 }
 0xb4a   : > { %v6762_v44 = vadd.f32 %v7610_v55, %v6614_v18  ;;  %v6756_v8 = vpop.f32.mrb[59].mxu0 }
 0xb4b   : > { %v6757_v56 = vadd.f32 %v6756_v8, %v6614_v18 }
 0xb4d   : > { %8961 = vtanh.f32 %v6757_v56 }
 0xb4e   : > { %8963 = vtanh.f32 %v6762_v44 }
 0xb57   : > { %v8962_v22 = vpop.eup %8961 }
 0xb58   : > { %v8964_v41 = vpop.eup %8963  ;;  %7622 = vmatprep.mubr.msk.f32.mxu0 %vm3769_vm3, %v8962_v22 }
 0xb59   : > { %7623 = vmatmul.mubr.msk.f32.vlgmr.msra.gmra.mrb[62].mxu0 %vm3769_vm3, %v8964_v41 }
 0xb5a   : > { %8089 = vmatpush3.bf16.msra.mxu0 %v8086_v0 }
 0xb88   : > { %v7613_v43 = vpop.f32.mrb[60].mxu0 }
 0xb89   : > { %v6772_v2 = vadd.f32 %v7613_v43, %v6614_v18  ;;  %v6766_v58 = vpop.f32.mrb[61].mxu0 }
 0xb8a   : > { %v6767_v42 = vadd.f32 %v6766_v58, %v6614_v18 }
 0xb8c   : > { %8965 = vtanh.f32 %v6767_v42 }
 0xb8d   : > { %8967 = vtanh.f32 %v6772_v2 }
 0xb96   : > { %v8966_v51 = vpop.eup %8965 }
 0xb97   : > { %v8968_v11 = vpop.eup %8967  ;;  %7625 = vmatprep.mubr.msk.f32.mxu0 %vm3769_vm3, %v8966_v51 }
 0xb98   : > { %7626 = vmatmul.mubr.msk.f32.gmra.mrb[64].mxu0 %vm3769_vm3, %v8968_v11 }
 0xc2c   : > { %v7624_v24 = vpop.f32.mrb[62].mxu0 }
 0xc2d   : > { %v6872_v54 = vadd.f32 %v7624_v24, %v6787_v12  ;;  %v6866_v46 = vpop.f32.mrb[63].mxu0 }
 0xc2e   : > { %v6867_v4 = vadd.f32 %v6866_v46, %v6787_v12 }
 0xc30   : > { %8969 = vtanh.f32 %v6867_v4 }
 0xc31   : > { %8971 = vtanh.f32 %v6872_v54 }
 0xc3a   : > { %v8970_v16 = vpop.eup %8969 }
 0xc3b   : > { %v8972_v9 = vpop.eup %8971  ;;  %7632 = vmatprep.mubr.msk.f32.mxu0 %vm6896_vm11, %v8970_v16 }
 0xc3c   : > { %7633 = vmatmul.mubr.msk.f32.vlgmr.msra.gmra.mrb[66].mxu0 %vm6896_vm11, %v8972_v9 }
 0xc6b   : > { %v7627_v17 = vpop.f32.mrb[64].mxu0 }
 0xc6c   : > { %v6882_v20 = vadd.f32 %v7627_v17, %v6787_v12  ;;  %v6876_v36 = vpop.f32.mrb[65].mxu0 }
 0xc6d   : > { %v6877_v19 = vadd.f32 %v6876_v36, %v6787_v12 }
 0xc6f   : > { %8973 = vtanh.f32 %v6877_v19 }
 0xc70   : > { %8975 = vtanh.f32 %v6882_v20 }
 0xc79   : > { %v8974_v53 = vpop.eup %8973 }
 0xc7a   : > { %v8976_v28 = vpop.eup %8975  ;;  %7635 = vmatprep.mubr.msk.f32.mxu0 %vm6896_vm11, %v8974_v53 }
 0xc7b   : > { %7636 = vmatmul.mubr.msk.f32.gmra.mrb[68].mxu0 %vm6896_vm11, %v8976_v28 }
 0xd0f   : > { %v7634_v26 = vpop.f32.mrb[66].mxu0 }
 0xd10   : > { %v6981_v39 = vadd.f32 %v7634_v26, %v6895_v37  ;;  %v6975_v21 = vpop.f32.mrb[67].mxu0 }
 0xd11   : > { %v6976_v10 = vadd.f32 %v6975_v21, %v6895_v37 }
 0xd12   : > { %7000 = vrot.lane.b32.xlu0 %v6981_v39, %s9022_s12 }
 0xd13   : > { %6998 = vrot.lane.b32.xlu1 %v6976_v10, %s9022_s12 }
 0xd4e   : > { %v7637_v52 = vpop.f32.mrb[68].mxu0 }
 0xd4f   : > { %v6991_v50 = vadd.f32 %v7637_v52, %v6895_v37  ;;  %v6985_v23 = vpop.f32.mrb[69].mxu0 }
 0xd50   : > { %v6986_v49 = vadd.f32 %v6985_v23, %v6895_v37 }
 0xd51   : > { %7004 = vrot.lane.b32.xlu0 %v6991_v50, %s9022_s12 }
 0xd52   : > { %7002 = vrot.lane.b32.xlu1 %v6986_v49, %s9022_s12 }
 0xd84   : > { %v7001_v34 = vpop.permute.xlu0 %7000 }
 0xd85   : > { %v6999_v30 = vpop.permute.xlu1 %6998  ;;  %v7011_v29 = vsel %vm6896_vm11, %v8972_v9, %v7001_v34 }
 0xd86   : > { %v7010_v63 = vsel %vm6896_vm11, %v8970_v16, %v6999_v30  ;;  %7016 = vst.msk [vmem:[%s383_s18 + $0x8] sm:$0xff] %vm7014_vm12, %v7011_v29 }
 0xd87   : > { %7015 = vst.msk [vmem:[%s383_s18] sm:$0xff] %vm7014_vm12, %v7010_v63 }
 0xdc3   : > { %v7005_v47 = vpop.permute.xlu0 %7004 }
 0xdc4   : > { %v7003_v13 = vpop.permute.xlu1 %7002  ;;  %v7013_v38 = vsel %vm6896_vm11, %v8976_v28, %v7005_v47 }
 0xdc5   : > { %v7012_v3 = vsel %vm6896_vm11, %v8974_v53, %v7003_v13  ;;  %7018 = vst.msk [vmem:[%s383_s18 + $0x18] sm:$0xff] %vm7014_vm12, %v7013_v38 }
 0xdc6   : > { %7017 = vst.msk [vmem:[%s383_s18 + $0x10] sm:$0xff] %vm7014_vm12, %v7012_v3 }
 0xdc7 PF: > { %s20_s13 = sadd.s32 1, %s9015_s13  }
 0xdc8   : > { %p17_p5 = scmp.ge.s32.totalorder %s20_s13, 4  }
 0xdca   :  { %19 = sbr.rel (!%p17_p5) target bundleno = 1 (0x1), region = 93 }

</bundles_post_ra>
